<compile_context>
chip_gen: v7x
topology: tpu7x:2x2x1
jax: 0.10.0
libtpu: 0.0.40
codegen_flags: <defaults>
</compile_context>

<pallas_src>
import math

import jax
import jax.numpy as jnp
from jax import lax
from jax.experimental import pallas as pl
from jax.experimental.pallas import tpu as pltpu

HIDDEN = 768   # matches torch.nn.Linear(768, 1) / the (batch, 768) assert
FFN = 768      # synthetic feed-forward width for the stand-in encoder layer
LN_EPS = 1e-12

# Pack enough pairs per grid step that the matmul M dimension (TILE_P * S) is ~256
# rows (good tile for v6e/v7x's 256-wide MXU, and a multiple of 128 for v5e).
MAX_ROWS_PER_TILE = 256


def _layernorm(x, g, b):
    mu = jnp.mean(x, axis=-1, keepdims=True)
    var = jnp.mean((x - mu) ** 2, axis=-1, keepdims=True)
    return (x - mu) * lax.rsqrt(var + LN_EPS) * g + b


# ----------------------------------------------------------------------------
# Kernel 1: TILE_P (query, intent) pairs per grid step — transformer encoder
#           layer, mean pool over the sequence (torch.mean(output, axis=1)) and
#           Linear(768, 1) score, emitted as a lane-dense (1, TILE_P) row.
# ----------------------------------------------------------------------------
def encoder_score_kernel(x_ref, mb_ref,
                         wqkv_ref, bqkv_ref, wo_ref, bo_ref,
                         ln1g_ref, ln1b_ref,
                         w1_ref, b1_ref, w2_ref, b2_ref,
                         ln2g_ref, ln2b_ref,
                         ws_ref, bs_ref, o_ref):
    TP, S, H = x_ref.shape
    x = x_ref[...]                               # (TP, S, H) bf16
    x2d = x.reshape(TP * S, H)                   # bf16 rows for the MXU

    # Fused QKV projection: one (TP*S, H) @ (H, 3H) bf16 matmul, f32 accumulation.
    qkv = jnp.dot(x2d, wqkv_ref[...],
                  preferred_element_type=jnp.float32) + bqkv_ref[...]
    q = qkv[:, 0 * H:1 * H].reshape(TP, S, H)
    k = qkv[:, 1 * H:2 * H].reshape(TP, S, H)
    v = qkv[:, 2 * H:3 * H].reshape(TP, S, H)

    # Per-pair attention: bf16 operands into the MXU, scores/softmax kept in f32.
    scores = jnp.einsum('bqd,bkd->bqk',
                        q.astype(jnp.bfloat16), k.astype(jnp.bfloat16),
                        preferred_element_type=jnp.float32)
    scores = scores * (1.0 / math.sqrt(H)) + mb_ref[...]      # mb: (TP, 1, S) f32
    m = jnp.max(scores, axis=-1, keepdims=True)
    p = jnp.exp(scores - m)
    # EUP approximate reciprocal instead of a VALU divide.
    p = p * pl.reciprocal(jnp.sum(p, axis=-1, keepdims=True), approx=True)
    attn = jnp.einsum('bqk,bkd->bqd',
                      p.astype(jnp.bfloat16), v.astype(jnp.bfloat16),
                      preferred_element_type=jnp.float32)

    attn2d = attn.reshape(TP * S, H).astype(jnp.bfloat16)
    attn_out = jnp.dot(attn2d, wo_ref[...],
                       preferred_element_type=jnp.float32) + bo_ref[...]
    h1 = _layernorm(x2d.astype(jnp.float32) + attn_out,
                    ln1g_ref[...], ln1b_ref[...])              # f32

    ff = jnp.dot(h1.astype(jnp.bfloat16), w1_ref[...],
                 preferred_element_type=jnp.float32) + b1_ref[...]
    # TODO(synk): real BERT uses exact (erf) GELU; tanh-approx kept (matches in-file ref).
    ff = jax.nn.gelu(ff)
    ff = jnp.dot(ff.astype(jnp.bfloat16), w2_ref[...],
                 preferred_element_type=jnp.float32) + b2_ref[...]
    h2 = _layernorm(h1 + ff, ln2g_ref[...], ln2b_ref[...])     # (TP*S, H) f32

    # Mean pool over the full sequence (matches torch.mean(output, axis=1), which
    # also includes padded positions).
    pooled = jnp.mean(h2.reshape(TP, S, H), axis=1)            # (TP, H) f32

    # Linear(768, 1) head as a VPU multiply + lane reduce (no (H,1) MXU matvec),
    # stored as one lane-dense (1, TILE_P) row per grid step.
    score = jnp.sum(pooled * ws_ref[...], axis=-1)             # (TP,)
    o_ref[...] = score[None, :] + bs_ref[...]                  # (1, TP) f32


def encode_and_score(params, x, maskbias, tile_p=None):
    """x: (P, S, H) f32, maskbias: (P, 1, S) f32 -> scores (P,) f32."""
    P, S, H = x.shape
    if tile_p is None:
        tile_p = max(1, min(P, MAX_ROWS_PER_TILE // S))
    num_blocks = pl.cdiv(P, tile_p)
    P_pad = num_blocks * tile_p
    if P_pad != P:
        x = jnp.pad(x, ((0, P_pad - P), (0, 0), (0, 0)))
        maskbias = jnp.pad(maskbias, ((0, P_pad - P), (0, 0), (0, 0)))

    # bf16 activations / matmul weights at the kernel boundary; biases, LayerNorm
    # params, mask bias and the scoring row stay f32.
    x_bf = x.astype(jnp.bfloat16)
    wqkv = jnp.concatenate([params['wq'], params['wk'], params['wv']],
                           axis=1).astype(jnp.bfloat16)                 # (H, 3H)
    bqkv = jnp.concatenate([params['bq'], params['bk'], params['bv']], axis=1)
    wo = params['wo'].astype(jnp.bfloat16)
    w1 = params['w1'].astype(jnp.bfloat16)
    w2 = params['w2'].astype(jnp.bfloat16)
    ws_row = params['ws'].reshape(1, H)                                 # (1, H) f32

    # Grid-invariant weights: whole array resident in VMEM (constant window ->
    # fetched once, never re-DMA'd across grid steps; bf16 halves the footprint).
    wspec = pl.BlockSpec(memory_space=pltpu.MemorySpace.VMEM)

    out = pl.pallas_call(
        encoder_score_kernel,
        out_shape=jax.ShapeDtypeStruct((num_blocks, tile_p), jnp.float32),
        grid=(num_blocks,),
        in_specs=[
            pl.BlockSpec((tile_p, S, H), lambda b: (b, 0, 0)),   # x tile (pipelined)
            pl.BlockSpec((tile_p, 1, S), lambda b: (b, 0, 0)),   # mask-bias tile
        ] + [wspec] * 14,
        out_specs=pl.BlockSpec((1, tile_p), lambda b: (b, 0)),
        compiler_params=pltpu.CompilerParams(
            dimension_semantics=("parallel",),          # pairs are independent (v7x 2 TCs)
            vmem_limit_bytes=48 * 1024 * 1024),         # headroom for v7x's 64 MiB VMEM
    )(x_bf, maskbias,
      wqkv, bqkv, wo, params['bo'],
      params['ln1_g'], params['ln1_b'],
      w1, params['b1'], w2, params['b2'],
      params['ln2_g'], params['ln2_b'],
      ws_row, params['bs'])
    return out.reshape(P_pad)[:P]


# ----------------------------------------------------------------------------
# Kernel 2: log_softmax over similarity rows, diagonal loss and argmax "ok".
# ----------------------------------------------------------------------------
def logsoftmax_loss_kernel(sim_ref, loss_ref, ok_ref):
    s = sim_ref[...]                                           # (B, B) f32
    B = s.shape[0]
    m = jnp.max(s, axis=1, keepdims=True)
    lse = m + jnp.log(jnp.sum(jnp.exp(s - m), axis=1, keepdims=True))
    logsm = s - lse                                            # F.log_softmax(sim, dim=1)

    row = lax.broadcasted_iota(jnp.int32, (B, B), 0)
    col = lax.broadcasted_iota(jnp.int32, (B, B), 1)
    diag_sum = jnp.sum(jnp.where(row == col, logsm, 0.0))      # sum(sim * I)
    loss_ref[...] = jnp.reshape(-diag_sum, (1, 1))             # forward returns -loss

    rowmax = jnp.max(logsm, axis=1, keepdims=True)
    is_max = logsm >= rowmax
    first_idx = jnp.min(jnp.where(is_max, col, B), axis=1, keepdims=True)   # torch.max indices
    row_ids = lax.broadcasted_iota(jnp.int32, (B, 1), 0)
    ok = jnp.sum((first_idx == row_ids).astype(jnp.int32))
    ok_ref[...] = jnp.reshape(ok, (1, 1))


def loss_and_ok(sim):
    loss2d, ok2d = pl.pallas_call(
        logsoftmax_loss_kernel,
        out_shape=(jax.ShapeDtypeStruct((1, 1), jnp.float32),
                   jax.ShapeDtypeStruct((1, 1), jnp.int32)),
        in_specs=[pl.BlockSpec(memory_space=pltpu.MemorySpace.VMEM)],
        out_specs=(pl.BlockSpec(memory_space=pltpu.MemorySpace.VMEM),
                   pl.BlockSpec(memory_space=pltpu.MemorySpace.VMEM)),
    )(sim)
    return loss2d[0, 0], ok2d[0, 0]


# ----------------------------------------------------------------------------
# Glue: pair construction (repeat + cat), embedding lookup, full forward.
# ----------------------------------------------------------------------------
def _build_pairs(q_ids, q_attn, i_ids, i_attn):
    B, Lq = q_ids.shape
    Li = i_ids.shape[1]
    # pair p = i * B + j  ->  (query i repeated, intent j) as in the PyTorch loop
    ids_q = jnp.repeat(q_ids[:, None, :], B, axis=1)
    att_q = jnp.repeat(q_attn[:, None, :], B, axis=1)
    ids_i = jnp.broadcast_to(i_ids[None, :, :], (B, B, Li))
    att_i = jnp.broadcast_to(i_attn[None, :, :], (B, B, Li))
    ids = jnp.concatenate([ids_q, ids_i], axis=-1).reshape(B * B, Lq + Li)
    att = jnp.concatenate([att_q, att_i], axis=-1).reshape(B * B, Lq + Li)
    return ids, att


def cross_encoder_forward(params, q_ids, q_attn, i_ids, i_attn):
    B = q_ids.shape[0]
    ids, att = _build_pairs(q_ids, q_attn, i_ids, i_attn)
    P, S = ids.shape
    x = params['word_emb'][ids] + params['pos_emb'][None, :S, :]          # (P, S, H)
    maskbias = ((1.0 - att.astype(jnp.float32)) * -1e9).reshape(P, 1, S)  # (P, 1, S)
    scores = encode_and_score(params, x.astype(jnp.float32), maskbias)    # (P,)
    sim = scores.reshape(B, B)                                            # sim[i, j]
    neg_loss, ok = loss_and_ok(sim)
    return neg_loss, ok, sim


# ----------------------------------------------------------------------------
# Pure-JAX reference (same math, f32 compute on the same bf16-rounded weights
# and activations the kernel consumes) for a correctness check.
# ----------------------------------------------------------------------------
def _bf16(a):
    return a.astype(jnp.bfloat16).astype(jnp.float32)


def _ref_pair(p, x, mb):
    x = _bf16(x)
    q = x @ _bf16(p['wq']) + p['bq']
    k = x @ _bf16(p['wk']) + p['bk']
    v = x @ _bf16(p['wv']) + p['bv']
    sc = (q @ k.T) / math.sqrt(HIDDEN) + mb
    pr = jax.nn.softmax(sc, axis=-1)
    a = (pr @ v) @ _bf16(p['wo']) + p['bo']
    h1 = _layernorm(x + a, p['ln1_g'], p['ln1_b'])
    f = jax.nn.gelu(h1 @ _bf16(p['w1']) + p['b1']) @ _bf16(p['w2']) + p['b2']
    h2 = _layernorm(h1 + f, p['ln2_g'], p['ln2_b'])
    pooled = jnp.mean(h2, axis=0)
    return pooled @ p['ws'][:, 0] + p['bs'][0, 0]


def ref_forward(params, q_ids, q_attn, i_ids, i_attn):
    B = q_ids.shape[0]
    ids, att = _build_pairs(q_ids, q_attn, i_ids, i_attn)
    P, S = ids.shape
    x = params['word_emb'][ids] + params['pos_emb'][None, :S, :]
    mb = ((1.0 - att.astype(jnp.float32)) * -1e9).reshape(P, 1, S)
    scores = jax.vmap(lambda xb, mbb: _ref_pair(params, xb, mbb[0:1]))(x, mb)
    sim = scores.reshape(B, B)
    logsm = jax.nn.log_softmax(sim, axis=1)
    loss = jnp.sum(logsm * jnp.eye(B))
    ok = jnp.sum(jnp.argmax(logsm, axis=1) == jnp.arange(B))
    return -loss, ok, sim


def init_params(key, vocab, max_seq, hidden=HIDDEN, ffn=FFN):
    ks = jax.random.split(key, 9)
    scale = 0.02

    def nrm(k, shape):
        return (scale * jax.random.normal(k, shape)).astype(jnp.float32)

    zeros = lambda shape: jnp.zeros(shape, jnp.float32)
    ones = lambda shape: jnp.ones(shape, jnp.float32)
    return dict(
        word_emb=nrm(ks[0], (vocab, hidden)),
        pos_emb=nrm(ks[1], (max_seq, hidden)),
        wq=nrm(ks[2], (hidden, hidden)), bq=zeros((1, hidden)),
        wk=nrm(ks[3], (hidden, hidden)), bk=zeros((1, hidden)),
        wv=nrm(ks[4], (hidden, hidden)), bv=zeros((1, hidden)),
        wo=nrm(ks[5], (hidden, hidden)), bo=zeros((1, hidden)),
        ln1_g=ones((1, hidden)), ln1_b=zeros((1, hidden)),
        w1=nrm(ks[6], (hidden, ffn)), b1=zeros((1, ffn)),
        w2=nrm(ks[7], (ffn, hidden)), b2=zeros((1, hidden)),
        ln2_g=ones((1, hidden)), ln2_b=zeros((1, hidden)),
        ws=nrm(ks[8], (hidden, 1)), bs=zeros((1, 1)),
    )


if __name__ == "__main__":
    key = jax.random.PRNGKey(0)
    B, Lq, Li, VOCAB = 2, 4, 4, 64
    k_params, k_q, k_i = jax.random.split(key, 3)

    # TODO(synk): bert_model / tokenizer are external pretrained objects; stood in by
    # a deterministic single-layer transformer encoder initialized in-script.
    params = init_params(k_params, vocab=VOCAB, max_seq=Lq + Li)

    batch_query_ids = jax.random.randint(k_q, (B, Lq), 0, VOCAB, dtype=jnp.int32)
    batch_intent_ids = jax.random.randint(k_i, (B, Li), 0, VOCAB, dtype=jnp.int32)
    batch_query_attention = jnp.ones((B, Lq), jnp.int32).at[1, Lq - 1].set(0)
    batch_intent_attention = jnp.ones((B, Li), jnp.int32).at[0, Li - 1].set(0)

    neg_loss, ok, sim = cross_encoder_forward(
        params, batch_query_ids, batch_query_attention,
        batch_intent_ids, batch_intent_attention)
    jax.block_until_ready((neg_loss, ok, sim))

    ref_neg_loss, ref_ok, ref_sim = ref_forward(
        params, batch_query_ids, batch_query_attention,
        batch_intent_ids, batch_intent_attention)
    jax.block_until_ready((ref_neg_loss, ref_ok, ref_sim))

    assert jnp.all(jnp.isfinite(sim))
    assert jnp.allclose(sim, ref_sim, rtol=2e-2, atol=2e-2)
    assert jnp.allclose(neg_loss, ref_neg_loss, rtol=2e-2, atol=2e-2)

    # The argmax ("ok") count can only legitimately differ if two log-softmax entries
    # in a row are closer than the bf16-vs-f32 numerical gap; assert equality outside
    # that degenerate regime.
    logsm_ref = jax.nn.log_softmax(ref_sim, axis=1)
    srt = jnp.sort(logsm_ref, axis=1)
    margin = float(jnp.min(srt[:, -1] - srt[:, -2]))
    if margin > 2e-2:
        assert int(ok) == int(ref_ok)
    else:
        assert 0 <= int(ok) <= B

    print("KERNEL_OK")
</pallas_src>

<mosaic_0001>
module attributes {stable_mosaic.version = 11 : i64} {
  func.func @encoder_score_kernel(%arg0: i32, %arg1: memref<4x8x768xbf16, #tpu.memory_space<vmem>>, %arg2: memref<4x1x8xf32, #tpu.memory_space<vmem>>, %arg3: memref<768x2304xbf16, #tpu.memory_space<vmem>>, %arg4: memref<1x2304xf32, #tpu.memory_space<vmem>>, %arg5: memref<768x768xbf16, #tpu.memory_space<vmem>>, %arg6: memref<1x768xf32, #tpu.memory_space<vmem>>, %arg7: memref<1x768xf32, #tpu.memory_space<vmem>>, %arg8: memref<1x768xf32, #tpu.memory_space<vmem>>, %arg9: memref<768x768xbf16, #tpu.memory_space<vmem>>, %arg10: memref<1x768xf32, #tpu.memory_space<vmem>>, %arg11: memref<768x768xbf16, #tpu.memory_space<vmem>>, %arg12: memref<1x768xf32, #tpu.memory_space<vmem>>, %arg13: memref<1x768xf32, #tpu.memory_space<vmem>>, %arg14: memref<1x768xf32, #tpu.memory_space<vmem>>, %arg15: memref<1x768xf32, #tpu.memory_space<vmem>>, %arg16: memref<1x1xf32, #tpu.memory_space<vmem>>, %arg17: memref<1x4xf32, #tpu.memory_space<vmem>>) attributes {dimension_semantics = [#tpu.dimension_semantics<parallel>], iteration_bounds = array<i64: 1>, scalar_prefetch = 0 : i64, scratch_operands = 0 : i64, tpu.core_type = #tpu.core_type<tc>, window_params = [{transform_indices = @transform_0, window_bounds = array<i64: 4, 8, 768>}, {transform_indices = @transform_1, window_bounds = array<i64: 4, 1, 8>}, {pipeline_mode = #tpu.pipeline_mode<synchronous>, transform_indices = @transform_2, window_bounds = array<i64: 768, 2304>}, {pipeline_mode = #tpu.pipeline_mode<synchronous>, transform_indices = @transform_3, window_bounds = array<i64: 1, 2304>}, {pipeline_mode = #tpu.pipeline_mode<synchronous>, transform_indices = @transform_4, window_bounds = array<i64: 768, 768>}, {pipeline_mode = #tpu.pipeline_mode<synchronous>, transform_indices = @transform_5, window_bounds = array<i64: 1, 768>}, {pipeline_mode = #tpu.pipeline_mode<synchronous>, transform_indices = @transform_6, window_bounds = array<i64: 1, 768>}, {pipeline_mode = #tpu.pipeline_mode<synchronous>, transform_indices = @transform_7, window_bounds = array<i64: 1, 768>}, {pipeline_mode = #tpu.pipeline_mode<synchronous>, transform_indices = @transform_8, window_bounds = array<i64: 768, 768>}, {pipeline_mode = #tpu.pipeline_mode<synchronous>, transform_indices = @transform_9, window_bounds = array<i64: 1, 768>}, {pipeline_mode = #tpu.pipeline_mode<synchronous>, transform_indices = @transform_10, window_bounds = array<i64: 768, 768>}, {pipeline_mode = #tpu.pipeline_mode<synchronous>, transform_indices = @transform_11, window_bounds = array<i64: 1, 768>}, {pipeline_mode = #tpu.pipeline_mode<synchronous>, transform_indices = @transform_12, window_bounds = array<i64: 1, 768>}, {pipeline_mode = #tpu.pipeline_mode<synchronous>, transform_indices = @transform_13, window_bounds = array<i64: 1, 768>}, {pipeline_mode = #tpu.pipeline_mode<synchronous>, transform_indices = @transform_14, window_bounds = array<i64: 1, 768>}, {pipeline_mode = #tpu.pipeline_mode<synchronous>, transform_indices = @transform_15, window_bounds = array<i64: 1, 1>}, {transform_indices = @transform_16, window_bounds = array<i64: 1, 4>}]} {
    %c0 = arith.constant 0 : index
    %c0_0 = arith.constant 0 : index
    %c0_1 = arith.constant 0 : index
    %0 = vector.load %arg1[%c0, %c0_0, %c0_1] : memref<4x8x768xbf16, #tpu.memory_space<vmem>>, vector<4x8x768xbf16>
    %1 = vector.shape_cast %0 : vector<4x8x768xbf16> to vector<32x768xbf16>
    %c0_2 = arith.constant 0 : index
    %c0_3 = arith.constant 0 : index
    %2 = vector.load %arg3[%c0_2, %c0_3] : memref<768x2304xbf16, #tpu.memory_space<vmem>>, vector<768x2304xbf16>
    %cst = arith.constant dense<0.000000e+00> : vector<32x2304xf32>
    %3 = tpu.matmul %1, %2, %cst {dimension_numbers = #tpu.dot_dimension_numbers<[1], [0], [0], [1], [0, 0, 1, 1], [], []>} : vector<32x768xbf16>, vector<768x2304xbf16>, vector<32x2304xf32> -> vector<32x2304xf32>
    %c0_4 = arith.constant 0 : index
    %c0_5 = arith.constant 0 : index
    %4 = vector.load %arg4[%c0_4, %c0_5] : memref<1x2304xf32, #tpu.memory_space<vmem>>, vector<1x2304xf32>
    %5 = vector.broadcast %4 : vector<1x2304xf32> to vector<32x2304xf32>
    %6 = arith.addf %3, %5 : vector<32x2304xf32>
    %7 = vector.extract_strided_slice %6 {offsets = [0, 0], sizes = [32, 768], strides = [1, 1]} : vector<32x2304xf32> to vector<32x768xf32>
    %8 = vector.shape_cast %7 : vector<32x768xf32> to vector<4x8x768xf32>
    %9 = vector.extract_strided_slice %6 {offsets = [0, 768], sizes = [32, 768], strides = [1, 1]} : vector<32x2304xf32> to vector<32x768xf32>
    %10 = vector.shape_cast %9 : vector<32x768xf32> to vector<4x8x768xf32>
    %11 = vector.extract_strided_slice %6 {offsets = [0, 1536], sizes = [32, 768], strides = [1, 1]} : vector<32x2304xf32> to vector<32x768xf32>
    %12 = vector.shape_cast %11 : vector<32x768xf32> to vector<4x8x768xf32>
    %13 = arith.truncf %8 : vector<4x8x768xf32> to vector<4x8x768xbf16>
    %14 = arith.truncf %10 : vector<4x8x768xf32> to vector<4x8x768xbf16>
    "tpu.trace_start"() <{level = 10 : i32, message = "bqd,bkd->bqk"}> : () -> ()
    %cst_6 = arith.constant dense<0.000000e+00> : vector<4x8x8xf32>
    %15 = tpu.matmul %13, %14, %cst_6 {dimension_numbers = #tpu.dot_dimension_numbers<[2], [2], [1], [1], [0, 0, 0, 1, 1, 1], [0], [0]>} : vector<4x8x768xbf16>, vector<4x8x768xbf16>, vector<4x8x8xf32> -> vector<4x8x8xf32>
    "tpu.trace_stop"() : () -> ()
    %cst_7 = arith.constant 0.0360843912 : f32
    %16 = vector.broadcast %cst_7 : f32 to vector<4x8x8xf32>
    %17 = arith.mulf %15, %16 : vector<4x8x8xf32>
    %c0_8 = arith.constant 0 : index
    %c0_9 = arith.constant 0 : index
    %c0_10 = arith.constant 0 : index
    %18 = vector.load %arg2[%c0_8, %c0_9, %c0_10] : memref<4x1x8xf32, #tpu.memory_space<vmem>>, vector<4x1x8xf32>
    %19 = vector.broadcast %18 : vector<4x1x8xf32> to vector<4x8x8xf32>
    %20 = arith.addf %17, %19 : vector<4x8x8xf32>
    %cst_11 = arith.constant dense<0xFF800000> : vector<4x8xf32>
    %21 = vector.multi_reduction <maximumf>, %20, %cst_11 [2] : vector<4x8x8xf32> to vector<4x8xf32>
    %22 = vector.shape_cast %21 : vector<4x8xf32> to vector<4x8x1xf32>
    %23 = vector.broadcast %22 : vector<4x8x1xf32> to vector<4x8x8xf32>
    %24 = arith.subf %20, %23 : vector<4x8x8xf32>
    %25 = math.exp %24 : vector<4x8x8xf32>
    %cst_12 = arith.constant dense<0.000000e+00> : vector<4x8xf32>
    %26 = vector.multi_reduction <add>, %25, %cst_12 [2] : vector<4x8x8xf32> to vector<4x8xf32>
    %27 = vector.shape_cast %26 : vector<4x8xf32> to vector<4x8x1xf32>
    %28 = tpu.reciprocal %27 {approx = true} : vector<4x8x1xf32> -> vector<4x8x1xf32>
    %29 = vector.broadcast %28 : vector<4x8x1xf32> to vector<4x8x8xf32>
    %30 = arith.mulf %25, %29 : vector<4x8x8xf32>
    %31 = arith.truncf %30 : vector<4x8x8xf32> to vector<4x8x8xbf16>
    %32 = arith.truncf %12 : vector<4x8x768xf32> to vector<4x8x768xbf16>
    "tpu.trace_start"() <{level = 10 : i32, message = "bqk,bkd->bqd"}> : () -> ()
    %cst_13 = arith.constant dense<0.000000e+00> : vector<4x8x768xf32>
    %33 = tpu.matmul %31, %32, %cst_13 {dimension_numbers = #tpu.dot_dimension_numbers<[2], [1], [1], [2], [0, 0, 0, 1, 1, 2], [0], [0]>} : vector<4x8x8xbf16>, vector<4x8x768xbf16>, vector<4x8x768xf32> -> vector<4x8x768xf32>
    "tpu.trace_stop"() : () -> ()
    %34 = vector.shape_cast %33 : vector<4x8x768xf32> to vector<32x768xf32>
    %35 = arith.truncf %34 : vector<32x768xf32> to vector<32x768xbf16>
    %c0_14 = arith.constant 0 : index
    %c0_15 = arith.constant 0 : index
    %36 = vector.load %arg5[%c0_14, %c0_15] : memref<768x768xbf16, #tpu.memory_space<vmem>>, vector<768x768xbf16>
    %cst_16 = arith.constant dense<0.000000e+00> : vector<32x768xf32>
    %37 = tpu.matmul %35, %36, %cst_16 {dimension_numbers = #tpu.dot_dimension_numbers<[1], [0], [0], [1], [0, 0, 1, 1], [], []>} : vector<32x768xbf16>, vector<768x768xbf16>, vector<32x768xf32> -> vector<32x768xf32>
    %c0_17 = arith.constant 0 : index
    %c0_18 = arith.constant 0 : index
    %38 = vector.load %arg6[%c0_17, %c0_18] : memref<1x768xf32, #tpu.memory_space<vmem>>, vector<1x768xf32>
    %39 = vector.broadcast %38 : vector<1x768xf32> to vector<32x768xf32>
    %40 = arith.addf %37, %39 : vector<32x768xf32>
    %41 = arith.extf %1 : vector<32x768xbf16> to vector<32x768xf32>
    %42 = arith.addf %41, %40 : vector<32x768xf32>
    %c0_19 = arith.constant 0 : index
    %c0_20 = arith.constant 0 : index
    %43 = vector.load %arg7[%c0_19, %c0_20] : memref<1x768xf32, #tpu.memory_space<vmem>>, vector<1x768xf32>
    %c0_21 = arith.constant 0 : index
    %c0_22 = arith.constant 0 : index
    %44 = vector.load %arg8[%c0_21, %c0_22] : memref<1x768xf32, #tpu.memory_space<vmem>>, vector<1x768xf32>
    %cst_23 = arith.constant dense<0.000000e+00> : vector<32xf32>
    %45 = vector.multi_reduction <add>, %42, %cst_23 [1] : vector<32x768xf32> to vector<32xf32>
    %46 = vector.shape_cast %45 : vector<32xf32> to vector<32x1xf32>
    %cst_24 = arith.constant 7.680000e+02 : f32
    %47 = vector.broadcast %cst_24 : f32 to vector<32x1xf32>
    %48 = arith.divf %46, %47 : vector<32x1xf32>
    %49 = vector.broadcast %48 : vector<32x1xf32> to vector<32x768xf32>
    %50 = arith.subf %42, %49 : vector<32x768xf32>
    %51 = arith.mulf %50, %50 : vector<32x768xf32>
    %cst_25 = arith.constant dense<0.000000e+00> : vector<32xf32>
    %52 = vector.multi_reduction <add>, %51, %cst_25 [1] : vector<32x768xf32> to vector<32xf32>
    %53 = vector.shape_cast %52 : vector<32xf32> to vector<32x1xf32>
    %cst_26 = arith.constant 7.680000e+02 : f32
    %54 = vector.broadcast %cst_26 : f32 to vector<32x1xf32>
    %55 = arith.divf %53, %54 : vector<32x1xf32>
    %56 = vector.broadcast %48 : vector<32x1xf32> to vector<32x768xf32>
    %57 = arith.subf %42, %56 : vector<32x768xf32>
    %cst_27 = arith.constant 9.99999996E-13 : f32
    %58 = vector.broadcast %cst_27 : f32 to vector<32x1xf32>
    %59 = arith.addf %55, %58 : vector<32x1xf32>
    %60 = math.rsqrt %59 : vector<32x1xf32>
    %61 = vector.broadcast %60 : vector<32x1xf32> to vector<32x768xf32>
    %62 = arith.mulf %57, %61 : vector<32x768xf32>
    %63 = vector.broadcast %43 : vector<1x768xf32> to vector<32x768xf32>
    %64 = arith.mulf %62, %63 : vector<32x768xf32>
    %65 = vector.broadcast %44 : vector<1x768xf32> to vector<32x768xf32>
    %66 = arith.addf %64, %65 : vector<32x768xf32>
    %67 = arith.truncf %66 : vector<32x768xf32> to vector<32x768xbf16>
    %c0_28 = arith.constant 0 : index
    %c0_29 = arith.constant 0 : index
    %68 = vector.load %arg9[%c0_28, %c0_29] : memref<768x768xbf16, #tpu.memory_space<vmem>>, vector<768x768xbf16>
    %cst_30 = arith.constant dense<0.000000e+00> : vector<32x768xf32>
    %69 = tpu.matmul %67, %68, %cst_30 {dimension_numbers = #tpu.dot_dimension_numbers<[1], [0], [0], [1], [0, 0, 1, 1], [], []>} : vector<32x768xbf16>, vector<768x768xbf16>, vector<32x768xf32> -> vector<32x768xf32>
    %c0_31 = arith.constant 0 : index
    %c0_32 = arith.constant 0 : index
    %70 = vector.load %arg10[%c0_31, %c0_32] : memref<1x768xf32, #tpu.memory_space<vmem>>, vector<1x768xf32>
    %71 = vector.broadcast %70 : vector<1x768xf32> to vector<32x768xf32>
    %72 = arith.addf %69, %71 : vector<32x768xf32>
    %73 = arith.mulf %72, %72 : vector<32x768xf32>
    %74 = arith.mulf %72, %73 : vector<32x768xf32>
    %cst_33 = arith.constant 4.471500e-02 : f32
    %75 = vector.broadcast %cst_33 : f32 to vector<32x768xf32>
    %76 = arith.mulf %75, %74 : vector<32x768xf32>
    %77 = arith.addf %72, %76 : vector<32x768xf32>
    %cst_34 = arith.constant 0.797884583 : f32
    %78 = vector.broadcast %cst_34 : f32 to vector<32x768xf32>
    %79 = arith.mulf %78, %77 : vector<32x768xf32>
    %80 = math.tanh %79 : vector<32x768xf32>
    %cst_35 = arith.constant 1.000000e+00 : f32
    %81 = vector.broadcast %cst_35 : f32 to vector<32x768xf32>
    %82 = arith.addf %81, %80 : vector<32x768xf32>
    %cst_36 = arith.constant 5.000000e-01 : f32
    %83 = vector.broadcast %cst_36 : f32 to vector<32x768xf32>
    %84 = arith.mulf %83, %82 : vector<32x768xf32>
    %85 = arith.mulf %72, %84 : vector<32x768xf32>
    %86 = arith.truncf %85 : vector<32x768xf32> to vector<32x768xbf16>
    %c0_37 = arith.constant 0 : index
    %c0_38 = arith.constant 0 : index
    %87 = vector.load %arg11[%c0_37, %c0_38] : memref<768x768xbf16, #tpu.memory_space<vmem>>, vector<768x768xbf16>
    %cst_39 = arith.constant dense<0.000000e+00> : vector<32x768xf32>
    %88 = tpu.matmul %86, %87, %cst_39 {dimension_numbers = #tpu.dot_dimension_numbers<[1], [0], [0], [1], [0, 0, 1, 1], [], []>} : vector<32x768xbf16>, vector<768x768xbf16>, vector<32x768xf32> -> vector<32x768xf32>
    %c0_40 = arith.constant 0 : index
    %c0_41 = arith.constant 0 : index
    %89 = vector.load %arg12[%c0_40, %c0_41] : memref<1x768xf32, #tpu.memory_space<vmem>>, vector<1x768xf32>
    %90 = vector.broadcast %89 : vector<1x768xf32> to vector<32x768xf32>
    %91 = arith.addf %88, %90 : vector<32x768xf32>
    %92 = arith.addf %66, %91 : vector<32x768xf32>
    %c0_42 = arith.constant 0 : index
    %c0_43 = arith.constant 0 : index
    %93 = vector.load %arg13[%c0_42, %c0_43] : memref<1x768xf32, #tpu.memory_space<vmem>>, vector<1x768xf32>
    %c0_44 = arith.constant 0 : index
    %c0_45 = arith.constant 0 : index
    %94 = vector.load %arg14[%c0_44, %c0_45] : memref<1x768xf32, #tpu.memory_space<vmem>>, vector<1x768xf32>
    %cst_46 = arith.constant dense<0.000000e+00> : vector<32xf32>
    %95 = vector.multi_reduction <add>, %92, %cst_46 [1] : vector<32x768xf32> to vector<32xf32>
    %96 = vector.shape_cast %95 : vector<32xf32> to vector<32x1xf32>
    %cst_47 = arith.constant 7.680000e+02 : f32
    %97 = vector.broadcast %cst_47 : f32 to vector<32x1xf32>
    %98 = arith.divf %96, %97 : vector<32x1xf32>
    %99 = vector.broadcast %98 : vector<32x1xf32> to vector<32x768xf32>
    %100 = arith.subf %92, %99 : vector<32x768xf32>
    %101 = arith.mulf %100, %100 : vector<32x768xf32>
    %cst_48 = arith.constant dense<0.000000e+00> : vector<32xf32>
    %102 = vector.multi_reduction <add>, %101, %cst_48 [1] : vector<32x768xf32> to vector<32xf32>
    %103 = vector.shape_cast %102 : vector<32xf32> to vector<32x1xf32>
    %cst_49 = arith.constant 7.680000e+02 : f32
    %104 = vector.broadcast %cst_49 : f32 to vector<32x1xf32>
    %105 = arith.divf %103, %104 : vector<32x1xf32>
    %106 = vector.broadcast %98 : vector<32x1xf32> to vector<32x768xf32>
    %107 = arith.subf %92, %106 : vector<32x768xf32>
    %cst_50 = arith.constant 9.99999996E-13 : f32
    %108 = vector.broadcast %cst_50 : f32 to vector<32x1xf32>
    %109 = arith.addf %105, %108 : vector<32x1xf32>
    %110 = math.rsqrt %109 : vector<32x1xf32>
    %111 = vector.broadcast %110 : vector<32x1xf32> to vector<32x768xf32>
    %112 = arith.mulf %107, %111 : vector<32x768xf32>
    %113 = vector.broadcast %93 : vector<1x768xf32> to vector<32x768xf32>
    %114 = arith.mulf %112, %113 : vector<32x768xf32>
    %115 = vector.broadcast %94 : vector<1x768xf32> to vector<32x768xf32>
    %116 = arith.addf %114, %115 : vector<32x768xf32>
    %117 = vector.shape_cast %116 : vector<32x768xf32> to vector<4x8x768xf32>
    %cst_51 = arith.constant dense<0.000000e+00> : vector<4x768xf32>
    %118 = vector.multi_reduction <add>, %117, %cst_51 [1] : vector<4x8x768xf32> to vector<4x768xf32>
    %cst_52 = arith.constant 8.000000e+00 : f32
    %119 = vector.broadcast %cst_52 : f32 to vector<4x768xf32>
    %120 = arith.divf %118, %119 : vector<4x768xf32>
    %c0_53 = arith.constant 0 : index
    %c0_54 = arith.constant 0 : index
    %121 = vector.load %arg15[%c0_53, %c0_54] : memref<1x768xf32, #tpu.memory_space<vmem>>, vector<1x768xf32>
    %122 = vector.broadcast %121 : vector<1x768xf32> to vector<4x768xf32>
    %123 = arith.mulf %120, %122 : vector<4x768xf32>
    %cst_55 = arith.constant dense<0.000000e+00> : vector<4xf32>
    %124 = vector.multi_reduction <add>, %123, %cst_55 [1] : vector<4x768xf32> to vector<4xf32>
    %125 = vector.shape_cast %124 : vector<4xf32> to vector<1x4xf32>
    %c0_56 = arith.constant 0 : index
    %c0_57 = arith.constant 0 : index
    %126 = vector.load %arg16[%c0_56, %c0_57] : memref<1x1xf32, #tpu.memory_space<vmem>>, vector<1x1xf32>
    %127 = vector.broadcast %126 : vector<1x1xf32> to vector<1x4xf32>
    %128 = arith.addf %125, %127 : vector<1x4xf32>
    %c0_58 = arith.constant 0 : index
    %c0_59 = arith.constant 0 : index
    %129 = vector.load %arg17[%c0_58, %c0_59] : memref<1x4xf32, #tpu.memory_space<vmem>>, vector<1x4xf32>
    tpu.vector_store %arg17[%c0_58, %c0_59], %128 {strides = array<i32>} : memref<1x4xf32, #tpu.memory_space<vmem>>, vector<1x4xf32>,
    return
  }
  func.func @transform_0(%arg0: i32) -> (i32, i32, i32) {
    %c0_i32 = arith.constant 0 : i32
    %c0_i32_0 = arith.constant 0 : i32
    %c0_i32_1 = arith.constant 0 : i32
    return %arg0, %c0_i32, %c0_i32_0 : i32, i32, i32
  }
  func.func @transform_1(%arg0: i32) -> (i32, i32, i32) {
    %c0_i32 = arith.constant 0 : i32
    %c0_i32_0 = arith.constant 0 : i32
    %c0_i32_1 = arith.constant 0 : i32
    return %arg0, %c0_i32, %c0_i32_0 : i32, i32, i32
  }
  func.func @transform_2(%arg0: i32) -> (i32, i32) {
    %c0_i32 = arith.constant 0 : i32
    %c0_i32_0 = arith.constant 0 : i32
    %c0_i32_1 = arith.constant 0 : i32
    return %c0_i32, %c0_i32_0 : i32, i32
  }
  func.func @transform_3(%arg0: i32) -> (i32, i32) {
    %c0_i32 = arith.constant 0 : i32
    %c0_i32_0 = arith.constant 0 : i32
    %c0_i32_1 = arith.constant 0 : i32
    return %c0_i32, %c0_i32_0 : i32, i32
  }
  func.func @transform_4(%arg0: i32) -> (i32, i32) {
    %c0_i32 = arith.constant 0 : i32
    %c0_i32_0 = arith.constant 0 : i32
    %c0_i32_1 = arith.constant 0 : i32
    return %c0_i32, %c0_i32_0 : i32, i32
  }
  func.func @transform_5(%arg0: i32) -> (i32, i32) {
    %c0_i32 = arith.constant 0 : i32
    %c0_i32_0 = arith.constant 0 : i32
    %c0_i32_1 = arith.constant 0 : i32
    return %c0_i32, %c0_i32_0 : i32, i32
  }
  func.func @transform_6(%arg0: i32) -> (i32, i32) {
    %c0_i32 = arith.constant 0 : i32
    %c0_i32_0 = arith.constant 0 : i32
    %c0_i32_1 = arith.constant 0 : i32
    return %c0_i32, %c0_i32_0 : i32, i32
  }
  func.func @transform_7(%arg0: i32) -> (i32, i32) {
    %c0_i32 = arith.constant 0 : i32
    %c0_i32_0 = arith.constant 0 : i32
    %c0_i32_1 = arith.constant 0 : i32
    return %c0_i32, %c0_i32_0 : i32, i32
  }
  func.func @transform_8(%arg0: i32) -> (i32, i32) {
    %c0_i32 = arith.constant 0 : i32
    %c0_i32_0 = arith.constant 0 : i32
    %c0_i32_1 = arith.constant 0 : i32
    return %c0_i32, %c0_i32_0 : i32, i32
  }
  func.func @transform_9(%arg0: i32) -> (i32, i32) {
    %c0_i32 = arith.constant 0 : i32
    %c0_i32_0 = arith.constant 0 : i32
    %c0_i32_1 = arith.constant 0 : i32
    return %c0_i32, %c0_i32_0 : i32, i32
  }
  func.func @transform_10(%arg0: i32) -> (i32, i32) {
    %c0_i32 = arith.constant 0 : i32
    %c0_i32_0 = arith.constant 0 : i32
    %c0_i32_1 = arith.constant 0 : i32
    return %c0_i32, %c0_i32_0 : i32, i32
  }
  func.func @transform_11(%arg0: i32) -> (i32, i32) {
    %c0_i32 = arith.constant 0 : i32
    %c0_i32_0 = arith.constant 0 : i32
    %c0_i32_1 = arith.constant 0 : i32
    return %c0_i32, %c0_i32_0 : i32, i32
  }
  func.func @transform_12(%arg0: i32) -> (i32, i32) {
    %c0_i32 = arith.constant 0 : i32
    %c0_i32_0 = arith.constant 0 : i32
    %c0_i32_1 = arith.constant 0 : i32
    return %c0_i32, %c0_i32_0 : i32, i32
  }
  func.func @transform_13(%arg0: i32) -> (i32, i32) {
    %c0_i32 = arith.constant 0 : i32
    %c0_i32_0 = arith.constant 0 : i32
    %c0_i32_1 = arith.constant 0 : i32
    return %c0_i32, %c0_i32_0 : i32, i32
  }
  func.func @transform_14(%arg0: i32) -> (i32, i32) {
    %c0_i32 = arith.constant 0 : i32
    %c0_i32_0 = arith.constant 0 : i32
    %c0_i32_1 = arith.constant 0 : i32
    return %c0_i32, %c0_i32_0 : i32, i32
  }
  func.func @transform_15(%arg0: i32) -> (i32, i32) {
    %c0_i32 = arith.constant 0 : i32
    %c0_i32_0 = arith.constant 0 : i32
    %c0_i32_1 = arith.constant 0 : i32
    return %c0_i32, %c0_i32_0 : i32, i32
  }
  func.func @transform_16(%arg0: i32) -> (i32, i32) {
    %c0_i32 = arith.constant 0 : i32
    %c0_i32_0 = arith.constant 0 : i32
    return %arg0, %c0_i32 : i32, i32
  }
}

</mosaic_0001>

<bundles_post_ra>
// kernel: tpu_custom_call.1
= control target key start
LH: loop header
LB: loop body
LE: loop exit
PB: predicated region body
PF: predicated region fallthrough
CT: control target
= control target key end

     0   :  { %s23719_s0 = inlined_call_operand.hbm [shape: bf16[4,8,768], index: 0, kind: input, shape index: {}]   ;;  %s23720_s1 = inlined_call_operand.hbm [shape: f32[4,1,8], index: 1, kind: input, shape index: {}]   ;;  %s23721_s2 = inlined_call_operand.hbm [shape: bf16[768,2304], index: 2, kind: input, shape index: {}]   ;;  %s23722_s3 = inlined_call_operand.hbm [shape: f32[1,2304], index: 3, kind: input, shape index: {}]   ;;  %s23723_s4 = inlined_call_operand.hbm [shape: bf16[768,768], index: 4, kind: input, shape index: {}]   ;;  %s23724_s5 = inlined_call_operand.hbm [shape: f32[1,768], index: 5, kind: input, shape index: {}]   ;;  %s23725_s6 = inlined_call_operand.hbm [shape: f32[1,768], index: 6, kind: input, shape index: {}]   ;;  %s23726_s7 = inlined_call_operand.hbm [shape: f32[1,768], index: 7, kind: input, shape index: {}]   ;;  %s23727_s8 = inlined_call_operand.hbm [shape: bf16[768,768], index: 8, kind: input, shape index: {}]   ;;  %s23728_s9 = inlined_call_operand.hbm [shape: f32[1,768], index: 9, kind: input, shape index: {}]   ;;  %s23729_s10 = inlined_call_operand.hbm [shape: bf16[768,768], index: 10, kind: input, shape index: {}]   ;;  %s23730_s11 = inlined_call_operand.hbm [shape: f32[1,768], index: 11, kind: input, shape index: {}]   ;;  %s23731_s12 = inlined_call_operand.hbm [shape: f32[1,768], index: 12, kind: input, shape index: {}]   ;;  %s23732_s13 = inlined_call_operand.hbm [shape: f32[1,768], index: 13, kind: input, shape index: {}]   ;;  %s23733_s14 = inlined_call_operand.hbm [shape: f32[1,768], index: 14, kind: input, shape index: {}]   ;;  %s23734_s15 = inlined_call_operand.<no memory space> [shape: f32[1,1], index: 15, kind: input, shape index: {}]   ;;  %s23735_s16 = inlined_call_operand.hbm [shape: f32[1,4], index: 16, kind: output, shape index: {}]  }
   0x1   :  { %23760 = sst [smem:[#allocation55_spill]] %s23719_s0  ;;  %v21_v0 = vstv %s23734_s15 }
   0x2   :  { %22 = vst [vmem:[#allocation2] sm:$0x1] %v21_v0 }
   0x3   :  { %23 = vsyncpa [#allocation4], 0 }
   0x4   :  { %24 = vsyncpa [#allocation7], 0 }
   0x5   :  { %25 = vsyncpa [#allocation10], 0 }
   0x6   :  { %26 = vsyncpa [#allocation13], 0 }
   0x7   :  { %27 = vsyncpa [#allocation16], 0 }
   0x8   :  { %28 = vsyncpa [#allocation19], 0 }
   0x9   :  { %29 = vsyncpa [#allocation22], 0 }
   0xa   :  { %30 = vsyncpa [#allocation25], 0 }
   0xb   :  { %31 = vsyncpa [#allocation5], 0  ;;  %s21464_s23 = smov [#allocation6]   ;;  %s21094_s27 = scalar_lea.hbm %s23720_s1, 64 }
   0xc   :  { %s49_s24 = sshll.u32 %s21464_s23, 4  ;;  %p21095_p0 = scmp.ne.s32.totalorder %s23720_s1, %s21094_s27  ;;  %s50_s24 = int_to_ptr.vmem [resolvable:$true] %s49_s24 }
   0xd   :  { %p21098_p1 = scmp.lt.u32.totalorder %s21094_s27, %s23720_s1 }
   0xf   :  { %p21100_p2 = pnand %p21098_p1, %p21095_p0 }
  0x11   :  { %21103 = shalt.err (!%p21100_p2)
}
  0x12   :  { %s21104_s0 = scalar_lea.vmem %s50_s24, 64  ;;  %p21109_p4 = scmp.lt.s32.totalorder %s50_s24, %s50_s24 }
  0x13   :  { %p21105_p3 = scmp.ne.s32.totalorder %s50_s24, %s21104_s0  ;;  %p21110_p5 = scmp.lt.s32.totalorder %s21104_s0, %s21104_s0 }
  0x15   :  { %p21111_p6 = por %p21110_p5, %p21109_p4 }
  0x17   :  { %p21112_p7 = pnand %p21111_p6, %p21105_p3 }
  0x19   :  { %21115 = shalt.err (!%p21112_p7)
}
  0x1a   :  { %s21465_s17 = smov 16   ;;  %s21466_s18 = smov 1  }
  0x1b   :  { %55 = dma.hbm_to_vmem [thread:$0]  %s23720_s1, 64, %s50_s24, [#allocation7], %s21465_s17, %s21465_s17, %s21466_s18  }
  0x1c   :  { %s21467_s21 = smov [#allocation9]   ;;  %s21468_s23 = smov [#allocation12]  }
  0x1d   :  { %s74_s22 = sshll.u32 %s21467_s21, 4  ;;  %s96_s25 = sshll.u32 %s21468_s23, 4  ;;  %s75_s22 = int_to_ptr.vmem [resolvable:$true] %s74_s22  ;;  %s97_s25 = int_to_ptr.vmem [resolvable:$true] %s96_s25 }
  0x1e   :  { %s21116_s28 = scalar_lea.hbm %s23722_s3, 288 }
  0x1f   :  { %p21117_p8 = scmp.ne.s32.totalorder %s23722_s3, %s21116_s28  ;;  %p21120_p9 = scmp.lt.u32.totalorder %s21116_s28, %s23722_s3 }
  0x21   :  { %p21122_p10 = pnand %p21120_p9, %p21117_p8 }
  0x23   :  { %21125 = shalt.err (!%p21122_p10)
}
  0x24   :  { %s21126_s1 = scalar_lea.vmem %s75_s22, 288  ;;  %p21131_p12 = scmp.lt.s32.totalorder %s75_s22, %s75_s22 }
  0x25   :  { %p21127_p11 = scmp.ne.s32.totalorder %s75_s22, %s21126_s1  ;;  %p21132_p13 = scmp.lt.s32.totalorder %s21126_s1, %s21126_s1 }
  0x27   :  { %p21133_p0 = por %p21132_p13, %p21131_p12 }
  0x29   :  { %p21134_p1 = pnand %p21133_p0, %p21127_p11 }
  0x2b   :  { %21137 = shalt.err (!%p21134_p1)
}
  0x2c   :  { %77 = dma.hbm_to_vmem [thread:$0]  %s23722_s3, 288, %s75_s22, [#allocation10]  }
  0x2d   :  { %s21138_s20 = scalar_lea.hbm %s23724_s5, 96 }
  0x2e   :  { %p21139_p2 = scmp.ne.s32.totalorder %s23724_s5, %s21138_s20  ;;  %p21142_p3 = scmp.lt.u32.totalorder %s21138_s20, %s23724_s5 }
  0x30   :  { %p21144_p4 = pnand %p21142_p3, %p21139_p2 }
  0x32   :  { %21147 = shalt.err (!%p21144_p4)
}
  0x33   :  { %s21148_s28 = scalar_lea.vmem %s97_s25, 96  ;;  %p21153_p6 = scmp.lt.s32.totalorder %s97_s25, %s97_s25 }
  0x34   :  { %p21149_p5 = scmp.ne.s32.totalorder %s97_s25, %s21148_s28  ;;  %p21154_p7 = scmp.lt.s32.totalorder %s21148_s28, %s21148_s28 }
  0x36   :  { %p21155_p8 = por %p21154_p7, %p21153_p6 }
  0x38   :  { %p21156_p9 = pnand %p21155_p8, %p21149_p5 }
  0x3a   :  { %21159 = shalt.err (!%p21156_p9)
}
  0x3b   :  { %99 = dma.hbm_to_vmem [thread:$0]  %s23724_s5, 96, %s97_s25, [#allocation13]  }
  0x3c   :  { %s21469_s29 = smov [#allocation15]   ;;  %s21470_s30 = smov [#allocation18]  }
  0x3d   :  { %s116_s15 = sshll.u32 %s21469_s29, 4  ;;  %s138_s0 = sshll.u32 %s21470_s30, 4  ;;  %s117_s15 = int_to_ptr.vmem [resolvable:$true] %s116_s15  ;;  %s139_s0 = int_to_ptr.vmem [resolvable:$true] %s138_s0 }
  0x3e   :  { %s21160_s17 = scalar_lea.hbm %s23726_s7, 96 }
  0x3f   :  { %p21161_p10 = scmp.ne.s32.totalorder %s23726_s7, %s21160_s17  ;;  %p21164_p11 = scmp.lt.u32.totalorder %s21160_s17, %s23726_s7 }
  0x41   :  { %p21166_p12 = pnand %p21164_p11, %p21161_p10 }
  0x43   :  { %21169 = shalt.err (!%p21166_p12)
}
  0x44   :  { %s21170_s5 = scalar_lea.vmem %s117_s15, 96  ;;  %p21175_p0 = scmp.lt.s32.totalorder %s117_s15, %s117_s15 }
  0x45   :  { %p21171_p13 = scmp.ne.s32.totalorder %s117_s15, %s21170_s5  ;;  %p21176_p1 = scmp.lt.s32.totalorder %s21170_s5, %s21170_s5 }
  0x47   :  { %p21177_p2 = por %p21176_p1, %p21175_p0 }
  0x49   :  { %p21178_p3 = pnand %p21177_p2, %p21171_p13 }
  0x4b   :  { %21181 = shalt.err (!%p21178_p3)
}
  0x4c   :  { %119 = dma.hbm_to_vmem [thread:$0]  %s23726_s7, 96, %s117_s15, [#allocation16]  }
  0x4d   :  { %s21182_s28 = scalar_lea.hbm %s23728_s9, 96 }
  0x4e   :  { %p21183_p4 = scmp.ne.s32.totalorder %s23728_s9, %s21182_s28  ;;  %p21186_p5 = scmp.lt.u32.totalorder %s21182_s28, %s23728_s9 }
  0x50   :  { %p21188_p6 = pnand %p21186_p5, %p21183_p4 }
  0x52   :  { %21191 = shalt.err (!%p21188_p6)
}
  0x53   :  { %s21192_s1 = scalar_lea.vmem %s139_s0, 96  ;;  %p21197_p8 = scmp.lt.s32.totalorder %s139_s0, %s139_s0 }
  0x54   :  { %p21193_p7 = scmp.ne.s32.totalorder %s139_s0, %s21192_s1  ;;  %p21198_p9 = scmp.lt.s32.totalorder %s21192_s1, %s21192_s1 }
  0x56   :  { %p21199_p10 = por %p21198_p9, %p21197_p8 }
  0x58   :  { %p21200_p11 = pnand %p21199_p10, %p21193_p7 }
  0x5a   :  { %21203 = shalt.err (!%p21200_p11)
}
  0x5b   :  { %141 = dma.hbm_to_vmem [thread:$0]  %s23728_s9, 96, %s139_s0, [#allocation19]  }
  0x5c   :  { %s21471_s24 = smov [#allocation21]   ;;  %s21472_s18 = smov [#allocation24]  }
  0x5d   :  { %s160_s17 = sshll.u32 %s21471_s24, 4  ;;  %s180_s19 = sshll.u32 %s21472_s18, 4  ;;  %s161_s17 = int_to_ptr.vmem [resolvable:$true] %s160_s17  ;;  %s181_s19 = int_to_ptr.vmem [resolvable:$true] %s180_s19 }
  0x5e   :  { %s21204_s5 = scalar_lea.hbm %s23730_s11, 96 }
  0x5f   :  { %p21205_p12 = scmp.ne.s32.totalorder %s23730_s11, %s21204_s5  ;;  %p21208_p13 = scmp.lt.u32.totalorder %s21204_s5, %s23730_s11 }
  0x61   :  { %p21210_p0 = pnand %p21208_p13, %p21205_p12 }
  0x63   :  { %21213 = shalt.err (!%p21210_p0)
}
  0x64   :  { %s21214_s9 = scalar_lea.vmem %s161_s17, 96  ;;  %p21219_p2 = scmp.lt.s32.totalorder %s161_s17, %s161_s17 }
  0x65   :  { %p21215_p1 = scmp.ne.s32.totalorder %s161_s17, %s21214_s9  ;;  %p21220_p3 = scmp.lt.s32.totalorder %s21214_s9, %s21214_s9 }
  0x67   :  { %p21221_p4 = por %p21220_p3, %p21219_p2 }
  0x69   :  { %p21222_p5 = pnand %p21221_p4, %p21215_p1 }
  0x6b   :  { %21225 = shalt.err (!%p21222_p5)
}
  0x6c   :  { %163 = dma.hbm_to_vmem [thread:$0]  %s23730_s11, 96, %s161_s17, [#allocation22]  }
  0x6d   :  { %s21226_s29 = scalar_lea.hbm %s23732_s13, 96 }
  0x6e   :  { %p21227_p6 = scmp.ne.s32.totalorder %s23732_s13, %s21226_s29  ;;  %p21230_p7 = scmp.lt.u32.totalorder %s21226_s29, %s23732_s13 }
  0x70   :  { %p21232_p8 = pnand %p21230_p7, %p21227_p6 }
  0x72   :  { %21235 = shalt.err (!%p21232_p8)
}
  0x73   :  { %s21236_s24 = scalar_lea.vmem %s181_s19, 96  ;;  %p21241_p10 = scmp.lt.s32.totalorder %s181_s19, %s181_s19 }
  0x74   :  { %p21237_p9 = scmp.ne.s32.totalorder %s181_s19, %s21236_s24  ;;  %p21242_p11 = scmp.lt.s32.totalorder %s21236_s24, %s21236_s24 }
  0x76   :  { %p21243_p12 = por %p21242_p11, %p21241_p10 }
  0x78   :  { %p21244_p13 = pnand %p21243_p12, %p21237_p9 }
  0x7a   :  { %21247 = shalt.err (!%p21244_p13)
}
  0x7b   :  { %183 = dma.hbm_to_vmem [thread:$0]  %s23732_s13, 96, %s181_s19, [#allocation25]  }
  0x7c   :  { %s21473_s18 = smov [#allocation3]   ;;  %s23761_s25 = sld [smem:[#allocation55_spill]] }
  0x7d   :  { %s37_s20 = sshll.u32 %s21473_s18, 4  ;;  %s38_s20 = int_to_ptr.vmem [resolvable:$true] %s37_s20 }
  0x82   :  { %s21248_s23 = scalar_lea.hbm %s23761_s25, 1536 }
  0x83   :  { %p21249_p0 = scmp.ne.s32.totalorder %s23761_s25, %s21248_s23  ;;  %p21252_p1 = scmp.lt.u32.totalorder %s21248_s23, %s23761_s25 }
  0x85   :  { %p21254_p2 = pnand %p21252_p1, %p21249_p0 }
  0x87   :  { %21257 = shalt.err (!%p21254_p2)
}
  0x88   :  { %s21258_s28 = scalar_lea.vmem %s38_s20, 1536  ;;  %p21263_p4 = scmp.lt.s32.totalorder %s38_s20, %s38_s20 }
  0x89   :  { %p21259_p3 = scmp.ne.s32.totalorder %s38_s20, %s21258_s28  ;;  %p21264_p5 = scmp.lt.s32.totalorder %s21258_s28, %s21258_s28 }
  0x8b   :  { %p21265_p6 = por %p21264_p5, %p21263_p4 }
  0x8d   :  { %p21266_p7 = pnand %p21265_p6, %p21259_p3 }
  0x8f   :  { %21269 = shalt.err (!%p21266_p7)
}
  0x90   :  { %s21474_s13 = smov 384   ;;  %s21475_s19 = smov 24  }
  0x91   :  { %43 = dma.hbm_to_vmem [thread:$0]  %s23761_s25, 1536, %s38_s20, [#allocation4], %s21474_s13, %s21474_s13, %s21475_s19  }
  0x92   :  { %s21476_s29 = smov [#allocation8]   ;;  %s21270_s15 = scalar_lea.hbm %s23721_s2, 110592 }
  0x93   :  { %s61_s30 = sshll.u32 %s21476_s29, 4  ;;  %p21271_p8 = scmp.ne.s32.totalorder %s23721_s2, %s21270_s15  ;;  %s62_s30 = int_to_ptr.vmem [resolvable:$true] %s61_s30 }
  0x94   :  { %p21274_p9 = scmp.lt.u32.totalorder %s21270_s15, %s23721_s2 }
  0x96   :  { %p21276_p10 = pnand %p21274_p9, %p21271_p8 }
  0x98   :  { %21279 = shalt.err (!%p21276_p10)
}
  0x99   :  { %s21280_s21 = scalar_lea.vmem %s62_s30, 110592  ;;  %p21285_p12 = scmp.lt.s32.totalorder %s62_s30, %s62_s30 }
  0x9a   :  { %p21281_p11 = scmp.ne.s32.totalorder %s62_s30, %s21280_s21  ;;  %p21286_p13 = scmp.lt.s32.totalorder %s21280_s21, %s21280_s21 }
  0x9c   :  { %p21287_p0 = por %p21286_p13, %p21285_p12 }
  0x9e   :  { %p21288_p1 = pnand %p21287_p0, %p21281_p11 }
  0xa0   :  { %21291 = shalt.err (!%p21288_p1)
}
  0xa1   :  { %s21477_s20 = smov 1152   ;;  %s21478_s5 = smov 72  }
  0xa2   :  { %67 = dma.hbm_to_vmem [thread:$0]  %s23721_s2, 110592, %s62_s30, [#allocation7], %s21477_s20, %s21477_s20, %s21478_s5  }
  0xa3   :  { %s21479_s26 = smov [#allocation11]   ;;  %s21480_s9 = smov [#allocation14]  }
  0xa4   :  { %s83_s27 = sshll.u32 %s21479_s26, 4  ;;  %s106_s0 = sshll.u32 %s21480_s9, 4  ;;  %s84_s27 = int_to_ptr.vmem [resolvable:$true] %s83_s27  ;;  %s107_s0 = int_to_ptr.vmem [resolvable:$true] %s106_s0 }
  0xa5   :  { %s21292_s22 = scalar_lea.hbm %s23723_s4, 36864 }
  0xa6   :  { %p21293_p2 = scmp.ne.s32.totalorder %s23723_s4, %s21292_s22  ;;  %p21296_p3 = scmp.lt.u32.totalorder %s21292_s22, %s23723_s4 }
  0xa8   :  { %p21298_p4 = pnand %p21296_p3, %p21293_p2 }
  0xaa   :  { %21301 = shalt.err (!%p21298_p4)
}
  0xab   :  { %s21302_s2 = scalar_lea.vmem %s84_s27, 36864  ;;  %p21307_p6 = scmp.lt.s32.totalorder %s84_s27, %s84_s27 }
  0xac   :  { %p21303_p5 = scmp.ne.s32.totalorder %s84_s27, %s21302_s2  ;;  %p21308_p7 = scmp.lt.s32.totalorder %s21302_s2, %s21302_s2 }
  0xae   :  { %p21309_p8 = por %p21308_p7, %p21307_p6 }
  0xb0   :  { %p21310_p9 = pnand %p21309_p8, %p21303_p5 }
  0xb2   :  { %21313 = shalt.err (!%p21310_p9)
}
  0xb3   :  { %89 = dma.hbm_to_vmem [thread:$0]  %s23723_s4, 36864, %s84_s27, [#allocation10], %s21474_s13, %s21474_s13, %s21475_s19  }
  0xb4   :  { %s21314_s18 = scalar_lea.hbm %s23725_s6, 96 }
  0xb5   :  { %p21315_p10 = scmp.ne.s32.totalorder %s23725_s6, %s21314_s18  ;;  %p21318_p11 = scmp.lt.u32.totalorder %s21314_s18, %s23725_s6 }
  0xb7   :  { %p21320_p12 = pnand %p21318_p11, %p21315_p10 }
  0xb9   :  { %21323 = shalt.err (!%p21320_p12)
}
  0xba   :  { %s21324_s23 = scalar_lea.vmem %s107_s0, 96  ;;  %p21329_p0 = scmp.lt.s32.totalorder %s107_s0, %s107_s0 }
  0xbb   :  { %p21325_p13 = scmp.ne.s32.totalorder %s107_s0, %s21324_s23  ;;  %p21330_p1 = scmp.lt.s32.totalorder %s21324_s23, %s21324_s23 }
  0xbd   :  { %p21331_p2 = por %p21330_p1, %p21329_p0 }
  0xbf   :  { %p21332_p3 = pnand %p21331_p2, %p21325_p13 }
  0xc1   :  { %21335 = shalt.err (!%p21332_p3)
}
  0xc2   :  { %109 = dma.hbm_to_vmem [thread:$0]  %s23725_s6, 96, %s107_s0, [#allocation13]  }
  0xc3   :  { %s21481_s27 = smov [#allocation17]   ;;  %s21482_s28 = smov [#allocation20]  }
  0xc4   :  { %s125_s9 = sshll.u32 %s21481_s27, 4  ;;  %s147_s3 = sshll.u32 %s21482_s28, 4  ;;  %s126_s9 = int_to_ptr.vmem [resolvable:$true] %s125_s9  ;;  %s148_s3 = int_to_ptr.vmem [resolvable:$true] %s147_s3 }
  0xc5   :  { %s21336_s1 = scalar_lea.hbm %s23727_s8, 36864 }
  0xc6   :  { %p21337_p4 = scmp.ne.s32.totalorder %s23727_s8, %s21336_s1  ;;  %p21340_p5 = scmp.lt.u32.totalorder %s21336_s1, %s23727_s8 }
  0xc8   :  { %p21342_p6 = pnand %p21340_p5, %p21337_p4 }
  0xca   :  { %21345 = shalt.err (!%p21342_p6)
}
  0xcb   :  { %s21346_s6 = scalar_lea.vmem %s126_s9, 36864  ;;  %p21351_p8 = scmp.lt.s32.totalorder %s126_s9, %s126_s9 }
  0xcc   :  { %p21347_p7 = scmp.ne.s32.totalorder %s126_s9, %s21346_s6  ;;  %p21352_p9 = scmp.lt.s32.totalorder %s21346_s6, %s21346_s6 }
  0xce   :  { %p21353_p10 = por %p21352_p9, %p21351_p8 }
  0xd0   :  { %p21354_p11 = pnand %p21353_p10, %p21347_p7 }
  0xd2   :  { %21357 = shalt.err (!%p21354_p11)
}
  0xd3   :  { %131 = dma.hbm_to_vmem [thread:$0]  %s23727_s8, 36864, %s126_s9, [#allocation16], %s21474_s13, %s21474_s13, %s21475_s19  }
  0xd4   :  { %s21358_s18 = scalar_lea.hbm %s23729_s10, 36864 }
  0xd5   :  { %p21359_p12 = scmp.ne.s32.totalorder %s23729_s10, %s21358_s18  ;;  %p21362_p13 = scmp.lt.u32.totalorder %s21358_s18, %s23729_s10 }
  0xd7   :  { %p21364_p0 = pnand %p21362_p13, %p21359_p12 }
  0xd9   :  { %21367 = shalt.err (!%p21364_p0)
}
  0xda   :  { %s21368_s23 = scalar_lea.vmem %s148_s3, 36864  ;;  %p21373_p2 = scmp.lt.s32.totalorder %s148_s3, %s148_s3 }
  0xdb   :  { %p21369_p1 = scmp.ne.s32.totalorder %s148_s3, %s21368_s23  ;;  %p21374_p3 = scmp.lt.s32.totalorder %s21368_s23, %s21368_s23 }
  0xdd   :  { %p21375_p4 = por %p21374_p3, %p21373_p2 }
  0xdf   :  { %p21376_p5 = pnand %p21375_p4, %p21369_p1 }
  0xe1   :  { %21379 = shalt.err (!%p21376_p5)
}
  0xe2   :  { %153 = dma.hbm_to_vmem [thread:$0]  %s23729_s10, 36864, %s148_s3, [#allocation19], %s21474_s13, %s21474_s13, %s21475_s19  }
  0xe3   :  { %s21483_s26 = smov [#allocation23]   ;;  %s21484_s9 = smov [#allocation26]  }
  0xe4   :  { %s170_s27 = sshll.u32 %s21483_s26, 4  ;;  %s190_s28 = sshll.u32 %s21484_s9, 4  ;;  %s171_s27 = int_to_ptr.vmem [resolvable:$true] %s170_s27  ;;  %s191_s28 = int_to_ptr.vmem [resolvable:$true] %s190_s28 }
  0xe5   :  { %s21380_s1 = scalar_lea.hbm %s23731_s12, 96 }
  0xe6   :  { %p21381_p6 = scmp.ne.s32.totalorder %s23731_s12, %s21380_s1  ;;  %p21384_p7 = scmp.lt.u32.totalorder %s21380_s1, %s23731_s12 }
  0xe8   :  { %p21386_p8 = pnand %p21384_p7, %p21381_p6 }
  0xea   :  { %21389 = shalt.err (!%p21386_p8)
}
  0xeb   :  { %s21390_s10 = scalar_lea.vmem %s171_s27, 96  ;;  %p21395_p10 = scmp.lt.s32.totalorder %s171_s27, %s171_s27 }
  0xec   :  { %p21391_p9 = scmp.ne.s32.totalorder %s171_s27, %s21390_s10  ;;  %p21396_p11 = scmp.lt.s32.totalorder %s21390_s10, %s21390_s10 }
  0xee   :  { %p21397_p12 = por %p21396_p11, %p21395_p10 }
  0xf0   :  { %p21398_p13 = pnand %p21397_p12, %p21391_p9 }
  0xf2   :  { %21401 = shalt.err (!%p21398_p13)
}
  0xf3   :  { %173 = dma.hbm_to_vmem [thread:$0]  %s23731_s12, 96, %s171_s27, [#allocation22]  }
  0xf4   :  { %s21402_s0 = scalar_lea.hbm %s23733_s14, 96 }
  0xf5   :  { %p21403_p0 = scmp.ne.s32.totalorder %s23733_s14, %s21402_s0  ;;  %p21406_p1 = scmp.lt.u32.totalorder %s21402_s0, %s23733_s14 }
  0xf7   :  { %p21408_p2 = pnand %p21406_p1, %p21403_p0 }
  0xf9   :  { %21411 = shalt.err (!%p21408_p2)
}
  0xfa   :  { %s21412_s21 = scalar_lea.vmem %s191_s28, 96  ;;  %p21417_p4 = scmp.lt.s32.totalorder %s191_s28, %s191_s28 }
  0xfb   :  { %p21413_p3 = scmp.ne.s32.totalorder %s191_s28, %s21412_s21  ;;  %p21418_p5 = scmp.lt.s32.totalorder %s21412_s21, %s21412_s21 }
  0xfd   :  { %p21419_p6 = por %p21418_p5, %p21417_p4 }
  0xff   :  { %p21420_p7 = pnand %p21419_p6, %p21413_p3 }
 0x101   :  { %21423 = shalt.err (!%p21420_p7)
}
 0x102   :  { %193 = dma.hbm_to_vmem [thread:$0]  %s23733_s14, 96, %s191_s28, [#allocation25]  }
 0x103   :  { %21446 = dma.done.wait [#allocation4], 1536  }
 0x104   :  { %21447 = vsyncadd [#allocation4], 4294965760 }
 0x105   :  { %21448 = dma.done.wait [#allocation7], 110656  }
 0x106   :  { %21449 = vsyncadd [#allocation7], 4294856640 }
 0x107   :  { %21450 = dma.done.wait [#allocation10], 37152  }
 0x108   :  { %21451 = vsyncadd [#allocation10], 4294930144 }
 0x109   :  { %21452 = dma.done.wait [#allocation13], 192  }
 0x10a   :  { %21453 = vsyncadd [#allocation13], 4294967104 }
 0x10b   :  { %21454 = dma.done.wait [#allocation16], 36960  }
 0x10c   :  { %21455 = vsyncadd [#allocation16], 4294930336 }
 0x10d   :  { %21456 = dma.done.wait [#allocation19], 36960  }
 0x10e   :  { %21457 = vsyncadd [#allocation19], 4294930336 }
 0x10f   :  { %21458 = dma.done.wait [#allocation22], 192  }
 0x110   :  { %21459 = vsyncadd [#allocation22], 4294967104 }
 0x111   :  { %21460 = dma.done.wait [#allocation25], 192  }
 0x112   :  { %21461 = vsyncadd [#allocation25], 4294967104  ;;  %v18394_v1 = vld [vmem:[#allocation8 + $0x4] ss:$72 sps:$4 sm:$0xff]   ;;  %v18398_v3 = vld [vmem:[#allocation8] ss:$72 sps:$4 sm:$0xff]  }
 0x113   :  { %v18396_v2 = vld [vmem:[#allocation8 + $0x904] ss:$72 sps:$4 sm:$0xff]   ;;  %5594 = vmatprep.subr.bf16.mxu1 %v18394_v1  ;;  %v18399_v4 = vld [vmem:[#allocation8 + $0x900] ss:$72 sps:$4 sm:$0xff]   ;;  %v18400_v5 = vld [vmem:[#allocation8 + $0x94] ss:$72 sps:$4 sm:$0xff]  }
 0x114   :  { %5647 = vmatprep.subr.bf16.mxu0 %v18396_v2  ;;  %5595 = vmatpush1.bf16.msra.mxu1 %v18398_v3  ;;  %v18402_v6 = vld [vmem:[#allocation8 + $0x994] ss:$72 sps:$4 sm:$0xff]   ;;  %v18404_v7 = vld [vmem:[#allocation8 + $0x90] ss:$72 sps:$4 sm:$0xff]   ;;  %v18406_v9 = vld [vmem:[#allocation8 + $0x124] ss:$72 sps:$4 sm:$0xff]  }
 0x115   :  { %5648 = vmatpush1.bf16.msra.mxu0 %v18399_v4  ;;  %5596 = vmatprep.subr.bf16.mxu1 %v18400_v5  ;;  %v18405_v8 = vld [vmem:[#allocation8 + $0x990] ss:$72 sps:$4 sm:$0xff]   ;;  %v18408_v10 = vld [vmem:[#allocation8 + $0xa24] ss:$72 sps:$4 sm:$0xff]   ;;  %v18410_v11 = vld [vmem:[#allocation8 + $0x120] ss:$72 sps:$4 sm:$0xff]  }
 0x116   :  { %5649 = vmatprep.subr.bf16.mxu0 %v18402_v6  ;;  %v18411_v12 = vld [vmem:[#allocation8 + $0xa20] ss:$72 sps:$4 sm:$0xff]   ;;  %v18412_v13 = vld [vmem:[#allocation8 + $0x1b4] ss:$72 sps:$4 sm:$0xff]   ;;  %v18416_v15 = vld [vmem:[#allocation8 + $0x1b0] ss:$72 sps:$4 sm:$0xff]  }
 0x117   :  { %v18414_v14 = vld [vmem:[#allocation8 + $0xab4] ss:$72 sps:$4 sm:$0xff]   ;;  %v18417_v16 = vld [vmem:[#allocation8 + $0xab0] ss:$72 sps:$4 sm:$0xff]   ;;  %v18418_v17 = vld [vmem:[#allocation8 + $0x244] ss:$72 sps:$4 sm:$0xff]  }
 0x118   :  { %5597 = vmatpush1.bf16.msra.mxu1 %v18404_v7  ;;  %v18420_v18 = vld [vmem:[#allocation8 + $0xb44] ss:$72 sps:$4 sm:$0xff]   ;;  %v18422_v19 = vld [vmem:[#allocation8 + $0x240] ss:$72 sps:$4 sm:$0xff]   ;;  %v18424_v21 = vld [vmem:[#allocation8 + $0x2d4] ss:$72 sps:$4 sm:$0xff]  }
 0x119   :  { %5650 = vmatpush1.bf16.msra.mxu0 %v18405_v8  ;;  %5598 = vmatprep.subr.bf16.mxu1 %v18406_v9  ;;  %v18423_v20 = vld [vmem:[#allocation8 + $0xb40] ss:$72 sps:$4 sm:$0xff]   ;;  %v18426_v22 = vld [vmem:[#allocation8 + $0xbd4] ss:$72 sps:$4 sm:$0xff]   ;;  %v18428_v23 = vld [vmem:[#allocation8 + $0x2d0] ss:$72 sps:$4 sm:$0xff]  }
 0x11a   :  { %5651 = vmatprep.subr.bf16.mxu0 %v18408_v10  ;;  %v18429_v24 = vld [vmem:[#allocation8 + $0xbd0] ss:$72 sps:$4 sm:$0xff]   ;;  %v18430_v25 = vld [vmem:[#allocation8 + $0x364] ss:$72 sps:$4 sm:$0xff]   ;;  %v18434_v27 = vld [vmem:[#allocation8 + $0x360] ss:$72 sps:$4 sm:$0xff]  }
 0x11b   :  { %v18432_v26 = vld [vmem:[#allocation8 + $0xc64] ss:$72 sps:$4 sm:$0xff]   ;;  %v18435_v28 = vld [vmem:[#allocation8 + $0xc60] ss:$72 sps:$4 sm:$0xff]   ;;  %v18436_v29 = vld [vmem:[#allocation8 + $0x3f4] ss:$72 sps:$4 sm:$0xff]  }
 0x11c   :  { %5599 = vmatpush1.bf16.msra.mxu1 %v18410_v11  ;;  %v18438_v30 = vld [vmem:[#allocation8 + $0xcf4] ss:$72 sps:$4 sm:$0xff]   ;;  %v18440_v31 = vld [vmem:[#allocation8 + $0x3f0] ss:$72 sps:$4 sm:$0xff]   ;;  %v18442_v33 = vld [vmem:[#allocation8 + $0x484] ss:$72 sps:$4 sm:$0xff]  }
 0x11d   :  { %5652 = vmatpush1.bf16.msra.mxu0 %v18411_v12  ;;  %5600 = vmatprep.subr.bf16.mxu1 %v18412_v13  ;;  %v18441_v32 = vld [vmem:[#allocation8 + $0xcf0] ss:$72 sps:$4 sm:$0xff]   ;;  %v18444_v34 = vld [vmem:[#allocation8 + $0xd84] ss:$72 sps:$4 sm:$0xff]   ;;  %v18446_v35 = vld [vmem:[#allocation8 + $0x480] ss:$72 sps:$4 sm:$0xff]  }
 0x11e   :  { %5653 = vmatprep.subr.bf16.mxu0 %v18414_v14  ;;  %v18447_v36 = vld [vmem:[#allocation8 + $0xd80] ss:$72 sps:$4 sm:$0xff]   ;;  %v18448_v37 = vld [vmem:[#allocation8 + $0x514] ss:$72 sps:$4 sm:$0xff]   ;;  %v18452_v39 = vld [vmem:[#allocation8 + $0x510] ss:$72 sps:$4 sm:$0xff]  }
 0x11f   :  { %v18450_v38 = vld [vmem:[#allocation8 + $0xe14] ss:$72 sps:$4 sm:$0xff]   ;;  %v18453_v40 = vld [vmem:[#allocation8 + $0xe10] ss:$72 sps:$4 sm:$0xff]   ;;  %v18454_v41 = vld [vmem:[#allocation8 + $0x5a4] ss:$72 sps:$4 sm:$0xff]  }
 0x120   :  { %5601 = vmatpush1.bf16.msra.mxu1 %v18416_v15  ;;  %v18456_v42 = vld [vmem:[#allocation8 + $0xea4] ss:$72 sps:$4 sm:$0xff]   ;;  %v18458_v43 = vld [vmem:[#allocation8 + $0x5a0] ss:$72 sps:$4 sm:$0xff]   ;;  %v18460_v45 = vld [vmem:[#allocation8 + $0x634] ss:$72 sps:$4 sm:$0xff]  }
 0x121   :  { %5654 = vmatpush1.bf16.msra.mxu0 %v18417_v16  ;;  %5602 = vmatprep.subr.bf16.mxu1 %v18418_v17  ;;  %v18459_v44 = vld [vmem:[#allocation8 + $0xea0] ss:$72 sps:$4 sm:$0xff]   ;;  %v18462_v46 = vld [vmem:[#allocation8 + $0xf34] ss:$72 sps:$4 sm:$0xff]   ;;  %v18464_v47 = vld [vmem:[#allocation8 + $0x630] ss:$72 sps:$4 sm:$0xff]  }
 0x122   :  { %5655 = vmatprep.subr.bf16.mxu0 %v18420_v18  ;;  %v18465_v48 = vld [vmem:[#allocation8 + $0xf30] ss:$72 sps:$4 sm:$0xff]   ;;  %v242_v49 = vld [vmem:[#allocation3] sm:$0xff]  ;;  %v243_v51 = vld [vmem:[#allocation3 + $0x8] sm:$0xff]  ;;  %vm7665_vm0 = vcmask 1043456   ;;  %vm7589_vm1 = vcmask 64512  }
 0x123   :  { %v245_v50 = vld [vmem:[#allocation3 + $0x18] sm:$0xff]  ;;  %v246_v52 = vld [vmem:[#allocation3 + $0x20] sm:$0xff]  ;;  %v18466_v53 = vld [vmem:[#allocation8 + $0x6c4] ss:$72 sps:$4 sm:$0xff]   ;;  %vm16037_vm2 = vcmask 1041409   ;;  %vm16040_vm3 = vcmask 1042434  }
 0x124   :  { %5603 = vmatpush1.bf16.msra.mxu1 %v18422_v19  ;;  %v21767_v54 = vcombine.high %v242_v49, %v245_v50  ;;  %v21769_v55 = vcombine.high %v243_v51, %v246_v52  ;;  %v18468_v56 = vld [vmem:[#allocation8 + $0xfc4] ss:$72 sps:$4 sm:$0xff]   ;;  %v18470_v57 = vld [vmem:[#allocation8 + $0x6c0] ss:$72 sps:$4 sm:$0xff]   ;;  %v18472_v59 = vld [vmem:[#allocation8 + $0x754] ss:$72 sps:$4 sm:$0xff]   ;;  %v21773_v9 = vcombine.low %v242_v49, %v245_v50  ;;  %v21775_v12 = vcombine.low %v243_v51, %v246_v52 }
 0x125   :  { %5656 = vmatpush1.bf16.msra.mxu0 %v18423_v20  ;;  %5604 = vmatprep.subr.bf16.mxu1 %v18424_v21  ;;  %v18471_v58 = vld [vmem:[#allocation8 + $0xfc0] ss:$72 sps:$4 sm:$0xff]   ;;  %v18474_v60 = vld [vmem:[#allocation8 + $0x1054] ss:$72 sps:$4 sm:$0xff]   ;;  %v18476_v61 = vld [vmem:[#allocation8 + $0x750] ss:$72 sps:$4 sm:$0xff]  }
 0x126   :  { %5657 = vmatprep.subr.bf16.mxu0 %v18426_v22  ;;  %5626 = vmatprep.mubr.bf16.mxu1 %v21767_v54  ;;  %v18477_v62 = vld [vmem:[#allocation8 + $0x1050] ss:$72 sps:$4 sm:$0xff]   ;;  %v18478_v63 = vld [vmem:[#allocation8 + $0x7e4] ss:$72 sps:$4 sm:$0xff]   ;;  %v18482_v1 = vld [vmem:[#allocation8 + $0x7e0] ss:$72 sps:$4 sm:$0xff]  }
 0x127   :  { %5679 = vmatprep.mubr.bf16.mxu0 %v21769_v55  ;;  %v18480_v0 = vld [vmem:[#allocation8 + $0x10e4] ss:$72 sps:$4 sm:$0xff]   ;;  %v18483_v2 = vld [vmem:[#allocation8 + $0x10e0] ss:$72 sps:$4 sm:$0xff]   ;;  %v18484_v3 = vld [vmem:[#allocation8 + $0x874] ss:$72 sps:$4 sm:$0xff]  }
 0x128   :  { %5605 = vmatpush1.bf16.msra.mxu1 %v18428_v23  ;;  %v18486_v4 = vld [vmem:[#allocation8 + $0x1174] ss:$72 sps:$4 sm:$0xff]   ;;  %v18488_v5 = vld [vmem:[#allocation8 + $0x870] ss:$72 sps:$4 sm:$0xff]   ;;  %v18495_v7 = vld [vmem:[#allocation8 + $0x1204] ss:$72 sps:$4 sm:$0xff]  }
 0x129   :  { %5658 = vmatpush1.bf16.msra.mxu0 %v18429_v24  ;;  %5606 = vmatprep.subr.bf16.mxu1 %v18430_v25  ;;  %v18489_v6 = vld [vmem:[#allocation8 + $0x1170] ss:$72 sps:$4 sm:$0xff]   ;;  %v18498_v8 = vld [vmem:[#allocation8 + $0xc] ss:$72 sps:$4 sm:$0xff]   ;;  %v18493_v10 = vld [vmem:[#allocation8 + $0x1200] ss:$72 sps:$4 sm:$0xff]  }
 0x12a   :  { %5659 = vmatprep.subr.bf16.mxu0 %v18432_v26  ;;  %v18496_v11 = vld [vmem:[#allocation8 + $0x8] ss:$72 sps:$4 sm:$0xff]   ;;  %v18502_v13 = vld [vmem:[#allocation8 + $0x1294] ss:$72 sps:$4 sm:$0xff]   ;;  %v18503_v16 = vld [vmem:[#allocation8 + $0x98] ss:$72 sps:$4 sm:$0xff]  }
 0x12b   :  { %v18505_v14 = vld [vmem:[#allocation8 + $0x9c] ss:$72 sps:$4 sm:$0xff]   ;;  %v18500_v15 = vld [vmem:[#allocation8 + $0x1290] ss:$72 sps:$4 sm:$0xff]   ;;  %v18511_v18 = vld [vmem:[#allocation8 + $0x12c] ss:$72 sps:$4 sm:$0xff]  }
 0x12c   :  { %5607 = vmatpush1.bf16.msra.mxu1 %v18434_v27  ;;  %v18508_v17 = vld [vmem:[#allocation8 + $0x1324] ss:$72 sps:$4 sm:$0xff]   ;;  %v18506_v19 = vld [vmem:[#allocation8 + $0x1320] ss:$72 sps:$4 sm:$0xff]   ;;  %v18514_v21 = vld [vmem:[#allocation8 + $0x13b4] ss:$72 sps:$4 sm:$0xff]  }
 0x12d   :  { %5660 = vmatpush1.bf16.msra.mxu0 %v18435_v28  ;;  %5608 = vmatprep.subr.bf16.mxu1 %v18436_v29  ;;  %v18509_v20 = vld [vmem:[#allocation8 + $0x128] ss:$72 sps:$4 sm:$0xff]   ;;  %v18517_v22 = vld [vmem:[#allocation8 + $0x1bc] ss:$72 sps:$4 sm:$0xff]   ;;  %v18515_v24 = vld [vmem:[#allocation8 + $0x1b8] ss:$72 sps:$4 sm:$0xff]  }
 0x12e   :  { %5661 = vmatprep.subr.bf16.mxu0 %v18438_v30  ;;  %v18512_v23 = vld [vmem:[#allocation8 + $0x13b0] ss:$72 sps:$4 sm:$0xff]   ;;  %v18520_v25 = vld [vmem:[#allocation8 + $0x1444] ss:$72 sps:$4 sm:$0xff]   ;;  %v18518_v27 = vld [vmem:[#allocation8 + $0x1440] ss:$72 sps:$4 sm:$0xff]  }
 0x12f   :  { %v18523_v26 = vld [vmem:[#allocation8 + $0x24c] ss:$72 sps:$4 sm:$0xff]   ;;  %v18521_v28 = vld [vmem:[#allocation8 + $0x248] ss:$72 sps:$4 sm:$0xff]   ;;  %v18529_v30 = vld [vmem:[#allocation8 + $0x2dc] ss:$72 sps:$4 sm:$0xff]  }
 0x130   :  { %5609 = vmatpush1.bf16.msra.mxu1 %v18440_v31  ;;  %v18526_v29 = vld [vmem:[#allocation8 + $0x14d4] ss:$72 sps:$4 sm:$0xff]   ;;  %v248_v31 = vld [vmem:[#allocation3 + $0x30] sm:$0xff]  ;;  %v18539_v51 = vld [vmem:[#allocation8 + $0x3f8] ss:$72 sps:$4 sm:$0xff]   ;;  %vm16043_vm4 = vcmask 1043459  }
 0x131   :  { %5662 = vmatpush1.bf16.msra.mxu0 %v18441_v32  ;;  %5610 = vmatprep.subr.bf16.mxu1 %v18442_v33  ;;  %v251_v32 = vld [vmem:[#allocation3 + $0x48] sm:$0xff]  ;;  %v18536_v50 = vld [vmem:[#allocation8 + $0x15f0] ss:$72 sps:$4 sm:$0xff]   ;;  %s21486_s14 = smov [#allocation27]   ;;  %vm16113_vm5 = vcmask 24576  }
 0x132   :  { %5663 = vmatprep.subr.bf16.mxu0 %v18444_v34  ;;  %v21779_v33 = vcombine.high %v248_v31, %v251_v32  ;;  %v249_v34 = vld [vmem:[#allocation3 + $0x38] sm:$0xff]  ;;  %v18544_v52 = vld [vmem:[#allocation8 + $0x1684] ss:$72 sps:$4 sm:$0xff]   ;;  %s16121_s5 = sshll.u32 %s21486_s14, 4  ;;  %s16122_s5 = int_to_ptr.vmem [resolvable:$true] %s16121_s5 }
 0x133   :  { %s21424_s25 = scalar_lea.vmem %s16122_s5, 16  ;;  %s21428_s23 = scalar_lea.vmem %s16122_s5, 32 }
 0x134   :  { %5611 = vmatpush1.bf16.msra.mxu1 %v18446_v35  ;;  %v252_v35 = vld [vmem:[#allocation3 + $0x50] sm:$0xff]  ;;  %p21425_p8 = scmp.ne.s32.totalorder %s16122_s5, %s21424_s25  ;;  %p21429_p9 = scmp.lt.s32.totalorder %s16122_s5, %s16122_s5 }
 0x135   :  { %5664 = vmatpush1.bf16.msra.mxu0 %v18447_v36  ;;  %5612 = vmatprep.subr.bf16.mxu1 %v18448_v37  ;;  %v18524_v36 = vld [vmem:[#allocation8 + $0x14d0] ss:$72 sps:$4 sm:$0xff]   ;;  %p21430_p10 = scmp.lt.s32.totalorder %s21428_s23, %s21424_s25 }
 0x136   :  { %5665 = vmatprep.subr.bf16.mxu0 %v18450_v38  ;;  %v18527_v37 = vld [vmem:[#allocation8 + $0x2d8] ss:$72 sps:$4 sm:$0xff]   ;;  %v21781_v38 = vcombine.low %v248_v31, %v251_v32  ;;  %v18604_v31 = vld [vmem:[#allocation8 + $0x99c] ss:$72 sps:$4 sm:$0xff]  }
 0x137   :  { %v18607_v32 = vld [vmem:[#allocation8 + $0xa4] ss:$72 sps:$4 sm:$0xff]   ;;  %p21431_p11 = por %p21430_p10, %p21429_p9 }
 0x138   :  { %5613 = vmatpush1.bf16.msra.mxu1 %v18452_v39  ;;  %v21783_v39 = vcombine.high %v249_v34, %v252_v35 }
 0x139   :  { %5666 = vmatpush1.bf16.msra.mxu0 %v18453_v40  ;;  %5614 = vmatprep.subr.bf16.mxu1 %v18454_v41  ;;  %v21785_v40 = vcombine.low %v249_v34, %v252_v35  ;;  %v18532_v41 = vld [vmem:[#allocation8 + $0x1564] ss:$72 sps:$4 sm:$0xff]   ;;  %v18602_v35 = vld [vmem:[#allocation8 + $0x998] ss:$72 sps:$4 sm:$0xff]   ;;  %p21432_p12 = pnand %p21431_p11, %p21425_p8 }
 0x13a   :  { %5667 = vmatprep.subr.bf16.mxu0 %v18456_v42  ;;  %v18535_v42 = vld [vmem:[#allocation8 + $0x36c] ss:$72 sps:$4 sm:$0xff]  }
 0x13c   :  { %5615 = vmatpush1.bf16.msra.mxu1 %v18458_v43  ;;  %v18530_v43 = vld [vmem:[#allocation8 + $0x1560] ss:$72 sps:$4 sm:$0xff]  }
 0x13d   :  { %5668 = vmatpush1.bf16.msra.mxu0 %v18459_v44  ;;  %5616 = vmatprep.subr.bf16.mxu1 %v18460_v45  ;;  %v18533_v44 = vld [vmem:[#allocation8 + $0x368] ss:$72 sps:$4 sm:$0xff]  }
 0x13e   :  { %5669 = vmatprep.subr.bf16.mxu0 %v18462_v46  ;;  %v21791_v45 = vld [vmem:[#allocation3 + $0x10] sm:$0xff]  ;;  %v21793_v46 = vld [vmem:[#allocation3 + $0x28] sm:$0xff] }
 0x13f   :  { %v21797_v49 = vcombine.high %v21791_v45, %v21793_v46 }
 0x140   :  { %5617 = vmatpush1.bf16.msra.mxu1 %v18464_v47  ;;  %v18538_v47 = vld [vmem:[#allocation8 + $0x15f4] ss:$72 sps:$4 sm:$0xff]  }
 0x141   :  { %5670 = vmatpush1.bf16.msra.mxu0 %v18465_v48  ;;  %5618 = vmatprep.subr.bf16.mxu1 %v18466_v53  ;;  %v18541_v48 = vld [vmem:[#allocation8 + $0x3fc] ss:$72 sps:$4 sm:$0xff]   ;;  %v18547_v53 = vld [vmem:[#allocation8 + $0x48c] ss:$72 sps:$4 sm:$0xff]  }
 0x142   :  { %5671 = vmatprep.subr.bf16.mxu0 %v18468_v56  ;;  %v18542_v56 = vld [vmem:[#allocation8 + $0x1680] ss:$72 sps:$4 sm:$0xff]  }
 0x144   :  { %5619 = vmatpush1.bf16.msra.mxu1 %v18470_v57  ;;  %v18545_v57 = vld [vmem:[#allocation8 + $0x488] ss:$72 sps:$4 sm:$0xff]  }
 0x145   :  { %5672 = vmatpush1.bf16.msra.mxu0 %v18471_v58  ;;  %5620 = vmatprep.subr.bf16.mxu1 %v18472_v59  ;;  %v18550_v58 = vld [vmem:[#allocation8 + $0x1714] ss:$72 sps:$4 sm:$0xff]  }
 0x146   :  { %5673 = vmatprep.subr.bf16.mxu0 %v18474_v60  ;;  %v18553_v59 = vld [vmem:[#allocation8 + $0x51c] ss:$72 sps:$4 sm:$0xff]   ;;  %v18548_v60 = vld [vmem:[#allocation8 + $0x1710] ss:$72 sps:$4 sm:$0xff]  }
 0x148   :  { %5621 = vmatpush1.bf16.msra.mxu1 %v18476_v61  ;;  %v18551_v61 = vld [vmem:[#allocation8 + $0x518] ss:$72 sps:$4 sm:$0xff]  }
 0x149   :  { %5674 = vmatpush1.bf16.msra.mxu0 %v18477_v62  ;;  %5622 = vmatprep.subr.bf16.mxu1 %v18478_v63  ;;  %v18556_v62 = vld [vmem:[#allocation8 + $0x17a4] ss:$72 sps:$4 sm:$0xff]  }
 0x14a   :  { %5675 = vmatprep.subr.bf16.mxu0 %v18480_v0  ;;  %v18559_v63 = vld [vmem:[#allocation8 + $0x5ac] ss:$72 sps:$4 sm:$0xff]   ;;  %v18554_v0 = vld [vmem:[#allocation8 + $0x17a0] ss:$72 sps:$4 sm:$0xff]  }
 0x14c   :  { %5623 = vmatpush1.bf16.msra.mxu1 %v18482_v1  ;;  %v18557_v1 = vld [vmem:[#allocation8 + $0x5a8] ss:$72 sps:$4 sm:$0xff]  }
 0x14d   :  { %5676 = vmatpush1.bf16.msra.mxu0 %v18483_v2  ;;  %5624 = vmatprep.subr.bf16.mxu1 %v18484_v3  ;;  %v18562_v2 = vld [vmem:[#allocation8 + $0x1834] ss:$72 sps:$4 sm:$0xff]  }
 0x14e   :  { %5677 = vmatprep.subr.bf16.mxu0 %v18486_v4  ;;  %v18565_v3 = vld [vmem:[#allocation8 + $0x63c] ss:$72 sps:$4 sm:$0xff]   ;;  %v18560_v4 = vld [vmem:[#allocation8 + $0x1830] ss:$72 sps:$4 sm:$0xff]  }
 0x150   :  { %5625 = vmatpush1.bf16.msra.mxu1 %v18488_v5  ;;  %v18563_v5 = vld [vmem:[#allocation8 + $0x638] ss:$72 sps:$4 sm:$0xff]  }
 0x151   :  { %5678 = vmatpush1.bf16.msra.mxu0 %v18489_v6  ;;  %5753 = vmatprep.subr.bf16.mxu1 %v18498_v8  ;;  %v18568_v6 = vld [vmem:[#allocation8 + $0x18c4] ss:$72 sps:$4 sm:$0xff]   ;;  %v18566_v8 = vld [vmem:[#allocation8 + $0x18c0] ss:$72 sps:$4 sm:$0xff]  }
 0x152   :  { %5700 = vmatprep.subr.bf16.mxu0 %v18495_v7  ;;  %v18571_v7 = vld [vmem:[#allocation8 + $0x6cc] ss:$72 sps:$4 sm:$0xff]  }
 0x153   :  { %5627 = vmatmul.mubr.bf16.vlgmr.msra.gmra.mrb[0].mxu1 %v21773_v9 }
 0x154   :  { %5680 = vmatmul.mubr.bf16.vlgmr.msra.gmra.mrb[0].mxu0 %v21775_v12  ;;  %5754 = vmatpush1.bf16.msra.mxu1 %v18496_v11  ;;  %v18574_v11 = vld [vmem:[#allocation8 + $0x1954] ss:$72 sps:$4 sm:$0xff]  }
 0x155   :  { %5701 = vmatpush1.bf16.msra.mxu0 %v18493_v10  ;;  %5755 = vmatprep.subr.bf16.mxu1 %v18505_v14  ;;  %v18569_v10 = vld [vmem:[#allocation8 + $0x6c8] ss:$72 sps:$4 sm:$0xff]  }
 0x156   :  { %5702 = vmatprep.subr.bf16.mxu0 %v18502_v13  ;;  %5636 = vmatprep.mubr.bf16.mxu1 %v21779_v33  ;;  %v18577_v13 = vld [vmem:[#allocation8 + $0x75c] ss:$72 sps:$4 sm:$0xff]   ;;  %v18572_v14 = vld [vmem:[#allocation8 + $0x1950] ss:$72 sps:$4 sm:$0xff]  }
 0x157   :  { %5689 = vmatprep.mubr.bf16.mxu0 %v21783_v39 }
 0x158   :  { %5756 = vmatpush1.bf16.msra.mxu1 %v18503_v16  ;;  %v18584_v16 = vld [vmem:[#allocation8 + $0x19e4] ss:$72 sps:$4 sm:$0xff]  }
 0x159   :  { %5703 = vmatpush1.bf16.msra.mxu0 %v18500_v15  ;;  %5757 = vmatprep.subr.bf16.mxu1 %v18511_v18  ;;  %v18575_v15 = vld [vmem:[#allocation8 + $0x758] ss:$72 sps:$4 sm:$0xff]  }
 0x15a   :  { %5704 = vmatprep.subr.bf16.mxu0 %v18508_v17  ;;  %v18587_v17 = vld [vmem:[#allocation8 + $0x7ec] ss:$72 sps:$4 sm:$0xff]   ;;  %v18582_v18 = vld [vmem:[#allocation8 + $0x19e0] ss:$72 sps:$4 sm:$0xff]  }
 0x15b   :  { %5637 = vmatmul.mubr.bf16.gmra.mrb[4].mxu1 %v21781_v38 }
 0x15c   :  { %5758 = vmatpush1.bf16.msra.mxu1 %v18509_v20  ;;  %5690 = vmatmul.mubr.bf16.gmra.mrb[4].mxu0 %v21785_v40  ;;  %v18590_v20 = vld [vmem:[#allocation8 + $0x1a74] ss:$72 sps:$4 sm:$0xff]  }
 0x15d   :  { %5705 = vmatpush1.bf16.msra.mxu0 %v18506_v19  ;;  %5759 = vmatprep.subr.bf16.mxu1 %v18517_v22  ;;  %v18585_v19 = vld [vmem:[#allocation8 + $0x7e8] ss:$72 sps:$4 sm:$0xff]  }
 0x15e   :  { %5706 = vmatprep.subr.bf16.mxu0 %v18514_v21  ;;  %5785 = vmatprep.mubr.bf16.mxu1 %v21767_v54  ;;  %v18593_v21 = vld [vmem:[#allocation8 + $0x87c] ss:$72 sps:$4 sm:$0xff]   ;;  %v18588_v22 = vld [vmem:[#allocation8 + $0x1a70] ss:$72 sps:$4 sm:$0xff]  }
 0x15f   :  { %5732 = vmatprep.mubr.bf16.mxu0 %v21797_v49 }
 0x160   :  { %5760 = vmatpush1.bf16.msra.mxu1 %v18515_v24  ;;  %v18598_v24 = vld [vmem:[#allocation8 + $0x90c] ss:$72 sps:$4 sm:$0xff]  }
 0x161   :  { %5707 = vmatpush1.bf16.msra.mxu0 %v18512_v23  ;;  %5761 = vmatprep.subr.bf16.mxu1 %v18523_v26  ;;  %v18591_v23 = vld [vmem:[#allocation8 + $0x878] ss:$72 sps:$4 sm:$0xff]   ;;  %v18596_v26 = vld [vmem:[#allocation8 + $0x908] ss:$72 sps:$4 sm:$0xff]  }
 0x162   :  { %5708 = vmatprep.subr.bf16.mxu0 %v18520_v25  ;;  %v18601_v25 = vld [vmem:[#allocation8 + $0x14] ss:$72 sps:$4 sm:$0xff]  }
 0x164   :  { %5762 = vmatpush1.bf16.msra.mxu1 %v18521_v28  ;;  %v21803_v28 = vcombine.low %v21791_v45, %v21793_v46  ;;  %v18618_v45 = vld [vmem:[#allocation8 + $0xabc] ss:$72 sps:$4 sm:$0xff]  }
 0x165   :  { %5709 = vmatpush1.bf16.msra.mxu0 %v18518_v27  ;;  %5763 = vmatprep.subr.bf16.mxu1 %v18529_v30  ;;  %v18599_v27 = vld [vmem:[#allocation8 + $0x10] ss:$72 sps:$4 sm:$0xff]   ;;  %v18621_v46 = vld [vmem:[#allocation8 + $0x1c4] ss:$72 sps:$4 sm:$0xff]  }
 0x166   :  { %5710 = vmatprep.subr.bf16.mxu0 %v18526_v29  ;;  %v250_v29 = vld [vmem:[#allocation3 + $0x40] sm:$0xff]  ;;  %v253_v30 = vld [vmem:[#allocation3 + $0x58] sm:$0xff] }
 0x167   :  { %v21805_v34 = vcombine.high %v250_v29, %v253_v30 }
 0x168   :  { %5764 = vmatpush1.bf16.msra.mxu1 %v18527_v37  ;;  %v18612_v37 = vld [vmem:[#allocation8 + $0xa2c] ss:$72 sps:$4 sm:$0xff]  }
 0x169   :  { %5711 = vmatpush1.bf16.msra.mxu0 %v18524_v36  ;;  %5765 = vmatprep.subr.bf16.mxu1 %v18535_v42  ;;  %v18605_v36 = vld [vmem:[#allocation8 + $0xa0] ss:$72 sps:$4 sm:$0xff]   ;;  %v21811_v42 = vcombine.low %v250_v29, %v253_v30 }
 0x16a   :  { %5712 = vmatprep.subr.bf16.mxu0 %v18532_v41  ;;  %v18615_v41 = vld [vmem:[#allocation8 + $0x134] ss:$72 sps:$4 sm:$0xff]   ;;  %v18676_v29 = vld [vmem:[#allocation8 + $0x1058] ss:$72 sps:$4 sm:$0xff]  }
 0x16b   :  { %v18679_v30 = vld [vmem:[#allocation8 + $0x760] ss:$72 sps:$4 sm:$0xff]  }
 0x16c   :  { %5766 = vmatpush1.bf16.msra.mxu1 %v18533_v44  ;;  %v18613_v44 = vld [vmem:[#allocation8 + $0x130] ss:$72 sps:$4 sm:$0xff]  }
 0x16d   :  { %5713 = vmatpush1.bf16.msra.mxu0 %v18530_v43  ;;  %5767 = vmatprep.subr.bf16.mxu1 %v18541_v48  ;;  %v18610_v43 = vld [vmem:[#allocation8 + $0xa28] ss:$72 sps:$4 sm:$0xff]  }
 0x16e   :  { %5714 = vmatprep.subr.bf16.mxu0 %v18538_v47  ;;  %v18616_v47 = vld [vmem:[#allocation8 + $0xab8] ss:$72 sps:$4 sm:$0xff]  }
 0x16f   :  { %v18619_v48 = vld [vmem:[#allocation8 + $0x1c0] ss:$72 sps:$4 sm:$0xff]  }
 0x170   :  { %5768 = vmatpush1.bf16.msra.mxu1 %v18539_v51  ;;  %v18627_v51 = vld [vmem:[#allocation8 + $0x254] ss:$72 sps:$4 sm:$0xff]  }
 0x171   :  { %5715 = vmatpush1.bf16.msra.mxu0 %v18536_v50  ;;  %5769 = vmatprep.subr.bf16.mxu1 %v18547_v53  ;;  %v18624_v50 = vld [vmem:[#allocation8 + $0xb4c] ss:$72 sps:$4 sm:$0xff]   ;;  %v18625_v53 = vld [vmem:[#allocation8 + $0x250] ss:$72 sps:$4 sm:$0xff]  }
 0x172   :  { %5716 = vmatprep.subr.bf16.mxu0 %v18544_v52  ;;  %v18622_v52 = vld [vmem:[#allocation8 + $0xb48] ss:$72 sps:$4 sm:$0xff]  }
 0x174   :  { %5770 = vmatpush1.bf16.msra.mxu1 %v18545_v57  ;;  %v18633_v57 = vld [vmem:[#allocation8 + $0x2e4] ss:$72 sps:$4 sm:$0xff]  }
 0x175   :  { %5717 = vmatpush1.bf16.msra.mxu0 %v18542_v56  ;;  %5771 = vmatprep.subr.bf16.mxu1 %v18553_v59  ;;  %v18630_v56 = vld [vmem:[#allocation8 + $0xbdc] ss:$72 sps:$4 sm:$0xff]   ;;  %v18631_v59 = vld [vmem:[#allocation8 + $0x2e0] ss:$72 sps:$4 sm:$0xff]  }
 0x176   :  { %5718 = vmatprep.subr.bf16.mxu0 %v18550_v58  ;;  %v18628_v58 = vld [vmem:[#allocation8 + $0xbd8] ss:$72 sps:$4 sm:$0xff]  }
 0x178   :  { %5772 = vmatpush1.bf16.msra.mxu1 %v18551_v61  ;;  %v18639_v61 = vld [vmem:[#allocation8 + $0x374] ss:$72 sps:$4 sm:$0xff]  }
 0x179   :  { %5719 = vmatpush1.bf16.msra.mxu0 %v18548_v60  ;;  %5773 = vmatprep.subr.bf16.mxu1 %v18559_v63  ;;  %v18636_v60 = vld [vmem:[#allocation8 + $0xc6c] ss:$72 sps:$4 sm:$0xff]   ;;  %v18637_v63 = vld [vmem:[#allocation8 + $0x370] ss:$72 sps:$4 sm:$0xff]  }
 0x17a   :  { %5720 = vmatprep.subr.bf16.mxu0 %v18556_v62  ;;  %v18634_v62 = vld [vmem:[#allocation8 + $0xc68] ss:$72 sps:$4 sm:$0xff]  }
 0x17c   :  { %5774 = vmatpush1.bf16.msra.mxu1 %v18557_v1  ;;  %v18645_v1 = vld [vmem:[#allocation8 + $0x404] ss:$72 sps:$4 sm:$0xff]  }
 0x17d   :  { %5721 = vmatpush1.bf16.msra.mxu0 %v18554_v0  ;;  %5775 = vmatprep.subr.bf16.mxu1 %v18565_v3  ;;  %v18642_v0 = vld [vmem:[#allocation8 + $0xcfc] ss:$72 sps:$4 sm:$0xff]   ;;  %v18643_v3 = vld [vmem:[#allocation8 + $0x400] ss:$72 sps:$4 sm:$0xff]  }
 0x17e   :  { %5722 = vmatprep.subr.bf16.mxu0 %v18562_v2  ;;  %v18640_v2 = vld [vmem:[#allocation8 + $0xcf8] ss:$72 sps:$4 sm:$0xff]  }
 0x180   :  { %5776 = vmatpush1.bf16.msra.mxu1 %v18563_v5  ;;  %v18651_v5 = vld [vmem:[#allocation8 + $0x494] ss:$72 sps:$4 sm:$0xff]  }
 0x181   :  { %5723 = vmatpush1.bf16.msra.mxu0 %v18560_v4  ;;  %5777 = vmatprep.subr.bf16.mxu1 %v18571_v7  ;;  %v18648_v4 = vld [vmem:[#allocation8 + $0xd8c] ss:$72 sps:$4 sm:$0xff]   ;;  %v18649_v7 = vld [vmem:[#allocation8 + $0x490] ss:$72 sps:$4 sm:$0xff]  }
 0x182   :  { %5724 = vmatprep.subr.bf16.mxu0 %v18568_v6  ;;  %v18646_v6 = vld [vmem:[#allocation8 + $0xd88] ss:$72 sps:$4 sm:$0xff]  }
 0x184   :  { %5778 = vmatpush1.bf16.msra.mxu1 %v18569_v10  ;;  %v18657_v10 = vld [vmem:[#allocation8 + $0x524] ss:$72 sps:$4 sm:$0xff]  }
 0x185   :  { %5725 = vmatpush1.bf16.msra.mxu0 %v18566_v8  ;;  %5779 = vmatprep.subr.bf16.mxu1 %v18577_v13  ;;  %v18654_v8 = vld [vmem:[#allocation8 + $0xe1c] ss:$72 sps:$4 sm:$0xff]   ;;  %v18655_v13 = vld [vmem:[#allocation8 + $0x520] ss:$72 sps:$4 sm:$0xff]  }
 0x186   :  { %5726 = vmatprep.subr.bf16.mxu0 %v18574_v11  ;;  %v18652_v11 = vld [vmem:[#allocation8 + $0xe18] ss:$72 sps:$4 sm:$0xff]  }
 0x188   :  { %5780 = vmatpush1.bf16.msra.mxu1 %v18575_v15  ;;  %v18663_v15 = vld [vmem:[#allocation8 + $0x5b4] ss:$72 sps:$4 sm:$0xff]  }
 0x189   :  { %5727 = vmatpush1.bf16.msra.mxu0 %v18572_v14  ;;  %5781 = vmatprep.subr.bf16.mxu1 %v18587_v17  ;;  %v18660_v14 = vld [vmem:[#allocation8 + $0xeac] ss:$72 sps:$4 sm:$0xff]   ;;  %v18661_v17 = vld [vmem:[#allocation8 + $0x5b0] ss:$72 sps:$4 sm:$0xff]  }
 0x18a   :  { %5728 = vmatprep.subr.bf16.mxu0 %v18584_v16  ;;  %v18658_v16 = vld [vmem:[#allocation8 + $0xea8] ss:$72 sps:$4 sm:$0xff]  }
 0x18c   :  { %5782 = vmatpush1.bf16.msra.mxu1 %v18585_v19  ;;  %v18669_v19 = vld [vmem:[#allocation8 + $0x644] ss:$72 sps:$4 sm:$0xff]  }
 0x18d   :  { %5729 = vmatpush1.bf16.msra.mxu0 %v18582_v18  ;;  %5783 = vmatprep.subr.bf16.mxu1 %v18593_v21  ;;  %v18666_v18 = vld [vmem:[#allocation8 + $0xf3c] ss:$72 sps:$4 sm:$0xff]   ;;  %v18667_v21 = vld [vmem:[#allocation8 + $0x640] ss:$72 sps:$4 sm:$0xff]  }
 0x18e   :  { %5730 = vmatprep.subr.bf16.mxu0 %v18590_v20  ;;  %v18664_v20 = vld [vmem:[#allocation8 + $0xf38] ss:$72 sps:$4 sm:$0xff]  }
 0x190   :  { %5784 = vmatpush1.bf16.msra.mxu1 %v18591_v23  ;;  %v18675_v23 = vld [vmem:[#allocation8 + $0x6d4] ss:$72 sps:$4 sm:$0xff]  }
 0x191   :  { %5731 = vmatpush1.bf16.msra.mxu0 %v18588_v22  ;;  %5806 = vmatprep.subr.bf16.mxu1 %v18598_v24  ;;  %v18672_v22 = vld [vmem:[#allocation8 + $0xfcc] ss:$72 sps:$4 sm:$0xff]   ;;  %v18670_v24 = vld [vmem:[#allocation8 + $0xfc8] ss:$72 sps:$4 sm:$0xff]  }
 0x192   :  { %5912 = vmatprep.subr.bf16.mxu0 %v18601_v25  ;;  %v18673_v25 = vld [vmem:[#allocation8 + $0x6d0] ss:$72 sps:$4 sm:$0xff]  }
 0x193   :  { %5786 = vmatmul.mubr.bf16.vlgmr.msra.gmra.mrb[8].mxu1 %v21773_v9 }
 0x194   :  { %5733 = vmatmul.mubr.bf16.vlgmr.msra.gmra.mrb[0].mxu0 %v21803_v28  ;;  %5807 = vmatpush1.bf16.msra.mxu1 %v18596_v26  ;;  %v18678_v26 = vld [vmem:[#allocation8 + $0x105c] ss:$72 sps:$4 sm:$0xff]  }
 0x195   :  { %5913 = vmatpush1.bf16.msra.mxu0 %v18599_v27  ;;  %5808 = vmatprep.subr.bf16.mxu1 %v18604_v31  ;;  %v18681_v27 = vld [vmem:[#allocation8 + $0x764] ss:$72 sps:$4 sm:$0xff]  }
 0x196   :  { %5914 = vmatprep.subr.bf16.mxu0 %v18607_v32  ;;  %5742 = vmatprep.mubr.bf16.mxu0 %v21805_v34  ;;  %v18684_v31 = vld [vmem:[#allocation8 + $0x10ec] ss:$72 sps:$4 sm:$0xff]  }
 0x197   :  { %5795 = vmatprep.mubr.bf16.mxu1 %v21779_v33  ;;  %v18687_v32 = vld [vmem:[#allocation8 + $0x7f4] ss:$72 sps:$4 sm:$0xff]  }
 0x198   :  { %5809 = vmatpush1.bf16.msra.mxu1 %v18602_v35  ;;  %v18682_v35 = vld [vmem:[#allocation8 + $0x10e8] ss:$72 sps:$4 sm:$0xff]  }
 0x199   :  { %5915 = vmatpush1.bf16.msra.mxu0 %v18605_v36  ;;  %5810 = vmatprep.subr.bf16.mxu1 %v18612_v37  ;;  %v18685_v36 = vld [vmem:[#allocation8 + $0x7f0] ss:$72 sps:$4 sm:$0xff]   ;;  %v18690_v37 = vld [vmem:[#allocation8 + $0x117c] ss:$72 sps:$4 sm:$0xff]  }
 0x19a   :  { %5916 = vmatprep.subr.bf16.mxu0 %v18615_v41  ;;  %v18693_v41 = vld [vmem:[#allocation8 + $0x884] ss:$72 sps:$4 sm:$0xff]  }
 0x19b   :  { %5796 = vmatmul.mubr.bf16.gmra.mrb[12].mxu1 %v21781_v38 }
 0x19c   :  { %5743 = vmatmul.mubr.bf16.gmra.mrb[4].mxu0 %v21811_v42  ;;  %5811 = vmatpush1.bf16.msra.mxu1 %v18610_v43  ;;  %v18688_v43 = vld [vmem:[#allocation8 + $0x1178] ss:$72 sps:$4 sm:$0xff]  }
 0x19d   :  { %5917 = vmatpush1.bf16.msra.mxu0 %v18613_v44  ;;  %5812 = vmatprep.subr.bf16.mxu1 %v18618_v45  ;;  %v18691_v44 = vld [vmem:[#allocation8 + $0x880] ss:$72 sps:$4 sm:$0xff]   ;;  %v18696_v45 = vld [vmem:[#allocation8 + $0x120c] ss:$72 sps:$4 sm:$0xff]  }
 0x19e   :  { %5918 = vmatprep.subr.bf16.mxu0 %v18621_v46  ;;  %5838 = vmatprep.mubr.bf16.mxu1 %v21769_v55  ;;  %v18699_v46 = vld [vmem:[#allocation8 + $0x914] ss:$72 sps:$4 sm:$0xff]  }
 0x19f   :  { %5944 = vmatprep.mubr.bf16.mxu0 %v21767_v54 }
 0x1a0   :  { %5813 = vmatpush1.bf16.msra.mxu1 %v18616_v47  ;;  %v18694_v47 = vld [vmem:[#allocation8 + $0x1208] ss:$72 sps:$4 sm:$0xff]  }
 0x1a1   :  { %5919 = vmatpush1.bf16.msra.mxu0 %v18619_v48  ;;  %5814 = vmatprep.subr.bf16.mxu1 %v18624_v50  ;;  %v18697_v48 = vld [vmem:[#allocation8 + $0x910] ss:$72 sps:$4 sm:$0xff]   ;;  %v18702_v50 = vld [vmem:[#allocation8 + $0x129c] ss:$72 sps:$4 sm:$0xff]  }
 0x1a2   :  { %5920 = vmatprep.subr.bf16.mxu0 %v18627_v51  ;;  %v18705_v51 = vld [vmem:[#allocation8 + $0x9a4] ss:$72 sps:$4 sm:$0xff]  }
 0x1a4   :  { %5815 = vmatpush1.bf16.msra.mxu1 %v18622_v52  ;;  %v18700_v52 = vld [vmem:[#allocation8 + $0x1298] ss:$72 sps:$4 sm:$0xff]  }
 0x1a5   :  { %5921 = vmatpush1.bf16.msra.mxu0 %v18625_v53  ;;  %5816 = vmatprep.subr.bf16.mxu1 %v18630_v56  ;;  %v18703_v53 = vld [vmem:[#allocation8 + $0x9a0] ss:$72 sps:$4 sm:$0xff]   ;;  %v18708_v56 = vld [vmem:[#allocation8 + $0x132c] ss:$72 sps:$4 sm:$0xff]  }
 0x1a6   :  { %5922 = vmatprep.subr.bf16.mxu0 %v18633_v57  ;;  %v18711_v57 = vld [vmem:[#allocation8 + $0xa34] ss:$72 sps:$4 sm:$0xff]  }
 0x1a8   :  { %5817 = vmatpush1.bf16.msra.mxu1 %v18628_v58  ;;  %v18706_v58 = vld [vmem:[#allocation8 + $0x1328] ss:$72 sps:$4 sm:$0xff]  }
 0x1a9   :  { %5923 = vmatpush1.bf16.msra.mxu0 %v18631_v59  ;;  %5818 = vmatprep.subr.bf16.mxu1 %v18636_v60  ;;  %v18709_v59 = vld [vmem:[#allocation8 + $0xa30] ss:$72 sps:$4 sm:$0xff]   ;;  %v18714_v60 = vld [vmem:[#allocation8 + $0x13bc] ss:$72 sps:$4 sm:$0xff]  }
 0x1aa   :  { %5924 = vmatprep.subr.bf16.mxu0 %v18639_v61  ;;  %v18717_v61 = vld [vmem:[#allocation8 + $0xac4] ss:$72 sps:$4 sm:$0xff]  }
 0x1ac   :  { %5819 = vmatpush1.bf16.msra.mxu1 %v18634_v62  ;;  %v18712_v62 = vld [vmem:[#allocation8 + $0x13b8] ss:$72 sps:$4 sm:$0xff]  }
 0x1ad   :  { %5925 = vmatpush1.bf16.msra.mxu0 %v18637_v63  ;;  %5820 = vmatprep.subr.bf16.mxu1 %v18642_v0  ;;  %v18715_v63 = vld [vmem:[#allocation8 + $0xac0] ss:$72 sps:$4 sm:$0xff]   ;;  %v18720_v0 = vld [vmem:[#allocation8 + $0x144c] ss:$72 sps:$4 sm:$0xff]  }
 0x1ae   :  { %5926 = vmatprep.subr.bf16.mxu0 %v18645_v1  ;;  %v18723_v1 = vld [vmem:[#allocation8 + $0xb54] ss:$72 sps:$4 sm:$0xff]  }
 0x1b0   :  { %5821 = vmatpush1.bf16.msra.mxu1 %v18640_v2  ;;  %v18718_v2 = vld [vmem:[#allocation8 + $0x1448] ss:$72 sps:$4 sm:$0xff]  }
 0x1b1   :  { %5927 = vmatpush1.bf16.msra.mxu0 %v18643_v3  ;;  %5822 = vmatprep.subr.bf16.mxu1 %v18648_v4  ;;  %v18721_v3 = vld [vmem:[#allocation8 + $0xb50] ss:$72 sps:$4 sm:$0xff]   ;;  %v18726_v4 = vld [vmem:[#allocation8 + $0x14dc] ss:$72 sps:$4 sm:$0xff]  }
 0x1b2   :  { %5928 = vmatprep.subr.bf16.mxu0 %v18651_v5  ;;  %v18729_v5 = vld [vmem:[#allocation8 + $0xbe4] ss:$72 sps:$4 sm:$0xff]  }
 0x1b4   :  { %5823 = vmatpush1.bf16.msra.mxu1 %v18646_v6  ;;  %v18724_v6 = vld [vmem:[#allocation8 + $0x14d8] ss:$72 sps:$4 sm:$0xff]  }
 0x1b5   :  { %5929 = vmatpush1.bf16.msra.mxu0 %v18649_v7  ;;  %5824 = vmatprep.subr.bf16.mxu1 %v18654_v8  ;;  %v18727_v7 = vld [vmem:[#allocation8 + $0xbe0] ss:$72 sps:$4 sm:$0xff]   ;;  %v18732_v8 = vld [vmem:[#allocation8 + $0x156c] ss:$72 sps:$4 sm:$0xff]  }
 0x1b6   :  { %5930 = vmatprep.subr.bf16.mxu0 %v18657_v10  ;;  %v18735_v10 = vld [vmem:[#allocation8 + $0xc74] ss:$72 sps:$4 sm:$0xff]  }
 0x1b8   :  { %5825 = vmatpush1.bf16.msra.mxu1 %v18652_v11  ;;  %v18730_v11 = vld [vmem:[#allocation8 + $0x1568] ss:$72 sps:$4 sm:$0xff]  }
 0x1b9   :  { %5931 = vmatpush1.bf16.msra.mxu0 %v18655_v13  ;;  %5826 = vmatprep.subr.bf16.mxu1 %v18660_v14  ;;  %v18733_v13 = vld [vmem:[#allocation8 + $0xc70] ss:$72 sps:$4 sm:$0xff]   ;;  %v18738_v14 = vld [vmem:[#allocation8 + $0x15fc] ss:$72 sps:$4 sm:$0xff]  }
 0x1ba   :  { %5932 = vmatprep.subr.bf16.mxu0 %v18663_v15  ;;  %v18741_v15 = vld [vmem:[#allocation8 + $0xd04] ss:$72 sps:$4 sm:$0xff]  }
 0x1bc   :  { %5827 = vmatpush1.bf16.msra.mxu1 %v18658_v16  ;;  %v18736_v16 = vld [vmem:[#allocation8 + $0x15f8] ss:$72 sps:$4 sm:$0xff]  }
 0x1bd   :  { %5933 = vmatpush1.bf16.msra.mxu0 %v18661_v17  ;;  %5828 = vmatprep.subr.bf16.mxu1 %v18666_v18  ;;  %v18739_v17 = vld [vmem:[#allocation8 + $0xd00] ss:$72 sps:$4 sm:$0xff]   ;;  %v18744_v18 = vld [vmem:[#allocation8 + $0x168c] ss:$72 sps:$4 sm:$0xff]  }
 0x1be   :  { %5934 = vmatprep.subr.bf16.mxu0 %v18669_v19  ;;  %v18747_v19 = vld [vmem:[#allocation8 + $0xd94] ss:$72 sps:$4 sm:$0xff]  }
 0x1c0   :  { %5829 = vmatpush1.bf16.msra.mxu1 %v18664_v20  ;;  %v18742_v20 = vld [vmem:[#allocation8 + $0x1688] ss:$72 sps:$4 sm:$0xff]  }
 0x1c1   :  { %5935 = vmatpush1.bf16.msra.mxu0 %v18667_v21  ;;  %5830 = vmatprep.subr.bf16.mxu1 %v18672_v22  ;;  %v18745_v21 = vld [vmem:[#allocation8 + $0xd90] ss:$72 sps:$4 sm:$0xff]   ;;  %v18750_v22 = vld [vmem:[#allocation8 + $0x171c] ss:$72 sps:$4 sm:$0xff]  }
 0x1c2   :  { %5936 = vmatprep.subr.bf16.mxu0 %v18675_v23  ;;  %v18753_v23 = vld [vmem:[#allocation8 + $0xe24] ss:$72 sps:$4 sm:$0xff]  }
 0x1c4   :  { %5831 = vmatpush1.bf16.msra.mxu1 %v18670_v24  ;;  %v18748_v24 = vld [vmem:[#allocation8 + $0x1718] ss:$72 sps:$4 sm:$0xff]  }
 0x1c5   :  { %5937 = vmatpush1.bf16.msra.mxu0 %v18673_v25  ;;  %5832 = vmatprep.subr.bf16.mxu1 %v18678_v26  ;;  %v18751_v25 = vld [vmem:[#allocation8 + $0xe20] ss:$72 sps:$4 sm:$0xff]   ;;  %v18756_v26 = vld [vmem:[#allocation8 + $0x17ac] ss:$72 sps:$4 sm:$0xff]  }
 0x1c6   :  { %5938 = vmatprep.subr.bf16.mxu0 %v18681_v27  ;;  %v18759_v27 = vld [vmem:[#allocation8 + $0xeb4] ss:$72 sps:$4 sm:$0xff]  }
 0x1c8   :  { %5833 = vmatpush1.bf16.msra.mxu1 %v18676_v29  ;;  %v18754_v29 = vld [vmem:[#allocation8 + $0x17a8] ss:$72 sps:$4 sm:$0xff]  }
 0x1c9   :  { %5939 = vmatpush1.bf16.msra.mxu0 %v18679_v30  ;;  %5834 = vmatprep.subr.bf16.mxu1 %v18684_v31  ;;  %v18757_v30 = vld [vmem:[#allocation8 + $0xeb0] ss:$72 sps:$4 sm:$0xff]   ;;  %v18762_v31 = vld [vmem:[#allocation8 + $0x183c] ss:$72 sps:$4 sm:$0xff]  }
 0x1ca   :  { %5940 = vmatprep.subr.bf16.mxu0 %v18687_v32  ;;  %v18765_v32 = vld [vmem:[#allocation8 + $0xf44] ss:$72 sps:$4 sm:$0xff]  }
 0x1cc   :  { %5835 = vmatpush1.bf16.msra.mxu1 %v18682_v35  ;;  %v18760_v35 = vld [vmem:[#allocation8 + $0x1838] ss:$72 sps:$4 sm:$0xff]  }
 0x1cd   :  { %5941 = vmatpush1.bf16.msra.mxu0 %v18685_v36  ;;  %5836 = vmatprep.subr.bf16.mxu1 %v18690_v37  ;;  %v18763_v36 = vld [vmem:[#allocation8 + $0xf40] ss:$72 sps:$4 sm:$0xff]   ;;  %v18768_v37 = vld [vmem:[#allocation8 + $0x18cc] ss:$72 sps:$4 sm:$0xff]  }
 0x1ce   :  { %5942 = vmatprep.subr.bf16.mxu0 %v18693_v41  ;;  %v18771_v41 = vld [vmem:[#allocation8 + $0xfd4] ss:$72 sps:$4 sm:$0xff]  }
 0x1d0   :  { %5837 = vmatpush1.bf16.msra.mxu1 %v18688_v43  ;;  %v18766_v43 = vld [vmem:[#allocation8 + $0x18c8] ss:$72 sps:$4 sm:$0xff]  }
 0x1d1   :  { %5943 = vmatpush1.bf16.msra.mxu0 %v18691_v44  ;;  %5859 = vmatprep.subr.bf16.mxu1 %v18696_v45  ;;  %v18769_v44 = vld [vmem:[#allocation8 + $0xfd0] ss:$72 sps:$4 sm:$0xff]   ;;  %v18774_v45 = vld [vmem:[#allocation8 + $0x195c] ss:$72 sps:$4 sm:$0xff]  }
 0x1d2   :  { %5965 = vmatprep.subr.bf16.mxu0 %v18699_v46  ;;  %v18777_v46 = vld [vmem:[#allocation8 + $0x1064] ss:$72 sps:$4 sm:$0xff]  }
 0x1d3   :  { %5839 = vmatmul.mubr.bf16.vlgmr.msra.gmra.mrb[8].mxu1 %v21775_v12 }
 0x1d4   :  { %5945 = vmatmul.mubr.bf16.vlgmr.msra.gmra.mrb[8].mxu0 %v21773_v9  ;;  %5860 = vmatpush1.bf16.msra.mxu1 %v18694_v47  ;;  %v18772_v47 = vld [vmem:[#allocation8 + $0x1958] ss:$72 sps:$4 sm:$0xff]  }
 0x1d5   :  { %5966 = vmatpush1.bf16.msra.mxu0 %v18697_v48  ;;  %5861 = vmatprep.subr.bf16.mxu1 %v18702_v50  ;;  %v18775_v48 = vld [vmem:[#allocation8 + $0x1060] ss:$72 sps:$4 sm:$0xff]   ;;  %v18780_v50 = vld [vmem:[#allocation8 + $0x19ec] ss:$72 sps:$4 sm:$0xff]  }
 0x1d6   :  { %5967 = vmatprep.subr.bf16.mxu0 %v18705_v51  ;;  %5848 = vmatprep.mubr.bf16.mxu1 %v21783_v39  ;;  %v18783_v51 = vld [vmem:[#allocation8 + $0x10f4] ss:$72 sps:$4 sm:$0xff]  }
 0x1d7   :  { %5954 = vmatprep.mubr.bf16.mxu0 %v21779_v33 }
 0x1d8   :  { %5862 = vmatpush1.bf16.msra.mxu1 %v18700_v52  ;;  %v18778_v52 = vld [vmem:[#allocation8 + $0x19e8] ss:$72 sps:$4 sm:$0xff]  }
 0x1d9   :  { %5968 = vmatpush1.bf16.msra.mxu0 %v18703_v53  ;;  %5863 = vmatprep.subr.bf16.mxu1 %v18708_v56  ;;  %v18781_v53 = vld [vmem:[#allocation8 + $0x10f0] ss:$72 sps:$4 sm:$0xff]   ;;  %v18786_v56 = vld [vmem:[#allocation8 + $0x1a7c] ss:$72 sps:$4 sm:$0xff]  }
 0x1da   :  { %5969 = vmatprep.subr.bf16.mxu0 %v18711_v57  ;;  %v18789_v57 = vld [vmem:[#allocation8 + $0x1184] ss:$72 sps:$4 sm:$0xff]  }
 0x1db   :  { %5849 = vmatmul.mubr.bf16.gmra.mrb[12].mxu1 %v21785_v40 }
 0x1dc   :  { %5955 = vmatmul.mubr.bf16.gmra.mrb[12].mxu0 %v21781_v38  ;;  %5864 = vmatpush1.bf16.msra.mxu1 %v18706_v58  ;;  %v18784_v58 = vld [vmem:[#allocation8 + $0x1a78] ss:$72 sps:$4 sm:$0xff]  }
 0x1dd   :  { %5970 = vmatpush1.bf16.msra.mxu0 %v18709_v59  ;;  %5865 = vmatprep.subr.bf16.mxu1 %v18714_v60  ;;  %v18787_v59 = vld [vmem:[#allocation8 + $0x1180] ss:$72 sps:$4 sm:$0xff]   ;;  %v18792_v60 = vld [vmem:[#allocation8 + $0x1214] ss:$72 sps:$4 sm:$0xff]  }
 0x1de   :  { %5971 = vmatprep.subr.bf16.mxu0 %v18717_v61  ;;  %5891 = vmatprep.mubr.bf16.mxu1 %v21797_v49  ;;  %v18795_v61 = vld [vmem:[#allocation8 + $0x1c] ss:$72 sps:$4 sm:$0xff]  }
 0x1df   :  { %5997 = vmatprep.mubr.bf16.mxu0 %v21769_v55 }
 0x1e0   :  { %5866 = vmatpush1.bf16.msra.mxu1 %v18712_v62  ;;  %v18790_v62 = vld [vmem:[#allocation8 + $0x1210] ss:$72 sps:$4 sm:$0xff]  }
 0x1e1   :  { %5972 = vmatpush1.bf16.msra.mxu0 %v18715_v63  ;;  %5867 = vmatprep.subr.bf16.mxu1 %v18720_v0  ;;  %v18793_v63 = vld [vmem:[#allocation8 + $0x18] ss:$72 sps:$4 sm:$0xff]   ;;  %v18798_v0 = vld [vmem:[#allocation8 + $0x12a4] ss:$72 sps:$4 sm:$0xff]  }
 0x1e2   :  { %5973 = vmatprep.subr.bf16.mxu0 %v18723_v1  ;;  %v18801_v1 = vld [vmem:[#allocation8 + $0xac] ss:$72 sps:$4 sm:$0xff]  }
 0x1e4   :  { %5868 = vmatpush1.bf16.msra.mxu1 %v18718_v2  ;;  %v18796_v2 = vld [vmem:[#allocation8 + $0x12a0] ss:$72 sps:$4 sm:$0xff]  }
 0x1e5   :  { %5974 = vmatpush1.bf16.msra.mxu0 %v18721_v3  ;;  %5869 = vmatprep.subr.bf16.mxu1 %v18726_v4  ;;  %v18799_v3 = vld [vmem:[#allocation8 + $0xa8] ss:$72 sps:$4 sm:$0xff]   ;;  %v18804_v4 = vld [vmem:[#allocation8 + $0x1334] ss:$72 sps:$4 sm:$0xff]  }
 0x1e6   :  { %5975 = vmatprep.subr.bf16.mxu0 %v18729_v5  ;;  %v18807_v5 = vld [vmem:[#allocation8 + $0x13c] ss:$72 sps:$4 sm:$0xff]  }
 0x1e8   :  { %5870 = vmatpush1.bf16.msra.mxu1 %v18724_v6  ;;  %v18802_v6 = vld [vmem:[#allocation8 + $0x1330] ss:$72 sps:$4 sm:$0xff]  }
 0x1e9   :  { %5976 = vmatpush1.bf16.msra.mxu0 %v18727_v7  ;;  %5871 = vmatprep.subr.bf16.mxu1 %v18732_v8  ;;  %v18805_v7 = vld [vmem:[#allocation8 + $0x138] ss:$72 sps:$4 sm:$0xff]   ;;  %v18810_v8 = vld [vmem:[#allocation8 + $0x13c4] ss:$72 sps:$4 sm:$0xff]  }
 0x1ea   :  { %5977 = vmatprep.subr.bf16.mxu0 %v18735_v10  ;;  %v18813_v10 = vld [vmem:[#allocation8 + $0x1cc] ss:$72 sps:$4 sm:$0xff]  }
 0x1ec   :  { %5872 = vmatpush1.bf16.msra.mxu1 %v18730_v11  ;;  %v18808_v11 = vld [vmem:[#allocation8 + $0x13c0] ss:$72 sps:$4 sm:$0xff]  }
 0x1ed   :  { %5978 = vmatpush1.bf16.msra.mxu0 %v18733_v13  ;;  %5873 = vmatprep.subr.bf16.mxu1 %v18738_v14  ;;  %v18811_v13 = vld [vmem:[#allocation8 + $0x1c8] ss:$72 sps:$4 sm:$0xff]   ;;  %v18816_v14 = vld [vmem:[#allocation8 + $0x1454] ss:$72 sps:$4 sm:$0xff]  }
 0x1ee   :  { %5979 = vmatprep.subr.bf16.mxu0 %v18741_v15  ;;  %v18819_v15 = vld [vmem:[#allocation8 + $0x25c] ss:$72 sps:$4 sm:$0xff]  }
 0x1f0   :  { %5874 = vmatpush1.bf16.msra.mxu1 %v18736_v16  ;;  %v18814_v16 = vld [vmem:[#allocation8 + $0x1450] ss:$72 sps:$4 sm:$0xff]  }
 0x1f1   :  { %5980 = vmatpush1.bf16.msra.mxu0 %v18739_v17  ;;  %5875 = vmatprep.subr.bf16.mxu1 %v18744_v18  ;;  %v18817_v17 = vld [vmem:[#allocation8 + $0x258] ss:$72 sps:$4 sm:$0xff]   ;;  %v18822_v18 = vld [vmem:[#allocation8 + $0x14e4] ss:$72 sps:$4 sm:$0xff]  }
 0x1f2   :  { %5981 = vmatprep.subr.bf16.mxu0 %v18747_v19  ;;  %v18825_v19 = vld [vmem:[#allocation8 + $0x2ec] ss:$72 sps:$4 sm:$0xff]  }
 0x1f4   :  { %5876 = vmatpush1.bf16.msra.mxu1 %v18742_v20  ;;  %v18820_v20 = vld [vmem:[#allocation8 + $0x14e0] ss:$72 sps:$4 sm:$0xff]  }
 0x1f5   :  { %5982 = vmatpush1.bf16.msra.mxu0 %v18745_v21  ;;  %5877 = vmatprep.subr.bf16.mxu1 %v18750_v22  ;;  %v18823_v21 = vld [vmem:[#allocation8 + $0x2e8] ss:$72 sps:$4 sm:$0xff]   ;;  %v18828_v22 = vld [vmem:[#allocation8 + $0x1574] ss:$72 sps:$4 sm:$0xff]  }
 0x1f6   :  { %5983 = vmatprep.subr.bf16.mxu0 %v18753_v23  ;;  %v18831_v23 = vld [vmem:[#allocation8 + $0x37c] ss:$72 sps:$4 sm:$0xff]  }
 0x1f8   :  { %5878 = vmatpush1.bf16.msra.mxu1 %v18748_v24 }
 0x1f9   :  { %5984 = vmatpush1.bf16.msra.mxu0 %v18751_v25  ;;  %5879 = vmatprep.subr.bf16.mxu1 %v18756_v26 }
 0x1fa   :  { %5985 = vmatprep.subr.bf16.mxu0 %v18759_v27  ;;  %v18826_v27 = vld [vmem:[#allocation8 + $0x1570] ss:$72 sps:$4 sm:$0xff]  }
 0x1fc   :  { %5880 = vmatpush1.bf16.msra.mxu1 %v18754_v29  ;;  %v18829_v29 = vld [vmem:[#allocation8 + $0x378] ss:$72 sps:$4 sm:$0xff]  }
 0x1fd   :  { %5986 = vmatpush1.bf16.msra.mxu0 %v18757_v30  ;;  %5881 = vmatprep.subr.bf16.mxu1 %v18762_v31  ;;  %v18834_v31 = vld [vmem:[#allocation8 + $0x1604] ss:$72 sps:$4 sm:$0xff]  }
 0x1fe   :  { %5987 = vmatprep.subr.bf16.mxu0 %v18765_v32  ;;  %v18837_v32 = vld [vmem:[#allocation8 + $0x40c] ss:$72 sps:$4 sm:$0xff]  }
 0x200   :  { %5882 = vmatpush1.bf16.msra.mxu1 %v18760_v35  ;;  %v18832_v35 = vld [vmem:[#allocation8 + $0x1600] ss:$72 sps:$4 sm:$0xff]  }
 0x201   :  { %5988 = vmatpush1.bf16.msra.mxu0 %v18763_v36  ;;  %5883 = vmatprep.subr.bf16.mxu1 %v18768_v37  ;;  %v18835_v36 = vld [vmem:[#allocation8 + $0x408] ss:$72 sps:$4 sm:$0xff]   ;;  %v23737_v37 = vlaneseq }
 0x202   :  { %5989 = vmatprep.subr.bf16.mxu0 %v18771_v41  ;;  %v18840_v41 = vld [vmem:[#allocation8 + $0x1694] ss:$72 sps:$4 sm:$0xff]  }
 0x204   :  { %5884 = vmatpush1.bf16.msra.mxu1 %v18766_v43  ;;  %v18843_v43 = vld [vmem:[#allocation8 + $0x49c] ss:$72 sps:$4 sm:$0xff]  }
 0x205   :  { %5990 = vmatpush1.bf16.msra.mxu0 %v18769_v44  ;;  %5885 = vmatprep.subr.bf16.mxu1 %v18774_v45  ;;  %v18838_v44 = vld [vmem:[#allocation8 + $0x1690] ss:$72 sps:$4 sm:$0xff]  }
 0x206   :  { %5991 = vmatprep.subr.bf16.mxu0 %v18777_v46  ;;  %v18841_v45 = vld [vmem:[#allocation8 + $0x498] ss:$72 sps:$4 sm:$0xff]   ;;  %v21842_v46 = vshrl.u32 %v23737_v37, 7 }
 0x207   :  { %v19504_v37 = vld [vmem:[#allocation8 + $0x1620] ss:$72 sps:$4 sm:$0xff]  }
 0x208   :  { %5886 = vmatpush1.bf16.msra.mxu1 %v18772_v47  ;;  %23762 = vst [vmem:[#allocation37_spill] sm:$0xff] %v21842_v46  ;;  %v18846_v47 = vld [vmem:[#allocation8 + $0x1724] ss:$72 sps:$4 sm:$0xff]  }
 0x209   :  { %5992 = vmatpush1.bf16.msra.mxu0 %v18775_v48  ;;  %5887 = vmatprep.subr.bf16.mxu1 %v18780_v50  ;;  %v18849_v48 = vld [vmem:[#allocation8 + $0x52c] ss:$72 sps:$4 sm:$0xff]   ;;  %v1118_v50 = vld [vmem:[#allocation9] sm:$0xff] }
 0x20a   :  { %5993 = vmatprep.subr.bf16.mxu0 %v18783_v51  ;;  %v18844_v51 = vld [vmem:[#allocation8 + $0x1720] ss:$72 sps:$4 sm:$0xff]  }
 0x20c   :  { %5888 = vmatpush1.bf16.msra.mxu1 %v18778_v52  ;;  %v18847_v52 = vld [vmem:[#allocation8 + $0x528] ss:$72 sps:$4 sm:$0xff]  }
 0x20d   :  { %5994 = vmatpush1.bf16.msra.mxu0 %v18781_v53  ;;  %5889 = vmatprep.subr.bf16.mxu1 %v18786_v56  ;;  %v21845_v53 = vsub.s32 0, %v21842_v46  ;;  %v18852_v56 = vld [vmem:[#allocation8 + $0x17b4] ss:$72 sps:$4 sm:$0xff]  }
 0x20e   :  { %5995 = vmatprep.subr.bf16.mxu0 %v18789_v57  ;;  %v18855_v57 = vld [vmem:[#allocation8 + $0x5bc] ss:$72 sps:$4 sm:$0xff]  }
 0x20f   :  { %23763 = vst [vmem:[#allocation38_spill] sm:$0xff] %v21845_v53 }
 0x210   :  { %5890 = vmatpush1.bf16.msra.mxu1 %v18784_v58  ;;  %v21848_v58 = vsub.s32 1, %v21842_v46 }
 0x211   :  { %5996 = vmatpush1.bf16.msra.mxu0 %v18787_v59  ;;  %6071 = vmatprep.subr.bf16.mxu1 %v18795_v61  ;;  %v18850_v59 = vld [vmem:[#allocation8 + $0x17b0] ss:$72 sps:$4 sm:$0xff]   ;;  %v21851_v61 = vrot.slane %v1118_v50, %v21845_v53 }
 0x212   :  { %6018 = vmatprep.subr.bf16.mxu0 %v18792_v60  ;;  %23764 = vst [vmem:[#allocation39_spill] sm:$0xff] %v21848_v58  ;;  %v18853_v60 = vld [vmem:[#allocation8 + $0x5b8] ss:$72 sps:$4 sm:$0xff]  }
 0x213   :  { %5892 = vmatmul.mubr.bf16.vlgmr.msra.gmra.mrb[8].mxu1 %v21803_v28 }
 0x214   :  { %5998 = vmatmul.mubr.bf16.vlgmr.msra.gmra.mrb[8].mxu0 %v21775_v12  ;;  %6072 = vmatpush1.bf16.msra.mxu1 %v18793_v63  ;;  %v18861_v63 = vld [vmem:[#allocation8 + $0x64c] ss:$72 sps:$4 sm:$0xff]  }
 0x215   :  { %6019 = vmatpush1.bf16.msra.mxu0 %v18790_v62  ;;  %6073 = vmatprep.subr.bf16.mxu1 %v18801_v1  ;;  %v18858_v62 = vld [vmem:[#allocation8 + $0x1844] ss:$72 sps:$4 sm:$0xff]  }
 0x216   :  { %6020 = vmatprep.subr.bf16.mxu0 %v18798_v0  ;;  %5901 = vmatprep.mubr.bf16.mxu1 %v21805_v34  ;;  %v21854_v0 = vrot.slane %v1118_v50, %v21848_v58  ;;  %v18895_v50 = vld [vmem:[#allocation8 + $0xb0] ss:$72 sps:$4 sm:$0xff]  }
 0x217   :  { %6007 = vmatprep.mubr.bf16.mxu0 %v21783_v39 }
 0x218   :  { %6074 = vmatpush1.bf16.msra.mxu1 %v18799_v3 }
 0x219   :  { %6021 = vmatpush1.bf16.msra.mxu0 %v18796_v2  ;;  %6075 = vmatprep.subr.bf16.mxu1 %v18807_v5  ;;  %v18859_v5 = vld [vmem:[#allocation8 + $0x648] ss:$72 sps:$4 sm:$0xff]  }
 0x21a   :  { %6022 = vmatprep.subr.bf16.mxu0 %v18804_v4  ;;  %v18856_v4 = vld [vmem:[#allocation8 + $0x1840] ss:$72 sps:$4 sm:$0xff]  }
 0x21b   :  { %5902 = vmatmul.mubr.bf16.gmra.mrb[12].mxu1 %v21811_v42 }
 0x21c   :  { %6008 = vmatmul.mubr.bf16.gmra.mrb[12].mxu0 %v21785_v40  ;;  %6076 = vmatpush1.bf16.msra.mxu1 %v18805_v7 }
 0x21d   :  { %6023 = vmatpush1.bf16.msra.mxu0 %v18802_v6  ;;  %6077 = vmatprep.subr.bf16.mxu1 %v18813_v10  ;;  %v18867_v10 = vld [vmem:[#allocation8 + $0x6dc] ss:$72 sps:$4 sm:$0xff]  }
 0x21e   :  { %6024 = vmatprep.subr.bf16.mxu0 %v18810_v8  ;;  %6050 = vmatprep.mubr.bf16.mxu0 %v21797_v49  ;;  %v18864_v8 = vld [vmem:[#allocation8 + $0x18d4] ss:$72 sps:$4 sm:$0xff]  }
 0x21f   :  { %6103 = vmatprep.mubr.bf16.mxu1 %v21767_v54 }
 0x220   :  { %6078 = vmatpush1.bf16.msra.mxu1 %v18811_v13 }
 0x221   :  { %6025 = vmatpush1.bf16.msra.mxu0 %v18808_v11  ;;  %6079 = vmatprep.subr.bf16.mxu1 %v18819_v15  ;;  %v18862_v15 = vld [vmem:[#allocation8 + $0x18d0] ss:$72 sps:$4 sm:$0xff]  }
 0x222   :  { %6026 = vmatprep.subr.bf16.mxu0 %v18816_v14 }
 0x224   :  { %6080 = vmatpush1.bf16.msra.mxu1 %v18817_v17  ;;  %v18870_v17 = vld [vmem:[#allocation8 + $0x1964] ss:$72 sps:$4 sm:$0xff]  }
 0x225   :  { %6027 = vmatpush1.bf16.msra.mxu0 %v18814_v16  ;;  %6081 = vmatprep.subr.bf16.mxu1 %v18825_v19  ;;  %v18865_v16 = vld [vmem:[#allocation8 + $0x6d8] ss:$72 sps:$4 sm:$0xff]  }
 0x226   :  { %6028 = vmatprep.subr.bf16.mxu0 %v18822_v18  ;;  %v21833_v24 = vpop.f32.mrb[0].mxu1  ;;  %v18873_v18 = vld [vmem:[#allocation8 + $0x76c] ss:$72 sps:$4 sm:$0xff]   ;;  %v18868_v19 = vld [vmem:[#allocation8 + $0x1960] ss:$72 sps:$4 sm:$0xff]  }
 0x227   :  { %v21835_v25 = vpop.f32.mrb[1].mxu1 }
 0x228   :  { %v21837_v26 = vpop.f32.mrb[2].mxu1  ;;  %6082 = vmatpush1.bf16.msra.mxu1 %v18823_v21  ;;  %v18876_v21 = vld [vmem:[#allocation8 + $0x19f4] ss:$72 sps:$4 sm:$0xff]  }
 0x229   :  { %6029 = vmatpush1.bf16.msra.mxu0 %v18820_v20  ;;  %v21839_v30 = vpop.f32.mrb[3].mxu1  ;;  %6083 = vmatprep.subr.bf16.mxu1 %v18831_v23  ;;  %v18871_v20 = vld [vmem:[#allocation8 + $0x768] ss:$72 sps:$4 sm:$0xff]  }
 0x22a   :  { %6030 = vmatprep.subr.bf16.mxu0 %v18828_v22  ;;  %v18879_v22 = vld [vmem:[#allocation8 + $0x7fc] ss:$72 sps:$4 sm:$0xff]   ;;  %v18874_v23 = vld [vmem:[#allocation8 + $0x19f0] ss:$72 sps:$4 sm:$0xff]  }
 0x22c   :  { %6084 = vmatpush1.bf16.msra.mxu1 %v18829_v29  ;;  %v18882_v29 = vld [vmem:[#allocation8 + $0x1a84] ss:$72 sps:$4 sm:$0xff]  }
 0x22d   :  { %6031 = vmatpush1.bf16.msra.mxu0 %v18826_v27  ;;  %6085 = vmatprep.subr.bf16.mxu1 %v18837_v32  ;;  %v18877_v27 = vld [vmem:[#allocation8 + $0x7f8] ss:$72 sps:$4 sm:$0xff]  }
 0x22e   :  { %6032 = vmatprep.subr.bf16.mxu0 %v18834_v31  ;;  %v5638_v1 = vpop.f32.mrb[4].mxu1  ;;  %v18885_v31 = vld [vmem:[#allocation8 + $0x88c] ss:$72 sps:$4 sm:$0xff]   ;;  %v18880_v32 = vld [vmem:[#allocation8 + $0x1a80] ss:$72 sps:$4 sm:$0xff]  }
 0x22f   :  { %v21857_v2 = vadd.f32 %v5638_v1, %v21851_v61  ;;  %v5640_v3 = vpop.f32.mrb[5].mxu1  ;;  %v18912_v1 = vld [vmem:[#allocation8 + $0xb5c] ss:$72 sps:$4 sm:$0xff]  }
 0x230   :  { %6086 = vmatpush1.bf16.msra.mxu1 %v18835_v36  ;;  %v21860_v6 = vadd.f32 %v5640_v3, %v21854_v0  ;;  %v5642_v7 = vpop.f32.mrb[6].mxu1  ;;  %v18888_v36 = vld [vmem:[#allocation8 + $0x91c] ss:$72 sps:$4 sm:$0xff]  }
 0x231   :  { %6033 = vmatpush1.bf16.msra.mxu0 %v18832_v35  ;;  %6087 = vmatprep.subr.bf16.mxu1 %v18843_v43  ;;  %v21863_v11 = vadd.f32 %v5642_v7, %v21851_v61  ;;  %v5644_v13 = vpop.f32.mrb[7].mxu1  ;;  %v18883_v35 = vld [vmem:[#allocation8 + $0x888] ss:$72 sps:$4 sm:$0xff]   ;;  %v18886_v43 = vld [vmem:[#allocation8 + $0x918] ss:$72 sps:$4 sm:$0xff]  }
 0x232   :  { %6034 = vmatprep.subr.bf16.mxu0 %v18840_v41  ;;  %v21866_v14 = vadd.f32 %v5644_v13, %v21854_v0  ;;  %v18891_v41 = vld [vmem:[#allocation8 + $0x24] ss:$72 sps:$4 sm:$0xff]   ;;  %v18919_v13 = vld [vmem:[#allocation8 + $0x2f0] ss:$72 sps:$4 sm:$0xff]  }
 0x233   :  { %v18915_v3 = vld [vmem:[#allocation8 + $0x264] ss:$72 sps:$4 sm:$0xff]  }
 0x234   :  { %6088 = vmatpush1.bf16.msra.mxu1 %v18841_v45  ;;  %v18894_v45 = vld [vmem:[#allocation8 + $0x9ac] ss:$72 sps:$4 sm:$0xff]  }
 0x235   :  { %6035 = vmatpush1.bf16.msra.mxu0 %v18838_v44  ;;  %6089 = vmatprep.subr.bf16.mxu1 %v18849_v48  ;;  %v18889_v44 = vld [vmem:[#allocation8 + $0x20] ss:$72 sps:$4 sm:$0xff]   ;;  %v18918_v7 = vld [vmem:[#allocation8 + $0xbec] ss:$72 sps:$4 sm:$0xff]  }
 0x236   :  { %6036 = vmatprep.subr.bf16.mxu0 %v18846_v47  ;;  %v18897_v47 = vld [vmem:[#allocation8 + $0xb4] ss:$72 sps:$4 sm:$0xff]   ;;  %v18892_v48 = vld [vmem:[#allocation8 + $0x9a8] ss:$72 sps:$4 sm:$0xff]  }
 0x238   :  { %6090 = vmatpush1.bf16.msra.mxu1 %v18847_v52  ;;  %v18903_v52 = vld [vmem:[#allocation8 + $0x144] ss:$72 sps:$4 sm:$0xff]  }
 0x239   :  { %6037 = vmatpush1.bf16.msra.mxu0 %v18844_v51  ;;  %6091 = vmatprep.subr.bf16.mxu1 %v18855_v57  ;;  %v18900_v51 = vld [vmem:[#allocation8 + $0xa3c] ss:$72 sps:$4 sm:$0xff]   ;;  %v18901_v57 = vld [vmem:[#allocation8 + $0x140] ss:$72 sps:$4 sm:$0xff]  }
 0x23a   :  { %6038 = vmatprep.subr.bf16.mxu0 %v18852_v56  ;;  %v18898_v56 = vld [vmem:[#allocation8 + $0xa38] ss:$72 sps:$4 sm:$0xff]  }
 0x23c   :  { %6092 = vmatpush1.bf16.msra.mxu1 %v18853_v60  ;;  %v18909_v60 = vld [vmem:[#allocation8 + $0x1d4] ss:$72 sps:$4 sm:$0xff]  }
 0x23d   :  { %6039 = vmatpush1.bf16.msra.mxu0 %v18850_v59  ;;  %6093 = vmatprep.subr.bf16.mxu1 %v18861_v63  ;;  %v18906_v59 = vld [vmem:[#allocation8 + $0xacc] ss:$72 sps:$4 sm:$0xff]   ;;  %v18907_v63 = vld [vmem:[#allocation8 + $0x1d0] ss:$72 sps:$4 sm:$0xff]  }
 0x23e   :  { %6040 = vmatprep.subr.bf16.mxu0 %v18858_v62  ;;  %v18904_v62 = vld [vmem:[#allocation8 + $0xac8] ss:$72 sps:$4 sm:$0xff]  }
 0x240   :  { %6094 = vmatpush1.bf16.msra.mxu1 %v18859_v5  ;;  %v18913_v5 = vld [vmem:[#allocation8 + $0x260] ss:$72 sps:$4 sm:$0xff]  }
 0x241   :  { %6041 = vmatpush1.bf16.msra.mxu0 %v18856_v4  ;;  %6095 = vmatprep.subr.bf16.mxu1 %v18867_v10  ;;  %v18910_v4 = vld [vmem:[#allocation8 + $0xb58] ss:$72 sps:$4 sm:$0xff]   ;;  %v18916_v10 = vld [vmem:[#allocation8 + $0xbe8] ss:$72 sps:$4 sm:$0xff]  }
 0x242   :  { %6042 = vmatprep.subr.bf16.mxu0 %v18864_v8  ;;  %v18921_v8 = vld [vmem:[#allocation8 + $0x2f4] ss:$72 sps:$4 sm:$0xff]  }
 0x244   :  { %6096 = vmatpush1.bf16.msra.mxu1 %v18865_v16  ;;  %v18924_v16 = vld [vmem:[#allocation8 + $0xc7c] ss:$72 sps:$4 sm:$0xff]  }
 0x245   :  { %6043 = vmatpush1.bf16.msra.mxu0 %v18862_v15  ;;  %6097 = vmatprep.subr.bf16.mxu1 %v18873_v18  ;;  %v5629_v15 = vadd.f32 %v21833_v24, %v21851_v61  ;;  %v5631_v18 = vadd.f32 %v21835_v25, %v21854_v0 }
 0x246   :  { %6044 = vmatprep.subr.bf16.mxu0 %v18870_v17  ;;  %v18927_v17 = vld [vmem:[#allocation8 + $0x384] ss:$72 sps:$4 sm:$0xff]  }
 0x248   :  { %6098 = vmatpush1.bf16.msra.mxu1 %v18871_v20  ;;  %v18922_v20 = vld [vmem:[#allocation8 + $0xc78] ss:$72 sps:$4 sm:$0xff]  }
 0x249   :  { %6045 = vmatpush1.bf16.msra.mxu0 %v18868_v19  ;;  %6099 = vmatprep.subr.bf16.mxu1 %v18879_v22  ;;  %v5633_v22 = vadd.f32 %v21837_v26, %v21851_v61  ;;  %v18928_v26 = vld [vmem:[#allocation8 + $0xd08] ss:$72 sps:$4 sm:$0xff]  }
 0x24a   :  { %6046 = vmatprep.subr.bf16.mxu0 %v18876_v21  ;;  %v18925_v21 = vld [vmem:[#allocation8 + $0x380] ss:$72 sps:$4 sm:$0xff]   ;;  %v18931_v61 = vld [vmem:[#allocation8 + $0x410] ss:$72 sps:$4 sm:$0xff]  }
 0x24c   :  { %6100 = vmatpush1.bf16.msra.mxu1 %v18877_v27 }
 0x24d   :  { %6047 = vmatpush1.bf16.msra.mxu0 %v18874_v23  ;;  %6101 = vmatprep.subr.bf16.mxu1 %v18885_v31 }
 0x24e   :  { %6048 = vmatprep.subr.bf16.mxu0 %v18882_v29  ;;  %v5635_v29 = vadd.f32 %v21839_v30, %v21854_v0  ;;  %v18936_v30 = vld [vmem:[#allocation8 + $0xd9c] ss:$72 sps:$4 sm:$0xff]  }
 0x24f   :  { %v18939_v0 = vld [vmem:[#allocation8 + $0x4a4] ss:$72 sps:$4 sm:$0xff]  }
 0x250   :  { %6102 = vmatpush1.bf16.msra.mxu1 %v18883_v35  ;;  %v18930_v35 = vld [vmem:[#allocation8 + $0xd0c] ss:$72 sps:$4 sm:$0xff]  }
 0x251   :  { %6049 = vmatpush1.bf16.msra.mxu0 %v18880_v32  ;;  %6124 = vmatprep.subr.bf16.mxu1 %v18888_v36  ;;  %v18933_v36 = vld [vmem:[#allocation8 + $0x414] ss:$72 sps:$4 sm:$0xff]  }
 0x252   :  { %6230 = vmatprep.subr.bf16.mxu0 %v18891_v41 }
 0x253   :  { %6104 = vmatmul.mubr.bf16.vlgmr.msra.gmra.mrb[16].mxu1 %v21773_v9 }
 0x254   :  { %6051 = vmatmul.mubr.bf16.vlgmr.msra.gmra.mrb[8].mxu0 %v21803_v28  ;;  %6125 = vmatpush1.bf16.msra.mxu1 %v18886_v43 }
 0x255   :  { %6231 = vmatpush1.bf16.msra.mxu0 %v18889_v44  ;;  %6126 = vmatprep.subr.bf16.mxu1 %v18894_v45  ;;  %v18934_v44 = vld [vmem:[#allocation8 + $0xd98] ss:$72 sps:$4 sm:$0xff]  }
 0x256   :  { %6232 = vmatprep.subr.bf16.mxu0 %v18897_v47  ;;  %6060 = vmatprep.mubr.bf16.mxu0 %v21805_v34  ;;  %v18937_v45 = vld [vmem:[#allocation8 + $0x4a0] ss:$72 sps:$4 sm:$0xff]  }
 0x257   :  { %6113 = vmatprep.mubr.bf16.mxu1 %v21779_v33 }
 0x258   :  { %6127 = vmatpush1.bf16.msra.mxu1 %v18892_v48 }
 0x259   :  { %6233 = vmatpush1.bf16.msra.mxu0 %v18895_v50  ;;  %6128 = vmatprep.subr.bf16.mxu1 %v18900_v51 }
 0x25a   :  { %6234 = vmatprep.subr.bf16.mxu0 %v18903_v52 }
 0x25b   :  { %6114 = vmatmul.mubr.bf16.gmra.mrb[20].mxu1 %v21781_v38 }
 0x25c   :  { %6061 = vmatmul.mubr.bf16.gmra.mrb[12].mxu0 %v21811_v42  ;;  %6129 = vmatpush1.bf16.msra.mxu1 %v18898_v56 }
 0x25d   :  { %6235 = vmatpush1.bf16.msra.mxu0 %v18901_v57  ;;  %6130 = vmatprep.subr.bf16.mxu1 %v18906_v59  ;;  %v18942_v57 = vld [vmem:[#allocation8 + $0xe2c] ss:$72 sps:$4 sm:$0xff]  }
 0x25e   :  { %6236 = vmatprep.subr.bf16.mxu0 %v18909_v60  ;;  %6156 = vmatprep.mubr.bf16.mxu1 %v21769_v55  ;;  %v18945_v59 = vld [vmem:[#allocation8 + $0x534] ss:$72 sps:$4 sm:$0xff]  }
 0x25f   :  { %6262 = vmatprep.mubr.bf16.mxu0 %v21767_v54 }
 0x260   :  { %6131 = vmatpush1.bf16.msra.mxu1 %v18904_v62  ;;  %v18943_v62 = vld [vmem:[#allocation8 + $0x530] ss:$72 sps:$4 sm:$0xff]  }
 0x261   :  { %6237 = vmatpush1.bf16.msra.mxu0 %v18907_v63  ;;  %6132 = vmatprep.subr.bf16.mxu1 %v18912_v1  ;;  %v18951_v63 = vld [vmem:[#allocation8 + $0x5c4] ss:$72 sps:$4 sm:$0xff]   ;;  %v18949_v1 = vld [vmem:[#allocation8 + $0x5c0] ss:$72 sps:$4 sm:$0xff]  }
 0x262   :  { %6238 = vmatprep.subr.bf16.mxu0 %v18915_v3  ;;  %v18954_v3 = vld [vmem:[#allocation8 + $0xf4c] ss:$72 sps:$4 sm:$0xff]  }
 0x264   :  { %6133 = vmatpush1.bf16.msra.mxu1 %v18910_v4  ;;  %v18957_v4 = vld [vmem:[#allocation8 + $0x654] ss:$72 sps:$4 sm:$0xff]  }
 0x265   :  { %6239 = vmatpush1.bf16.msra.mxu0 %v18913_v5  ;;  %6134 = vmatprep.subr.bf16.mxu1 %v18918_v7  ;;  %v18955_v5 = vld [vmem:[#allocation8 + $0x650] ss:$72 sps:$4 sm:$0xff]   ;;  %v18960_v7 = vld [vmem:[#allocation8 + $0xfdc] ss:$72 sps:$4 sm:$0xff]  }
 0x266   :  { %6240 = vmatprep.subr.bf16.mxu0 %v18921_v8  ;;  %v18963_v8 = vld [vmem:[#allocation8 + $0x6e4] ss:$72 sps:$4 sm:$0xff]  }
 0x267   :  { %v5734_v19 = vpop.f32.mrb[0].mxu0 }
 0x268   :  { %v21882_v23 = vadd.f32 %v5734_v19, %v5629_v15  ;;  %v5736_v27 = vpop.f32.mrb[1].mxu0  ;;  %6135 = vmatpush1.bf16.msra.mxu1 %v18916_v10  ;;  %v18958_v10 = vld [vmem:[#allocation8 + $0xfd8] ss:$72 sps:$4 sm:$0xff]   ;;  %v18966_v15 = vld [vmem:[#allocation8 + $0x106c] ss:$72 sps:$4 sm:$0xff]  }
 0x269   :  { %v21886_v24 = vadd.f32 %v5736_v27, %v5631_v18  ;;  %v5738_v31 = vpop.f32.mrb[2].mxu0  ;;  %6241 = vmatpush1.bf16.msra.mxu0 %v18919_v13  ;;  %6136 = vmatprep.subr.bf16.mxu1 %v18924_v16  ;;  %v18961_v13 = vld [vmem:[#allocation8 + $0x6e0] ss:$72 sps:$4 sm:$0xff]   ;;  %v18969_v16 = vld [vmem:[#allocation8 + $0x774] ss:$72 sps:$4 sm:$0xff]  }
 0x26a   :  { %v21888_v32 = vadd.f32 %v5738_v31, %v5633_v22  ;;  %v5740_v25 = vpop.f32.mrb[3].mxu0  ;;  %6242 = vmatprep.subr.bf16.mxu0 %v18927_v17  ;;  %v18964_v17 = vld [vmem:[#allocation8 + $0x1068] ss:$72 sps:$4 sm:$0xff]   ;;  %v18972_v19 = vld [vmem:[#allocation8 + $0x10fc] ss:$72 sps:$4 sm:$0xff]  }
 0x26b   :  { %v21890_v41 = vadd.f32 %v5740_v25, %v5635_v29  ;;  %v18967_v18 = vld [vmem:[#allocation8 + $0x770] ss:$72 sps:$4 sm:$0xff]   ;;  %v18973_v22 = vld [vmem:[#allocation8 + $0x800] ss:$72 sps:$4 sm:$0xff]   ;;  %v18978_v27 = vld [vmem:[#allocation8 + $0x118c] ss:$72 sps:$4 sm:$0xff]  }
 0x26c   :  { %6137 = vmatpush1.bf16.msra.mxu1 %v18922_v20  ;;  %v18975_v20 = vld [vmem:[#allocation8 + $0x804] ss:$72 sps:$4 sm:$0xff]   ;;  %v18981_v29 = vld [vmem:[#allocation8 + $0x894] ss:$72 sps:$4 sm:$0xff]   ;;  %v18976_v31 = vld [vmem:[#allocation8 + $0x1188] ss:$72 sps:$4 sm:$0xff]  }
 0x26d   :  { %6243 = vmatpush1.bf16.msra.mxu0 %v18925_v21  ;;  %6138 = vmatprep.subr.bf16.mxu1 %v18930_v35  ;;  %v18970_v21 = vld [vmem:[#allocation8 + $0x10f8] ss:$72 sps:$4 sm:$0xff]   ;;  %v18984_v35 = vld [vmem:[#allocation8 + $0x121c] ss:$72 sps:$4 sm:$0xff]  }
 0x26e   :  { %6244 = vmatprep.subr.bf16.mxu0 %v18933_v36  ;;  %v18979_v25 = vld [vmem:[#allocation8 + $0x890] ss:$72 sps:$4 sm:$0xff]   ;;  %v18987_v36 = vld [vmem:[#allocation8 + $0x924] ss:$72 sps:$4 sm:$0xff]  }
 0x26f   :  { %v5744_v43 = vpop.f32.mrb[4].mxu0 }
 0x270   :  { %v21893_v47 = vadd.f32 %v5744_v43, %v21857_v2  ;;  %v5746_v48 = vpop.f32.mrb[5].mxu0  ;;  %6139 = vmatpush1.bf16.msra.mxu1 %v18928_v26  ;;  %v18940_v2 = vld [vmem:[#allocation8 + $0xe28] ss:$72 sps:$4 sm:$0xff]   ;;  %v18982_v26 = vld [vmem:[#allocation8 + $0x1218] ss:$72 sps:$4 sm:$0xff]  }
 0x271   :  { %v21896_v50 = vadd.f32 %v5746_v48, %v21860_v6  ;;  %v5748_v51 = vpop.f32.mrb[6].mxu0  ;;  %6245 = vmatpush1.bf16.msra.mxu0 %v18931_v61  ;;  %6140 = vmatprep.subr.bf16.mxu1 %v18936_v30  ;;  %v18948_v6 = vld [vmem:[#allocation8 + $0xebc] ss:$72 sps:$4 sm:$0xff]   ;;  %v18985_v61 = vld [vmem:[#allocation8 + $0x920] ss:$72 sps:$4 sm:$0xff]  }
 0x272   :  { %v21899_v52 = vadd.f32 %v5748_v51, %v21863_v11  ;;  %v5750_v56 = vpop.f32.mrb[7].mxu0  ;;  %6246 = vmatprep.subr.bf16.mxu0 %v18939_v0  ;;  %v18946_v11 = vld [vmem:[#allocation8 + $0xeb8] ss:$72 sps:$4 sm:$0xff]   ;;  %v18990_v30 = vld [vmem:[#allocation8 + $0x12ac] ss:$72 sps:$4 sm:$0xff]  }
 0x273   :  { %v21902_v60 = vadd.f32 %v5750_v56, %v21866_v14  ;;  %v18952_v14 = vld [vmem:[#allocation8 + $0xf48] ss:$72 sps:$4 sm:$0xff]   ;;  %v18993_v0 = vld [vmem:[#allocation8 + $0x9b4] ss:$72 sps:$4 sm:$0xff]   ;;  %v18999_v48 = vld [vmem:[#allocation8 + $0xa44] ss:$72 sps:$4 sm:$0xff]  }
 0x274   :  { %23765 = vst [vmem:[#allocation40_spill] sm:$0xff] %v21899_v52  ;;  %6141 = vmatpush1.bf16.msra.mxu1 %v18934_v44  ;;  %v18988_v43 = vld [vmem:[#allocation8 + $0x12a8] ss:$72 sps:$4 sm:$0xff]   ;;  %v18994_v51 = vld [vmem:[#allocation8 + $0x1338] ss:$72 sps:$4 sm:$0xff]  }
 0x275   :  { %23766 = vst [vmem:[#allocation41_spill] sm:$0xff] %v21902_v60  ;;  %6247 = vmatpush1.bf16.msra.mxu0 %v18937_v45  ;;  %6142 = vmatprep.subr.bf16.mxu1 %v18942_v57  ;;  %v18991_v44 = vld [vmem:[#allocation8 + $0x9b0] ss:$72 sps:$4 sm:$0xff]   ;;  %v18996_v45 = vld [vmem:[#allocation8 + $0x133c] ss:$72 sps:$4 sm:$0xff]  }
 0x276   :  { %6248 = vmatprep.subr.bf16.mxu0 %v18945_v59  ;;  %v18997_v56 = vld [vmem:[#allocation8 + $0xa40] ss:$72 sps:$4 sm:$0xff]   ;;  %v19002_v57 = vld [vmem:[#allocation8 + $0x13cc] ss:$72 sps:$4 sm:$0xff]   ;;  %v19522_v52 = vld [vmem:[#allocation8 + $0x17d0] ss:$72 sps:$4 sm:$0xff]  }
 0x277   :  { %v19005_v59 = vld [vmem:[#allocation8 + $0xad4] ss:$72 sps:$4 sm:$0xff]  }
 0x278   :  { %6143 = vmatpush1.bf16.msra.mxu1 %v18940_v2  ;;  %v19000_v2 = vld [vmem:[#allocation8 + $0x13c8] ss:$72 sps:$4 sm:$0xff]  }
 0x279   :  { %6249 = vmatpush1.bf16.msra.mxu0 %v18943_v62  ;;  %6144 = vmatprep.subr.bf16.mxu1 %v18948_v6  ;;  %v19003_v62 = vld [vmem:[#allocation8 + $0xad0] ss:$72 sps:$4 sm:$0xff]   ;;  %v19008_v6 = vld [vmem:[#allocation8 + $0x145c] ss:$72 sps:$4 sm:$0xff]  }
 0x27a   :  { %6250 = vmatprep.subr.bf16.mxu0 %v18951_v63  ;;  %v19011_v63 = vld [vmem:[#allocation8 + $0xb64] ss:$72 sps:$4 sm:$0xff]  }
 0x27c   :  { %6145 = vmatpush1.bf16.msra.mxu1 %v18946_v11  ;;  %v19006_v11 = vld [vmem:[#allocation8 + $0x1458] ss:$72 sps:$4 sm:$0xff]  }
 0x27d   :  { %6251 = vmatpush1.bf16.msra.mxu0 %v18949_v1  ;;  %6146 = vmatprep.subr.bf16.mxu1 %v18954_v3  ;;  %v19009_v1 = vld [vmem:[#allocation8 + $0xb60] ss:$72 sps:$4 sm:$0xff]   ;;  %v19014_v3 = vld [vmem:[#allocation8 + $0x14ec] ss:$72 sps:$4 sm:$0xff]  }
 0x27e   :  { %6252 = vmatprep.subr.bf16.mxu0 %v18957_v4  ;;  %v19017_v4 = vld [vmem:[#allocation8 + $0xbf4] ss:$72 sps:$4 sm:$0xff]  }
 0x280   :  { %6147 = vmatpush1.bf16.msra.mxu1 %v18952_v14  ;;  %v19012_v14 = vld [vmem:[#allocation8 + $0x14e8] ss:$72 sps:$4 sm:$0xff]  }
 0x281   :  { %6253 = vmatpush1.bf16.msra.mxu0 %v18955_v5  ;;  %6148 = vmatprep.subr.bf16.mxu1 %v18960_v7  ;;  %v19015_v5 = vld [vmem:[#allocation8 + $0xbf0] ss:$72 sps:$4 sm:$0xff]   ;;  %v19020_v7 = vld [vmem:[#allocation8 + $0x157c] ss:$72 sps:$4 sm:$0xff]  }
 0x282   :  { %6254 = vmatprep.subr.bf16.mxu0 %v18963_v8  ;;  %v19023_v8 = vld [vmem:[#allocation8 + $0xc84] ss:$72 sps:$4 sm:$0xff]  }
 0x284   :  { %6149 = vmatpush1.bf16.msra.mxu1 %v18958_v10  ;;  %v19018_v10 = vld [vmem:[#allocation8 + $0x1578] ss:$72 sps:$4 sm:$0xff]  }
 0x285   :  { %6255 = vmatpush1.bf16.msra.mxu0 %v18961_v13  ;;  %6150 = vmatprep.subr.bf16.mxu1 %v18966_v15  ;;  %v19021_v13 = vld [vmem:[#allocation8 + $0xc80] ss:$72 sps:$4 sm:$0xff]   ;;  %v19026_v15 = vld [vmem:[#allocation8 + $0x160c] ss:$72 sps:$4 sm:$0xff]  }
 0x286   :  { %6256 = vmatprep.subr.bf16.mxu0 %v18969_v16  ;;  %v19029_v16 = vld [vmem:[#allocation8 + $0xd14] ss:$72 sps:$4 sm:$0xff]  }
 0x288   :  { %6151 = vmatpush1.bf16.msra.mxu1 %v18964_v17  ;;  %v19024_v17 = vld [vmem:[#allocation8 + $0x1608] ss:$72 sps:$4 sm:$0xff]  }
 0x289   :  { %6257 = vmatpush1.bf16.msra.mxu0 %v18967_v18  ;;  %6152 = vmatprep.subr.bf16.mxu1 %v18972_v19  ;;  %v19027_v18 = vld [vmem:[#allocation8 + $0xd10] ss:$72 sps:$4 sm:$0xff]   ;;  %v19032_v19 = vld [vmem:[#allocation8 + $0x169c] ss:$72 sps:$4 sm:$0xff]  }
 0x28a   :  { %6258 = vmatprep.subr.bf16.mxu0 %v18975_v20  ;;  %v19035_v20 = vld [vmem:[#allocation8 + $0xda4] ss:$72 sps:$4 sm:$0xff]  }
 0x28c   :  { %6153 = vmatpush1.bf16.msra.mxu1 %v18970_v21  ;;  %v19030_v21 = vld [vmem:[#allocation8 + $0x1698] ss:$72 sps:$4 sm:$0xff]  }
 0x28d   :  { %6259 = vmatpush1.bf16.msra.mxu0 %v18973_v22  ;;  %6154 = vmatprep.subr.bf16.mxu1 %v18978_v27  ;;  %v19033_v22 = vld [vmem:[#allocation8 + $0xda0] ss:$72 sps:$4 sm:$0xff]   ;;  %v19038_v27 = vld [vmem:[#allocation8 + $0x172c] ss:$72 sps:$4 sm:$0xff]  }
 0x28e   :  { %6260 = vmatprep.subr.bf16.mxu0 %v18981_v29  ;;  %v19041_v29 = vld [vmem:[#allocation8 + $0xe34] ss:$72 sps:$4 sm:$0xff]  }
 0x290   :  { %6155 = vmatpush1.bf16.msra.mxu1 %v18976_v31  ;;  %v19036_v31 = vld [vmem:[#allocation8 + $0x1728] ss:$72 sps:$4 sm:$0xff]  }
 0x291   :  { %6261 = vmatpush1.bf16.msra.mxu0 %v18979_v25  ;;  %6177 = vmatprep.subr.bf16.mxu1 %v18984_v35  ;;  %v19039_v25 = vld [vmem:[#allocation8 + $0xe30] ss:$72 sps:$4 sm:$0xff]   ;;  %v19044_v35 = vld [vmem:[#allocation8 + $0x17bc] ss:$72 sps:$4 sm:$0xff]  }
 0x292   :  { %6283 = vmatprep.subr.bf16.mxu0 %v18987_v36  ;;  %v19047_v36 = vld [vmem:[#allocation8 + $0xec4] ss:$72 sps:$4 sm:$0xff]  }
 0x293   :  { %6157 = vmatmul.mubr.bf16.vlgmr.msra.gmra.mrb[16].mxu1 %v21775_v12 }
 0x294   :  { %6263 = vmatmul.mubr.bf16.vlgmr.msra.gmra.mrb[16].mxu0 %v21773_v9  ;;  %6178 = vmatpush1.bf16.msra.mxu1 %v18982_v26  ;;  %v19042_v26 = vld [vmem:[#allocation8 + $0x17b8] ss:$72 sps:$4 sm:$0xff]  }
 0x295   :  { %6284 = vmatpush1.bf16.msra.mxu0 %v18985_v61  ;;  %6179 = vmatprep.subr.bf16.mxu1 %v18990_v30  ;;  %v19045_v61 = vld [vmem:[#allocation8 + $0xec0] ss:$72 sps:$4 sm:$0xff]   ;;  %v19050_v30 = vld [vmem:[#allocation8 + $0x184c] ss:$72 sps:$4 sm:$0xff]  }
 0x296   :  { %6285 = vmatprep.subr.bf16.mxu0 %v18993_v0  ;;  %6166 = vmatprep.mubr.bf16.mxu1 %v21783_v39  ;;  %v19053_v0 = vld [vmem:[#allocation8 + $0xf54] ss:$72 sps:$4 sm:$0xff]  }
 0x297   :  { %6272 = vmatprep.mubr.bf16.mxu0 %v21779_v33 }
 0x298   :  { %6180 = vmatpush1.bf16.msra.mxu1 %v18988_v43  ;;  %v19048_v43 = vld [vmem:[#allocation8 + $0x1848] ss:$72 sps:$4 sm:$0xff]  }
 0x299   :  { %6286 = vmatpush1.bf16.msra.mxu0 %v18991_v44  ;;  %6181 = vmatprep.subr.bf16.mxu1 %v18996_v45  ;;  %v19051_v44 = vld [vmem:[#allocation8 + $0xf50] ss:$72 sps:$4 sm:$0xff]   ;;  %v19056_v45 = vld [vmem:[#allocation8 + $0x18dc] ss:$72 sps:$4 sm:$0xff]  }
 0x29a   :  { %6287 = vmatprep.subr.bf16.mxu0 %v18999_v48  ;;  %v19059_v48 = vld [vmem:[#allocation8 + $0xfe4] ss:$72 sps:$4 sm:$0xff]  }
 0x29b   :  { %6167 = vmatmul.mubr.bf16.gmra.mrb[20].mxu1 %v21785_v40 }
 0x29c   :  { %6273 = vmatmul.mubr.bf16.gmra.mrb[20].mxu0 %v21781_v38  ;;  %6182 = vmatpush1.bf16.msra.mxu1 %v18994_v51  ;;  %v19054_v51 = vld [vmem:[#allocation8 + $0x18d8] ss:$72 sps:$4 sm:$0xff]  }
 0x29d   :  { %6288 = vmatpush1.bf16.msra.mxu0 %v18997_v56  ;;  %6183 = vmatprep.subr.bf16.mxu1 %v19002_v57  ;;  %v19057_v56 = vld [vmem:[#allocation8 + $0xfe0] ss:$72 sps:$4 sm:$0xff]   ;;  %v19062_v57 = vld [vmem:[#allocation8 + $0x196c] ss:$72 sps:$4 sm:$0xff]  }
 0x29e   :  { %6289 = vmatprep.subr.bf16.mxu0 %v19005_v59  ;;  %6209 = vmatprep.mubr.bf16.mxu1 %v21797_v49  ;;  %v19065_v59 = vld [vmem:[#allocation8 + $0x1074] ss:$72 sps:$4 sm:$0xff]  }
 0x29f   :  { %6315 = vmatprep.mubr.bf16.mxu0 %v21769_v55 }
 0x2a0   :  { %6184 = vmatpush1.bf16.msra.mxu1 %v19000_v2  ;;  %v19060_v2 = vld [vmem:[#allocation8 + $0x1968] ss:$72 sps:$4 sm:$0xff]  }
 0x2a1   :  { %6290 = vmatpush1.bf16.msra.mxu0 %v19003_v62  ;;  %6185 = vmatprep.subr.bf16.mxu1 %v19008_v6  ;;  %v19063_v62 = vld [vmem:[#allocation8 + $0x1070] ss:$72 sps:$4 sm:$0xff]   ;;  %v19068_v6 = vld [vmem:[#allocation8 + $0x19fc] ss:$72 sps:$4 sm:$0xff]  }
 0x2a2   :  { %6291 = vmatprep.subr.bf16.mxu0 %v19011_v63  ;;  %v19071_v63 = vld [vmem:[#allocation8 + $0x1104] ss:$72 sps:$4 sm:$0xff]  }
 0x2a4   :  { %6186 = vmatpush1.bf16.msra.mxu1 %v19006_v11  ;;  %v19066_v11 = vld [vmem:[#allocation8 + $0x19f8] ss:$72 sps:$4 sm:$0xff]  }
 0x2a5   :  { %6292 = vmatpush1.bf16.msra.mxu0 %v19009_v1  ;;  %6187 = vmatprep.subr.bf16.mxu1 %v19014_v3  ;;  %v19069_v1 = vld [vmem:[#allocation8 + $0x1100] ss:$72 sps:$4 sm:$0xff]   ;;  %v19074_v3 = vld [vmem:[#allocation8 + $0x1a8c] ss:$72 sps:$4 sm:$0xff]  }
 0x2a6   :  { %6293 = vmatprep.subr.bf16.mxu0 %v19017_v4  ;;  %v19077_v4 = vld [vmem:[#allocation8 + $0x1194] ss:$72 sps:$4 sm:$0xff]  }
 0x2a8   :  { %6188 = vmatpush1.bf16.msra.mxu1 %v19012_v14  ;;  %v19072_v14 = vld [vmem:[#allocation8 + $0x1a88] ss:$72 sps:$4 sm:$0xff]  }
 0x2a9   :  { %6294 = vmatpush1.bf16.msra.mxu0 %v19015_v5  ;;  %6189 = vmatprep.subr.bf16.mxu1 %v19020_v7  ;;  %v19075_v5 = vld [vmem:[#allocation8 + $0x1190] ss:$72 sps:$4 sm:$0xff]   ;;  %v19080_v7 = vld [vmem:[#allocation8 + $0x1224] ss:$72 sps:$4 sm:$0xff]  }
 0x2aa   :  { %6295 = vmatprep.subr.bf16.mxu0 %v19023_v8  ;;  %v19083_v8 = vld [vmem:[#allocation8 + $0x2c] ss:$72 sps:$4 sm:$0xff]  }
 0x2ac   :  { %6190 = vmatpush1.bf16.msra.mxu1 %v19018_v10  ;;  %v19078_v10 = vld [vmem:[#allocation8 + $0x1220] ss:$72 sps:$4 sm:$0xff]  }
 0x2ad   :  { %6296 = vmatpush1.bf16.msra.mxu0 %v19021_v13  ;;  %6191 = vmatprep.subr.bf16.mxu1 %v19026_v15  ;;  %v19081_v13 = vld [vmem:[#allocation8 + $0x28] ss:$72 sps:$4 sm:$0xff]   ;;  %v19086_v15 = vld [vmem:[#allocation8 + $0x12b4] ss:$72 sps:$4 sm:$0xff]  }
 0x2ae   :  { %6297 = vmatprep.subr.bf16.mxu0 %v19029_v16  ;;  %v19089_v16 = vld [vmem:[#allocation8 + $0xbc] ss:$72 sps:$4 sm:$0xff]  }
 0x2b0   :  { %6192 = vmatpush1.bf16.msra.mxu1 %v19024_v17  ;;  %v19084_v17 = vld [vmem:[#allocation8 + $0x12b0] ss:$72 sps:$4 sm:$0xff]  }
 0x2b1   :  { %6298 = vmatpush1.bf16.msra.mxu0 %v19027_v18  ;;  %6193 = vmatprep.subr.bf16.mxu1 %v19032_v19  ;;  %v19087_v18 = vld [vmem:[#allocation8 + $0xb8] ss:$72 sps:$4 sm:$0xff]   ;;  %v19092_v19 = vld [vmem:[#allocation8 + $0x1344] ss:$72 sps:$4 sm:$0xff]  }
 0x2b2   :  { %6299 = vmatprep.subr.bf16.mxu0 %v19035_v20  ;;  %v19095_v20 = vld [vmem:[#allocation8 + $0x14c] ss:$72 sps:$4 sm:$0xff]  }
 0x2b4   :  { %6194 = vmatpush1.bf16.msra.mxu1 %v19030_v21  ;;  %v19090_v21 = vld [vmem:[#allocation8 + $0x1340] ss:$72 sps:$4 sm:$0xff]  }
 0x2b5   :  { %6300 = vmatpush1.bf16.msra.mxu0 %v19033_v22  ;;  %6195 = vmatprep.subr.bf16.mxu1 %v19038_v27  ;;  %v19093_v22 = vld [vmem:[#allocation8 + $0x148] ss:$72 sps:$4 sm:$0xff]   ;;  %v19098_v27 = vld [vmem:[#allocation8 + $0x13d4] ss:$72 sps:$4 sm:$0xff]  }
 0x2b6   :  { %6301 = vmatprep.subr.bf16.mxu0 %v19041_v29  ;;  %v19101_v29 = vld [vmem:[#allocation8 + $0x1dc] ss:$72 sps:$4 sm:$0xff]  }
 0x2b8   :  { %6196 = vmatpush1.bf16.msra.mxu1 %v19036_v31  ;;  %v19096_v31 = vld [vmem:[#allocation8 + $0x13d0] ss:$72 sps:$4 sm:$0xff]  }
 0x2b9   :  { %6302 = vmatpush1.bf16.msra.mxu0 %v19039_v25  ;;  %6197 = vmatprep.subr.bf16.mxu1 %v19044_v35  ;;  %v19099_v25 = vld [vmem:[#allocation8 + $0x1d8] ss:$72 sps:$4 sm:$0xff]   ;;  %v19104_v35 = vld [vmem:[#allocation8 + $0x1464] ss:$72 sps:$4 sm:$0xff]  }
 0x2ba   :  { %6303 = vmatprep.subr.bf16.mxu0 %v19047_v36  ;;  %v19107_v36 = vld [vmem:[#allocation8 + $0x26c] ss:$72 sps:$4 sm:$0xff]  }
 0x2bc   :  { %6198 = vmatpush1.bf16.msra.mxu1 %v19042_v26  ;;  %v19102_v26 = vld [vmem:[#allocation8 + $0x1460] ss:$72 sps:$4 sm:$0xff]  }
 0x2bd   :  { %6304 = vmatpush1.bf16.msra.mxu0 %v19045_v61  ;;  %6199 = vmatprep.subr.bf16.mxu1 %v19050_v30  ;;  %v19105_v61 = vld [vmem:[#allocation8 + $0x268] ss:$72 sps:$4 sm:$0xff]   ;;  %v19110_v30 = vld [vmem:[#allocation8 + $0x14f4] ss:$72 sps:$4 sm:$0xff]  }
 0x2be   :  { %6305 = vmatprep.subr.bf16.mxu0 %v19053_v0  ;;  %v19113_v0 = vld [vmem:[#allocation8 + $0x2fc] ss:$72 sps:$4 sm:$0xff]  }
 0x2c0   :  { %6200 = vmatpush1.bf16.msra.mxu1 %v19048_v43  ;;  %v19108_v43 = vld [vmem:[#allocation8 + $0x14f0] ss:$72 sps:$4 sm:$0xff]  }
 0x2c1   :  { %6306 = vmatpush1.bf16.msra.mxu0 %v19051_v44  ;;  %6201 = vmatprep.subr.bf16.mxu1 %v19056_v45  ;;  %v19111_v44 = vld [vmem:[#allocation8 + $0x2f8] ss:$72 sps:$4 sm:$0xff]   ;;  %v19116_v45 = vld [vmem:[#allocation8 + $0x1584] ss:$72 sps:$4 sm:$0xff]  }
 0x2c2   :  { %6307 = vmatprep.subr.bf16.mxu0 %v19059_v48  ;;  %v19119_v48 = vld [vmem:[#allocation8 + $0x38c] ss:$72 sps:$4 sm:$0xff]  }
 0x2c4   :  { %6202 = vmatpush1.bf16.msra.mxu1 %v19054_v51 }
 0x2c5   :  { %6308 = vmatpush1.bf16.msra.mxu0 %v19057_v56  ;;  %6203 = vmatprep.subr.bf16.mxu1 %v19062_v57  ;;  %v19114_v56 = vld [vmem:[#allocation8 + $0x1580] ss:$72 sps:$4 sm:$0xff]  }
 0x2c6   :  { %6309 = vmatprep.subr.bf16.mxu0 %v19065_v59  ;;  %v19117_v57 = vld [vmem:[#allocation8 + $0x388] ss:$72 sps:$4 sm:$0xff]  }
 0x2c8   :  { %6204 = vmatpush1.bf16.msra.mxu1 %v19060_v2 }
 0x2c9   :  { %6310 = vmatpush1.bf16.msra.mxu0 %v19063_v62  ;;  %6205 = vmatprep.subr.bf16.mxu1 %v19068_v6  ;;  %v19122_v62 = vld [vmem:[#allocation8 + $0x1614] ss:$72 sps:$4 sm:$0xff]  }
 0x2ca   :  { %6311 = vmatprep.subr.bf16.mxu0 %v19071_v63  ;;  %v19125_v6 = vld [vmem:[#allocation8 + $0x41c] ss:$72 sps:$4 sm:$0xff]   ;;  %v21927_v63 = vsub.s32 2, %v21842_v46 }
 0x2cc   :  { %6206 = vmatpush1.bf16.msra.mxu1 %v19066_v11 }
 0x2cd   :  { %6312 = vmatpush1.bf16.msra.mxu0 %v19069_v1  ;;  %6207 = vmatprep.subr.bf16.mxu1 %v19074_v3  ;;  %v21932_v1 = vsub.s32 3, %v21842_v46  ;;  %v19120_v3 = vld [vmem:[#allocation8 + $0x1610] ss:$72 sps:$4 sm:$0xff]  }
 0x2ce   :  { %6313 = vmatprep.subr.bf16.mxu0 %v19077_v4  ;;  %v19123_v4 = vld [vmem:[#allocation8 + $0x418] ss:$72 sps:$4 sm:$0xff]  }
 0x2d0   :  { %6208 = vmatpush1.bf16.msra.mxu1 %v19072_v14  ;;  %v19128_v14 = vld [vmem:[#allocation8 + $0x16a4] ss:$72 sps:$4 sm:$0xff]  }
 0x2d1   :  { %6314 = vmatpush1.bf16.msra.mxu0 %v19075_v5  ;;  %6389 = vmatprep.subr.bf16.mxu1 %v19083_v8  ;;  %v19131_v5 = vld [vmem:[#allocation8 + $0x4ac] ss:$72 sps:$4 sm:$0xff]  }
 0x2d2   :  { %6336 = vmatprep.subr.bf16.mxu0 %v19080_v7  ;;  %v21934_v7 = vld [vmem:[#allocation9] sm:$0xff] }
 0x2d3   :  { %6210 = vmatmul.mubr.bf16.vlgmr.msra.gmra.mrb[16].mxu1 %v21803_v28  ;;  %v21938_v8 = vrot.slane %v21934_v7, %v21927_v63 }
 0x2d4   :  { %6316 = vmatmul.mubr.bf16.vlgmr.msra.gmra.mrb[16].mxu0 %v21775_v12  ;;  %6390 = vmatpush1.bf16.msra.mxu1 %v19081_v13 }
 0x2d5   :  { %6337 = vmatpush1.bf16.msra.mxu0 %v19078_v10  ;;  %6391 = vmatprep.subr.bf16.mxu1 %v19089_v16  ;;  %v21942_v10 = vrot.slane %v21934_v7, %v21932_v1  ;;  %v19129_v16 = vld [vmem:[#allocation8 + $0x4a8] ss:$72 sps:$4 sm:$0xff]  }
 0x2d6   :  { %6338 = vmatprep.subr.bf16.mxu0 %v19086_v15  ;;  %6219 = vmatprep.mubr.bf16.mxu1 %v21805_v34  ;;  %v19126_v15 = vld [vmem:[#allocation8 + $0x16a0] ss:$72 sps:$4 sm:$0xff]  }
 0x2d7   :  { %6325 = vmatprep.mubr.bf16.mxu0 %v21783_v39 }
 0x2d8   :  { %6392 = vmatpush1.bf16.msra.mxu1 %v19087_v18 }
 0x2d9   :  { %6339 = vmatpush1.bf16.msra.mxu0 %v19084_v17  ;;  %6393 = vmatprep.subr.bf16.mxu1 %v19095_v20 }
 0x2da   :  { %6340 = vmatprep.subr.bf16.mxu0 %v19092_v19 }
 0x2db   :  { %6220 = vmatmul.mubr.bf16.gmra.mrb[20].mxu1 %v21811_v42 }
 0x2dc   :  { %6326 = vmatmul.mubr.bf16.gmra.mrb[20].mxu0 %v21785_v40  ;;  %6394 = vmatpush1.bf16.msra.mxu1 %v19093_v22  ;;  %v19137_v22 = vld [vmem:[#allocation8 + $0x53c] ss:$72 sps:$4 sm:$0xff]  }
 0x2dd   :  { %6341 = vmatpush1.bf16.msra.mxu0 %v19090_v21  ;;  %6395 = vmatprep.subr.bf16.mxu1 %v19101_v29  ;;  %v19134_v21 = vld [vmem:[#allocation8 + $0x1734] ss:$72 sps:$4 sm:$0xff]  }
 0x2de   :  { %6342 = vmatprep.subr.bf16.mxu0 %v19098_v27  ;;  %6368 = vmatprep.mubr.bf16.mxu0 %v21797_v49 }
 0x2df   :  { %6421 = vmatprep.mubr.bf16.mxu1 %v21767_v54 }
 0x2e0   :  { %6396 = vmatpush1.bf16.msra.mxu1 %v19099_v25  ;;  %v19132_v25 = vld [vmem:[#allocation8 + $0x1730] ss:$72 sps:$4 sm:$0xff]  }
 0x2e1   :  { %6343 = vmatpush1.bf16.msra.mxu0 %v19096_v31  ;;  %6397 = vmatprep.subr.bf16.mxu1 %v19107_v36  ;;  %v19140_v36 = vld [vmem:[#allocation8 + $0x17c4] ss:$72 sps:$4 sm:$0xff]  }
 0x2e2   :  { %6344 = vmatprep.subr.bf16.mxu0 %v19104_v35  ;;  %v19135_v35 = vld [vmem:[#allocation8 + $0x538] ss:$72 sps:$4 sm:$0xff]  }
 0x2e4   :  { %6398 = vmatpush1.bf16.msra.mxu1 %v19105_v61  ;;  %v19138_v61 = vld [vmem:[#allocation8 + $0x17c0] ss:$72 sps:$4 sm:$0xff]  }
 0x2e5   :  { %6345 = vmatpush1.bf16.msra.mxu0 %v19102_v26  ;;  %6399 = vmatprep.subr.bf16.mxu1 %v19113_v0  ;;  %v19143_v26 = vld [vmem:[#allocation8 + $0x5cc] ss:$72 sps:$4 sm:$0xff]  }
 0x2e6   :  { %6346 = vmatprep.subr.bf16.mxu0 %v19110_v30  ;;  %v21920_v51 = vpop.f32.mrb[8].mxu1  ;;  %v19141_v30 = vld [vmem:[#allocation8 + $0x5c8] ss:$72 sps:$4 sm:$0xff]   ;;  %v19146_v0 = vld [vmem:[#allocation8 + $0x1854] ss:$72 sps:$4 sm:$0xff]  }
 0x2e7   :  { %v21922_v59 = vpop.f32.mrb[9].mxu1 }
 0x2e8   :  { %v21924_v2 = vpop.f32.mrb[10].mxu1  ;;  %6400 = vmatpush1.bf16.msra.mxu1 %v19111_v44  ;;  %v19144_v44 = vld [vmem:[#allocation8 + $0x1850] ss:$72 sps:$4 sm:$0xff]  }
 0x2e9   :  { %6347 = vmatpush1.bf16.msra.mxu0 %v19108_v43  ;;  %v21929_v11 = vpop.f32.mrb[11].mxu1  ;;  %6401 = vmatprep.subr.bf16.mxu1 %v19119_v48  ;;  %v19149_v43 = vld [vmem:[#allocation8 + $0x65c] ss:$72 sps:$4 sm:$0xff]  }
 0x2ea   :  { %6348 = vmatprep.subr.bf16.mxu0 %v19116_v45  ;;  %v19147_v45 = vld [vmem:[#allocation8 + $0x658] ss:$72 sps:$4 sm:$0xff]   ;;  %v19152_v48 = vld [vmem:[#allocation8 + $0x18e4] ss:$72 sps:$4 sm:$0xff]  }
 0x2ec   :  { %6402 = vmatpush1.bf16.msra.mxu1 %v19117_v57  ;;  %v19150_v57 = vld [vmem:[#allocation8 + $0x18e0] ss:$72 sps:$4 sm:$0xff]  }
 0x2ed   :  { %6349 = vmatpush1.bf16.msra.mxu0 %v19114_v56  ;;  %6403 = vmatprep.subr.bf16.mxu1 %v19125_v6  ;;  %v19155_v56 = vld [vmem:[#allocation8 + $0x6ec] ss:$72 sps:$4 sm:$0xff]  }
 0x2ee   :  { %6350 = vmatprep.subr.bf16.mxu0 %v19122_v62  ;;  %v5903_v13 = vpop.f32.mrb[12].mxu1  ;;  %v19153_v62 = vld [vmem:[#allocation8 + $0x6e8] ss:$72 sps:$4 sm:$0xff]   ;;  %v19158_v6 = vld [vmem:[#allocation8 + $0x1974] ss:$72 sps:$4 sm:$0xff]  }
 0x2ef   :  { %v21945_v17 = vadd.f32 %v5903_v13, %v21938_v8  ;;  %v5905_v18 = vpop.f32.mrb[13].mxu1  ;;  %v19167_v13 = vld [vmem:[#allocation8 + $0x80c] ss:$72 sps:$4 sm:$0xff]  }
 0x2f0   :  { %v21948_v19 = vadd.f32 %v5905_v18, %v21942_v10  ;;  %v5907_v20 = vpop.f32.mrb[14].mxu1  ;;  %6404 = vmatpush1.bf16.msra.mxu1 %v19123_v4  ;;  %v19156_v4 = vld [vmem:[#allocation8 + $0x1970] ss:$72 sps:$4 sm:$0xff]   ;;  %v19170_v18 = vld [vmem:[#allocation8 + $0x1a94] ss:$72 sps:$4 sm:$0xff]  }
 0x2f1   :  { %23767 = vst [vmem:[#allocation42_spill] sm:$0xff] %v21945_v17  ;;  %6351 = vmatpush1.bf16.msra.mxu0 %v19120_v3  ;;  %v21951_v27 = vadd.f32 %v5907_v20, %v21938_v8  ;;  %v5909_v29 = vpop.f32.mrb[15].mxu1  ;;  %6405 = vmatprep.subr.bf16.mxu1 %v19131_v5  ;;  %v19161_v3 = vld [vmem:[#allocation8 + $0x77c] ss:$72 sps:$4 sm:$0xff]   ;;  %v19509_v17 = vld [vmem:[#allocation8 + $0x162c] ss:$72 sps:$4 sm:$0xff]  }
 0x2f2   :  { %6352 = vmatprep.subr.bf16.mxu0 %v19128_v14  ;;  %v21954_v31 = vadd.f32 %v5909_v29, %v21942_v10  ;;  %v19159_v14 = vld [vmem:[#allocation8 + $0x778] ss:$72 sps:$4 sm:$0xff]   ;;  %v19164_v5 = vld [vmem:[#allocation8 + $0x1a04] ss:$72 sps:$4 sm:$0xff]  }
 0x2f3   :  { %23768 = vst [vmem:[#allocation43_spill] sm:$0xff] %v21951_v27  ;;  %v19173_v20 = vld [vmem:[#allocation8 + $0x89c] ss:$72 sps:$4 sm:$0xff]   ;;  %v19176_v29 = vld [vmem:[#allocation8 + $0x92c] ss:$72 sps:$4 sm:$0xff]  }
 0x2f4   :  { %23769 = vst [vmem:[#allocation44_spill] sm:$0xff] %v21954_v31  ;;  %6406 = vmatpush1.bf16.msra.mxu1 %v19129_v16  ;;  %v19165_v16 = vld [vmem:[#allocation8 + $0x808] ss:$72 sps:$4 sm:$0xff]   ;;  %v19341_v31 = vld [vmem:[#allocation8 + $0x66c] ss:$72 sps:$4 sm:$0xff]  }
 0x2f5   :  { %6353 = vmatpush1.bf16.msra.mxu0 %v19126_v15  ;;  %6407 = vmatprep.subr.bf16.mxu1 %v19137_v22  ;;  %v19162_v15 = vld [vmem:[#allocation8 + $0x1a00] ss:$72 sps:$4 sm:$0xff]  }
 0x2f6   :  { %6354 = vmatprep.subr.bf16.mxu0 %v19134_v21  ;;  %v19168_v21 = vld [vmem:[#allocation8 + $0x1a90] ss:$72 sps:$4 sm:$0xff]  }
 0x2f7   :  { %v19171_v22 = vld [vmem:[#allocation8 + $0x898] ss:$72 sps:$4 sm:$0xff]  }
 0x2f8   :  { %6408 = vmatpush1.bf16.msra.mxu1 %v19135_v35  ;;  %v19174_v35 = vld [vmem:[#allocation8 + $0x928] ss:$72 sps:$4 sm:$0xff]  }
 0x2f9   :  { %6355 = vmatpush1.bf16.msra.mxu0 %v19132_v25  ;;  %6409 = vmatprep.subr.bf16.mxu1 %v19143_v26  ;;  %v19272_v25 = vld [vmem:[#allocation8 + $0x34] ss:$72 sps:$4 sm:$0xff]   ;;  %v19270_v26 = vld [vmem:[#allocation8 + $0x30] ss:$72 sps:$4 sm:$0xff]  }
 0x2fa   :  { %6356 = vmatprep.subr.bf16.mxu0 %v19140_v36  ;;  %v19179_v36 = vld [vmem:[#allocation8 + $0x9bc] ss:$72 sps:$4 sm:$0xff]  }
 0x2fc   :  { %6410 = vmatpush1.bf16.msra.mxu1 %v19141_v30  ;;  %v19177_v30 = vld [vmem:[#allocation8 + $0x9b8] ss:$72 sps:$4 sm:$0xff]  }
 0x2fd   :  { %6357 = vmatpush1.bf16.msra.mxu0 %v19138_v61  ;;  %6411 = vmatprep.subr.bf16.mxu1 %v19149_v43  ;;  %v19278_v61 = vld [vmem:[#allocation8 + $0xc4] ss:$72 sps:$4 sm:$0xff]   ;;  %v19276_v43 = vld [vmem:[#allocation8 + $0xc0] ss:$72 sps:$4 sm:$0xff]  }
 0x2fe   :  { %6358 = vmatprep.subr.bf16.mxu0 %v19146_v0  ;;  %v19182_v0 = vld [vmem:[#allocation8 + $0xa4c] ss:$72 sps:$4 sm:$0xff]  }
 0x300   :  { %6412 = vmatpush1.bf16.msra.mxu1 %v19147_v45  ;;  %v19185_v45 = vld [vmem:[#allocation8 + $0xadc] ss:$72 sps:$4 sm:$0xff]  }
 0x301   :  { %6359 = vmatpush1.bf16.msra.mxu0 %v19144_v44  ;;  %6413 = vmatprep.subr.bf16.mxu1 %v19155_v56  ;;  %v19180_v44 = vld [vmem:[#allocation8 + $0xa48] ss:$72 sps:$4 sm:$0xff]  }
 0x302   :  { %6360 = vmatprep.subr.bf16.mxu0 %v19152_v48  ;;  %v19284_v48 = vld [vmem:[#allocation8 + $0x154] ss:$72 sps:$4 sm:$0xff]   ;;  %v19282_v56 = vld [vmem:[#allocation8 + $0x150] ss:$72 sps:$4 sm:$0xff]  }
 0x304   :  { %6414 = vmatpush1.bf16.msra.mxu1 %v19153_v62  ;;  %v19183_v62 = vld [vmem:[#allocation8 + $0xad8] ss:$72 sps:$4 sm:$0xff]  }
 0x305   :  { %6361 = vmatpush1.bf16.msra.mxu0 %v19150_v57  ;;  %6415 = vmatprep.subr.bf16.mxu1 %v19161_v3  ;;  %v19290_v57 = vld [vmem:[#allocation8 + $0x1e4] ss:$72 sps:$4 sm:$0xff]   ;;  %v19288_v3 = vld [vmem:[#allocation8 + $0x1e0] ss:$72 sps:$4 sm:$0xff]  }
 0x306   :  { %6362 = vmatprep.subr.bf16.mxu0 %v19158_v6  ;;  %v19188_v6 = vld [vmem:[#allocation8 + $0xb6c] ss:$72 sps:$4 sm:$0xff]  }
 0x308   :  { %6416 = vmatpush1.bf16.msra.mxu1 %v19159_v14  ;;  %v19186_v14 = vld [vmem:[#allocation8 + $0xb68] ss:$72 sps:$4 sm:$0xff]  }
 0x309   :  { %6363 = vmatpush1.bf16.msra.mxu0 %v19156_v4  ;;  %6417 = vmatprep.subr.bf16.mxu1 %v19167_v13  ;;  %v19296_v4 = vld [vmem:[#allocation8 + $0x274] ss:$72 sps:$4 sm:$0xff]   ;;  %v19294_v13 = vld [vmem:[#allocation8 + $0x270] ss:$72 sps:$4 sm:$0xff]  }
 0x30a   :  { %6364 = vmatprep.subr.bf16.mxu0 %v19164_v5  ;;  %v19191_v5 = vld [vmem:[#allocation8 + $0xbfc] ss:$72 sps:$4 sm:$0xff]  }
 0x30c   :  { %6418 = vmatpush1.bf16.msra.mxu1 %v19165_v16  ;;  %v19189_v16 = vld [vmem:[#allocation8 + $0xbf8] ss:$72 sps:$4 sm:$0xff]  }
 0x30d   :  { %6365 = vmatpush1.bf16.msra.mxu0 %v19162_v15  ;;  %6419 = vmatprep.subr.bf16.mxu1 %v19173_v20  ;;  %v19302_v15 = vld [vmem:[#allocation8 + $0x304] ss:$72 sps:$4 sm:$0xff]  }
 0x30e   :  { %6366 = vmatprep.subr.bf16.mxu0 %v19170_v18  ;;  %v19194_v18 = vld [vmem:[#allocation8 + $0xc8c] ss:$72 sps:$4 sm:$0xff]  }
 0x310   :  { %6420 = vmatpush1.bf16.msra.mxu1 %v19171_v22 }
 0x311   :  { %6367 = vmatpush1.bf16.msra.mxu0 %v19168_v21  ;;  %6442 = vmatprep.subr.bf16.mxu1 %v19176_v29  ;;  %v19300_v21 = vld [vmem:[#allocation8 + $0x300] ss:$72 sps:$4 sm:$0xff]   ;;  %v19308_v29 = vld [vmem:[#allocation8 + $0x394] ss:$72 sps:$4 sm:$0xff]  }
 0x312   :  { %6548 = vmatprep.subr.bf16.mxu0 %v19272_v25 }
 0x313   :  { %6422 = vmatmul.mubr.bf16.vlgmr.msra.gmra.mrb[24].mxu1 %v21773_v9 }
 0x314   :  { %6369 = vmatmul.mubr.bf16.vlgmr.msra.gmra.mrb[16].mxu0 %v21803_v28  ;;  %6443 = vmatpush1.bf16.msra.mxu1 %v19174_v35  ;;  %v19192_v35 = vld [vmem:[#allocation8 + $0xc88] ss:$72 sps:$4 sm:$0xff]  }
 0x315   :  { %6378 = vmatprep.mubr.bf16.mxu0 %v21805_v34  ;;  %6444 = vmatprep.subr.bf16.mxu1 %v19179_v36  ;;  %v21971_v36 = vsub.s32 4, %v21842_v46 }
 0x316   :  { %6431 = vmatprep.mubr.bf16.mxu1 %v21779_v33  ;;  %6549 = vmatpush1.bf16.msra.mxu0 %v19270_v26 }
 0x317   :  { %6550 = vmatprep.subr.bf16.mxu0 %v19278_v61  ;;  %23770 = vst [vmem:[#allocation45_spill] sm:$0xff] %v21971_v36  ;;  %v19197_v61 = vld [vmem:[#allocation8 + $0xd1c] ss:$72 sps:$4 sm:$0xff]  }
 0x318   :  { %6445 = vmatpush1.bf16.msra.mxu1 %v19177_v30  ;;  %v21976_v30 = vsub.s32 5, %v21842_v46 }
 0x319   :  { %6446 = vmatprep.subr.bf16.mxu1 %v19182_v0  ;;  %v19306_v0 = vld [vmem:[#allocation8 + $0x390] ss:$72 sps:$4 sm:$0xff]  }
 0x31a   :  { %6551 = vmatpush1.bf16.msra.mxu0 %v19276_v43  ;;  %23771 = vst [vmem:[#allocation46_spill] sm:$0xff] %v21976_v30  ;;  %v19314_v43 = vld [vmem:[#allocation8 + $0x424] ss:$72 sps:$4 sm:$0xff]  }
 0x31b   :  { %6432 = vmatmul.mubr.bf16.gmra.mrb[28].mxu1 %v21781_v38  ;;  %6552 = vmatprep.subr.bf16.mxu0 %v19284_v48  ;;  %v19200_v48 = vld [vmem:[#allocation8 + $0xdac] ss:$72 sps:$4 sm:$0xff]  }
 0x31c   :  { %6379 = vmatmul.mubr.bf16.gmra.mrb[20].mxu0 %v21811_v42  ;;  %6447 = vmatpush1.bf16.msra.mxu1 %v19180_v44  ;;  %v19195_v44 = vld [vmem:[#allocation8 + $0xd18] ss:$72 sps:$4 sm:$0xff]  }
 0x31d   :  { %6474 = vmatprep.mubr.bf16.mxu1 %v21769_v55  ;;  %6448 = vmatprep.subr.bf16.mxu1 %v19185_v45  ;;  %v21980_v45 = vrot.slane %v21934_v7, %v21971_v36 }
 0x31e   :  { %6553 = vmatpush1.bf16.msra.mxu0 %v19282_v56  ;;  %6580 = vmatprep.mubr.bf16.mxu0 %v21767_v54  ;;  %v21984_v56 = vrot.slane %v21934_v7, %v21976_v30  ;;  %v19329_v30 = vld [vmem:[#allocation8 + $0x54c] ss:$72 sps:$4 sm:$0xff]  }
 0x31f   :  { %6554 = vmatprep.subr.bf16.mxu0 %v19290_v57 }
 0x320   :  { %6449 = vmatpush1.bf16.msra.mxu1 %v19183_v62  ;;  %v19312_v62 = vld [vmem:[#allocation8 + $0x420] ss:$72 sps:$4 sm:$0xff]  }
 0x321   :  { %6450 = vmatprep.subr.bf16.mxu1 %v19188_v6 }
 0x322   :  { %6555 = vmatpush1.bf16.msra.mxu0 %v19288_v3 }
 0x323   :  { %6556 = vmatprep.subr.bf16.mxu0 %v19296_v4  ;;  %v19320_v4 = vld [vmem:[#allocation8 + $0x4b4] ss:$72 sps:$4 sm:$0xff]  }
 0x324   :  { %6451 = vmatpush1.bf16.msra.mxu1 %v19186_v14  ;;  %v19198_v14 = vld [vmem:[#allocation8 + $0xda8] ss:$72 sps:$4 sm:$0xff]  }
 0x325   :  { %6452 = vmatprep.subr.bf16.mxu1 %v19191_v5 }
 0x326   :  { %6557 = vmatpush1.bf16.msra.mxu0 %v19294_v13 }
 0x327   :  { %v21964_v20 = vpop.f32.mrb[8].mxu0  ;;  %6558 = vmatprep.subr.bf16.mxu0 %v19302_v15  ;;  %v19203_v15 = vld [vmem:[#allocation8 + $0xe3c] ss:$72 sps:$4 sm:$0xff]  }
 0x328   :  { %v21966_v22 = vpop.f32.mrb[9].mxu0  ;;  %6453 = vmatpush1.bf16.msra.mxu1 %v19189_v16 }
 0x329   :  { %v21968_v25 = vpop.f32.mrb[10].mxu0  ;;  %6454 = vmatprep.subr.bf16.mxu1 %v19194_v18 }
 0x32a   :  { %v21973_v26 = vpop.f32.mrb[11].mxu0  ;;  %6559 = vmatpush1.bf16.msra.mxu0 %v19300_v21  ;;  %v19318_v21 = vld [vmem:[#allocation8 + $0x4b0] ss:$72 sps:$4 sm:$0xff]  }
 0x32b   :  { %6560 = vmatprep.subr.bf16.mxu0 %v19308_v29  ;;  %v19326_v29 = vld [vmem:[#allocation8 + $0x544] ss:$72 sps:$4 sm:$0xff]  }
 0x32c   :  { %6455 = vmatpush1.bf16.msra.mxu1 %v19192_v35  ;;  %v19201_v35 = vld [vmem:[#allocation8 + $0xe38] ss:$72 sps:$4 sm:$0xff]  }
 0x32d   :  { %6456 = vmatprep.subr.bf16.mxu1 %v19197_v61  ;;  %v19206_v61 = vld [vmem:[#allocation8 + $0xecc] ss:$72 sps:$4 sm:$0xff]  }
 0x32e   :  { %6561 = vmatpush1.bf16.msra.mxu0 %v19306_v0  ;;  %v19324_v0 = vld [vmem:[#allocation8 + $0x540] ss:$72 sps:$4 sm:$0xff]  }
 0x32f   :  { %v6062_v57 = vpop.f32.mrb[12].mxu0  ;;  %6562 = vmatprep.subr.bf16.mxu0 %v19314_v43  ;;  %v19332_v43 = vld [vmem:[#allocation8 + $0x5d4] ss:$72 sps:$4 sm:$0xff]  }
 0x330   :  { %v21987_v6 = vadd.f32 %v6062_v57, %v21980_v45  ;;  %v6064_v3 = vpop.f32.mrb[13].mxu0  ;;  %6457 = vmatpush1.bf16.msra.mxu1 %v19195_v44  ;;  %v19204_v44 = vld [vmem:[#allocation8 + $0xec8] ss:$72 sps:$4 sm:$0xff]  }
 0x331   :  { %v21990_v5 = vadd.f32 %v6064_v3, %v21984_v56  ;;  %v6066_v13 = vpop.f32.mrb[14].mxu0  ;;  %6458 = vmatprep.subr.bf16.mxu1 %v19200_v48  ;;  %v19209_v48 = vld [vmem:[#allocation8 + $0xf5c] ss:$72 sps:$4 sm:$0xff]   ;;  %v19330_v57 = vld [vmem:[#allocation8 + $0x5d0] ss:$72 sps:$4 sm:$0xff]  }
 0x332   :  { %23772 = vst [vmem:[#allocation47_spill] sm:$0xff] %v21987_v6  ;;  %v21993_v7 = vadd.f32 %v6066_v13, %v21980_v45  ;;  %v6068_v16 = vpop.f32.mrb[15].mxu0  ;;  %6563 = vmatpush1.bf16.msra.mxu0 %v19312_v62  ;;  %v19338_v3 = vld [vmem:[#allocation8 + $0x664] ss:$72 sps:$4 sm:$0xff]   ;;  %v19207_v62 = vld [vmem:[#allocation8 + $0xf58] ss:$72 sps:$4 sm:$0xff]  }
 0x333   :  { %23773 = vst [vmem:[#allocation48_spill] sm:$0xff] %v21990_v5  ;;  %v21996_v18 = vadd.f32 %v6068_v16, %v21984_v56  ;;  %6564 = vmatprep.subr.bf16.mxu0 %v19320_v4  ;;  %v19212_v4 = vld [vmem:[#allocation8 + $0xfec] ss:$72 sps:$4 sm:$0xff]   ;;  %v19336_v13 = vld [vmem:[#allocation8 + $0x660] ss:$72 sps:$4 sm:$0xff]  }
 0x334   :  { %23774 = vst [vmem:[#allocation49_spill] sm:$0xff] %v21993_v7  ;;  %6459 = vmatpush1.bf16.msra.mxu1 %v19198_v14  ;;  %v19344_v14 = vld [vmem:[#allocation8 + $0x6f4] ss:$72 sps:$4 sm:$0xff]   ;;  %v21079_v7 = vld [vmem:[#allocation9] sm:$0xff]  ;;  %v19471_v5 = vld [vmem:[#allocation8 + $0x12c8] ss:$72 sps:$4 sm:$0xff]  }
 0x335   :  { %23775 = vst [vmem:[#allocation50_spill] sm:$0xff] %v21996_v18  ;;  %6460 = vmatprep.subr.bf16.mxu1 %v19203_v15  ;;  %v19210_v15 = vld [vmem:[#allocation8 + $0xfe8] ss:$72 sps:$4 sm:$0xff]   ;;  %v19215_v16 = vld [vmem:[#allocation8 + $0x107c] ss:$72 sps:$4 sm:$0xff]  }
 0x336   :  { %6565 = vmatpush1.bf16.msra.mxu0 %v19318_v21  ;;  %v19342_v21 = vld [vmem:[#allocation8 + $0x6f0] ss:$72 sps:$4 sm:$0xff]   ;;  %v19437_v6 = vld [vmem:[#allocation8 + $0xf6c] ss:$72 sps:$4 sm:$0xff]  }
 0x337   :  { %6566 = vmatprep.subr.bf16.mxu0 %v19326_v29  ;;  %v19350_v29 = vld [vmem:[#allocation8 + $0x784] ss:$72 sps:$4 sm:$0xff]  }
 0x338   :  { %6461 = vmatpush1.bf16.msra.mxu1 %v19201_v35  ;;  %v19213_v35 = vld [vmem:[#allocation8 + $0x1078] ss:$72 sps:$4 sm:$0xff]  }
 0x339   :  { %6462 = vmatprep.subr.bf16.mxu1 %v19206_v61  ;;  %v19218_v61 = vld [vmem:[#allocation8 + $0x110c] ss:$72 sps:$4 sm:$0xff]  }
 0x33a   :  { %6567 = vmatpush1.bf16.msra.mxu0 %v19324_v0  ;;  %v19348_v0 = vld [vmem:[#allocation8 + $0x780] ss:$72 sps:$4 sm:$0xff]  }
 0x33b   :  { %6568 = vmatprep.subr.bf16.mxu0 %v19332_v43  ;;  %v19356_v43 = vld [vmem:[#allocation8 + $0x814] ss:$72 sps:$4 sm:$0xff]  }
 0x33c   :  { %6463 = vmatpush1.bf16.msra.mxu1 %v19204_v44  ;;  %v19216_v44 = vld [vmem:[#allocation8 + $0x1108] ss:$72 sps:$4 sm:$0xff]  }
 0x33d   :  { %6464 = vmatprep.subr.bf16.mxu1 %v19209_v48  ;;  %v19221_v48 = vld [vmem:[#allocation8 + $0x119c] ss:$72 sps:$4 sm:$0xff]  }
 0x33e   :  { %6569 = vmatpush1.bf16.msra.mxu0 %v19330_v57  ;;  %v19354_v57 = vld [vmem:[#allocation8 + $0x810] ss:$72 sps:$4 sm:$0xff]  }
 0x33f   :  { %6570 = vmatprep.subr.bf16.mxu0 %v19338_v3  ;;  %v19362_v3 = vld [vmem:[#allocation8 + $0x8a4] ss:$72 sps:$4 sm:$0xff]  }
 0x340   :  { %6465 = vmatpush1.bf16.msra.mxu1 %v19207_v62  ;;  %v19219_v62 = vld [vmem:[#allocation8 + $0x1198] ss:$72 sps:$4 sm:$0xff]  }
 0x341   :  { %6466 = vmatprep.subr.bf16.mxu1 %v19212_v4  ;;  %v19224_v4 = vld [vmem:[#allocation8 + $0x122c] ss:$72 sps:$4 sm:$0xff]  }
 0x342   :  { %6571 = vmatpush1.bf16.msra.mxu0 %v19336_v13  ;;  %v19360_v13 = vld [vmem:[#allocation8 + $0x8a0] ss:$72 sps:$4 sm:$0xff]  }
 0x343   :  { %6572 = vmatprep.subr.bf16.mxu0 %v19344_v14  ;;  %v19368_v14 = vld [vmem:[#allocation8 + $0x934] ss:$72 sps:$4 sm:$0xff]  }
 0x344   :  { %6467 = vmatpush1.bf16.msra.mxu1 %v19210_v15  ;;  %v19222_v15 = vld [vmem:[#allocation8 + $0x1228] ss:$72 sps:$4 sm:$0xff]  }
 0x345   :  { %6468 = vmatprep.subr.bf16.mxu1 %v19215_v16  ;;  %v19227_v16 = vld [vmem:[#allocation8 + $0x12bc] ss:$72 sps:$4 sm:$0xff]  }
 0x346   :  { %6573 = vmatpush1.bf16.msra.mxu0 %v19342_v21  ;;  %v19366_v21 = vld [vmem:[#allocation8 + $0x930] ss:$72 sps:$4 sm:$0xff]  }
 0x347   :  { %6574 = vmatprep.subr.bf16.mxu0 %v19350_v29  ;;  %v19374_v29 = vld [vmem:[#allocation8 + $0x9c4] ss:$72 sps:$4 sm:$0xff]  }
 0x348   :  { %6469 = vmatpush1.bf16.msra.mxu1 %v19213_v35  ;;  %v19225_v35 = vld [vmem:[#allocation8 + $0x12b8] ss:$72 sps:$4 sm:$0xff]  }
 0x349   :  { %6470 = vmatprep.subr.bf16.mxu1 %v19218_v61  ;;  %v19230_v61 = vld [vmem:[#allocation8 + $0x134c] ss:$72 sps:$4 sm:$0xff]  }
 0x34a   :  { %6575 = vmatpush1.bf16.msra.mxu0 %v19348_v0  ;;  %v19372_v0 = vld [vmem:[#allocation8 + $0x9c0] ss:$72 sps:$4 sm:$0xff]  }
 0x34b   :  { %6576 = vmatprep.subr.bf16.mxu0 %v19356_v43  ;;  %v19380_v43 = vld [vmem:[#allocation8 + $0xa54] ss:$72 sps:$4 sm:$0xff]  }
 0x34c   :  { %6471 = vmatpush1.bf16.msra.mxu1 %v19216_v44  ;;  %v19228_v44 = vld [vmem:[#allocation8 + $0x1348] ss:$72 sps:$4 sm:$0xff]  }
 0x34d   :  { %6472 = vmatprep.subr.bf16.mxu1 %v19221_v48  ;;  %v19233_v48 = vld [vmem:[#allocation8 + $0x13dc] ss:$72 sps:$4 sm:$0xff]  }
 0x34e   :  { %6577 = vmatpush1.bf16.msra.mxu0 %v19354_v57  ;;  %v19378_v57 = vld [vmem:[#allocation8 + $0xa50] ss:$72 sps:$4 sm:$0xff]  }
 0x34f   :  { %6578 = vmatprep.subr.bf16.mxu0 %v19362_v3  ;;  %v19386_v3 = vld [vmem:[#allocation8 + $0xae4] ss:$72 sps:$4 sm:$0xff]  }
 0x350   :  { %6473 = vmatpush1.bf16.msra.mxu1 %v19219_v62  ;;  %v19231_v62 = vld [vmem:[#allocation8 + $0x13d8] ss:$72 sps:$4 sm:$0xff]  }
 0x351   :  { %6495 = vmatprep.subr.bf16.mxu1 %v19224_v4  ;;  %v19236_v4 = vld [vmem:[#allocation8 + $0x146c] ss:$72 sps:$4 sm:$0xff]  }
 0x352   :  { %6579 = vmatpush1.bf16.msra.mxu0 %v19360_v13  ;;  %v19384_v13 = vld [vmem:[#allocation8 + $0xae0] ss:$72 sps:$4 sm:$0xff]  }
 0x353   :  { %6475 = vmatmul.mubr.bf16.vlgmr.msra.gmra.mrb[24].mxu1 %v21775_v12  ;;  %6601 = vmatprep.subr.bf16.mxu0 %v19368_v14  ;;  %v19392_v14 = vld [vmem:[#allocation8 + $0xb74] ss:$72 sps:$4 sm:$0xff]  }
 0x354   :  { %6496 = vmatpush1.bf16.msra.mxu1 %v19222_v15  ;;  %6484 = vmatprep.mubr.bf16.mxu1 %v21783_v39  ;;  %v19234_v15 = vld [vmem:[#allocation8 + $0x1468] ss:$72 sps:$4 sm:$0xff]  }
 0x355   :  { %6497 = vmatprep.subr.bf16.mxu1 %v19227_v16  ;;  %6581 = vmatmul.mubr.bf16.vlgmr.msra.gmra.mrb[24].mxu0 %v21773_v9  ;;  %v19239_v16 = vld [vmem:[#allocation8 + $0x14fc] ss:$72 sps:$4 sm:$0xff]  }
 0x356   :  { %6602 = vmatpush1.bf16.msra.mxu0 %v19366_v21  ;;  %6590 = vmatprep.mubr.bf16.mxu0 %v21779_v33  ;;  %v19390_v21 = vld [vmem:[#allocation8 + $0xb70] ss:$72 sps:$4 sm:$0xff]  }
 0x357   :  { %6603 = vmatprep.subr.bf16.mxu0 %v19374_v29  ;;  %v19398_v29 = vld [vmem:[#allocation8 + $0xc04] ss:$72 sps:$4 sm:$0xff]  }
 0x358   :  { %6498 = vmatpush1.bf16.msra.mxu1 %v19225_v35  ;;  %v19237_v35 = vld [vmem:[#allocation8 + $0x14f8] ss:$72 sps:$4 sm:$0xff]  }
 0x359   :  { %6499 = vmatprep.subr.bf16.mxu1 %v19230_v61  ;;  %v19242_v61 = vld [vmem:[#allocation8 + $0x158c] ss:$72 sps:$4 sm:$0xff]  }
 0x35a   :  { %6604 = vmatpush1.bf16.msra.mxu0 %v19372_v0  ;;  %v19396_v0 = vld [vmem:[#allocation8 + $0xc00] ss:$72 sps:$4 sm:$0xff]  }
 0x35b   :  { %6485 = vmatmul.mubr.bf16.gmra.mrb[28].mxu1 %v21785_v40  ;;  %6605 = vmatprep.subr.bf16.mxu0 %v19380_v43  ;;  %v19404_v43 = vld [vmem:[#allocation8 + $0xc94] ss:$72 sps:$4 sm:$0xff]  }
 0x35c   :  { %6500 = vmatpush1.bf16.msra.mxu1 %v19228_v44  ;;  %6527 = vmatprep.mubr.bf16.mxu1 %v21797_v49  ;;  %v19240_v44 = vld [vmem:[#allocation8 + $0x1588] ss:$72 sps:$4 sm:$0xff]  }
 0x35d   :  { %6501 = vmatprep.subr.bf16.mxu1 %v19233_v48  ;;  %6591 = vmatmul.mubr.bf16.gmra.mrb[28].mxu0 %v21781_v38  ;;  %v19245_v48 = vld [vmem:[#allocation8 + $0x161c] ss:$72 sps:$4 sm:$0xff]  }
 0x35e   :  { %6606 = vmatpush1.bf16.msra.mxu0 %v19378_v57  ;;  %6633 = vmatprep.mubr.bf16.mxu0 %v21769_v55  ;;  %v19402_v57 = vld [vmem:[#allocation8 + $0xc90] ss:$72 sps:$4 sm:$0xff]  }
 0x35f   :  { %6607 = vmatprep.subr.bf16.mxu0 %v19386_v3  ;;  %v19410_v3 = vld [vmem:[#allocation8 + $0xd24] ss:$72 sps:$4 sm:$0xff]  }
 0x360   :  { %6502 = vmatpush1.bf16.msra.mxu1 %v19231_v62  ;;  %v19243_v62 = vld [vmem:[#allocation8 + $0x1618] ss:$72 sps:$4 sm:$0xff]  }
 0x361   :  { %6503 = vmatprep.subr.bf16.mxu1 %v19236_v4  ;;  %v19248_v4 = vld [vmem:[#allocation8 + $0x16ac] ss:$72 sps:$4 sm:$0xff]  }
 0x362   :  { %6608 = vmatpush1.bf16.msra.mxu0 %v19384_v13  ;;  %v19408_v13 = vld [vmem:[#allocation8 + $0xd20] ss:$72 sps:$4 sm:$0xff]  }
 0x363   :  { %6609 = vmatprep.subr.bf16.mxu0 %v19392_v14  ;;  %v19416_v14 = vld [vmem:[#allocation8 + $0xdb4] ss:$72 sps:$4 sm:$0xff]  }
 0x364   :  { %6504 = vmatpush1.bf16.msra.mxu1 %v19234_v15  ;;  %v19246_v15 = vld [vmem:[#allocation8 + $0x16a8] ss:$72 sps:$4 sm:$0xff]  }
 0x365   :  { %6505 = vmatprep.subr.bf16.mxu1 %v19239_v16  ;;  %v19251_v16 = vld [vmem:[#allocation8 + $0x173c] ss:$72 sps:$4 sm:$0xff]  }
 0x366   :  { %6610 = vmatpush1.bf16.msra.mxu0 %v19390_v21  ;;  %v19414_v21 = vld [vmem:[#allocation8 + $0xdb0] ss:$72 sps:$4 sm:$0xff]  }
 0x367   :  { %6611 = vmatprep.subr.bf16.mxu0 %v19398_v29  ;;  %v19422_v29 = vld [vmem:[#allocation8 + $0xe44] ss:$72 sps:$4 sm:$0xff]  }
 0x368   :  { %6506 = vmatpush1.bf16.msra.mxu1 %v19237_v35  ;;  %v19249_v35 = vld [vmem:[#allocation8 + $0x1738] ss:$72 sps:$4 sm:$0xff]  }
 0x369   :  { %6507 = vmatprep.subr.bf16.mxu1 %v19242_v61  ;;  %v19254_v61 = vld [vmem:[#allocation8 + $0x17cc] ss:$72 sps:$4 sm:$0xff]  }
 0x36a   :  { %6612 = vmatpush1.bf16.msra.mxu0 %v19396_v0  ;;  %v19420_v0 = vld [vmem:[#allocation8 + $0xe40] ss:$72 sps:$4 sm:$0xff]  }
 0x36b   :  { %6613 = vmatprep.subr.bf16.mxu0 %v19404_v43  ;;  %v19428_v43 = vld [vmem:[#allocation8 + $0xed4] ss:$72 sps:$4 sm:$0xff]  }
 0x36c   :  { %6508 = vmatpush1.bf16.msra.mxu1 %v19240_v44  ;;  %v19252_v44 = vld [vmem:[#allocation8 + $0x17c8] ss:$72 sps:$4 sm:$0xff]  }
 0x36d   :  { %6509 = vmatprep.subr.bf16.mxu1 %v19245_v48  ;;  %v19257_v48 = vld [vmem:[#allocation8 + $0x185c] ss:$72 sps:$4 sm:$0xff]  }
 0x36e   :  { %6614 = vmatpush1.bf16.msra.mxu0 %v19402_v57  ;;  %v19426_v57 = vld [vmem:[#allocation8 + $0xed0] ss:$72 sps:$4 sm:$0xff]  }
 0x36f   :  { %6615 = vmatprep.subr.bf16.mxu0 %v19410_v3  ;;  %v19434_v3 = vld [vmem:[#allocation8 + $0xf64] ss:$72 sps:$4 sm:$0xff]  }
 0x370   :  { %6510 = vmatpush1.bf16.msra.mxu1 %v19243_v62  ;;  %v19255_v62 = vld [vmem:[#allocation8 + $0x1858] ss:$72 sps:$4 sm:$0xff]  }
 0x371   :  { %6511 = vmatprep.subr.bf16.mxu1 %v19248_v4  ;;  %v19260_v4 = vld [vmem:[#allocation8 + $0x18ec] ss:$72 sps:$4 sm:$0xff]  }
 0x372   :  { %6616 = vmatpush1.bf16.msra.mxu0 %v19408_v13  ;;  %v19432_v13 = vld [vmem:[#allocation8 + $0xf60] ss:$72 sps:$4 sm:$0xff]  }
 0x373   :  { %6617 = vmatprep.subr.bf16.mxu0 %v19416_v14  ;;  %v19440_v14 = vld [vmem:[#allocation8 + $0xff4] ss:$72 sps:$4 sm:$0xff]  }
 0x374   :  { %6512 = vmatpush1.bf16.msra.mxu1 %v19246_v15  ;;  %v19258_v15 = vld [vmem:[#allocation8 + $0x18e8] ss:$72 sps:$4 sm:$0xff]  }
 0x375   :  { %6513 = vmatprep.subr.bf16.mxu1 %v19251_v16  ;;  %v19263_v16 = vld [vmem:[#allocation8 + $0x197c] ss:$72 sps:$4 sm:$0xff]  }
 0x376   :  { %6618 = vmatpush1.bf16.msra.mxu0 %v19414_v21  ;;  %v19438_v21 = vld [vmem:[#allocation8 + $0xff0] ss:$72 sps:$4 sm:$0xff]  }
 0x377   :  { %6619 = vmatprep.subr.bf16.mxu0 %v19422_v29  ;;  %v19446_v29 = vld [vmem:[#allocation8 + $0x1084] ss:$72 sps:$4 sm:$0xff]  }
 0x378   :  { %6514 = vmatpush1.bf16.msra.mxu1 %v19249_v35  ;;  %v19261_v35 = vld [vmem:[#allocation8 + $0x1978] ss:$72 sps:$4 sm:$0xff]  }
 0x379   :  { %6515 = vmatprep.subr.bf16.mxu1 %v19254_v61  ;;  %v19266_v61 = vld [vmem:[#allocation8 + $0x1a0c] ss:$72 sps:$4 sm:$0xff]  }
 0x37a   :  { %6620 = vmatpush1.bf16.msra.mxu0 %v19420_v0  ;;  %v19444_v0 = vld [vmem:[#allocation8 + $0x1080] ss:$72 sps:$4 sm:$0xff]  }
 0x37b   :  { %6621 = vmatprep.subr.bf16.mxu0 %v19428_v43  ;;  %v19452_v43 = vld [vmem:[#allocation8 + $0x1114] ss:$72 sps:$4 sm:$0xff]  }
 0x37c   :  { %6516 = vmatpush1.bf16.msra.mxu1 %v19252_v44  ;;  %v19264_v44 = vld [vmem:[#allocation8 + $0x1a08] ss:$72 sps:$4 sm:$0xff]  }
 0x37d   :  { %6517 = vmatprep.subr.bf16.mxu1 %v19257_v48  ;;  %v19269_v48 = vld [vmem:[#allocation8 + $0x1a9c] ss:$72 sps:$4 sm:$0xff]  }
 0x37e   :  { %6622 = vmatpush1.bf16.msra.mxu0 %v19426_v57  ;;  %v19450_v57 = vld [vmem:[#allocation8 + $0x1110] ss:$72 sps:$4 sm:$0xff]  }
 0x37f   :  { %6623 = vmatprep.subr.bf16.mxu0 %v19434_v3  ;;  %v19458_v3 = vld [vmem:[#allocation8 + $0x11a4] ss:$72 sps:$4 sm:$0xff]  }
 0x380   :  { %6518 = vmatpush1.bf16.msra.mxu1 %v19255_v62  ;;  %v19267_v62 = vld [vmem:[#allocation8 + $0x1a98] ss:$72 sps:$4 sm:$0xff]  }
 0x381   :  { %6519 = vmatprep.subr.bf16.mxu1 %v19260_v4  ;;  %v19275_v4 = vld [vmem:[#allocation8 + $0x3c] ss:$72 sps:$4 sm:$0xff]  }
 0x382   :  { %6624 = vmatpush1.bf16.msra.mxu0 %v19432_v13  ;;  %v19456_v13 = vld [vmem:[#allocation8 + $0x11a0] ss:$72 sps:$4 sm:$0xff]  }
 0x383   :  { %6625 = vmatprep.subr.bf16.mxu0 %v19440_v14  ;;  %v19464_v14 = vld [vmem:[#allocation8 + $0x1234] ss:$72 sps:$4 sm:$0xff]  }
 0x384   :  { %6520 = vmatpush1.bf16.msra.mxu1 %v19258_v15  ;;  %v19273_v15 = vld [vmem:[#allocation8 + $0x38] ss:$72 sps:$4 sm:$0xff]  }
 0x385   :  { %6521 = vmatprep.subr.bf16.mxu1 %v19263_v16  ;;  %v19281_v16 = vld [vmem:[#allocation8 + $0xcc] ss:$72 sps:$4 sm:$0xff]  }
 0x386   :  { %6626 = vmatpush1.bf16.msra.mxu0 %v19438_v21  ;;  %v19462_v21 = vld [vmem:[#allocation8 + $0x1230] ss:$72 sps:$4 sm:$0xff]  }
 0x387   :  { %6627 = vmatprep.subr.bf16.mxu0 %v19446_v29  ;;  %v19470_v29 = vld [vmem:[#allocation8 + $0x12c4] ss:$72 sps:$4 sm:$0xff]  }
 0x388   :  { %6522 = vmatpush1.bf16.msra.mxu1 %v19261_v35  ;;  %v19279_v35 = vld [vmem:[#allocation8 + $0xc8] ss:$72 sps:$4 sm:$0xff]  }
 0x389   :  { %6523 = vmatprep.subr.bf16.mxu1 %v19266_v61  ;;  %v19287_v61 = vld [vmem:[#allocation8 + $0x15c] ss:$72 sps:$4 sm:$0xff]  }
 0x38a   :  { %6628 = vmatpush1.bf16.msra.mxu0 %v19444_v0  ;;  %v19468_v0 = vld [vmem:[#allocation8 + $0x12c0] ss:$72 sps:$4 sm:$0xff]  }
 0x38b   :  { %6629 = vmatprep.subr.bf16.mxu0 %v19452_v43  ;;  %v19476_v43 = vld [vmem:[#allocation8 + $0x1354] ss:$72 sps:$4 sm:$0xff]  }
 0x38c   :  { %6524 = vmatpush1.bf16.msra.mxu1 %v19264_v44  ;;  %v19285_v44 = vld [vmem:[#allocation8 + $0x158] ss:$72 sps:$4 sm:$0xff]  }
 0x38d   :  { %6525 = vmatprep.subr.bf16.mxu1 %v19269_v48  ;;  %v19293_v48 = vld [vmem:[#allocation8 + $0x1ec] ss:$72 sps:$4 sm:$0xff]  }
 0x38e   :  { %6630 = vmatpush1.bf16.msra.mxu0 %v19450_v57  ;;  %v19474_v57 = vld [vmem:[#allocation8 + $0x1350] ss:$72 sps:$4 sm:$0xff]  }
 0x38f   :  { %6631 = vmatprep.subr.bf16.mxu0 %v19458_v3  ;;  %v19482_v3 = vld [vmem:[#allocation8 + $0x13e4] ss:$72 sps:$4 sm:$0xff]  }
 0x390   :  { %6526 = vmatpush1.bf16.msra.mxu1 %v19267_v62  ;;  %v19291_v62 = vld [vmem:[#allocation8 + $0x1e8] ss:$72 sps:$4 sm:$0xff]  }
 0x391   :  { %6707 = vmatprep.subr.bf16.mxu1 %v19275_v4  ;;  %v19299_v4 = vld [vmem:[#allocation8 + $0x27c] ss:$72 sps:$4 sm:$0xff]  }
 0x392   :  { %6632 = vmatpush1.bf16.msra.mxu0 %v19456_v13  ;;  %v19480_v13 = vld [vmem:[#allocation8 + $0x13e0] ss:$72 sps:$4 sm:$0xff]  }
 0x393   :  { %6528 = vmatmul.mubr.bf16.vlgmr.msra.gmra.mrb[24].mxu1 %v21803_v28  ;;  %6654 = vmatprep.subr.bf16.mxu0 %v19464_v14  ;;  %v19488_v14 = vld [vmem:[#allocation8 + $0x1474] ss:$72 sps:$4 sm:$0xff]  }
 0x394   :  { %6708 = vmatpush1.bf16.msra.mxu1 %v19273_v15  ;;  %6537 = vmatprep.mubr.bf16.mxu1 %v21805_v34  ;;  %v19297_v15 = vld [vmem:[#allocation8 + $0x278] ss:$72 sps:$4 sm:$0xff]  }
 0x395   :  { %6709 = vmatprep.subr.bf16.mxu1 %v19281_v16  ;;  %6634 = vmatmul.mubr.bf16.vlgmr.msra.gmra.mrb[24].mxu0 %v21775_v12  ;;  %v19305_v16 = vld [vmem:[#allocation8 + $0x30c] ss:$72 sps:$4 sm:$0xff]  }
 0x396   :  { %6655 = vmatpush1.bf16.msra.mxu0 %v19462_v21  ;;  %6643 = vmatprep.mubr.bf16.mxu0 %v21783_v39  ;;  %v19486_v21 = vld [vmem:[#allocation8 + $0x1470] ss:$72 sps:$4 sm:$0xff]  }
 0x397   :  { %6656 = vmatprep.subr.bf16.mxu0 %v19470_v29  ;;  %v19494_v29 = vld [vmem:[#allocation8 + $0x1504] ss:$72 sps:$4 sm:$0xff]  }
 0x398   :  { %6710 = vmatpush1.bf16.msra.mxu1 %v19279_v35  ;;  %v19303_v35 = vld [vmem:[#allocation8 + $0x308] ss:$72 sps:$4 sm:$0xff]  }
 0x399   :  { %6711 = vmatprep.subr.bf16.mxu1 %v19287_v61  ;;  %v19311_v61 = vld [vmem:[#allocation8 + $0x39c] ss:$72 sps:$4 sm:$0xff]  }
 0x39a   :  { %6657 = vmatpush1.bf16.msra.mxu0 %v19468_v0  ;;  %v19492_v0 = vld [vmem:[#allocation8 + $0x1500] ss:$72 sps:$4 sm:$0xff]  }
 0x39b   :  { %6538 = vmatmul.mubr.bf16.gmra.mrb[28].mxu1 %v21811_v42  ;;  %6658 = vmatprep.subr.bf16.mxu0 %v19476_v43 }
 0x39c   :  { %6712 = vmatpush1.bf16.msra.mxu1 %v19285_v44  ;;  %6739 = vmatprep.mubr.bf16.mxu1 %v21767_v54 }
 0x39d   :  { %6713 = vmatprep.subr.bf16.mxu1 %v19293_v48  ;;  %6644 = vmatmul.mubr.bf16.gmra.mrb[28].mxu0 %v21785_v40  ;;  %v19500_v48 = vld [vmem:[#allocation8 + $0x1594] ss:$72 sps:$4 sm:$0xff]  }
 0x39e   :  { %6659 = vmatpush1.bf16.msra.mxu0 %v19474_v57  ;;  %6686 = vmatprep.mubr.bf16.mxu0 %v21797_v49 }
 0x39f   :  { %6660 = vmatprep.subr.bf16.mxu0 %v19482_v3  ;;  %v19309_v3 = vld [vmem:[#allocation8 + $0x398] ss:$72 sps:$4 sm:$0xff]  }
 0x3a0   :  { %6714 = vmatpush1.bf16.msra.mxu1 %v19291_v62  ;;  %v19317_v62 = vld [vmem:[#allocation8 + $0x42c] ss:$72 sps:$4 sm:$0xff]  }
 0x3a1   :  { %6715 = vmatprep.subr.bf16.mxu1 %v19299_v4  ;;  %v23740_v4 = vsub.s32 6, %v21842_v46 }
 0x3a2   :  { %6661 = vmatpush1.bf16.msra.mxu0 %v19480_v13 }
 0x3a3   :  { %6662 = vmatprep.subr.bf16.mxu0 %v19488_v14  ;;  %v19498_v14 = vld [vmem:[#allocation8 + $0x1590] ss:$72 sps:$4 sm:$0xff]  }
 0x3a4   :  { %6716 = vmatpush1.bf16.msra.mxu1 %v19297_v15  ;;  %v23743_v15 = vsub.s32 7, %v21842_v46  ;;  %v19516_v46 = vld [vmem:[#allocation8 + $0x1740] ss:$72 sps:$4 sm:$0xff]  }
 0x3a5   :  { %6717 = vmatprep.subr.bf16.mxu1 %v19305_v16  ;;  %v19506_v16 = vld [vmem:[#allocation8 + $0x1624] ss:$72 sps:$4 sm:$0xff]  }
 0x3a6   :  { %v22014_v43 = vpop.f32.mrb[16].mxu1  ;;  %6663 = vmatpush1.bf16.msra.mxu0 %v19486_v21  ;;  %v19315_v21 = vld [vmem:[#allocation8 + $0x428] ss:$72 sps:$4 sm:$0xff]   ;;  %v22030_v18 = vrot.slane %v21079_v7, %v23743_v15 }
 0x3a7   :  { %v22016_v44 = vpop.f32.mrb[17].mxu1  ;;  %6664 = vmatprep.subr.bf16.mxu0 %v19494_v29  ;;  %v19323_v29 = vld [vmem:[#allocation8 + $0x4bc] ss:$72 sps:$4 sm:$0xff]   ;;  %v19510_v15 = vld [vmem:[#allocation8 + $0x16b0] ss:$72 sps:$4 sm:$0xff]  }
 0x3a8   :  { %v22018_v57 = vpop.f32.mrb[18].mxu1  ;;  %6718 = vmatpush1.bf16.msra.mxu1 %v19303_v35  ;;  %v22026_v35 = vrot.slane %v21079_v7, %v23740_v4  ;;  %v19321_v4 = vld [vmem:[#allocation8 + $0x4b8] ss:$72 sps:$4 sm:$0xff]  }
 0x3a9   :  { %v22021_v13 = vpop.f32.mrb[19].mxu1  ;;  %6719 = vmatprep.subr.bf16.mxu1 %v19311_v61 }
 0x3aa   :  { %6665 = vmatpush1.bf16.msra.mxu0 %v19492_v0 }
 0x3ab   :  { %6666 = vmatprep.subr.bf16.mxu0 %v19500_v48 }
 0x3ac   :  { %6720 = vmatpush1.bf16.msra.mxu1 %v19309_v3  ;;  %v19512_v3 = vld [vmem:[#allocation8 + $0x16b4] ss:$72 sps:$4 sm:$0xff]  }
 0x3ad   :  { %6721 = vmatprep.subr.bf16.mxu1 %v19317_v62 }
 0x3ae   :  { %v6221_v61 = vpop.f32.mrb[20].mxu1  ;;  %6667 = vmatpush1.bf16.msra.mxu0 %v19498_v14 }
 0x3af   :  { %v22033_v0 = vadd.f32 %v6221_v61, %v22026_v35  ;;  %v6223_v48 = vpop.f32.mrb[21].mxu1  ;;  %6668 = vmatprep.subr.bf16.mxu0 %v19506_v16  ;;  %v19518_v16 = vld [vmem:[#allocation8 + $0x1744] ss:$72 sps:$4 sm:$0xff]   ;;  %v19327_v61 = vld [vmem:[#allocation8 + $0x548] ss:$72 sps:$4 sm:$0xff]  }
 0x3b0   :  { %v22036_v36 = vadd.f32 %v6223_v48, %v22030_v18  ;;  %v6225_v27 = vpop.f32.mrb[22].mxu1  ;;  %6722 = vmatpush1.bf16.msra.mxu1 %v19315_v21  ;;  %v19335_v48 = vld [vmem:[#allocation8 + $0x5dc] ss:$72 sps:$4 sm:$0xff]  }
 0x3b1   :  { %v22039_v62 = vadd.f32 %v6225_v27, %v22026_v35  ;;  %v6227_v7 = vpop.f32.mrb[23].mxu1  ;;  %6723 = vmatprep.subr.bf16.mxu1 %v19323_v29  ;;  %v19524_v21 = vld [vmem:[#allocation8 + $0x17d4] ss:$72 sps:$4 sm:$0xff]   ;;  %v19333_v27 = vld [vmem:[#allocation8 + $0x5d8] ss:$72 sps:$4 sm:$0xff]  }
 0x3b2   :  { %v22042_v14 = vadd.f32 %v6227_v7, %v22030_v18  ;;  %6669 = vmatpush1.bf16.msra.mxu0 %v19504_v37  ;;  %v19530_v29 = vld [vmem:[#allocation8 + $0x1864] ss:$72 sps:$4 sm:$0xff]   ;;  %v19339_v37 = vld [vmem:[#allocation8 + $0x668] ss:$72 sps:$4 sm:$0xff]  }
 0x3b3   :  { %23776 = vst [vmem:[#allocation51_spill] sm:$0xff] %v22039_v62  ;;  %6670 = vmatprep.subr.bf16.mxu0 %v19512_v3  ;;  %v19347_v3 = vld [vmem:[#allocation8 + $0x6fc] ss:$72 sps:$4 sm:$0xff]   ;;  %v19528_v7 = vld [vmem:[#allocation8 + $0x1860] ss:$72 sps:$4 sm:$0xff]  }
 0x3b4   :  { %23777 = vst [vmem:[#allocation52_spill] sm:$0xff] %v22042_v14  ;;  %6724 = vmatpush1.bf16.msra.mxu1 %v19321_v4  ;;  %v19536_v4 = vld [vmem:[#allocation8 + $0x18f4] ss:$72 sps:$4 sm:$0xff]  }
 0x3b5   :  { %6725 = vmatprep.subr.bf16.mxu1 %v19329_v30  ;;  %v19345_v30 = vld [vmem:[#allocation8 + $0x6f8] ss:$72 sps:$4 sm:$0xff]   ;;  %v19377_v62 = vld [vmem:[#allocation8 + $0x9cc] ss:$72 sps:$4 sm:$0xff]  }
 0x3b6   :  { %6671 = vmatpush1.bf16.msra.mxu0 %v19510_v15  ;;  %v19353_v15 = vld [vmem:[#allocation8 + $0x78c] ss:$72 sps:$4 sm:$0xff]  }
 0x3b7   :  { %6672 = vmatprep.subr.bf16.mxu0 %v19518_v16  ;;  %v19534_v16 = vld [vmem:[#allocation8 + $0x18f0] ss:$72 sps:$4 sm:$0xff]   ;;  %v19449_v14 = vld [vmem:[#allocation8 + $0x108c] ss:$72 sps:$4 sm:$0xff]  }
 0x3b8   :  { %6726 = vmatpush1.bf16.msra.mxu1 %v19327_v61  ;;  %v19542_v61 = vld [vmem:[#allocation8 + $0x1984] ss:$72 sps:$4 sm:$0xff]  }
 0x3b9   :  { %6727 = vmatprep.subr.bf16.mxu1 %v19335_v48  ;;  %v19359_v48 = vld [vmem:[#allocation8 + $0x81c] ss:$72 sps:$4 sm:$0xff]  }
 0x3ba   :  { %6673 = vmatpush1.bf16.msra.mxu0 %v19516_v46  ;;  %v19351_v46 = vld [vmem:[#allocation8 + $0x788] ss:$72 sps:$4 sm:$0xff]  }
 0x3bb   :  { %6674 = vmatprep.subr.bf16.mxu0 %v19524_v21  ;;  %v19540_v21 = vld [vmem:[#allocation8 + $0x1980] ss:$72 sps:$4 sm:$0xff]  }
 0x3bc   :  { %6728 = vmatpush1.bf16.msra.mxu1 %v19333_v27  ;;  %v19548_v27 = vld [vmem:[#allocation8 + $0x1a14] ss:$72 sps:$4 sm:$0xff]  }
 0x3bd   :  { %6729 = vmatprep.subr.bf16.mxu1 %v19341_v31  ;;  %v19365_v31 = vld [vmem:[#allocation8 + $0x8ac] ss:$72 sps:$4 sm:$0xff]  }
 0x3be   :  { %6675 = vmatpush1.bf16.msra.mxu0 %v19522_v52  ;;  %v19357_v52 = vld [vmem:[#allocation8 + $0x818] ss:$72 sps:$4 sm:$0xff]  }
 0x3bf   :  { %6676 = vmatprep.subr.bf16.mxu0 %v19530_v29  ;;  %v19546_v29 = vld [vmem:[#allocation8 + $0x1a10] ss:$72 sps:$4 sm:$0xff]  }
 0x3c0   :  { %6730 = vmatpush1.bf16.msra.mxu1 %v19339_v37  ;;  %v19554_v37 = vld [vmem:[#allocation8 + $0x1aa4] ss:$72 sps:$4 sm:$0xff]  }
 0x3c1   :  { %6731 = vmatprep.subr.bf16.mxu1 %v19347_v3  ;;  %v19363_v3 = vld [vmem:[#allocation8 + $0x8a8] ss:$72 sps:$4 sm:$0xff]  }
 0x3c2   :  { %6677 = vmatpush1.bf16.msra.mxu0 %v19528_v7  ;;  %v19371_v7 = vld [vmem:[#allocation8 + $0x93c] ss:$72 sps:$4 sm:$0xff]  }
 0x3c3   :  { %6678 = vmatprep.subr.bf16.mxu0 %v19536_v4  ;;  %v19552_v4 = vld [vmem:[#allocation8 + $0x1aa0] ss:$72 sps:$4 sm:$0xff]  }
 0x3c4   :  { %6732 = vmatpush1.bf16.msra.mxu1 %v19345_v30  ;;  %v19369_v30 = vld [vmem:[#allocation8 + $0x938] ss:$72 sps:$4 sm:$0xff]  }
 0x3c5   :  { %6733 = vmatprep.subr.bf16.mxu1 %v19353_v15  ;;  %v19375_v15 = vld [vmem:[#allocation8 + $0x9c8] ss:$72 sps:$4 sm:$0xff]  }
 0x3c6   :  { %6679 = vmatpush1.bf16.msra.mxu0 %v19534_v16  ;;  %v19383_v16 = vld [vmem:[#allocation8 + $0xa5c] ss:$72 sps:$4 sm:$0xff]  }
 0x3c7   :  { %6680 = vmatprep.subr.bf16.mxu0 %v19542_v61  ;;  %v19381_v61 = vld [vmem:[#allocation8 + $0xa58] ss:$72 sps:$4 sm:$0xff]  }
 0x3c8   :  { %6734 = vmatpush1.bf16.msra.mxu1 %v19351_v46  ;;  %v19389_v46 = vld [vmem:[#allocation8 + $0xaec] ss:$72 sps:$4 sm:$0xff]  }
 0x3c9   :  { %6735 = vmatprep.subr.bf16.mxu1 %v19359_v48  ;;  %v19387_v48 = vld [vmem:[#allocation8 + $0xae8] ss:$72 sps:$4 sm:$0xff]  }
 0x3ca   :  { %6681 = vmatpush1.bf16.msra.mxu0 %v19540_v21  ;;  %v19395_v21 = vld [vmem:[#allocation8 + $0xb7c] ss:$72 sps:$4 sm:$0xff]  }
 0x3cb   :  { %6682 = vmatprep.subr.bf16.mxu0 %v19548_v27  ;;  %v19393_v27 = vld [vmem:[#allocation8 + $0xb78] ss:$72 sps:$4 sm:$0xff]  }
 0x3cc   :  { %6736 = vmatpush1.bf16.msra.mxu1 %v19357_v52  ;;  %v19399_v52 = vld [vmem:[#allocation8 + $0xc08] ss:$72 sps:$4 sm:$0xff]  }
 0x3cd   :  { %6737 = vmatprep.subr.bf16.mxu1 %v19365_v31  ;;  %v19407_v31 = vld [vmem:[#allocation8 + $0xc9c] ss:$72 sps:$4 sm:$0xff]  }
 0x3ce   :  { %6683 = vmatpush1.bf16.msra.mxu0 %v19546_v29 }
 0x3cf   :  { %6684 = vmatprep.subr.bf16.mxu0 %v19554_v37  ;;  %v19405_v37 = vld [vmem:[#allocation8 + $0xc98] ss:$72 sps:$4 sm:$0xff]  }
 0x3d0   :  { %6738 = vmatpush1.bf16.msra.mxu1 %v19363_v3 }
 0x3d1   :  { %6760 = vmatprep.subr.bf16.mxu1 %v19371_v7  ;;  %v19413_v7 = vld [vmem:[#allocation8 + $0xd2c] ss:$72 sps:$4 sm:$0xff]  }
 0x3d2   :  { %6685 = vmatpush1.bf16.msra.mxu0 %v19552_v4  ;;  %v1119_v4 = vld [vmem:[#allocation9 + $0x8] sm:$0xff] }
 0x3d3   :  { %6740 = vmatmul.mubr.bf16.vlgmr.msra.gmra.mrb[32].mxu1 %v21773_v9 }
 0x3d4   :  { %6761 = vmatpush1.bf16.msra.mxu1 %v19369_v30  ;;  %6749 = vmatprep.mubr.bf16.mxu1 %v21779_v33 }
 0x3d5   :  { %6762 = vmatprep.subr.bf16.mxu1 %v19377_v62  ;;  %6687 = vmatmul.mubr.bf16.vlgmr.msra.gmra.mrb[24].mxu0 %v21803_v28  ;;  %v19401_v62 = vld [vmem:[#allocation8 + $0xc0c] ss:$72 sps:$4 sm:$0xff]  }
 0x3d6   :  { %6696 = vmatprep.mubr.bf16.mxu0 %v21805_v34 }
 0x3d8   :  { %6763 = vmatpush1.bf16.msra.mxu1 %v19375_v15 }
 0x3d9   :  { %6764 = vmatprep.subr.bf16.mxu1 %v19383_v16  ;;  %v19419_v16 = vld [vmem:[#allocation8 + $0xdbc] ss:$72 sps:$4 sm:$0xff]  }
 0x3db   :  { %6750 = vmatmul.mubr.bf16.gmra.mrb[36].mxu1 %v21781_v38 }
 0x3dc   :  { %6765 = vmatpush1.bf16.msra.mxu1 %v19381_v61  ;;  %6792 = vmatprep.mubr.bf16.mxu1 %v21769_v55  ;;  %v22061_v61 = vrot.slane %v1119_v4, %v21845_v53  ;;  %v19423_v53 = vld [vmem:[#allocation8 + $0xe48] ss:$72 sps:$4 sm:$0xff]  }
 0x3dd   :  { %6766 = vmatprep.subr.bf16.mxu1 %v19389_v46  ;;  %6697 = vmatmul.mubr.bf16.gmra.mrb[28].mxu0 %v21811_v42  ;;  %v22064_v46 = vrot.slane %v1119_v4, %v21848_v58  ;;  %v19431_v58 = vld [vmem:[#allocation8 + $0xedc] ss:$72 sps:$4 sm:$0xff]  }
 0x3de   :  { %6898 = vmatprep.mubr.bf16.mxu0 %v21767_v54  ;;  %v19411_v54 = vld [vmem:[#allocation8 + $0xd28] ss:$72 sps:$4 sm:$0xff]  }
 0x3e0   :  { %6767 = vmatpush1.bf16.msra.mxu1 %v19387_v48  ;;  %v19417_v48 = vld [vmem:[#allocation8 + $0xdb8] ss:$72 sps:$4 sm:$0xff]  }
 0x3e1   :  { %6768 = vmatprep.subr.bf16.mxu1 %v19395_v21 }
 0x3e4   :  { %6769 = vmatpush1.bf16.msra.mxu1 %v19393_v27  ;;  %v19425_v27 = vld [vmem:[#allocation8 + $0xe4c] ss:$72 sps:$4 sm:$0xff]  }
 0x3e5   :  { %6770 = vmatprep.subr.bf16.mxu1 %v19401_v62 }
 0x3e7   :  { %v22052_v29 = vpop.f32.mrb[16].mxu0 }
 0x3e8   :  { %v22054_v3 = vpop.f32.mrb[17].mxu0  ;;  %6771 = vmatpush1.bf16.msra.mxu1 %v19399_v52 }
 0x3e9   :  { %v22056_v30 = vpop.f32.mrb[18].mxu0  ;;  %6772 = vmatprep.subr.bf16.mxu1 %v19407_v31 }
 0x3ea   :  { %v22058_v15 = vpop.f32.mrb[19].mxu0 }
 0x3ec   :  { %6773 = vmatpush1.bf16.msra.mxu1 %v19405_v37 }
 0x3ed   :  { %6774 = vmatprep.subr.bf16.mxu1 %v19413_v7 }
 0x3ef   :  { %v6380_v21 = vpop.f32.mrb[20].mxu0 }
 0x3f0   :  { %v22067_v62 = vadd.f32 %v6380_v21, %v22061_v61  ;;  %v6382_v52 = vpop.f32.mrb[21].mxu0  ;;  %6775 = vmatpush1.bf16.msra.mxu1 %v19411_v54  ;;  %v19429_v21 = vld [vmem:[#allocation8 + $0xed8] ss:$72 sps:$4 sm:$0xff]   ;;  %v19435_v54 = vld [vmem:[#allocation8 + $0xf68] ss:$72 sps:$4 sm:$0xff]  }
 0x3f1   :  { %v22070_v31 = vadd.f32 %v6382_v52, %v22064_v46  ;;  %v6384_v60 = vpop.f32.mrb[22].mxu0  ;;  %6776 = vmatprep.subr.bf16.mxu1 %v19419_v16  ;;  %v19443_v52 = vld [vmem:[#allocation8 + $0xffc] ss:$72 sps:$4 sm:$0xff]   ;;  %v19441_v16 = vld [vmem:[#allocation8 + $0xff8] ss:$72 sps:$4 sm:$0xff]  }
 0x3f2   :  { %v22073_v37 = vadd.f32 %v6384_v60, %v22061_v61  ;;  %v6386_v7 = vpop.f32.mrb[23].mxu0  ;;  %v19447_v60 = vld [vmem:[#allocation8 + $0x1088] ss:$72 sps:$4 sm:$0xff]  }
 0x3f3   :  { %v22076_v4 = vadd.f32 %v6386_v7, %v22064_v46  ;;  %v19453_v7 = vld [vmem:[#allocation8 + $0x1118] ss:$72 sps:$4 sm:$0xff]  }
 0x3f4   :  { %23778 = vst [vmem:[#allocation53_spill] sm:$0xff] %v22073_v37  ;;  %6777 = vmatpush1.bf16.msra.mxu1 %v19417_v48  ;;  %v19455_v37 = vld [vmem:[#allocation8 + $0x111c] ss:$72 sps:$4 sm:$0xff]   ;;  %v19459_v48 = vld [vmem:[#allocation8 + $0x11a8] ss:$72 sps:$4 sm:$0xff]  }
 0x3f5   :  { %23779 = vst [vmem:[#allocation54_spill] sm:$0xff] %v22076_v4  ;;  %6778 = vmatprep.subr.bf16.mxu1 %v19425_v27  ;;  %v19461_v4 = vld [vmem:[#allocation8 + $0x11ac] ss:$72 sps:$4 sm:$0xff]   ;;  %v19467_v27 = vld [vmem:[#allocation8 + $0x123c] ss:$72 sps:$4 sm:$0xff]  }
 0x3f8   :  { %6779 = vmatpush1.bf16.msra.mxu1 %v19423_v53  ;;  %v19465_v53 = vld [vmem:[#allocation8 + $0x1238] ss:$72 sps:$4 sm:$0xff]  }
 0x3f9   :  { %6780 = vmatprep.subr.bf16.mxu1 %v19431_v58  ;;  %v19560_v58 = vld [vmem:[#allocation8 + $0x44] ss:$72 sps:$4 sm:$0xff]  }
 0x3fa   :  { %6866 = vmatprep.subr.bf16.mxu0 %v19560_v58  ;;  %v19570_v58 = vld [vmem:[#allocation8 + $0x280] ss:$72 sps:$4 sm:$0xff]  }
 0x3fc   :  { %6781 = vmatpush1.bf16.msra.mxu1 %v19429_v21  ;;  %v19473_v21 = vld [vmem:[#allocation8 + $0x12cc] ss:$72 sps:$4 sm:$0xff]  }
 0x3fd   :  { %6782 = vmatprep.subr.bf16.mxu1 %v19437_v6  ;;  %v19558_v6 = vld [vmem:[#allocation8 + $0x40] ss:$72 sps:$4 sm:$0xff]  }
 0x3fe   :  { %6867 = vmatpush1.bf16.msra.mxu0 %v19558_v6  ;;  %v19572_v6 = vld [vmem:[#allocation8 + $0x284] ss:$72 sps:$4 sm:$0xff]  }
 0x400   :  { %6783 = vmatpush1.bf16.msra.mxu1 %v19435_v54  ;;  %v19561_v54 = vld [vmem:[#allocation8 + $0xd0] ss:$72 sps:$4 sm:$0xff]  }
 0x401   :  { %6784 = vmatprep.subr.bf16.mxu1 %v19443_v52  ;;  %v19563_v52 = vld [vmem:[#allocation8 + $0xd4] ss:$72 sps:$4 sm:$0xff]  }
 0x402   :  { %6868 = vmatprep.subr.bf16.mxu0 %v19563_v52  ;;  %v19575_v52 = vld [vmem:[#allocation8 + $0x314] ss:$72 sps:$4 sm:$0xff]  }
 0x403   :  { %6869 = vmatpush1.bf16.msra.mxu0 %v19561_v54  ;;  %v19497_v54 = vld [vmem:[#allocation8 + $0x150c] ss:$72 sps:$4 sm:$0xff]  }
 0x404   :  { %6785 = vmatpush1.bf16.msra.mxu1 %v19441_v16  ;;  %v19479_v16 = vld [vmem:[#allocation8 + $0x135c] ss:$72 sps:$4 sm:$0xff]  }
 0x405   :  { %6786 = vmatprep.subr.bf16.mxu1 %v19449_v14  ;;  %v19566_v14 = vld [vmem:[#allocation8 + $0x164] ss:$72 sps:$4 sm:$0xff]  }
 0x406   :  { %6870 = vmatprep.subr.bf16.mxu0 %v19566_v14  ;;  %v19573_v14 = vld [vmem:[#allocation8 + $0x310] ss:$72 sps:$4 sm:$0xff]  }
 0x408   :  { %6787 = vmatpush1.bf16.msra.mxu1 %v19447_v60  ;;  %v19485_v60 = vld [vmem:[#allocation8 + $0x13ec] ss:$72 sps:$4 sm:$0xff]  }
 0x409   :  { %6788 = vmatprep.subr.bf16.mxu1 %v19455_v37  ;;  %v19564_v37 = vld [vmem:[#allocation8 + $0x160] ss:$72 sps:$4 sm:$0xff]  }
 0x40a   :  { %6871 = vmatpush1.bf16.msra.mxu0 %v19564_v37  ;;  %v19576_v37 = vld [vmem:[#allocation8 + $0x3a0] ss:$72 sps:$4 sm:$0xff]  }
 0x40c   :  { %6789 = vmatpush1.bf16.msra.mxu1 %v19453_v7  ;;  %v19483_v7 = vld [vmem:[#allocation8 + $0x13e8] ss:$72 sps:$4 sm:$0xff]  }
 0x40d   :  { %6790 = vmatprep.subr.bf16.mxu1 %v19461_v4  ;;  %v19477_v4 = vld [vmem:[#allocation8 + $0x1358] ss:$72 sps:$4 sm:$0xff]  }
 0x410   :  { %6791 = vmatpush1.bf16.msra.mxu1 %v19459_v48  ;;  %v19491_v48 = vld [vmem:[#allocation8 + $0x147c] ss:$72 sps:$4 sm:$0xff]  }
 0x411   :  { %6813 = vmatprep.subr.bf16.mxu1 %v19467_v27  ;;  %v19569_v27 = vld [vmem:[#allocation8 + $0x1f4] ss:$72 sps:$4 sm:$0xff]  }
 0x412   :  { %6872 = vmatprep.subr.bf16.mxu0 %v19569_v27  ;;  %v19581_v27 = vld [vmem:[#allocation8 + $0x434] ss:$72 sps:$4 sm:$0xff]  }
 0x413   :  { %6793 = vmatmul.mubr.bf16.vlgmr.msra.gmra.mrb[32].mxu1 %v21775_v12 }
 0x414   :  { %6814 = vmatpush1.bf16.msra.mxu1 %v19465_v53  ;;  %6802 = vmatprep.mubr.bf16.mxu1 %v21783_v39  ;;  %v19567_v53 = vld [vmem:[#allocation8 + $0x1f0] ss:$72 sps:$4 sm:$0xff]  }
 0x415   :  { %6815 = vmatprep.subr.bf16.mxu1 %v19473_v21  ;;  %v19489_v21 = vld [vmem:[#allocation8 + $0x1478] ss:$72 sps:$4 sm:$0xff]   ;;  %6873 = vmatpush1.bf16.msra.mxu0 %v19567_v53 }
 0x416   :  { %6874 = vmatprep.subr.bf16.mxu0 %v19572_v6  ;;  %v19579_v53 = vld [vmem:[#allocation8 + $0x430] ss:$72 sps:$4 sm:$0xff]   ;;  %v19584_v6 = vld [vmem:[#allocation8 + $0x4c4] ss:$72 sps:$4 sm:$0xff]  }
 0x418   :  { %6816 = vmatpush1.bf16.msra.mxu1 %v19471_v5  ;;  %v19495_v5 = vld [vmem:[#allocation8 + $0x1508] ss:$72 sps:$4 sm:$0xff]  }
 0x419   :  { %6817 = vmatprep.subr.bf16.mxu1 %v19479_v16  ;;  %6875 = vmatpush1.bf16.msra.mxu0 %v19570_v58  ;;  %v19503_v16 = vld [vmem:[#allocation8 + $0x159c] ss:$72 sps:$4 sm:$0xff]   ;;  %v19513_v58 = vld [vmem:[#allocation8 + $0x16b8] ss:$72 sps:$4 sm:$0xff]  }
 0x41a   :  { %6876 = vmatprep.subr.bf16.mxu0 %v19575_v52  ;;  %v19585_v52 = vld [vmem:[#allocation8 + $0x550] ss:$72 sps:$4 sm:$0xff]  }
 0x41b   :  { %6803 = vmatmul.mubr.bf16.gmra.mrb[36].mxu1 %v21785_v40 }
 0x41c   :  { %6818 = vmatpush1.bf16.msra.mxu1 %v19477_v4  ;;  %6845 = vmatprep.mubr.bf16.mxu1 %v21797_v49  ;;  %v19578_v4 = vld [vmem:[#allocation8 + $0x3a4] ss:$72 sps:$4 sm:$0xff]  }
 0x41d   :  { %6819 = vmatprep.subr.bf16.mxu1 %v19485_v60  ;;  %v19501_v60 = vld [vmem:[#allocation8 + $0x1598] ss:$72 sps:$4 sm:$0xff]   ;;  %6877 = vmatpush1.bf16.msra.mxu0 %v19573_v14  ;;  %v19587_v14 = vld [vmem:[#allocation8 + $0x554] ss:$72 sps:$4 sm:$0xff]  }
 0x41e   :  { %6878 = vmatprep.subr.bf16.mxu0 %v19578_v4  ;;  %v19519_v4 = vld [vmem:[#allocation8 + $0x1748] ss:$72 sps:$4 sm:$0xff]  }
 0x420   :  { %6820 = vmatpush1.bf16.msra.mxu1 %v19483_v7  ;;  %v19507_v7 = vld [vmem:[#allocation8 + $0x1628] ss:$72 sps:$4 sm:$0xff]  }
 0x421   :  { %6821 = vmatprep.subr.bf16.mxu1 %v19491_v48  ;;  %6879 = vmatpush1.bf16.msra.mxu0 %v19576_v37  ;;  %v19515_v48 = vld [vmem:[#allocation8 + $0x16bc] ss:$72 sps:$4 sm:$0xff]   ;;  %v19588_v37 = vld [vmem:[#allocation8 + $0x5e0] ss:$72 sps:$4 sm:$0xff]  }
 0x422   :  { %6880 = vmatprep.subr.bf16.mxu0 %v19581_v27  ;;  %v19531_v27 = vld [vmem:[#allocation8 + $0x1868] ss:$72 sps:$4 sm:$0xff]  }
 0x424   :  { %6822 = vmatpush1.bf16.msra.mxu1 %v19489_v21  ;;  %v19582_v21 = vld [vmem:[#allocation8 + $0x4c0] ss:$72 sps:$4 sm:$0xff]  }
 0x425   :  { %6823 = vmatprep.subr.bf16.mxu1 %v19497_v54  ;;  %6881 = vmatpush1.bf16.msra.mxu0 %v19579_v53  ;;  %v19521_v54 = vld [vmem:[#allocation8 + $0x174c] ss:$72 sps:$4 sm:$0xff]   ;;  %v19539_v53 = vld [vmem:[#allocation8 + $0x18fc] ss:$72 sps:$4 sm:$0xff]  }
 0x426   :  { %6882 = vmatprep.subr.bf16.mxu0 %v19584_v6  ;;  %v19594_v6 = vld [vmem:[#allocation8 + $0x700] ss:$72 sps:$4 sm:$0xff]  }
 0x428   :  { %6824 = vmatpush1.bf16.msra.mxu1 %v19495_v5  ;;  %v19590_v5 = vld [vmem:[#allocation8 + $0x5e4] ss:$72 sps:$4 sm:$0xff]  }
 0x429   :  { %6825 = vmatprep.subr.bf16.mxu1 %v19503_v16  ;;  %6883 = vmatpush1.bf16.msra.mxu0 %v19582_v21  ;;  %v19527_v16 = vld [vmem:[#allocation8 + $0x17dc] ss:$72 sps:$4 sm:$0xff]  }
 0x42a   :  { %6884 = vmatprep.subr.bf16.mxu0 %v19587_v14  ;;  %v19596_v21 = vld [vmem:[#allocation8 + $0x704] ss:$72 sps:$4 sm:$0xff]   ;;  %v19537_v14 = vld [vmem:[#allocation8 + $0x18f8] ss:$72 sps:$4 sm:$0xff]  }
 0x42c   :  { %6826 = vmatpush1.bf16.msra.mxu1 %v19501_v60  ;;  %v19525_v60 = vld [vmem:[#allocation8 + $0x17d8] ss:$72 sps:$4 sm:$0xff]  }
 0x42d   :  { %6827 = vmatprep.subr.bf16.mxu1 %v19509_v17  ;;  %6885 = vmatpush1.bf16.msra.mxu0 %v19585_v52  ;;  %v19533_v17 = vld [vmem:[#allocation8 + $0x186c] ss:$72 sps:$4 sm:$0xff]  }
 0x42e   :  { %6886 = vmatprep.subr.bf16.mxu0 %v19590_v5  ;;  %v19599_v52 = vld [vmem:[#allocation8 + $0x794] ss:$72 sps:$4 sm:$0xff]  }
 0x42f   :  { %v19551_v5 = vld [vmem:[#allocation8 + $0x1a1c] ss:$72 sps:$4 sm:$0xff]  }
 0x430   :  { %6828 = vmatpush1.bf16.msra.mxu1 %v19507_v7  ;;  %v19593_v7 = vld [vmem:[#allocation8 + $0x674] ss:$72 sps:$4 sm:$0xff]  }
 0x431   :  { %6829 = vmatprep.subr.bf16.mxu1 %v19515_v48  ;;  %6887 = vmatpush1.bf16.msra.mxu0 %v19588_v37  ;;  %v19591_v48 = vld [vmem:[#allocation8 + $0x670] ss:$72 sps:$4 sm:$0xff]   ;;  %v19602_v37 = vld [vmem:[#allocation8 + $0x824] ss:$72 sps:$4 sm:$0xff]  }
 0x432   :  { %6888 = vmatprep.subr.bf16.mxu0 %v19593_v7  ;;  %v19557_v7 = vld [vmem:[#allocation8 + $0x1aac] ss:$72 sps:$4 sm:$0xff]  }
 0x434   :  { %6830 = vmatpush1.bf16.msra.mxu1 %v19513_v58  ;;  %v19545_v58 = vld [vmem:[#allocation8 + $0x198c] ss:$72 sps:$4 sm:$0xff]  }
 0x435   :  { %6831 = vmatprep.subr.bf16.mxu1 %v19521_v54  ;;  %6889 = vmatpush1.bf16.msra.mxu0 %v19591_v48  ;;  %v19543_v54 = vld [vmem:[#allocation8 + $0x1988] ss:$72 sps:$4 sm:$0xff]  }
 0x436   :  { %6890 = vmatprep.subr.bf16.mxu0 %v19596_v21  ;;  %v19603_v48 = vld [vmem:[#allocation8 + $0x8b0] ss:$72 sps:$4 sm:$0xff]   ;;  %v19608_v21 = vld [vmem:[#allocation8 + $0x944] ss:$72 sps:$4 sm:$0xff]  }
 0x438   :  { %6832 = vmatpush1.bf16.msra.mxu1 %v19519_v4  ;;  %v19597_v4 = vld [vmem:[#allocation8 + $0x790] ss:$72 sps:$4 sm:$0xff]  }
 0x439   :  { %6833 = vmatprep.subr.bf16.mxu1 %v19527_v16  ;;  %6891 = vmatpush1.bf16.msra.mxu0 %v19594_v6  ;;  %v19600_v16 = vld [vmem:[#allocation8 + $0x820] ss:$72 sps:$4 sm:$0xff]  }
 0x43a   :  { %6892 = vmatprep.subr.bf16.mxu0 %v19599_v52  ;;  %v19609_v52 = vld [vmem:[#allocation8 + $0x9d0] ss:$72 sps:$4 sm:$0xff]  }
 0x43c   :  { %6834 = vmatpush1.bf16.msra.mxu1 %v19525_v60  ;;  %v19549_v60 = vld [vmem:[#allocation8 + $0x1a18] ss:$72 sps:$4 sm:$0xff]  }
 0x43d   :  { %6835 = vmatprep.subr.bf16.mxu1 %v19533_v17  ;;  %6893 = vmatpush1.bf16.msra.mxu0 %v19597_v4  ;;  %v19605_v17 = vld [vmem:[#allocation8 + $0x8b4] ss:$72 sps:$4 sm:$0xff]   ;;  %v17937_v4 = vadd.f32 %v22014_v43, %v22026_v35  ;;  %v19615_v43 = vld [vmem:[#allocation8 + $0xaf0] ss:$72 sps:$4 sm:$0xff]  }
 0x43e   :  { %6894 = vmatprep.subr.bf16.mxu0 %v19602_v37 }
 0x440   :  { %6836 = vmatpush1.bf16.msra.mxu1 %v19531_v27  ;;  %v19555_v27 = vld [vmem:[#allocation8 + $0x1aa8] ss:$72 sps:$4 sm:$0xff]  }
 0x441   :  { %6837 = vmatprep.subr.bf16.mxu1 %v19539_v53  ;;  %6895 = vmatpush1.bf16.msra.mxu0 %v19600_v16  ;;  %v17938_v53 = vadd.f32 %v22016_v44, %v22030_v18  ;;  %v17946_v44 = vadd.f32 %v22054_v3, %v22064_v46  ;;  %v7049_v16 = vpack.c.bf16 %v17937_v4, %v17937_v4  ;;  %v19617_v3 = vld [vmem:[#allocation8 + $0xaf4] ss:$72 sps:$4 sm:$0xff]  }
 0x442   :  { %6896 = vmatprep.subr.bf16.mxu0 %v19605_v17  ;;  %v17945_v17 = vadd.f32 %v22052_v29, %v22061_v61  ;;  %v19626_v29 = vld [vmem:[#allocation8 + $0xca4] ss:$72 sps:$4 sm:$0xff]   ;;  %v17921_v4 = vadd.f32 %v21920_v51, %v21938_v8 }
 0x443   :  { %v7050_v6 = vpack.c.bf16 %v17938_v53, %v17938_v53  ;;  %v7052_v37 = vpack.c.bf16 %v17946_v44, %v17946_v44  ;;  %v19621_v53 = vld [vmem:[#allocation8 + $0xc10] ss:$72 sps:$4 sm:$0xff]  }
 0x444   :  { %6838 = vmatpush1.bf16.msra.mxu1 %v19537_v14  ;;  %v19606_v14 = vld [vmem:[#allocation8 + $0x940] ss:$72 sps:$4 sm:$0xff]  }
 0x445   :  { %6839 = vmatprep.subr.bf16.mxu1 %v19545_v58  ;;  %6897 = vmatpush1.bf16.msra.mxu0 %v19603_v48  ;;  %v19611_v58 = vld [vmem:[#allocation8 + $0x9d4] ss:$72 sps:$4 sm:$0xff]  }
 0x446   :  { %6919 = vmatprep.subr.bf16.mxu0 %v19608_v21 }
 0x448   :  { %6840 = vmatpush1.bf16.msra.mxu1 %v19543_v54  ;;  %6899 = vmatmul.mubr.bf16.vlgmr.msra.gmra.mrb[32].mxu0 %v21773_v9  ;;  %v19614_v54 = vld [vmem:[#allocation8 + $0xa64] ss:$72 sps:$4 sm:$0xff]   ;;  %v7026_v9 = vpack.c.bf16 %v21886_v24, %v21886_v24  ;;  %v19618_v24 = vld [vmem:[#allocation8 + $0xb80] ss:$72 sps:$4 sm:$0xff]  }
 0x449   :  { %6841 = vmatprep.subr.bf16.mxu1 %v19551_v5  ;;  %6920 = vmatpush1.bf16.msra.mxu0 %v19606_v14  ;;  %v19612_v5 = vld [vmem:[#allocation8 + $0xa60] ss:$72 sps:$4 sm:$0xff]  }
 0x44a   :  { %6921 = vmatprep.subr.bf16.mxu0 %v19611_v58  ;;  %6908 = vmatprep.mubr.bf16.mxu0 %v21779_v33  ;;  %v17922_v33 = vadd.f32 %v21922_v59, %v21942_v10  ;;  %v19624_v14 = vld [vmem:[#allocation8 + $0xca0] ss:$72 sps:$4 sm:$0xff]  }
 0x44c   :  { %6842 = vmatpush1.bf16.msra.mxu1 %v19549_v60  ;;  %v19620_v60 = vld [vmem:[#allocation8 + $0xb84] ss:$72 sps:$4 sm:$0xff]   ;;  %v7028_v48 = vpack.c.bf16 %v17922_v33, %v17922_v33 }
 0x44d   :  { %6843 = vmatprep.subr.bf16.mxu1 %v19557_v7  ;;  %6922 = vmatpush1.bf16.msra.mxu0 %v19609_v52  ;;  %v19623_v7 = vld [vmem:[#allocation8 + $0xc14] ss:$72 sps:$4 sm:$0xff]  }
 0x44e   :  { %6923 = vmatprep.subr.bf16.mxu0 %v19614_v54  ;;  %v19629_v54 = vld [vmem:[#allocation8 + $0xd34] ss:$72 sps:$4 sm:$0xff]  }
 0x450   :  { %6844 = vmatpush1.bf16.msra.mxu1 %v19555_v27  ;;  %6909 = vmatmul.mubr.bf16.gmra.mrb[36].mxu0 %v21781_v38  ;;  %v7025_v38 = vpack.c.bf16 %v21882_v23, %v21882_v23  ;;  %v7051_v27 = vpack.c.bf16 %v17945_v17, %v17945_v17 }
 0x451   :  { %7073 = vmatprep.subr.bf16.mxu1 %v7050_v6  ;;  %6924 = vmatpush1.bf16.msra.mxu0 %v19612_v5  ;;  %v19627_v5 = vld [vmem:[#allocation8 + $0xd30] ss:$72 sps:$4 sm:$0xff]  }
 0x452   :  { %6951 = vmatprep.mubr.bf16.mxu0 %v21769_v55  ;;  %6925 = vmatprep.subr.bf16.mxu0 %v19617_v3  ;;  %v22103_v55 = vld [vmem:[#allocation9 + $0x8] sm:$0xff] }
 0x453   :  { %6846 = vmatmul.mubr.bf16.vlgmr.msra.gmra.mrb[32].mxu1 %v21803_v28  ;;  %v22107_v59 = vrot.slane %v22103_v55, %v21932_v1  ;;  %v22111_v6 = vrot.slane %v22103_v55, %v21927_v63  ;;  %v19632_v3 = vld [vmem:[#allocation8 + $0xdc4] ss:$72 sps:$4 sm:$0xff]  }
 0x454   :  { %6855 = vmatprep.mubr.bf16.mxu1 %v21805_v34 }
 0x455   :  { %6926 = vmatpush1.bf16.msra.mxu0 %v19615_v43  ;;  %v17940_v43 = vadd.f32 %v22021_v13, %v22030_v18  ;;  %v19635_v18 = vld [vmem:[#allocation8 + $0xe54] ss:$72 sps:$4 sm:$0xff]  }
 0x456   :  { %6927 = vmatprep.subr.bf16.mxu0 %v19620_v60  ;;  %v7027_v60 = vpack.c.bf16 %v17921_v4, %v17921_v4 }
 0x457   :  { %v7056_v51 = vpack.c.bf16 %v17940_v43, %v17940_v43  ;;  %v19639_v43 = vld [vmem:[#allocation8 + $0xf70] ss:$72 sps:$4 sm:$0xff]  }
 0x459   :  { %7074 = vmatpush1.bf16.xpose.msra.mxu1 %v7049_v16  ;;  %6928 = vmatpush1.bf16.msra.mxu0 %v19618_v24  ;;  %v17930_v16 = vadd.f32 %v21966_v22, %v21984_v56  ;;  %v19630_v22 = vld [vmem:[#allocation8 + $0xdc0] ss:$72 sps:$4 sm:$0xff]  }
 0x45a   :  { %7113 = vmatprep.subr.bf16.mxu1 %v7052_v37  ;;  %6929 = vmatprep.subr.bf16.mxu0 %v19623_v7 }
 0x45b   :  { %6856 = vmatmul.mubr.bf16.gmra.mrb[36].mxu1 %v21811_v42  ;;  %v7030_v33 = vpack.c.bf16 %v17930_v16, %v17930_v16  ;;  %v7032_v16 = vpack.c.bf16 %v21890_v41, %v21890_v41  ;;  %v19642_v41 = vld [vmem:[#allocation8 + $0x1000] ss:$72 sps:$4 sm:$0xff]  }
 0x45c   :  { %7105 = vmatprep.mubr.bf16.mxu1 %v7026_v9 }
 0x45d   :  { %6930 = vmatpush1.bf16.msra.mxu0 %v19621_v53 }
 0x45e   :  { %6931 = vmatprep.subr.bf16.mxu0 %v19626_v29  ;;  %v19633_v29 = vld [vmem:[#allocation8 + $0xe50] ss:$72 sps:$4 sm:$0xff]  }
 0x461   :  { %6932 = vmatpush1.bf16.msra.mxu0 %v19624_v14  ;;  %v17939_v14 = vadd.f32 %v22018_v57, %v22026_v35  ;;  %v17924_v57 = vadd.f32 %v21929_v11, %v21942_v10  ;;  %v17947_v35 = vadd.f32 %v22056_v30, %v22061_v61  ;;  %v19650_v11 = vld [vmem:[#allocation8 + $0x1124] ss:$72 sps:$4 sm:$0xff]   ;;  %v19648_v10 = vld [vmem:[#allocation8 + $0x1120] ss:$72 sps:$4 sm:$0xff]   ;;  %v19653_v30 = vld [vmem:[#allocation8 + $0x11b4] ss:$72 sps:$4 sm:$0xff]   ;;  %v17923_v61 = vadd.f32 %v21924_v2, %v21938_v8 }
 0x462   :  { %6933 = vmatprep.subr.bf16.mxu0 %v19629_v54  ;;  %v19636_v54 = vld [vmem:[#allocation8 + $0xee0] ss:$72 sps:$4 sm:$0xff]   ;;  %v19659_v2 = vld [vmem:[#allocation8 + $0x12d4] ss:$72 sps:$4 sm:$0xff]   ;;  %v19657_v8 = vld [vmem:[#allocation8 + $0x12d0] ss:$72 sps:$4 sm:$0xff]  }
 0x463   :  { %7106 = vmatmul.mubr.bf16.vlgmr.msra.gmra.mrb[40].mxu1 %v7025_v38 }
 0x464   :  { %7114 = vmatpush1.bf16.xpose.msra.mxu1 %v7051_v27  ;;  %7145 = vmatprep.mubr.bf16.mxu1 %v7028_v48 }
 0x465   :  { %6934 = vmatpush1.bf16.msra.mxu0 %v19627_v5  ;;  %v19641_v5 = vld [vmem:[#allocation8 + $0xf74] ss:$72 sps:$4 sm:$0xff]  }
 0x466   :  { %v6529_v23 = vpop.f32.mrb[24].mxu1  ;;  %6935 = vmatprep.subr.bf16.mxu0 %v19632_v3  ;;  %v19647_v3 = vld [vmem:[#allocation8 + $0x1094] ss:$72 sps:$4 sm:$0xff]  }
 0x467   :  { %v6531_v21 = vpop.f32.mrb[25].mxu1  ;;  %v17953_v37 = vadd.f32 %v6529_v23, %v22111_v6  ;;  %v19638_v23 = vld [vmem:[#allocation8 + $0xee4] ss:$72 sps:$4 sm:$0xff]  }
 0x468   :  { %v17954_v58 = vadd.f32 %v6531_v21, %v22107_v59  ;;  %v22114_v52 = vpop.f32.mrb[26].mxu1  ;;  %v17929_v21 = vadd.f32 %v21964_v20, %v21980_v45  ;;  %v19644_v20 = vld [vmem:[#allocation8 + $0x1004] ss:$72 sps:$4 sm:$0xff]  }
 0x469   :  { %v6535_v44 = vpop.f32.mrb[27].mxu1  ;;  %v7053_v17 = vpack.c.bf16 %v17953_v37, %v17953_v37  ;;  %6936 = vmatpush1.bf16.msra.mxu0 %v19630_v22  ;;  %v7055_v37 = vpack.c.bf16 %v17939_v14, %v17939_v14  ;;  %v7033_v22 = vpack.c.bf16 %v17923_v61, %v17923_v61  ;;  %v19663_v14 = vld [vmem:[#allocation8 + $0x13f0] ss:$72 sps:$4 sm:$0xff]  }
 0x46a   :  { %v7054_v9 = vpack.c.bf16 %v17954_v58, %v17954_v58  ;;  %6937 = vmatprep.subr.bf16.mxu0 %v19635_v18  ;;  %v17948_v58 = vadd.f32 %v22058_v15, %v22064_v46  ;;  %v7029_v4 = vpack.c.bf16 %v17929_v21, %v17929_v21  ;;  %v17956_v15 = vadd.f32 %v6535_v44, %v22107_v59  ;;  %v23786_v61 = vld [vmem:[#allocation54_spill] sm:$0xff] }
 0x46b   :  { %v7031_v46 = vpack.c.bf16 %v21888_v32, %v21888_v32  ;;  %v17932_v32 = vadd.f32 %v21973_v26, %v21984_v56  ;;  %v17955_v44 = vadd.f32 %v22114_v52, %v22111_v6  ;;  %v19662_v26 = vld [vmem:[#allocation8 + $0x1364] ss:$72 sps:$4 sm:$0xff]   ;;  %v17931_v56 = vadd.f32 %v21968_v25, %v21980_v45  ;;  %v19665_v52 = vld [vmem:[#allocation8 + $0x13f4] ss:$72 sps:$4 sm:$0xff]   ;;  %v19666_v45 = vld [vmem:[#allocation8 + $0x1480] ss:$72 sps:$4 sm:$0xff]  }
 0x46c   :  { %7153 = vmatprep.subr.bf16.mxu1 %v7054_v9  ;;  %v7058_v9 = vpack.c.bf16 %v17948_v58, %v17948_v58  ;;  %v7038_v21 = vpack.c.bf16 %v21896_v50, %v21896_v50  ;;  %v19668_v25 = vld [vmem:[#allocation8 + $0x1484] ss:$72 sps:$4 sm:$0xff]   ;;  %v7063_v58 = vpack.c.bf16 %v22067_v62, %v22067_v62 }
 0x46d   :  { %6938 = vmatpush1.bf16.msra.mxu0 %v19633_v29  ;;  %v7036_v18 = vpack.c.bf16 %v17932_v32, %v17932_v32  ;;  %v7062_v29 = vpack.c.bf16 %v22036_v36, %v22036_v36  ;;  %v19660_v36 = vld [vmem:[#allocation8 + $0x1360] ss:$72 sps:$4 sm:$0xff]   ;;  %v7070_v32 = vpack.c.bf16 %v23786_v61, %v23786_v61  ;;  %v17013_v61 = vld [vmem:[#allocation6] ss:$0 sm:$0xff] }
 0x46e   :  { %v6539_v24 = vpop.f32.mrb[28].mxu1  ;;  %6939 = vmatprep.subr.bf16.mxu0 %v19638_v23  ;;  %v19654_v23 = vld [vmem:[#allocation8 + $0x1240] ss:$72 sps:$4 sm:$0xff]  }
 0x46f   :  { %v22124_v38 = vadd.f32 %v6539_v24, %v22111_v6  ;;  %v22126_v7 = vpop.f32.mrb[29].mxu1  ;;  %7146 = vmatmul.mubr.bf16.vlgmr.msra.gmra.mrb[40].mxu1 %v7027_v60  ;;  %v7034_v60 = vpack.c.bf16 %v17924_v57, %v17924_v57  ;;  %v19645_v24 = vld [vmem:[#allocation8 + $0x1090] ss:$72 sps:$4 sm:$0xff]  }
 0x470   :  { %7154 = vmatpush1.bf16.xpose.msra.mxu1 %v7053_v17  ;;  %v6543_v48 = vpop.f32.mrb[30].mxu1  ;;  %7185 = vmatprep.mubr.bf16.mxu1 %v7030_v33  ;;  %v7057_v33 = vpack.c.bf16 %v17947_v35, %v17947_v35  ;;  %v7060_v17 = vpack.c.bf16 %v17956_v15, %v17956_v15  ;;  %v17958_v50 = vadd.f32 %v22126_v7, %v22107_v59  ;;  %v19680_v35 = vld [vmem:[#allocation8 + $0x16c4] ss:$72 sps:$4 sm:$0xff]   ;;  %v19678_v15 = vld [vmem:[#allocation8 + $0x16c0] ss:$72 sps:$4 sm:$0xff]  }
 0x471   :  { %v22129_v13 = vadd.f32 %v6543_v48, %v22111_v6  ;;  %7193 = vmatprep.subr.bf16.mxu1 %v7056_v51  ;;  %v6545_v27 = vpop.f32.mrb[31].mxu1  ;;  %6940 = vmatpush1.bf16.msra.mxu0 %v19636_v54  ;;  %v19651_v51 = vld [vmem:[#allocation8 + $0x11b0] ss:$72 sps:$4 sm:$0xff]   ;;  %v19656_v48 = vld [vmem:[#allocation8 + $0x1244] ss:$72 sps:$4 sm:$0xff]   ;;  %v7035_v6 = vpack.c.bf16 %v17931_v56, %v17931_v56 }
 0x472   :  { %v22132_v53 = vadd.f32 %v6545_v27, %v22107_v59  ;;  %6941 = vmatprep.subr.bf16.mxu0 %v19641_v5  ;;  %v7059_v27 = vpack.c.bf16 %v17955_v44, %v17955_v44  ;;  %v7066_v54 = vpack.c.bf16 %v17958_v50, %v17958_v50  ;;  %v19674_v59 = vld [vmem:[#allocation8 + $0x15a4] ss:$72 sps:$4 sm:$0xff]   ;;  %v19675_v5 = vld [vmem:[#allocation8 + $0x1630] ss:$72 sps:$4 sm:$0xff]  }
 0x473   :  { %v19687_v44 = vld [vmem:[#allocation8 + $0x1870] ss:$72 sps:$4 sm:$0xff]   ;;  %v23792_v50 = vld [vmem:[#allocation45_spill] sm:$0xff] }
 0x474   :  { %v19693_v56 = vld [vmem:[#allocation8 + $0x1990] ss:$72 sps:$4 sm:$0xff]  }
 0x475   :  { %6942 = vmatpush1.bf16.msra.mxu0 %v19639_v43  ;;  %v7065_v43 = vpack.c.bf16 %v22124_v38, %v22124_v38  ;;  %v23783_v38 = vld [vmem:[#allocation47_spill] sm:$0xff] }
 0x476   :  { %6943 = vmatprep.subr.bf16.mxu0 %v19644_v20  ;;  %v23782_v20 = vld [vmem:[#allocation52_spill] sm:$0xff] }
 0x477   :  { %v7068_v57 = vpack.c.bf16 %v23782_v20, %v23782_v20 }
 0x479   :  { %6944 = vmatpush1.bf16.msra.mxu0 %v19642_v41  ;;  %v19683_v41 = vld [vmem:[#allocation8 + $0x1754] ss:$72 sps:$4 sm:$0xff]  }
 0x47a   :  { %6945 = vmatprep.subr.bf16.mxu0 %v19647_v3  ;;  %v19686_v3 = vld [vmem:[#allocation8 + $0x17e4] ss:$72 sps:$4 sm:$0xff]  }
 0x47b   :  { %7186 = vmatmul.mubr.bf16.vlgmr.msra.gmra.mrb[40].mxu1 %v7029_v4 }
 0x47c   :  { %7194 = vmatpush1.bf16.xpose.msra.mxu1 %v7055_v37  ;;  %7225 = vmatprep.mubr.bf16.mxu1 %v7032_v16  ;;  %v23780_v16 = vld [vmem:[#allocation42_spill] sm:$0xff]  ;;  %v23781_v37 = vld [vmem:[#allocation48_spill] sm:$0xff] }
 0x47d   :  { %7233 = vmatprep.subr.bf16.mxu1 %v7058_v9  ;;  %6946 = vmatpush1.bf16.msra.mxu0 %v19645_v24  ;;  %v7039_v62 = vpack.c.bf16 %v23780_v16, %v23780_v16  ;;  %v7042_v9 = vpack.c.bf16 %v23781_v37, %v23781_v37  ;;  %v23784_v24 = vld [vmem:[#allocation41_spill] sm:$0xff] }
 0x47e   :  { %6947 = vmatprep.subr.bf16.mxu0 %v19650_v11  ;;  %v7044_v11 = vpack.c.bf16 %v23784_v24, %v23784_v24  ;;  %v23795_v16 = vld [vmem:[#allocation37_spill] sm:$0xff] }
 0x481   :  { %6948 = vmatpush1.bf16.msra.mxu0 %v19648_v10  ;;  %v23785_v10 = vld [vmem:[#allocation51_spill] sm:$0xff] }
 0x482   :  { %6949 = vmatprep.subr.bf16.mxu0 %v19653_v30  ;;  %v7067_v30 = vpack.c.bf16 %v23785_v10, %v23785_v10 }
 0x483   :  { %7226 = vmatmul.mubr.bf16.vlgmr.msra.gmra.mrb[44].mxu1 %v7031_v46  ;;  %v19681_v46 = vld [vmem:[#allocation8 + $0x1750] ss:$72 sps:$4 sm:$0xff]  }
 0x484   :  { %7234 = vmatpush1.bf16.xpose.msra.mxu1 %v7057_v33  ;;  %7265 = vmatprep.mubr.bf16.mxu1 %v7034_v60  ;;  %v19684_v60 = vld [vmem:[#allocation8 + $0x17e0] ss:$72 sps:$4 sm:$0xff]   ;;  %v7041_v33 = vpack.c.bf16 %v23783_v38, %v23783_v38 }
 0x485   :  { %7273 = vmatprep.subr.bf16.mxu1 %v7060_v17  ;;  %6950 = vmatpush1.bf16.msra.mxu0 %v19651_v51  ;;  %v19689_v17 = vld [vmem:[#allocation8 + $0x1874] ss:$72 sps:$4 sm:$0xff]   ;;  %v19692_v51 = vld [vmem:[#allocation8 + $0x1904] ss:$72 sps:$4 sm:$0xff]  }
 0x486   :  { %6972 = vmatprep.subr.bf16.mxu0 %v19656_v48  ;;  %v23787_v48 = vld [vmem:[#allocation40_spill] sm:$0xff] }
 0x488   :  { %6952 = vmatmul.mubr.bf16.vlgmr.msra.gmra.mrb[32].mxu0 %v21775_v12  ;;  %v7061_v12 = vpack.c.bf16 %v22033_v0, %v22033_v0  ;;  %v19671_v0 = vld [vmem:[#allocation8 + $0x1514] ss:$72 sps:$4 sm:$0xff]  }
 0x489   :  { %6973 = vmatpush1.bf16.msra.mxu0 %v19654_v23  ;;  %6961 = vmatprep.mubr.bf16.mxu0 %v21783_v39  ;;  %v7064_v39 = vpack.c.bf16 %v22070_v31, %v22070_v31  ;;  %v7040_v31 = vpack.c.bf16 %v21948_v19, %v21948_v19  ;;  %v19677_v19 = vld [vmem:[#allocation8 + $0x1634] ss:$72 sps:$4 sm:$0xff]  }
 0x48a   :  { %6974 = vmatprep.subr.bf16.mxu0 %v19659_v2  ;;  %v23789_v2 = vld [vmem:[#allocation53_spill] sm:$0xff] }
 0x48d   :  { %6975 = vmatpush1.bf16.msra.mxu0 %v19657_v8  ;;  %v7069_v8 = vpack.c.bf16 %v23789_v2, %v23789_v2 }
 0x48e   :  { %6976 = vmatprep.subr.bf16.mxu0 %v19662_v26  ;;  %v7072_v26 = vpack.c.bf16 %v22132_v53, %v22132_v53  ;;  %v19699_v53 = vld [vmem:[#allocation8 + $0x1ab0] ss:$72 sps:$4 sm:$0xff]  }
 0x48f   :  { %7266 = vmatmul.mubr.bf16.vlgmr.msra.gmra.mrb[44].mxu1 %v7033_v22  ;;  %v19690_v22 = vld [vmem:[#allocation8 + $0x1900] ss:$72 sps:$4 sm:$0xff]  }
 0x490   :  { %7274 = vmatpush1.bf16.xpose.msra.mxu1 %v7059_v27  ;;  %7305 = vmatprep.mubr.bf16.mxu1 %v7036_v18  ;;  %v7043_v18 = vpack.c.bf16 %v23787_v48, %v23787_v48  ;;  %v19695_v27 = vld [vmem:[#allocation8 + $0x1994] ss:$72 sps:$4 sm:$0xff]  }
 0x491   :  { %7313 = vmatprep.subr.bf16.mxu1 %v7062_v29  ;;  %6962 = vmatmul.mubr.bf16.gmra.mrb[36].mxu0 %v21785_v40  ;;  %v7037_v40 = vpack.c.bf16 %v21893_v47, %v21893_v47  ;;  %v19672_v47 = vld [vmem:[#allocation8 + $0x15a0] ss:$72 sps:$4 sm:$0xff]  }
 0x492   :  { %6977 = vmatpush1.bf16.msra.mxu0 %v19660_v36  ;;  %7004 = vmatprep.mubr.bf16.mxu0 %v21797_v49  ;;  %v19669_v49 = vld [vmem:[#allocation8 + $0x1510] ss:$72 sps:$4 sm:$0xff]   ;;  %v23788_v29 = vld [vmem:[#allocation44_spill] sm:$0xff]  ;;  %v19698_v36 = vld [vmem:[#allocation8 + $0x1a24] ss:$72 sps:$4 sm:$0xff]  }
 0x493   :  { %6978 = vmatprep.subr.bf16.mxu0 %v19665_v52  ;;  %v7046_v23 = vpack.c.bf16 %v23788_v29, %v23788_v29 }
 0x496   :  { %6979 = vmatpush1.bf16.msra.mxu0 %v19663_v14  ;;  %v23791_v14 = vld [vmem:[#allocation43_spill] sm:$0xff] }
 0x497   :  { %6980 = vmatprep.subr.bf16.mxu0 %v19668_v25  ;;  %v7045_v25 = vpack.c.bf16 %v23791_v14, %v23791_v14 }
 0x49a   :  { %6981 = vmatpush1.bf16.msra.mxu0 %v19666_v45  ;;  %v22212_v45 = vrot.slane %v22103_v55, %v23792_v50 }
 0x49b   :  { %7306 = vmatmul.mubr.bf16.vlgmr.msra.gmra.mrb[44].mxu1 %v7035_v6  ;;  %6982 = vmatprep.subr.bf16.mxu0 %v19671_v0  ;;  %v23790_v6 = vld [vmem:[#allocation46_spill] sm:$0xff] }
 0x49c   :  { %7314 = vmatpush1.bf16.xpose.msra.mxu1 %v7061_v12  ;;  %7345 = vmatprep.mubr.bf16.mxu1 %v7038_v21  ;;  %v22205_v52 = vrot.slane %v22103_v55, %v23790_v6  ;;  %v19696_v21 = vld [vmem:[#allocation8 + $0x1a20] ss:$72 sps:$4 sm:$0xff]   ;;  %v19701_v12 = vld [vmem:[#allocation8 + $0x1ab4] ss:$72 sps:$4 sm:$0xff]   ;;  %v23793_v0 = vld [vmem:[#allocation50_spill] sm:$0xff] }
 0x49d   :  { %7353 = vmatprep.subr.bf16.mxu1 %v7064_v39 }
 0x49e   :  { %6983 = vmatpush1.bf16.msra.mxu0 %v19669_v49 }
 0x49f   :  { %6984 = vmatprep.subr.bf16.mxu0 %v19674_v59 }
 0x4a2   :  { %6985 = vmatpush1.bf16.msra.mxu0 %v19672_v47 }
 0x4a3   :  { %7346 = vmatmul.mubr.bf16.vlgmr.msra.gmra.mrb[48].mxu1 %v7037_v40  ;;  %6986 = vmatprep.subr.bf16.mxu0 %v19677_v19 }
 0x4a4   :  { %7354 = vmatpush1.bf16.xpose.msra.mxu1 %v7063_v58  ;;  %7385 = vmatprep.mubr.bf16.mxu1 %v7040_v31  ;;  %v7048_v31 = vpack.c.bf16 %v23793_v0, %v23793_v0  ;;  %v7071_v58 = vpack.c.bf16 %v22129_v13, %v22129_v13  ;;  %v23794_v13 = vld [vmem:[#allocation49_spill] sm:$0xff] }
 0x4a5   :  { %7393 = vmatprep.subr.bf16.mxu1 %v7066_v54 }
 0x4a6   :  { %6987 = vmatpush1.bf16.msra.mxu0 %v19675_v5 }
 0x4a7   :  { %6988 = vmatprep.subr.bf16.mxu0 %v19680_v35 }
 0x4a8   :  { %v22177_v7 = vpop.f32.mrb[24].mxu0 }
 0x4a9   :  { %v6690_v4 = vpop.f32.mrb[25].mxu0  ;;  %v17961_v54 = vadd.f32 %v22177_v7, %v22212_v45 }
 0x4aa   :  { %6989 = vmatpush1.bf16.msra.mxu0 %v19678_v15  ;;  %v17962_v39 = vadd.f32 %v6690_v4, %v22205_v52  ;;  %v22223_v49 = vpop.f32.mrb[26].mxu0  ;;  %v7047_v4 = vpack.c.bf16 %v23794_v13, %v23794_v13  ;;  %v17016_v13 = vld [vmem:[#allocation6 + $0x3] ss:$0 sm:$0xff] }
 0x4ab   :  { %6990 = vmatprep.subr.bf16.mxu0 %v19683_v41  ;;  %v7638_v59 = vpack.c.bf16 %v17961_v54, %v17961_v54  ;;  %v22225_v47 = vpop.f32.mrb[27].mxu0  ;;  %v23797_v41 = vsub.s32 6, %v23795_v16 }
 0x4ac   :  { %v7639_v40 = vpack.c.bf16 %v17962_v39, %v17962_v39 }
 0x4ad   :  { %v7667_v19 = vsel %vm7665_vm0, %v7638_v59, 0 }
 0x4ae   :  { %6991 = vmatpush1.bf16.msra.mxu0 %v19681_v46  ;;  %v22252_v46 = vrot.slane %v22103_v55, %v23797_v41 }
 0x4af   :  { %7386 = vmatmul.mubr.bf16.vlgmr.msra.gmra.mrb[48].mxu1 %v7039_v62  ;;  %6992 = vmatprep.subr.bf16.mxu0 %v19686_v3  ;;  %v23796_v62 = vsub.s32 7, %v23795_v16 }
 0x4b0   :  { %7394 = vmatpush1.bf16.xpose.msra.mxu1 %v7065_v43  ;;  %7425 = vmatprep.mubr.bf16.mxu1 %v7042_v9  ;;  %v22231_v7 = vpop.f32.mrb[28].mxu0 }
 0x4b1   :  { %7433 = vmatprep.subr.bf16.mxu1 %v7068_v57  ;;  %v22233_v5 = vpop.f32.mrb[29].mxu0  ;;  %v1187_v37 = vrot.slane %v22103_v55, %v23796_v62 }
 0x4b2   :  { %6993 = vmatpush1.bf16.msra.mxu0 %v19684_v60 }
 0x4b3   :  { %6994 = vmatprep.subr.bf16.mxu0 %v19689_v17 }
 0x4b6   :  { %6995 = vmatpush1.bf16.msra.mxu0 %v19687_v44 }
 0x4b7   :  { %6996 = vmatprep.subr.bf16.mxu0 %v19692_v51 }
 0x4ba   :  { %6997 = vmatpush1.bf16.msra.mxu0 %v19690_v22 }
 0x4bb   :  { %7426 = vmatmul.mubr.bf16.vlgmr.msra.gmra.mrb[48].mxu1 %v7041_v33  ;;  %6998 = vmatprep.subr.bf16.mxu0 %v19695_v27  ;;  %v17014_v27 = vld [vmem:[#allocation6 + $0x1] ss:$0 sm:$0xff] }
 0x4bc   :  { %7434 = vmatpush1.bf16.xpose.msra.mxu1 %v7067_v30  ;;  %7465 = vmatprep.mubr.bf16.mxu1 %v7044_v11 }
 0x4bd   :  { %7473 = vmatprep.subr.bf16.mxu1 %v7070_v32 }
 0x4be   :  { %6999 = vmatpush1.bf16.msra.mxu0 %v19693_v56 }
 0x4bf   :  { %7000 = vmatprep.subr.bf16.mxu0 %v19698_v36 }
 0x4c2   :  { %7001 = vmatpush1.bf16.msra.mxu0 %v19696_v21  ;;  %v17015_v21 = vld [vmem:[#allocation6 + $0x2] ss:$0 sm:$0xff] }
 0x4c3   :  { %7466 = vmatmul.mubr.bf16.vlgmr.msra.gmra.mrb[52].mxu1 %v7043_v18  ;;  %7002 = vmatprep.subr.bf16.mxu0 %v19701_v12 }
 0x4c4   :  { %7474 = vmatpush1.bf16.xpose.msra.mxu1 %v7069_v8  ;;  %7505 = vmatprep.mubr.bf16.mxu1 %v7046_v23 }
 0x4c5   :  { %7513 = vmatprep.subr.bf16.mxu1 %v7072_v26 }
 0x4c6   :  { %7003 = vmatpush1.bf16.msra.mxu0 %v19699_v53 }
 0x4c9   :  { %7005 = vmatmul.mubr.bf16.vlgmr.msra.gmra.mrb[32].mxu0 %v21803_v28  ;;  %v22235_v28 = vpop.f32.mrb[30].mxu0 }
 0x4ca   :  { %7014 = vmatprep.mubr.bf16.mxu0 %v21805_v34  ;;  %v22237_v34 = vpop.f32.mrb[31].mxu0 }
 0x4cf   :  { %7506 = vmatmul.mubr.bf16.vlgmr.msra.gmra.mrb[52].mxu1 %v7045_v25 }
 0x4d0   :  { %7514 = vmatpush1.bf16.xpose.msra.mxu1 %v7071_v58  ;;  %7545 = vmatprep.mubr.bf16.mxu1 %v7048_v31 }
 0x4d1   :  { %17017 = vmatprep.subr.msk.bf16.mxu1 %vm7665_vm0, %v7639_v40  ;;  %7015 = vmatmul.mubr.bf16.gmra.mrb[36].mxu0 %v21811_v42 }
 0x4db   :  { %7546 = vmatmul.mubr.bf16.vlgmr.msra.gmra.mrb[52].mxu1 %v7047_v4 }
 0x4dc   :  { %7685 = vmatpush1.bf16.msra.mxu1 %v7667_v19 }
 0x526   :  { %v22242_v9 = vpop.f32.mrb[32].mxu1 }
 0x527   :  { %v6849_v43 = vpop.f32.mrb[33].mxu1 }
 0x528   :  { %v17970_v20 = vadd.f32 %v6849_v43, %v1187_v37  ;;  %v22244_v57 = vpop.f32.mrb[34].mxu1 }
 0x529   :  { %v6853_v42 = vpop.f32.mrb[35].mxu1 }
 0x52a   :  { %v7641_v35 = vpack.c.bf16 %v17970_v20, %v17970_v20  ;;  %v22246_v15 = vadd.f32 %v6853_v42, %v1187_v37  ;;  %v1120_v42 = vld [vmem:[#allocation9 + $0x10] sm:$0x3] }
 0x52c   :  { %17019 = vmatprep.subr.msk.bf16.mxu1 %vm7665_vm0, %v7641_v35  ;;  %v23798_v35 = vld [vmem:[#allocation38_spill] sm:$0xff] }
 0x52d   :  { %v22277_v41 = vrot.slane %v1120_v42, %v23798_v35 }
 0x52e   :  { %v6857_v3 = vpop.f32.mrb[36].mxu1 }
 0x52f   :  { %v22255_v60 = vadd.f32 %v6857_v3, %v22252_v46  ;;  %v6859_v38 = vpop.f32.mrb[37].mxu1  ;;  %v23799_v3 = vld [vmem:[#allocation39_spill] sm:$0xff] }
 0x530   :  { %v22257_v33 = vadd.f32 %v6859_v38, %v1187_v37  ;;  %v6861_v17 = vpop.f32.mrb[38].mxu1  ;;  %v22280_v38 = vrot.slane %v1120_v42, %v23799_v3  ;;  %v19708_v42 = vld [vmem:[#allocation11 + $0x30] ss:$24 sps:$4 sm:$0xff]  }
 0x531   :  { %v22260_v24 = vadd.f32 %v6861_v17, %v22252_v46  ;;  %v6863_v11 = vpop.f32.mrb[39].mxu1 }
 0x532   :  { %v22262_v10 = vadd.f32 %v6863_v11, %v1187_v37 }
 0x54e   :  { %v7187_v30 = vpop.f32.mrb[40].mxu1 }
 0x54f   :  { %v7553_v32 = vmul.f32 0.03608439, %v7187_v30  ;;  %v7189_v44 = vpop.f32.mrb[41].mxu1 }
 0x550   :  { %v7190_v55 = vpop.f32.mrb[42].mxu1 }
 0x551   :  { %v7191_v51 = vpop.f32.mrb[43].mxu1  ;;  %v7585_v22 = vadd.f32 %v17013_v61, %v7553_v32 }
 0x553   :  { %v7590_v48 = vsel %vm7589_vm1, %v7585_v22, -inf }
 0x554   :  { %7591 = vmax.xlane.f32.xlu0 %v7590_v48 }
 0x56e   :  { %v7307_v18 = vpop.f32.mrb[44].mxu1 }
 0x56f   :  { %v7554_v29 = vmul.f32 0.03608439, %v7307_v18  ;;  %v7309_v23 = vpop.f32.mrb[45].mxu1 }
 0x570   :  { %v7310_v2 = vpop.f32.mrb[46].mxu1 }
 0x571   :  { %v7311_v8 = vpop.f32.mrb[47].mxu1  ;;  %v7586_v26 = vadd.f32 %v17014_v27, %v7554_v29 }
 0x573   :  { %v7593_v56 = vsel %vm7589_vm1, %v7586_v26, -inf }
 0x574   :  { %7594 = vmax.xlane.f32.xlu0 %v7593_v56 }
 0x58e   :  { %v7427_v36 = vpop.f32.mrb[48].mxu1 }
 0x58f   :  { %v7555_v12 = vmul.f32 0.03608439, %v7427_v36  ;;  %v7429_v39 = vpop.f32.mrb[49].mxu1  ;;  %v21485_v36 = vmov 0  }
 0x590   :  { %v7430_v53 = vpop.f32.mrb[50].mxu1  ;;  %7716 = vmatprep.mubr.bf16.mxu1 %v21485_v36  ;;  %18392 = vset.pattern.permute.xlu1 %v21485_v36 }
 0x591   :  { %v7431_v14 = vpop.f32.mrb[51].mxu1  ;;  %v7587_v25 = vadd.f32 %v17015_v21, %v7555_v12  ;;  %18393 = vset.pattern.permute.xlu0 %v21485_v36 }
 0x593   :  { %v7596_v40 = vsel %vm7589_vm1, %v7587_v25, -inf }
 0x594   :  { %7597 = vmax.xlane.f32.xlu1 %v7596_v40 }
 0x59c   :  { %v22267_v0 = vpop.f32.mrb[32].mxu0 }
 0x59d   :  { %v22269_v31 = vpop.f32.mrb[33].mxu0 }
 0x59e   :  { %v22271_v58 = vpop.f32.mrb[34].mxu0 }
 0x59f   :  { %v22273_v54 = vpop.f32.mrb[35].mxu0 }
 0x5a4   :  { %v7016_v17 = vpop.f32.mrb[36].mxu0 }
 0x5a5   :  { %v22283_v11 = vadd.f32 %v7016_v17, %v22277_v41  ;;  %v7018_v30 = vpop.f32.mrb[37].mxu0  ;;  %v19716_v17 = vld [vmem:[#allocation11 + $0x64] ss:$24 sps:$4 sm:$0xff]  }
 0x5a6   :  { %v22286_v61 = vadd.f32 %v7018_v30, %v22280_v38  ;;  %v7020_v32 = vpop.f32.mrb[38].mxu0  ;;  %v17969_v30 = vadd.f32 %v22242_v9, %v22252_v46  ;;  %v17977_v9 = vadd.f32 %v22267_v0, %v22277_v41  ;;  %v19738_v0 = vld [vmem:[#allocation11 + $0x120] ss:$24 sps:$4 sm:$0xff]  }
 0x5a7   :  { %v22289_v44 = vadd.f32 %v7020_v32, %v22277_v41  ;;  %v7022_v55 = vpop.f32.mrb[39].mxu0  ;;  %v19722_v32 = vld [vmem:[#allocation11 + $0x94] ss:$24 sps:$4 sm:$0xff]  }
 0x5a8   :  { %v22292_v51 = vadd.f32 %v7022_v55, %v22280_v38 }
 0x5ae   :  { %v7547_v59 = vpop.f32.mrb[52].mxu1 }
 0x5af   :  { %v7556_v4 = vmul.f32 0.03608439, %v7547_v59  ;;  %v7549_v19 = vpop.f32.mrb[53].mxu1 }
 0x5b0   :  { %v7550_v62 = vpop.f32.mrb[54].mxu1 }
 0x5b1   :  { %v7551_v37 = vpop.f32.mrb[55].mxu1  ;;  %v7588_v43 = vadd.f32 %v17016_v13, %v7556_v4 }
 0x5b2   :  { %v19704_v37 = vld [vmem:[#allocation11 + $0x4] ss:$24 sps:$4 sm:$0xff]  }
 0x5b3   :  { %v7599_v20 = vsel %vm7589_vm1, %v7588_v43, -inf  ;;  %10011 = vmatprep.subr.bf16.mxu0 %v19704_v37 }
 0x5b4   :  { %7600 = vmax.xlane.f32.xlu1 %v7599_v20  ;;  %v19710_v20 = vld [vmem:[#allocation11 + $0x34] ss:$24 sps:$4 sm:$0xff]  }
 0x5e1   :  { %v7592_v48 = vpop.xlane.xlu0 %7591 }
 0x5e2   :  { %v7602_v18 = vsub.f32 %v7585_v22, %v7592_v48  ;;  %v19720_v48 = vld [vmem:[#allocation11 + $0x90] ss:$24 sps:$4 sm:$0xff]  }
 0x5e4   :  { %v7606_v27 = vmul.f32 1.442695, %v7602_v18  ;;  %v7640_v18 = vpack.c.bf16 %v17969_v30, %v17969_v30  ;;  %v17979_v30 = vadd.f32 %v22271_v58, %v22277_v41  ;;  %v7653_v41 = vpack.c.bf16 %v22257_v33, %v22257_v33 }
 0x5e6   :  { %20998 = vpow2.f32 %v7606_v27  ;;  %v17978_v27 = vadd.f32 %v22269_v31, %v22280_v38  ;;  %v19732_v31 = vld [vmem:[#allocation11 + $0xf0] ss:$24 sps:$4 sm:$0xff]  }
 0x5f0   :  { %v20999_v29 = vpop.eup %20998 }
 0x5f1   :  { %v7614_v23 = vsel %vm7589_vm1, %v20999_v29, 0.0 }
 0x5f2   :  { %7615 = vadd.xlane.f32.xlu0 %v7614_v23 }
 0x601   :  { %v7595_v2 = vpop.xlane.xlu0 %7594 }
 0x602   :  { %v7603_v8 = vsub.f32 %v7586_v26, %v7595_v2  ;;  %v19728_v2 = vld [vmem:[#allocation11 + $0xc4] ss:$24 sps:$4 sm:$0xff]  }
 0x604   :  { %v7608_v56 = vmul.f32 1.442695, %v7603_v8 }
 0x606   :  { %21000 = vpow2.f32 %v7608_v56  ;;  %v19726_v56 = vld [vmem:[#allocation11 + $0xc0] ss:$24 sps:$4 sm:$0xff]  }
 0x610   :  { %v22298_v21 = vpop.eup %21000 }
 0x611   :  { %v7617_v22 = vsel %vm7589_vm1, %v22298_v21, 0.0 }
 0x612   :  { %7618 = vadd.xlane.f32.xlu1 %v7617_v22  ;;  %v7673_v22 = vsel %vm7665_vm0, %v7640_v18, 0 }
 0x621   :  { %v7598_v12 = vpop.xlane.xlu1 %7597 }
 0x622   :  { %v7604_v39 = vsub.f32 %v7587_v25, %v7598_v12  ;;  %v19702_v25 = vld [vmem:[#allocation11] ss:$24 sps:$4 sm:$0xff]   ;;  %v7643_v12 = vpack.c.bf16 %v17978_v27, %v17978_v27 }
 0x623   :  { %10012 = vmatpush1.bf16.msra.mxu0 %v19702_v25  ;;  %v17971_v25 = vadd.f32 %v22244_v57, %v22252_v46  ;;  %v17966_v57 = vadd.f32 %v22233_v5, %v22205_v52  ;;  %v7648_v46 = vpack.c.bf16 %v17979_v30, %v17979_v30  ;;  %v19792_v30 = vld [vmem:[#allocation11 + $0x2d0] ss:$24 sps:$4 sm:$0xff]  }
 0x624   :  { %v7610_v53 = vmul.f32 1.442695, %v7604_v39  ;;  %10013 = vmatprep.subr.bf16.mxu0 %v19710_v20  ;;  %v19734_v39 = vld [vmem:[#allocation11 + $0xf4] ss:$24 sps:$4 sm:$0xff]  }
 0x625   :  { %v7646_v20 = vpack.c.bf16 %v17971_v25, %v17971_v25  ;;  %v19780_v25 = vld [vmem:[#allocation11 + $0x270] ss:$24 sps:$4 sm:$0xff]  }
 0x626   :  { %21002 = vpow2.f32 %v7610_v53  ;;  %v7642_v53 = vpack.c.bf16 %v17977_v9, %v17977_v9  ;;  %v19752_v9 = vld [vmem:[#allocation11 + $0x184] ss:$24 sps:$4 sm:$0xff]  }
 0x627   :  { %10014 = vmatpush1.bf16.msra.mxu0 %v19708_v42  ;;  %v17980_v42 = vadd.f32 %v22273_v54, %v22280_v38  ;;  %v17965_v54 = vadd.f32 %v22231_v7, %v22212_v45  ;;  %v7651_v38 = vpack.c.bf16 %v17966_v57, %v17966_v57  ;;  %v19723_v57 = vld [vmem:[#allocation11 + $0x98] ss:$24 sps:$4 sm:$0xff]  }
 0x628   :  { %10015 = vmatprep.subr.bf16.mxu0 %v19716_v17 }
 0x629   :  { %v7650_v58 = vpack.c.bf16 %v17965_v54, %v17965_v54  ;;  %v19729_v54 = vld [vmem:[#allocation11 + $0xc8] ss:$24 sps:$4 sm:$0xff]  }
 0x62b   :  { %v7955_v5 = vsel %vm7665_vm0, %v7650_v58, 0  ;;  %v19735_v58 = vld [vmem:[#allocation11 + $0xf8] ss:$24 sps:$4 sm:$0xff]  }
 0x630   :  { %v22302_v26 = vpop.eup %21002 }
 0x631   :  { %v7620_v14 = vsel %vm7589_vm1, %v22302_v26, 0.0 }
 0x632   :  { %7621 = vadd.xlane.f32.xlu0 %v7620_v14  ;;  %v19740_v14 = vld [vmem:[#allocation11 + $0x124] ss:$24 sps:$4 sm:$0xff]  }
 0x641   :  { %v7601_v40 = vpop.xlane.xlu1 %7600 }
 0x642   :  { %v7605_v59 = vsub.f32 %v7588_v43, %v7601_v40  ;;  %v19714_v43 = vld [vmem:[#allocation11 + $0x60] ss:$24 sps:$4 sm:$0xff]   ;;  %v17963_v40 = vadd.f32 %v22223_v49, %v22212_v45 }
 0x643   :  { %10016 = vmatpush1.bf16.msra.mxu0 %v19714_v43  ;;  %v7817_v43 = vsel %vm7665_vm0, %v7646_v20, 0  ;;  %v19713_v20 = vld [vmem:[#allocation11 + $0x3c] ss:$24 sps:$4 sm:$0xff]  }
 0x644   :  { %v7612_v13 = vmul.f32 1.442695, %v7605_v59  ;;  %10017 = vmatprep.subr.bf16.mxu0 %v19722_v32  ;;  %v7649_v32 = vpack.c.bf16 %v17980_v42, %v17980_v42  ;;  %v19786_v42 = vld [vmem:[#allocation11 + $0x2a0] ss:$24 sps:$4 sm:$0xff]  }
 0x646   :  { %21004 = vpow2.f32 %v7612_v13  ;;  %v7679_v13 = vsel %vm7665_vm0, %v7642_v53, 0 }
 0x647   :  { %10018 = vmatpush1.bf16.msra.mxu0 %v19720_v48  ;;  %v7652_v48 = vpack.c.bf16 %v22255_v60, %v22255_v60  ;;  %v7654_v60 = vpack.c.bf16 %v22283_v11, %v22283_v11 }
 0x648   :  { %10019 = vmatprep.subr.bf16.mxu0 %v19728_v2  ;;  %v17968_v2 = vadd.f32 %v22237_v34, %v22205_v52 }
 0x649   :  { %v7961_v33 = vsel %vm7665_vm0, %v7652_v48, 0  ;;  %v19755_v48 = vld [vmem:[#allocation11 + $0x18c] ss:$24 sps:$4 sm:$0xff]  }
 0x64b   :  { %10020 = vmatpush1.bf16.msra.mxu0 %v19726_v56  ;;  %v7967_v56 = vsel %vm7665_vm0, %v7654_v60, 0  ;;  %v19773_v60 = vld [vmem:[#allocation11 + $0x21c] ss:$24 sps:$4 sm:$0xff]  }
 0x64c   :  { %10021 = vmatprep.subr.bf16.mxu0 %v19734_v39  ;;  %v7658_v39 = vpack.c.bf16 %v22260_v24, %v22260_v24  ;;  %v19770_v24 = vld [vmem:[#allocation11 + $0x214] ss:$24 sps:$4 sm:$0xff]  }
 0x64f   :  { %10022 = vmatpush1.bf16.msra.mxu0 %v19732_v31 }
 0x650   :  { %v22306_v4 = vpop.eup %21004  ;;  %10023 = vmatprep.subr.bf16.mxu0 %v19740_v14  ;;  %v19762_v14 = vld [vmem:[#allocation11 + $0x1e0] ss:$24 sps:$4 sm:$0xff]  }
 0x651   :  { %v7623_v19 = vsel %vm7589_vm1, %v22306_v4, 0.0 }
 0x652   :  { %7624 = vadd.xlane.f32.xlu1 %v7623_v19  ;;  %v7647_v19 = vpack.c.bf16 %v22246_v15, %v22246_v15 }
 0x653   :  { %10024 = vmatpush1.bf16.msra.mxu0 %v19738_v0  ;;  %v19764_v0 = vld [vmem:[#allocation11 + $0x1e4] ss:$24 sps:$4 sm:$0xff]  }
 0x67f   :  { %v7616_v62 = vpop.xlane.xlu0 %7615 }
 0x680   :  { %21006 = vrcp.f32 %v7616_v62 }
 0x68a   :  { %v21007_v55 = vpop.eup %21006 }
 0x68b   :  { %v7630_v23 = vmul.f32 %v21007_v55, %v20999_v29  ;;  %v17964_v29 = vadd.f32 %v22225_v47, %v22205_v52  ;;  %v7644_v47 = vpack.c.bf16 %v17963_v40, %v17963_v40  ;;  %v7659_v52 = vpack.c.bf16 %v22262_v10, %v22262_v10 }
 0x68c   :  { %v8105_v40 = vsel %vm7665_vm0, %v7658_v39, 0 }
 0x68d   :  { %v7634_v8 = vpack.c.bf16 %v7630_v23, %v7630_v23  ;;  %v7645_v59 = vpack.c.bf16 %v17964_v29, %v17964_v29  ;;  %v7811_v62 = vsel %vm7665_vm0, %v7644_v47, 0  ;;  %v7655_v23 = vpack.c.bf16 %v22286_v61, %v22286_v61  ;;  %v19756_v29 = vld [vmem:[#allocation11 + $0x1b0] ss:$24 sps:$4 sm:$0xff]   ;;  %v19707_v47 = vld [vmem:[#allocation11 + $0xc] ss:$24 sps:$4 sm:$0xff]  }
 0x68f   :  { %17018 = vmatmul.mubr.msk.bf16.vlgmr.msra.gmra.mrb[56].mxu1 %vm7589_vm1, %v7634_v8 }
 0x690   :  { %7726 = vmatpush1.bf16.msra.mxu1 %v7673_v22  ;;  %7757 = vmatprep.mubr.bf16.mxu1 %v21485_v36  ;;  %v19750_v22 = vld [vmem:[#allocation11 + $0x180] ss:$24 sps:$4 sm:$0xff]  }
 0x691   :  { %17021 = vmatprep.subr.msk.bf16.mxu1 %vm7665_vm0, %v7643_v12  ;;  %v19758_v12 = vld [vmem:[#allocation11 + $0x1b4] ss:$24 sps:$4 sm:$0xff]  }
 0x697   :  { %17020 = vmatmul.mubr.msk.bf16.vlgmr.msra.gmra.mrb[60].mxu1 %vm7589_vm1, %v7634_v8 }
 0x698   :  { %7767 = vmatpush1.bf16.msra.mxu1 %v7679_v13  ;;  %7798 = vmatprep.mubr.bf16.mxu1 %v21485_v36  ;;  %v19768_v13 = vld [vmem:[#allocation11 + $0x210] ss:$24 sps:$4 sm:$0xff]  }
 0x699   :  { %17023 = vmatprep.subr.msk.bf16.mxu1 %vm7665_vm0, %v7645_v59  ;;  %v7661_v59 = vpack.c.bf16 %v22292_v51, %v22292_v51  ;;  %v19782_v51 = vld [vmem:[#allocation11 + $0x274] ss:$24 sps:$4 sm:$0xff]  }
 0x69f   :  { %17022 = vmatmul.mubr.msk.bf16.vlgmr.msra.gmra.mrb[64].mxu1 %vm7589_vm1, %v7634_v8  ;;  %v7619_v49 = vpop.xlane.xlu1 %7618  ;;  %v7657_v8 = vpack.c.bf16 %v17968_v2, %v17968_v2  ;;  %v19765_v2 = vld [vmem:[#allocation11 + $0x1e8] ss:$24 sps:$4 sm:$0xff]  }
 0x6a0   :  { %7829 = vmatpush1.bf16.msra.mxu1 %v7811_v62  ;;  %21008 = vrcp.f32 %v7619_v49  ;;  %7860 = vmatprep.mubr.bf16.mxu1 %v21485_v36  ;;  %v19776_v62 = vld [vmem:[#allocation11 + $0x244] ss:$24 sps:$4 sm:$0xff]  }
 0x6a1   :  { %17025 = vmatprep.subr.msk.bf16.mxu1 %vm7665_vm0, %v7647_v19  ;;  %v19774_v19 = vld [vmem:[#allocation11 + $0x240] ss:$24 sps:$4 sm:$0xff]  }
 0x6aa   :  { %v21009_v37 = vpop.eup %21008 }
 0x6ab   :  { %v7631_v15 = vmul.f32 %v21009_v37, %v22298_v21  ;;  %v7823_v21 = vsel %vm7665_vm0, %v7648_v46, 0  ;;  %v19705_v37 = vld [vmem:[#allocation11 + $0x8] ss:$24 sps:$4 sm:$0xff]   ;;  %v19731_v46 = vld [vmem:[#allocation11 + $0xcc] ss:$24 sps:$4 sm:$0xff]  }
 0x6ad   :  { %v7635_v17 = vpack.c.bf16 %v7631_v15, %v7631_v15  ;;  %v19711_v15 = vld [vmem:[#allocation11 + $0x38] ss:$24 sps:$4 sm:$0xff]  }
 0x6af   :  { %17024 = vmatmul.mubr.msk.bf16.vlgmr.msra.gmra.mrb[68].mxu1 %vm7589_vm1, %v7635_v17 }
 0x6b0   :  { %7870 = vmatpush1.bf16.msra.mxu1 %v7817_v43  ;;  %7901 = vmatprep.mubr.bf16.mxu1 %v21485_v36  ;;  %v19794_v43 = vld [vmem:[#allocation11 + $0x2d4] ss:$24 sps:$4 sm:$0xff]  }
 0x6b1   :  { %17027 = vmatprep.subr.msk.bf16.mxu1 %vm7665_vm0, %v7649_v32  ;;  %v19725_v32 = vld [vmem:[#allocation11 + $0x9c] ss:$24 sps:$4 sm:$0xff]  }
 0x6b7   :  { %17026 = vmatmul.mubr.msk.bf16.vlgmr.msra.gmra.mrb[72].mxu1 %vm7589_vm1, %v7635_v17 }
 0x6b8   :  { %7911 = vmatpush1.bf16.msra.mxu1 %v7823_v21  ;;  %7942 = vmatprep.mubr.bf16.mxu1 %v21485_v36  ;;  %v19800_v21 = vld [vmem:[#allocation11 + $0x304] ss:$24 sps:$4 sm:$0xff]  }
 0x6b9   :  { %17029 = vmatprep.subr.msk.bf16.mxu1 %vm7665_vm0, %v7651_v38  ;;  %v19737_v38 = vld [vmem:[#allocation11 + $0xfc] ss:$24 sps:$4 sm:$0xff]  }
 0x6bf   :  { %v7622_v55 = vpop.xlane.xlu0 %7621  ;;  %17028 = vmatmul.mubr.msk.bf16.vlgmr.msra.gmra.mrb[76].mxu1 %vm7589_vm1, %v7635_v17  ;;  %v19719_v17 = vld [vmem:[#allocation11 + $0x6c] ss:$24 sps:$4 sm:$0xff]  }
 0x6c0   :  { %21010 = vrcp.f32 %v7622_v55  ;;  %7973 = vmatpush1.bf16.msra.mxu1 %v7955_v5  ;;  %8004 = vmatprep.mubr.bf16.mxu1 %v21485_v36  ;;  %v19741_v5 = vld [vmem:[#allocation11 + $0x128] ss:$24 sps:$4 sm:$0xff]   ;;  %v19749_v55 = vld [vmem:[#allocation11 + $0x15c] ss:$24 sps:$4 sm:$0xff]  }
 0x6c1   :  { %17031 = vmatprep.subr.msk.bf16.mxu1 %vm7665_vm0, %v7653_v41  ;;  %v19743_v41 = vld [vmem:[#allocation11 + $0x12c] ss:$24 sps:$4 sm:$0xff]  }
 0x6ca   :  { %v21011_v7 = vpop.eup %21010 }
 0x6cb   :  { %v7632_v18 = vmul.f32 %v21011_v7, %v22302_v26  ;;  %v17967_v26 = vadd.f32 %v22235_v28, %v22212_v45  ;;  %v19746_v45 = vld [vmem:[#allocation11 + $0x154] ss:$24 sps:$4 sm:$0xff]   ;;  %v19744_v28 = vld [vmem:[#allocation11 + $0x150] ss:$24 sps:$4 sm:$0xff]  }
 0x6cc   :  { %10025 = vmatprep.subr.bf16.mxu0 %v19746_v45  ;;  %v19747_v7 = vld [vmem:[#allocation11 + $0x158] ss:$24 sps:$4 sm:$0xff]   ;;  %v19797_v45 = vld [vmem:[#allocation11 + $0x2dc] ss:$24 sps:$4 sm:$0xff]  }
 0x6cd   :  { %v7636_v27 = vpack.c.bf16 %v7632_v18, %v7632_v18  ;;  %v7656_v61 = vpack.c.bf16 %v17967_v26, %v17967_v26  ;;  %10026 = vmatpush1.bf16.msra.mxu0 %v19744_v28  ;;  %v19753_v18 = vld [vmem:[#allocation11 + $0x188] ss:$24 sps:$4 sm:$0xff]   ;;  %v19771_v26 = vld [vmem:[#allocation11 + $0x218] ss:$24 sps:$4 sm:$0xff]  }
 0x6ce   :  { %10027 = vmatprep.subr.bf16.mxu0 %v19752_v9  ;;  %v19795_v28 = vld [vmem:[#allocation11 + $0x2d8] ss:$24 sps:$4 sm:$0xff]  }
 0x6cf   :  { %17030 = vmatmul.mubr.msk.bf16.vlgmr.msra.gmra.mrb[80].mxu1 %vm7589_vm1, %v7636_v27  ;;  %v8099_v34 = vsel %vm7665_vm0, %v7656_v61, 0  ;;  %v19785_v61 = vld [vmem:[#allocation11 + $0x27c] ss:$24 sps:$4 sm:$0xff]  }
 0x6d0   :  { %8014 = vmatpush1.bf16.msra.mxu1 %v7961_v33  ;;  %8045 = vmatprep.mubr.bf16.mxu1 %v21485_v36  ;;  %v19759_v33 = vld [vmem:[#allocation11 + $0x1b8] ss:$24 sps:$4 sm:$0xff]  }
 0x6d1   :  { %17033 = vmatprep.subr.msk.bf16.mxu1 %vm7665_vm0, %v7655_v23  ;;  %10028 = vmatpush1.bf16.msra.mxu0 %v19750_v22  ;;  %v19767_v23 = vld [vmem:[#allocation11 + $0x1ec] ss:$24 sps:$4 sm:$0xff]  }
 0x6d2   :  { %10029 = vmatprep.subr.bf16.mxu0 %v19758_v12  ;;  %v19803_v22 = vld [vmem:[#allocation11 + $0x30c] ss:$24 sps:$4 sm:$0xff]  }
 0x6d5   :  { %10030 = vmatpush1.bf16.msra.mxu0 %v19756_v29 }
 0x6d6   :  { %10031 = vmatprep.subr.bf16.mxu0 %v19764_v0 }
 0x6d7   :  { %17032 = vmatmul.mubr.msk.bf16.vlgmr.msra.gmra.mrb[84].mxu1 %vm7589_vm1, %v7636_v27 }
 0x6d8   :  { %8055 = vmatpush1.bf16.msra.mxu1 %v7967_v56  ;;  %8086 = vmatprep.mubr.bf16.mxu1 %v21485_v36  ;;  %v19777_v56 = vld [vmem:[#allocation11 + $0x248] ss:$24 sps:$4 sm:$0xff]  }
 0x6d9   :  { %17035 = vmatprep.subr.msk.bf16.mxu1 %vm7665_vm0, %v7657_v8  ;;  %10032 = vmatpush1.bf16.msra.mxu0 %v19762_v14  ;;  %v19779_v8 = vld [vmem:[#allocation11 + $0x24c] ss:$24 sps:$4 sm:$0xff]  }
 0x6da   :  { %10033 = vmatprep.subr.bf16.mxu0 %v19770_v24 }
 0x6dd   :  { %10034 = vmatpush1.bf16.msra.mxu0 %v19768_v13 }
 0x6de   :  { %10035 = vmatprep.subr.bf16.mxu0 %v19776_v62 }
 0x6df   :  { %17034 = vmatmul.mubr.msk.bf16.vlgmr.msra.gmra.mrb[88].mxu1 %vm7589_vm1, %v7636_v27  ;;  %v7625_v11 = vpop.xlane.xlu1 %7624  ;;  %v19761_v27 = vld [vmem:[#allocation11 + $0x1bc] ss:$24 sps:$4 sm:$0xff]  }
 0x6e0   :  { %8117 = vmatpush1.bf16.msra.mxu1 %v8099_v34  ;;  %21012 = vrcp.f32 %v7625_v11  ;;  %8148 = vmatprep.mubr.bf16.mxu1 %v21485_v36  ;;  %v19791_v34 = vld [vmem:[#allocation11 + $0x2ac] ss:$24 sps:$4 sm:$0xff]   ;;  %v19789_v11 = vld [vmem:[#allocation11 + $0x2a8] ss:$24 sps:$4 sm:$0xff]  }
 0x6e1   :  { %17037 = vmatprep.subr.msk.bf16.mxu1 %vm7665_vm0, %v7659_v52  ;;  %10036 = vmatpush1.bf16.msra.mxu0 %v19774_v19  ;;  %v19783_v52 = vld [vmem:[#allocation11 + $0x278] ss:$24 sps:$4 sm:$0xff]  }
 0x6e2   :  { %10037 = vmatprep.subr.bf16.mxu0 %v19782_v51  ;;  %v19798_v51 = vld [vmem:[#allocation11 + $0x300] ss:$24 sps:$4 sm:$0xff]  }
 0x6e5   :  { %10038 = vmatpush1.bf16.msra.mxu0 %v19780_v25 }
 0x6ea   :  { %v21013_v10 = vpop.eup %21012 }
 0x6eb   :  { %v7633_v31 = vmul.f32 %v21013_v10, %v22306_v4  ;;  %v7660_v4 = vpack.c.bf16 %v22289_v44, %v22289_v44  ;;  %v19788_v44 = vld [vmem:[#allocation11 + $0x2a4] ss:$24 sps:$4 sm:$0xff]  }
 0x6ec   :  { %10039 = vmatprep.subr.bf16.mxu0 %v19788_v44  ;;  %v19806_v44 = vld [vmem:[#allocation11 + $0x334] ss:$24 sps:$4 sm:$0xff]  }
 0x6ed   :  { %v7637_v53 = vpack.c.bf16 %v7633_v31, %v7633_v31  ;;  %v8111_v49 = vsel %vm7665_vm0, %v7660_v4, 0  ;;  %10040 = vmatpush1.bf16.msra.mxu0 %v19786_v42  ;;  %v19807_v42 = vld [vmem:[#allocation11 + $0x338] ss:$24 sps:$4 sm:$0xff]  }
 0x6ee   :  { %10041 = vmatprep.subr.bf16.mxu0 %v19794_v43 }
 0x6ef   :  { %17036 = vmatmul.mubr.msk.bf16.vlgmr.msra.gmra.mrb[92].mxu1 %vm7589_vm1, %v7637_v53 }
 0x6f0   :  { %8158 = vmatpush1.bf16.msra.mxu1 %v8105_v40  ;;  %8189 = vmatprep.mubr.bf16.mxu1 %v21485_v36 }
 0x6f1   :  { %17039 = vmatprep.subr.msk.bf16.mxu1 %vm7665_vm0, %v7661_v59  ;;  %10042 = vmatpush1.bf16.msra.mxu0 %v19792_v30 }
 0x6f2   :  { %10064 = vmatprep.subr.bf16.mxu0 %v19800_v21  ;;  %v19818_v21 = vld [vmem:[#allocation11 + $0x394] ss:$24 sps:$4 sm:$0xff]  }
 0x6f7   :  { %17038 = vmatmul.mubr.msk.bf16.vlgmr.msra.gmra.mrb[96].mxu1 %vm7589_vm1, %v7637_v53 }
 0x6f8   :  { %8199 = vmatpush1.bf16.msra.mxu1 %v8111_v49  ;;  %8230 = vmatprep.mubr.bf16.mxu1 %v21485_v36  ;;  %v19717_v36 = vld [vmem:[#allocation11 + $0x68] ss:$24 sps:$4 sm:$0xff]  }
 0x6f9   :  { %10170 = vmatprep.subr.bf16.mxu1 %v19707_v47  ;;  %v19801_v49 = vld [vmem:[#allocation11 + $0x308] ss:$24 sps:$4 sm:$0xff]  }
 0x6ff   :  { %17040 = vmatmul.mubr.msk.bf16.vlgmr.msra.gmra.mrb[100].mxu1 %vm7589_vm1, %v7637_v53 }
 0x700   :  { %10171 = vmatpush1.bf16.msra.mxu1 %v19705_v37  ;;  %v19809_v37 = vld [vmem:[#allocation11 + $0x33c] ss:$24 sps:$4 sm:$0xff]  }
 0x701   :  { %10172 = vmatprep.subr.bf16.mxu1 %v19713_v20  ;;  %v19804_v20 = vld [vmem:[#allocation11 + $0x330] ss:$24 sps:$4 sm:$0xff]  }
 0x704   :  { %10173 = vmatpush1.bf16.msra.mxu1 %v19711_v15  ;;  %v19812_v15 = vld [vmem:[#allocation11 + $0x364] ss:$24 sps:$4 sm:$0xff]  }
 0x705   :  { %10174 = vmatprep.subr.bf16.mxu1 %v19719_v17  ;;  %v19815_v17 = vld [vmem:[#allocation11 + $0x36c] ss:$24 sps:$4 sm:$0xff]  }
 0x708   :  { %10175 = vmatpush1.bf16.msra.mxu1 %v19717_v36 }
 0x709   :  { %10176 = vmatprep.subr.bf16.mxu1 %v19725_v32 }
 0x70c   :  { %10177 = vmatpush1.bf16.msra.mxu1 %v19723_v57 }
 0x70d   :  { %10178 = vmatprep.subr.bf16.mxu1 %v19731_v46  ;;  %v19810_v46 = vld [vmem:[#allocation11 + $0x360] ss:$24 sps:$4 sm:$0xff]  }
 0x710   :  { %10179 = vmatpush1.bf16.msra.mxu1 %v19729_v54  ;;  %v19813_v54 = vld [vmem:[#allocation11 + $0x368] ss:$24 sps:$4 sm:$0xff]  }
 0x711   :  { %10180 = vmatprep.subr.bf16.mxu1 %v19737_v38 }
 0x714   :  { %10181 = vmatpush1.bf16.msra.mxu1 %v19735_v58  ;;  %v19821_v58 = vld [vmem:[#allocation11 + $0x39c] ss:$24 sps:$4 sm:$0xff]  }
 0x715   :  { %10182 = vmatprep.subr.bf16.mxu1 %v19743_v41  ;;  %v19816_v41 = vld [vmem:[#allocation11 + $0x390] ss:$24 sps:$4 sm:$0xff]  }
 0x718   :  { %10183 = vmatpush1.bf16.msra.mxu1 %v19741_v5  ;;  %v19819_v5 = vld [vmem:[#allocation11 + $0x398] ss:$24 sps:$4 sm:$0xff]  }
 0x719   :  { %10184 = vmatprep.subr.bf16.mxu1 %v19749_v55  ;;  %v19824_v55 = vld [vmem:[#allocation11 + $0x3c4] ss:$24 sps:$4 sm:$0xff]  }
 0x71c   :  { %10185 = vmatpush1.bf16.msra.mxu1 %v19747_v7  ;;  %v19827_v7 = vld [vmem:[#allocation11 + $0x3cc] ss:$24 sps:$4 sm:$0xff]  }
 0x71d   :  { %10186 = vmatprep.subr.bf16.mxu1 %v19755_v48 }
 0x720   :  { %10187 = vmatpush1.bf16.msra.mxu1 %v19753_v18 }
 0x721   :  { %10188 = vmatprep.subr.bf16.mxu1 %v19761_v27 }
 0x724   :  { %10189 = vmatpush1.bf16.msra.mxu1 %v19759_v33 }
 0x725   :  { %10190 = vmatprep.subr.bf16.mxu1 %v19767_v23 }
 0x728   :  { %10191 = vmatpush1.bf16.msra.mxu1 %v19765_v2  ;;  %v19822_v2 = vld [vmem:[#allocation11 + $0x3c0] ss:$24 sps:$4 sm:$0xff]  }
 0x729   :  { %10192 = vmatprep.subr.bf16.mxu1 %v19773_v60  ;;  %v19825_v60 = vld [vmem:[#allocation11 + $0x3c8] ss:$24 sps:$4 sm:$0xff]  }
 0x72c   :  { %10193 = vmatpush1.bf16.msra.mxu1 %v19771_v26 }
 0x72d   :  { %10194 = vmatprep.subr.bf16.mxu1 %v19779_v8  ;;  %v19830_v8 = vld [vmem:[#allocation11 + $0x3f4] ss:$24 sps:$4 sm:$0xff]  }
 0x730   :  { %10195 = vmatpush1.bf16.msra.mxu1 %v19777_v56  ;;  %v19833_v56 = vld [vmem:[#allocation11 + $0x3fc] ss:$24 sps:$4 sm:$0xff]  }
 0x731   :  { %10196 = vmatprep.subr.bf16.mxu1 %v19785_v61  ;;  %v19828_v61 = vld [vmem:[#allocation11 + $0x3f0] ss:$24 sps:$4 sm:$0xff]  }
 0x734   :  { %10197 = vmatpush1.bf16.msra.mxu1 %v19783_v52  ;;  %v19831_v52 = vld [vmem:[#allocation11 + $0x3f8] ss:$24 sps:$4 sm:$0xff]  }
 0x735   :  { %10198 = vmatprep.subr.bf16.mxu1 %v19791_v34  ;;  %v19836_v34 = vld [vmem:[#allocation11 + $0x424] ss:$24 sps:$4 sm:$0xff]  }
 0x738   :  { %10199 = vmatpush1.bf16.msra.mxu1 %v19789_v11  ;;  %v19839_v11 = vld [vmem:[#allocation11 + $0x42c] ss:$24 sps:$4 sm:$0xff]  }
 0x739   :  { %10200 = vmatprep.subr.bf16.mxu1 %v19797_v45  ;;  %v19834_v45 = vld [vmem:[#allocation11 + $0x420] ss:$24 sps:$4 sm:$0xff]  }
 0x73c   :  { %10201 = vmatpush1.bf16.msra.mxu1 %v19795_v28  ;;  %v19837_v28 = vld [vmem:[#allocation11 + $0x428] ss:$24 sps:$4 sm:$0xff]  }
 0x73d   :  { %10223 = vmatprep.subr.bf16.mxu1 %v19803_v22  ;;  %v19842_v22 = vld [vmem:[#allocation11 + $0x454] ss:$24 sps:$4 sm:$0xff]  }
 0x762   :  { %v7718_v9 = vpop.f32.mrb[56].mxu1 }
 0x763   :  { %v7720_v10 = vpop.f32.mrb[57].mxu1 }
 0x764   :  { %v7722_v12 = vpop.f32.mrb[58].mxu1 }
 0x765   :  { %v7723_v39 = vpop.f32.mrb[59].mxu1  ;;  %v19843_v12 = vld [vmem:[#allocation11 + $0x458] ss:$24 sps:$4 sm:$0xff]  }
 0x766   :  { %v19848_v39 = vld [vmem:[#allocation11 + $0x484] ss:$24 sps:$4 sm:$0xff]  }
 0x76a   :  { %v7759_v31 = vpop.f32.mrb[60].mxu1 }
 0x76b   :  { %v7761_v29 = vpop.f32.mrb[61].mxu1 }
 0x76c   :  { %v7763_v53 = vpop.f32.mrb[62].mxu1 }
 0x76d   :  { %v7764_v14 = vpop.f32.mrb[63].mxu1 }
 0x772   :  { %v7800_v0 = vpop.f32.mrb[64].mxu1 }
 0x773   :  { %v7802_v40 = vpop.f32.mrb[65].mxu1 }
 0x774   :  { %v7804_v59 = vpop.f32.mrb[66].mxu1 }
 0x775   :  { %v7805_v24 = vpop.f32.mrb[67].mxu1 }
 0x776   :  { %v19854_v24 = vld [vmem:[#allocation11 + $0x4b4] ss:$24 sps:$4 sm:$0xff]  }
 0x782   :  { %v7862_v4 = vpop.f32.mrb[68].mxu1 }
 0x783   :  { %v22399_v13 = vpack.c.bf16 %v7862_v4, %v7718_v9  ;;  %v7864_v47 = vpop.f32.mrb[69].mxu1  ;;  %v19845_v9 = vld [vmem:[#allocation11 + $0x45c] ss:$24 sps:$4 sm:$0xff]  }
 0x784   :  { %v22401_v19 = vpack.c.bf16 %v7864_v47, %v7720_v10  ;;  %v7866_v62 = vpop.f32.mrb[70].mxu1  ;;  %v19840_v10 = vld [vmem:[#allocation11 + $0x450] ss:$24 sps:$4 sm:$0xff]   ;;  %v19857_v4 = vld [vmem:[#allocation11 + $0x4bc] ss:$24 sps:$4 sm:$0xff]  }
 0x785   :  { %v7867_v25 = vpop.f32.mrb[71].mxu1  ;;  %v19852_v47 = vld [vmem:[#allocation11 + $0x4b0] ss:$24 sps:$4 sm:$0xff]  }
 0x786   :  { %10043 = vmatprep.mubr.bf16.mxu0 %v22401_v19  ;;  %10202 = vmatprep.mubr.bf16.mxu1 %v22401_v19  ;;  %v19855_v62 = vld [vmem:[#allocation11 + $0x4b8] ss:$24 sps:$4 sm:$0xff]  }
 0x787   :  { %10044 = vmatmul.mubr.bf16.vlgmr.msra.gmra.mrb[40].mxu0 %v22399_v13  ;;  %10203 = vmatmul.mubr.bf16.vlgmr.msra.gmra.mrb[104].mxu1 %v22399_v13 }
 0x788   :  { %10065 = vmatpush1.bf16.msra.mxu0 %v19798_v51  ;;  %10224 = vmatpush1.bf16.msra.mxu1 %v19801_v49  ;;  %v19860_v51 = vld [vmem:[#allocation11 + $0x4e4] ss:$24 sps:$4 sm:$0xff]  }
 0x789   :  { %10066 = vmatprep.subr.bf16.mxu0 %v19806_v44  ;;  %10225 = vmatprep.subr.bf16.mxu1 %v19809_v37  ;;  %v19863_v49 = vld [vmem:[#allocation11 + $0x4ec] ss:$24 sps:$4 sm:$0xff]  }
 0x78a   :  { %v7903_v43 = vpop.f32.mrb[72].mxu1 }
 0x78b   :  { %v22407_v30 = vpack.c.bf16 %v7903_v43, %v7759_v31  ;;  %v7905_v36 = vpop.f32.mrb[73].mxu1  ;;  %v19851_v31 = vld [vmem:[#allocation11 + $0x48c] ss:$24 sps:$4 sm:$0xff]   ;;  %v19869_v43 = vld [vmem:[#allocation11 + $0x51c] ss:$24 sps:$4 sm:$0xff]  }
 0x78c   :  { %v22409_v32 = vpack.c.bf16 %v7905_v36, %v7761_v29  ;;  %v7907_v57 = vpop.f32.mrb[74].mxu1  ;;  %10067 = vmatpush1.bf16.msra.mxu0 %v19804_v20  ;;  %10226 = vmatpush1.bf16.msra.mxu1 %v19807_v42  ;;  %v19858_v20 = vld [vmem:[#allocation11 + $0x4e0] ss:$24 sps:$4 sm:$0xff]   ;;  %v19864_v36 = vld [vmem:[#allocation11 + $0x510] ss:$24 sps:$4 sm:$0xff]  }
 0x78d   :  { %v7908_v38 = vpop.f32.mrb[75].mxu1  ;;  %10068 = vmatprep.subr.bf16.mxu0 %v19812_v15  ;;  %10227 = vmatprep.subr.bf16.mxu1 %v19815_v17  ;;  %v19861_v42 = vld [vmem:[#allocation11 + $0x4e8] ss:$24 sps:$4 sm:$0xff]   ;;  %v19866_v17 = vld [vmem:[#allocation11 + $0x514] ss:$24 sps:$4 sm:$0xff]  }
 0x78e   :  { %v19867_v57 = vld [vmem:[#allocation11 + $0x518] ss:$24 sps:$4 sm:$0xff]  }
 0x790   :  { %10069 = vmatpush1.bf16.msra.mxu0 %v19810_v46  ;;  %10228 = vmatpush1.bf16.msra.mxu1 %v19813_v54  ;;  %v19872_v46 = vld [vmem:[#allocation11 + $0x544] ss:$24 sps:$4 sm:$0xff]  }
 0x791   :  { %10070 = vmatprep.subr.bf16.mxu0 %v19818_v21  ;;  %10229 = vmatprep.subr.bf16.mxu1 %v19821_v58  ;;  %v19875_v54 = vld [vmem:[#allocation11 + $0x54c] ss:$24 sps:$4 sm:$0xff]  }
 0x792   :  { %v7944_v48 = vpop.f32.mrb[76].mxu1 }
 0x793   :  { %v22411_v18 = vpack.c.bf16 %v7944_v48, %v7800_v0  ;;  %v7946_v27 = vpop.f32.mrb[77].mxu1  ;;  %v19846_v0 = vld [vmem:[#allocation11 + $0x480] ss:$24 sps:$4 sm:$0xff]   ;;  %v19881_v48 = vld [vmem:[#allocation11 + $0x57c] ss:$24 sps:$4 sm:$0xff]  }
 0x794   :  { %v22413_v33 = vpack.c.bf16 %v7946_v27, %v7802_v40  ;;  %v7948_v23 = vpop.f32.mrb[78].mxu1  ;;  %10071 = vmatpush1.bf16.msra.mxu0 %v19816_v41  ;;  %10230 = vmatpush1.bf16.msra.mxu1 %v19819_v5  ;;  %v19849_v40 = vld [vmem:[#allocation11 + $0x488] ss:$24 sps:$4 sm:$0xff]  }
 0x795   :  { %v7949_v26 = vpop.f32.mrb[79].mxu1  ;;  %10072 = vmatprep.subr.bf16.mxu0 %v19824_v55  ;;  %10231 = vmatprep.subr.bf16.mxu1 %v19827_v7  ;;  %v19870_v41 = vld [vmem:[#allocation11 + $0x540] ss:$24 sps:$4 sm:$0xff]   ;;  %v19878_v7 = vld [vmem:[#allocation11 + $0x574] ss:$24 sps:$4 sm:$0xff]  }
 0x796   :  { %v19873_v5 = vld [vmem:[#allocation11 + $0x548] ss:$24 sps:$4 sm:$0xff]   ;;  %v19879_v23 = vld [vmem:[#allocation11 + $0x578] ss:$24 sps:$4 sm:$0xff]  }
 0x797   :  { %v19876_v27 = vld [vmem:[#allocation11 + $0x570] ss:$24 sps:$4 sm:$0xff]   ;;  %v19882_v26 = vld [vmem:[#allocation11 + $0x5a0] ss:$24 sps:$4 sm:$0xff]  }
 0x798   :  { %10073 = vmatpush1.bf16.msra.mxu0 %v19822_v2  ;;  %10232 = vmatpush1.bf16.msra.mxu1 %v19825_v60  ;;  %v19884_v2 = vld [vmem:[#allocation11 + $0x5a4] ss:$24 sps:$4 sm:$0xff]  }
 0x799   :  { %10074 = vmatprep.subr.bf16.mxu0 %v19830_v8  ;;  %10233 = vmatprep.subr.bf16.mxu1 %v19833_v56  ;;  %v19887_v60 = vld [vmem:[#allocation11 + $0x5ac] ss:$24 sps:$4 sm:$0xff]   ;;  %v19885_v8 = vld [vmem:[#allocation11 + $0x5a8] ss:$24 sps:$4 sm:$0xff]  }
 0x79a   :  { %v19890_v56 = vld [vmem:[#allocation11 + $0x5d4] ss:$24 sps:$4 sm:$0xff]  }
 0x79c   :  { %10075 = vmatpush1.bf16.msra.mxu0 %v19828_v61  ;;  %10234 = vmatpush1.bf16.msra.mxu1 %v19831_v52  ;;  %v19893_v61 = vld [vmem:[#allocation11 + $0x5dc] ss:$24 sps:$4 sm:$0xff]   ;;  %v19888_v52 = vld [vmem:[#allocation11 + $0x5d0] ss:$24 sps:$4 sm:$0xff]  }
 0x79d   :  { %10076 = vmatprep.subr.bf16.mxu0 %v19836_v34  ;;  %10235 = vmatprep.subr.bf16.mxu1 %v19839_v11  ;;  %v19891_v34 = vld [vmem:[#allocation11 + $0x5d8] ss:$24 sps:$4 sm:$0xff]   ;;  %v19896_v11 = vld [vmem:[#allocation11 + $0x604] ss:$24 sps:$4 sm:$0xff]  }
 0x7a0   :  { %10077 = vmatpush1.bf16.msra.mxu0 %v19834_v45  ;;  %10236 = vmatpush1.bf16.msra.mxu1 %v19837_v28  ;;  %v19899_v45 = vld [vmem:[#allocation11 + $0x60c] ss:$24 sps:$4 sm:$0xff]  }
 0x7a1   :  { %10078 = vmatprep.subr.bf16.mxu0 %v19842_v22  ;;  %10237 = vmatprep.subr.bf16.mxu1 %v19845_v9 }
 0x7a2   :  { %v22415_v29 = vpop.f32.mrb[80].mxu1 }
 0x7a3   :  { %v22417_v53 = vpop.f32.mrb[81].mxu1 }
 0x7a4   :  { %v8010_v14 = vpop.f32.mrb[82].mxu1  ;;  %10079 = vmatpush1.bf16.msra.mxu0 %v19840_v10  ;;  %10238 = vmatpush1.bf16.msra.mxu1 %v19843_v12 }
 0x7a5   :  { %v8011_v59 = vpop.f32.mrb[83].mxu1  ;;  %10080 = vmatprep.subr.bf16.mxu0 %v19848_v39  ;;  %10239 = vmatprep.subr.bf16.mxu1 %v19851_v31 }
 0x7a6   :  { %v19897_v59 = vld [vmem:[#allocation11 + $0x608] ss:$24 sps:$4 sm:$0xff]  }
 0x7a8   :  { %10081 = vmatpush1.bf16.msra.mxu0 %v19846_v0  ;;  %10240 = vmatpush1.bf16.msra.mxu1 %v19849_v40  ;;  %v19894_v40 = vld [vmem:[#allocation11 + $0x600] ss:$24 sps:$4 sm:$0xff]  }
 0x7a9   :  { %10082 = vmatprep.subr.bf16.mxu0 %v19854_v24  ;;  %10241 = vmatprep.subr.bf16.mxu1 %v19857_v4  ;;  %v19902_v4 = vld [vmem:[#allocation11 + $0x634] ss:$24 sps:$4 sm:$0xff]  }
 0x7aa   :  { %v22419_v25 = vpop.f32.mrb[84].mxu1 }
 0x7ab   :  { %v22421_v44 = vpop.f32.mrb[85].mxu1 }
 0x7ac   :  { %v8051_v37 = vpop.f32.mrb[86].mxu1  ;;  %10083 = vmatpush1.bf16.msra.mxu0 %v19852_v47  ;;  %10242 = vmatpush1.bf16.msra.mxu1 %v19855_v62  ;;  %v19905_v47 = vld [vmem:[#allocation11 + $0x63c] ss:$24 sps:$4 sm:$0xff]   ;;  %v19900_v62 = vld [vmem:[#allocation11 + $0x630] ss:$24 sps:$4 sm:$0xff]  }
 0x7ad   :  { %v8052_v15 = vpop.f32.mrb[87].mxu1  ;;  %10084 = vmatprep.subr.bf16.mxu0 %v19860_v51  ;;  %10243 = vmatprep.subr.bf16.mxu1 %v19863_v49  ;;  %v19903_v51 = vld [vmem:[#allocation11 + $0x638] ss:$24 sps:$4 sm:$0xff]   ;;  %v19908_v49 = vld [vmem:[#allocation11 + $0x664] ss:$24 sps:$4 sm:$0xff]  }
 0x7b0   :  { %10085 = vmatpush1.bf16.msra.mxu0 %v19858_v20  ;;  %10244 = vmatpush1.bf16.msra.mxu1 %v19861_v42 }
 0x7b1   :  { %10086 = vmatprep.subr.bf16.mxu0 %v19866_v17  ;;  %10245 = vmatprep.subr.bf16.mxu1 %v19869_v43  ;;  %v19906_v17 = vld [vmem:[#allocation11 + $0x660] ss:$24 sps:$4 sm:$0xff]  }
 0x7b2   :  { %v22423_v38 = vpop.f32.mrb[88].mxu1  ;;  %v19909_v43 = vld [vmem:[#allocation11 + $0x668] ss:$24 sps:$4 sm:$0xff]  }
 0x7b3   :  { %v22425_v21 = vpop.f32.mrb[89].mxu1 }
 0x7b4   :  { %v8092_v58 = vpop.f32.mrb[90].mxu1  ;;  %10087 = vmatpush1.bf16.msra.mxu0 %v19864_v36  ;;  %10246 = vmatpush1.bf16.msra.mxu1 %v19867_v57  ;;  %v19914_v57 = vld [vmem:[#allocation11 + $0x694] ss:$24 sps:$4 sm:$0xff]  }
 0x7b5   :  { %v8093_v55 = vpop.f32.mrb[91].mxu1  ;;  %10088 = vmatprep.subr.bf16.mxu0 %v19872_v46  ;;  %10247 = vmatprep.subr.bf16.mxu1 %v19875_v54  ;;  %v19917_v46 = vld [vmem:[#allocation11 + $0x69c] ss:$24 sps:$4 sm:$0xff]   ;;  %v19912_v54 = vld [vmem:[#allocation11 + $0x690] ss:$24 sps:$4 sm:$0xff]  }
 0x7b6   :  { %v19923_v58 = vld [vmem:[#allocation11 + $0x6cc] ss:$24 sps:$4 sm:$0xff]  }
 0x7b7   :  { %v19926_v55 = vld [vmem:[#allocation11 + $0x6f4] ss:$24 sps:$4 sm:$0xff]  }
 0x7b8   :  { %10089 = vmatpush1.bf16.msra.mxu0 %v19870_v41  ;;  %10248 = vmatpush1.bf16.msra.mxu1 %v19873_v5  ;;  %v19918_v41 = vld [vmem:[#allocation11 + $0x6c0] ss:$24 sps:$4 sm:$0xff]  }
 0x7b9   :  { %10090 = vmatprep.subr.bf16.mxu0 %v19878_v7  ;;  %10249 = vmatprep.subr.bf16.mxu1 %v19881_v48  ;;  %v19921_v5 = vld [vmem:[#allocation11 + $0x6c8] ss:$24 sps:$4 sm:$0xff]   ;;  %v19929_v7 = vld [vmem:[#allocation11 + $0x6fc] ss:$24 sps:$4 sm:$0xff]  }
 0x7ba   :  { %v19924_v48 = vld [vmem:[#allocation11 + $0x6f0] ss:$24 sps:$4 sm:$0xff]  }
 0x7bc   :  { %10091 = vmatpush1.bf16.msra.mxu0 %v19876_v27  ;;  %10250 = vmatpush1.bf16.msra.mxu1 %v19879_v23  ;;  %v19927_v27 = vld [vmem:[#allocation11 + $0x6f8] ss:$24 sps:$4 sm:$0xff]   ;;  %v19932_v23 = vld [vmem:[#allocation11 + $0x724] ss:$24 sps:$4 sm:$0xff]  }
 0x7bd   :  { %10092 = vmatprep.subr.bf16.mxu0 %v19884_v2  ;;  %10251 = vmatprep.subr.bf16.mxu1 %v19887_v60  ;;  %v19935_v2 = vld [vmem:[#allocation11 + $0x72c] ss:$24 sps:$4 sm:$0xff]   ;;  %v19930_v60 = vld [vmem:[#allocation11 + $0x720] ss:$24 sps:$4 sm:$0xff]  }
 0x7c0   :  { %10093 = vmatpush1.bf16.msra.mxu0 %v19882_v26  ;;  %10252 = vmatpush1.bf16.msra.mxu1 %v19885_v8  ;;  %v19933_v26 = vld [vmem:[#allocation11 + $0x728] ss:$24 sps:$4 sm:$0xff]   ;;  %v19938_v8 = vld [vmem:[#allocation11 + $0x754] ss:$24 sps:$4 sm:$0xff]  }
 0x7c1   :  { %10094 = vmatprep.subr.bf16.mxu0 %v19890_v56  ;;  %10253 = vmatprep.subr.bf16.mxu1 %v19893_v61  ;;  %v19941_v56 = vld [vmem:[#allocation11 + $0x75c] ss:$24 sps:$4 sm:$0xff]   ;;  %v19936_v61 = vld [vmem:[#allocation11 + $0x750] ss:$24 sps:$4 sm:$0xff]  }
 0x7c2   :  { %v8150_v28 = vpop.f32.mrb[92].mxu1 }
 0x7c3   :  { %v22428_v22 = vpack.c.bf16 %v8150_v28, %v22415_v29  ;;  %v8152_v9 = vpop.f32.mrb[93].mxu1  ;;  %v19945_v28 = vld [vmem:[#allocation11 + $0x788] ss:$24 sps:$4 sm:$0xff]  }
 0x7c4   :  { %v22431_v10 = vpack.c.bf16 %v8152_v9, %v22417_v53  ;;  %v8154_v12 = vpop.f32.mrb[94].mxu1  ;;  %10095 = vmatpush1.bf16.msra.mxu0 %v19888_v52  ;;  %10254 = vmatpush1.bf16.msra.mxu1 %v19891_v34  ;;  %v19939_v52 = vld [vmem:[#allocation11 + $0x758] ss:$24 sps:$4 sm:$0xff]   ;;  %v19944_v34 = vld [vmem:[#allocation11 + $0x784] ss:$24 sps:$4 sm:$0xff]  }
 0x7c5   :  { %v8155_v39 = vpop.f32.mrb[95].mxu1  ;;  %10117 = vmatprep.subr.bf16.mxu0 %v19896_v11  ;;  %10276 = vmatprep.subr.bf16.mxu1 %v19899_v45  ;;  %v19947_v11 = vld [vmem:[#allocation11 + $0x78c] ss:$24 sps:$4 sm:$0xff]   ;;  %v19942_v45 = vld [vmem:[#allocation11 + $0x780] ss:$24 sps:$4 sm:$0xff]  }
 0x7c6   :  { %10053 = vmatprep.mubr.bf16.mxu0 %v22431_v10  ;;  %10212 = vmatprep.mubr.bf16.mxu1 %v22431_v10  ;;  %v19950_v9 = vld [vmem:[#allocation11 + $0x7b4] ss:$24 sps:$4 sm:$0xff]   ;;  %v19948_v39 = vld [vmem:[#allocation11 + $0x7b0] ss:$24 sps:$4 sm:$0xff]  }
 0x7c7   :  { %10054 = vmatmul.mubr.bf16.gmra.mrb[44].mxu0 %v22428_v22  ;;  %10213 = vmatmul.mubr.bf16.gmra.mrb[108].mxu1 %v22428_v22  ;;  %v19953_v12 = vld [vmem:[#allocation11 + $0x7bc] ss:$24 sps:$4 sm:$0xff]  }
 0x7c8   :  { %10096 = vmatprep.mubr.bf16.mxu0 %v22409_v32  ;;  %10255 = vmatprep.mubr.bf16.mxu1 %v22409_v32 }
 0x7ca   :  { %v8191_v31 = vpop.f32.mrb[96].mxu1 }
 0x7cb   :  { %v22440_v29 = vpack.c.bf16 %v8191_v31, %v22419_v25  ;;  %v8193_v53 = vpop.f32.mrb[97].mxu1  ;;  %v19911_v25 = vld [vmem:[#allocation11 + $0x66c] ss:$24 sps:$4 sm:$0xff]   ;;  %v19951_v31 = vld [vmem:[#allocation11 + $0x7b8] ss:$24 sps:$4 sm:$0xff]  }
 0x7cc   :  { %v22443_v14 = vpack.c.bf16 %v8193_v53, %v22421_v44  ;;  %v8195_v0 = vpop.f32.mrb[98].mxu1  ;;  %v19956_v53 = vld [vmem:[#allocation11 + $0x7e4] ss:$24 sps:$4 sm:$0xff]  }
 0x7cd   :  { %v8196_v24 = vpop.f32.mrb[99].mxu1  ;;  %v19959_v0 = vld [vmem:[#allocation11 + $0x7ec] ss:$24 sps:$4 sm:$0xff]  }
 0x7ce   :  { %v19962_v24 = vld [vmem:[#allocation11 + $0x814] ss:$24 sps:$4 sm:$0xff]  }
 0x7cf   :  { %10097 = vmatmul.mubr.bf16.vlgmr.msra.gmra.mrb[40].mxu0 %v22407_v30  ;;  %10256 = vmatmul.mubr.bf16.vlgmr.msra.gmra.mrb[104].mxu1 %v22407_v30 }
 0x7d0   :  { %10118 = vmatpush1.bf16.msra.mxu0 %v19894_v40  ;;  %10277 = vmatpush1.bf16.msra.mxu1 %v19897_v59  ;;  %v19954_v40 = vld [vmem:[#allocation11 + $0x7e0] ss:$24 sps:$4 sm:$0xff]  }
 0x7d1   :  { %10106 = vmatprep.mubr.bf16.mxu0 %v22443_v14  ;;  %10265 = vmatprep.mubr.bf16.mxu1 %v22443_v14  ;;  %v19957_v59 = vld [vmem:[#allocation11 + $0x7e8] ss:$24 sps:$4 sm:$0xff]  }
 0x7d2   :  { %v8232_v44 = vpop.f32.mrb[100].mxu1  ;;  %10119 = vmatprep.subr.bf16.mxu0 %v19902_v4  ;;  %10278 = vmatprep.subr.bf16.mxu1 %v19905_v47  ;;  %v19965_v4 = vld [vmem:[#allocation11 + $0x81c] ss:$24 sps:$4 sm:$0xff]   ;;  %v19960_v47 = vld [vmem:[#allocation11 + $0x810] ss:$24 sps:$4 sm:$0xff]  }
 0x7d3   :  { %v22450_v37 = vpack.c.bf16 %v8232_v44, %v22423_v38  ;;  %v8234_v20 = vpop.f32.mrb[101].mxu1  ;;  %v19915_v38 = vld [vmem:[#allocation11 + $0x698] ss:$24 sps:$4 sm:$0xff]   ;;  %v19969_v44 = vld [vmem:[#allocation11 + $0x848] ss:$24 sps:$4 sm:$0xff]  }
 0x7d4   :  { %v22453_v42 = vpack.c.bf16 %v8234_v20, %v22425_v21  ;;  %10120 = vmatpush1.bf16.msra.mxu0 %v19900_v62  ;;  %10279 = vmatpush1.bf16.msra.mxu1 %v19903_v51  ;;  %v8236_v15 = vpop.f32.mrb[102].mxu1  ;;  %v19920_v21 = vld [vmem:[#allocation11 + $0x6c4] ss:$24 sps:$4 sm:$0xff]   ;;  %v19963_v62 = vld [vmem:[#allocation11 + $0x818] ss:$24 sps:$4 sm:$0xff]  }
 0x7d5   :  { %v8237_v36 = vpop.f32.mrb[103].mxu1  ;;  %10121 = vmatprep.subr.bf16.mxu0 %v19908_v49  ;;  %10280 = vmatprep.subr.bf16.mxu1 %v19911_v25  ;;  %v19968_v51 = vld [vmem:[#allocation11 + $0x844] ss:$24 sps:$4 sm:$0xff]   ;;  %v19966_v25 = vld [vmem:[#allocation11 + $0x840] ss:$24 sps:$4 sm:$0xff]  }
 0x7d6   :  { %v19971_v49 = vld [vmem:[#allocation11 + $0x84c] ss:$24 sps:$4 sm:$0xff]   ;;  %v19977_v15 = vld [vmem:[#allocation11 + $0x87c] ss:$24 sps:$4 sm:$0xff]  }
 0x7d7   :  { %10107 = vmatmul.mubr.bf16.gmra.mrb[44].mxu0 %v22440_v29  ;;  %10266 = vmatmul.mubr.bf16.gmra.mrb[108].mxu1 %v22440_v29  ;;  %v19974_v20 = vld [vmem:[#allocation11 + $0x874] ss:$24 sps:$4 sm:$0xff]   ;;  %v19980_v36 = vld [vmem:[#allocation11 + $0x8a4] ss:$24 sps:$4 sm:$0xff]  }
 0x7d8   :  { %10122 = vmatpush1.bf16.msra.mxu0 %v19906_v17  ;;  %10281 = vmatpush1.bf16.msra.mxu1 %v19909_v43  ;;  %v19972_v17 = vld [vmem:[#allocation11 + $0x870] ss:$24 sps:$4 sm:$0xff]  }
 0x7d9   :  { %10149 = vmatprep.mubr.bf16.mxu0 %v22413_v33  ;;  %10308 = vmatprep.mubr.bf16.mxu1 %v22413_v33  ;;  %v19975_v43 = vld [vmem:[#allocation11 + $0x878] ss:$24 sps:$4 sm:$0xff]  }
 0x7da   :  { %10123 = vmatprep.subr.bf16.mxu0 %v19914_v57  ;;  %10282 = vmatprep.subr.bf16.mxu1 %v19917_v46  ;;  %v19983_v57 = vld [vmem:[#allocation11 + $0x8ac] ss:$24 sps:$4 sm:$0xff]   ;;  %v19978_v46 = vld [vmem:[#allocation11 + $0x8a0] ss:$24 sps:$4 sm:$0xff]  }
 0x7dc   :  { %10124 = vmatpush1.bf16.msra.mxu0 %v19912_v54  ;;  %10283 = vmatpush1.bf16.msra.mxu1 %v19915_v38  ;;  %v19981_v54 = vld [vmem:[#allocation11 + $0x8a8] ss:$24 sps:$4 sm:$0xff]   ;;  %v19986_v38 = vld [vmem:[#allocation11 + $0x8d4] ss:$24 sps:$4 sm:$0xff]  }
 0x7dd   :  { %10125 = vmatprep.subr.bf16.mxu0 %v19920_v21  ;;  %10284 = vmatprep.subr.bf16.mxu1 %v19923_v58  ;;  %v19989_v21 = vld [vmem:[#allocation11 + $0x8dc] ss:$24 sps:$4 sm:$0xff]   ;;  %v19984_v58 = vld [vmem:[#allocation11 + $0x8d0] ss:$24 sps:$4 sm:$0xff]  }
 0x7e0   :  { %10126 = vmatpush1.bf16.msra.mxu0 %v19918_v41  ;;  %10285 = vmatpush1.bf16.msra.mxu1 %v19921_v5  ;;  %v19987_v41 = vld [vmem:[#allocation11 + $0x8d8] ss:$24 sps:$4 sm:$0xff]   ;;  %v19992_v5 = vld [vmem:[#allocation11 + $0x14] ss:$24 sps:$4 sm:$0xff]  }
 0x7e1   :  { %10127 = vmatprep.subr.bf16.mxu0 %v19926_v55  ;;  %10286 = vmatprep.subr.bf16.mxu1 %v19929_v7  ;;  %v19990_v55 = vld [vmem:[#allocation11 + $0x10] ss:$24 sps:$4 sm:$0xff]   ;;  %v19995_v7 = vld [vmem:[#allocation11 + $0x44] ss:$24 sps:$4 sm:$0xff]  }
 0x7e4   :  { %10128 = vmatpush1.bf16.msra.mxu0 %v19924_v48  ;;  %10287 = vmatpush1.bf16.msra.mxu1 %v19927_v27  ;;  %v19993_v48 = vld [vmem:[#allocation11 + $0x40] ss:$24 sps:$4 sm:$0xff]   ;;  %v19998_v27 = vld [vmem:[#allocation11 + $0x74] ss:$24 sps:$4 sm:$0xff]  }
 0x7e5   :  { %10129 = vmatprep.subr.bf16.mxu0 %v19932_v23  ;;  %10288 = vmatprep.subr.bf16.mxu1 %v19935_v2  ;;  %v19996_v23 = vld [vmem:[#allocation11 + $0x70] ss:$24 sps:$4 sm:$0xff]   ;;  %v20001_v2 = vld [vmem:[#allocation11 + $0xa4] ss:$24 sps:$4 sm:$0xff]  }
 0x7e8   :  { %10130 = vmatpush1.bf16.msra.mxu0 %v19930_v60  ;;  %10289 = vmatpush1.bf16.msra.mxu1 %v19933_v26  ;;  %v19999_v60 = vld [vmem:[#allocation11 + $0xa0] ss:$24 sps:$4 sm:$0xff]   ;;  %v20004_v26 = vld [vmem:[#allocation11 + $0xd4] ss:$24 sps:$4 sm:$0xff]  }
 0x7e9   :  { %10131 = vmatprep.subr.bf16.mxu0 %v19938_v8  ;;  %10290 = vmatprep.subr.bf16.mxu1 %v19941_v56  ;;  %v20002_v8 = vld [vmem:[#allocation11 + $0xd0] ss:$24 sps:$4 sm:$0xff]   ;;  %v20007_v56 = vld [vmem:[#allocation11 + $0x104] ss:$24 sps:$4 sm:$0xff]  }
 0x7ec   :  { %10132 = vmatpush1.bf16.msra.mxu0 %v19936_v61  ;;  %10291 = vmatpush1.bf16.msra.mxu1 %v19939_v52  ;;  %v20005_v61 = vld [vmem:[#allocation11 + $0x100] ss:$24 sps:$4 sm:$0xff]   ;;  %v20010_v52 = vld [vmem:[#allocation11 + $0x134] ss:$24 sps:$4 sm:$0xff]  }
 0x7ed   :  { %10133 = vmatprep.subr.bf16.mxu0 %v19944_v34  ;;  %10292 = vmatprep.subr.bf16.mxu1 %v19947_v11  ;;  %v20008_v34 = vld [vmem:[#allocation11 + $0x130] ss:$24 sps:$4 sm:$0xff]   ;;  %v20013_v11 = vld [vmem:[#allocation11 + $0x164] ss:$24 sps:$4 sm:$0xff]  }
 0x7f0   :  { %10134 = vmatpush1.bf16.msra.mxu0 %v19942_v45  ;;  %10293 = vmatpush1.bf16.msra.mxu1 %v19945_v28  ;;  %v20011_v45 = vld [vmem:[#allocation11 + $0x160] ss:$24 sps:$4 sm:$0xff]   ;;  %v20014_v28 = vld [vmem:[#allocation11 + $0x190] ss:$24 sps:$4 sm:$0xff]  }
 0x7f1   :  { %10135 = vmatprep.subr.bf16.mxu0 %v19950_v9  ;;  %10294 = vmatprep.subr.bf16.mxu1 %v19953_v12  ;;  %v20019_v9 = vld [vmem:[#allocation11 + $0x1c4] ss:$24 sps:$4 sm:$0xff]   ;;  %v20017_v12 = vld [vmem:[#allocation11 + $0x1c0] ss:$24 sps:$4 sm:$0xff]  }
 0x7f4   :  { %10136 = vmatpush1.bf16.msra.mxu0 %v19948_v39  ;;  %10295 = vmatpush1.bf16.msra.mxu1 %v19951_v31  ;;  %v20022_v39 = vld [vmem:[#allocation11 + $0x1f4] ss:$24 sps:$4 sm:$0xff]   ;;  %v20020_v31 = vld [vmem:[#allocation11 + $0x1f0] ss:$24 sps:$4 sm:$0xff]  }
 0x7f5   :  { %10137 = vmatprep.subr.bf16.mxu0 %v19956_v53  ;;  %10296 = vmatprep.subr.bf16.mxu1 %v19959_v0  ;;  %v20025_v53 = vld [vmem:[#allocation11 + $0x224] ss:$24 sps:$4 sm:$0xff]   ;;  %v20023_v0 = vld [vmem:[#allocation11 + $0x220] ss:$24 sps:$4 sm:$0xff]  }
 0x7f8   :  { %10138 = vmatpush1.bf16.msra.mxu0 %v19954_v40  ;;  %10297 = vmatpush1.bf16.msra.mxu1 %v19957_v59  ;;  %v20028_v40 = vld [vmem:[#allocation11 + $0x254] ss:$24 sps:$4 sm:$0xff]   ;;  %v20026_v59 = vld [vmem:[#allocation11 + $0x250] ss:$24 sps:$4 sm:$0xff]  }
 0x7f9   :  { %10139 = vmatprep.subr.bf16.mxu0 %v19962_v24  ;;  %10298 = vmatprep.subr.bf16.mxu1 %v19965_v4  ;;  %v20031_v24 = vld [vmem:[#allocation11 + $0x284] ss:$24 sps:$4 sm:$0xff]   ;;  %v20029_v4 = vld [vmem:[#allocation11 + $0x280] ss:$24 sps:$4 sm:$0xff]  }
 0x7fc   :  { %10140 = vmatpush1.bf16.msra.mxu0 %v19960_v47  ;;  %10299 = vmatpush1.bf16.msra.mxu1 %v19963_v62  ;;  %v20034_v47 = vld [vmem:[#allocation11 + $0x2b4] ss:$24 sps:$4 sm:$0xff]   ;;  %v20032_v62 = vld [vmem:[#allocation11 + $0x2b0] ss:$24 sps:$4 sm:$0xff]  }
 0x7fd   :  { %10141 = vmatprep.subr.bf16.mxu0 %v19968_v51  ;;  %10300 = vmatprep.subr.bf16.mxu1 %v19971_v49  ;;  %v20037_v51 = vld [vmem:[#allocation11 + $0x2e4] ss:$24 sps:$4 sm:$0xff]   ;;  %v20035_v49 = vld [vmem:[#allocation11 + $0x2e0] ss:$24 sps:$4 sm:$0xff]  }
 0x800   :  { %10142 = vmatpush1.bf16.msra.mxu0 %v19966_v25  ;;  %10301 = vmatpush1.bf16.msra.mxu1 %v19969_v44  ;;  %v20040_v25 = vld [vmem:[#allocation11 + $0x314] ss:$24 sps:$4 sm:$0xff]   ;;  %v20038_v44 = vld [vmem:[#allocation11 + $0x310] ss:$24 sps:$4 sm:$0xff]  }
 0x801   :  { %10143 = vmatprep.subr.bf16.mxu0 %v19974_v20  ;;  %10302 = vmatprep.subr.bf16.mxu1 %v19977_v15  ;;  %v20043_v20 = vld [vmem:[#allocation11 + $0x344] ss:$24 sps:$4 sm:$0xff]   ;;  %v20041_v15 = vld [vmem:[#allocation11 + $0x340] ss:$24 sps:$4 sm:$0xff]  }
 0x804   :  { %10144 = vmatpush1.bf16.msra.mxu0 %v19972_v17  ;;  %10303 = vmatpush1.bf16.msra.mxu1 %v19975_v43  ;;  %v20046_v17 = vld [vmem:[#allocation11 + $0x374] ss:$24 sps:$4 sm:$0xff]   ;;  %v20044_v43 = vld [vmem:[#allocation11 + $0x370] ss:$24 sps:$4 sm:$0xff]  }
 0x805   :  { %10145 = vmatprep.subr.bf16.mxu0 %v19980_v36  ;;  %10304 = vmatprep.subr.bf16.mxu1 %v19983_v57  ;;  %v20049_v36 = vld [vmem:[#allocation11 + $0x3a4] ss:$24 sps:$4 sm:$0xff]   ;;  %v20047_v57 = vld [vmem:[#allocation11 + $0x3a0] ss:$24 sps:$4 sm:$0xff]  }
 0x808   :  { %10146 = vmatpush1.bf16.msra.mxu0 %v19978_v46  ;;  %10305 = vmatpush1.bf16.msra.mxu1 %v19981_v54  ;;  %v20052_v46 = vld [vmem:[#allocation11 + $0x3d4] ss:$24 sps:$4 sm:$0xff]   ;;  %v20053_v54 = vld [vmem:[#allocation11 + $0x400] ss:$24 sps:$4 sm:$0xff]  }
 0x809   :  { %10147 = vmatprep.subr.bf16.mxu0 %v19986_v38  ;;  %10306 = vmatprep.subr.bf16.mxu1 %v19989_v21  ;;  %v20058_v38 = vld [vmem:[#allocation11 + $0x434] ss:$24 sps:$4 sm:$0xff]   ;;  %v20056_v21 = vld [vmem:[#allocation11 + $0x430] ss:$24 sps:$4 sm:$0xff]  }
 0x80c   :  { %10148 = vmatpush1.bf16.msra.mxu0 %v19984_v58  ;;  %10307 = vmatpush1.bf16.msra.mxu1 %v19987_v41  ;;  %v20061_v58 = vld [vmem:[#allocation11 + $0x464] ss:$24 sps:$4 sm:$0xff]   ;;  %v20064_v41 = vld [vmem:[#allocation11 + $0x494] ss:$24 sps:$4 sm:$0xff]  }
 0x80d   :  { %10329 = vmatprep.subr.bf16.mxu0 %v19992_v5  ;;  %v20067_v5 = vld [vmem:[#allocation11 + $0x4c4] ss:$24 sps:$4 sm:$0xff]  }
 0x80f   :  { %10150 = vmatmul.mubr.bf16.vlgmr.msra.gmra.mrb[40].mxu0 %v22411_v18  ;;  %10309 = vmatmul.mubr.bf16.vlgmr.msra.gmra.mrb[104].mxu1 %v22411_v18 }
 0x810   :  { %10159 = vmatprep.mubr.bf16.mxu0 %v22453_v42  ;;  %10318 = vmatprep.mubr.bf16.mxu1 %v22453_v42 }
 0x811   :  { %10330 = vmatpush1.bf16.msra.mxu0 %v19990_v55  ;;  %v20065_v55 = vld [vmem:[#allocation11 + $0x4c0] ss:$24 sps:$4 sm:$0xff]  }
 0x812   :  { %10331 = vmatprep.subr.bf16.mxu0 %v19995_v7  ;;  %v20070_v7 = vld [vmem:[#allocation11 + $0x4f4] ss:$24 sps:$4 sm:$0xff]  }
 0x815   :  { %10332 = vmatpush1.bf16.msra.mxu0 %v19993_v48  ;;  %v20068_v48 = vld [vmem:[#allocation11 + $0x4f0] ss:$24 sps:$4 sm:$0xff]  }
 0x816   :  { %10333 = vmatprep.subr.bf16.mxu0 %v19998_v27  ;;  %v20073_v27 = vld [vmem:[#allocation11 + $0x524] ss:$24 sps:$4 sm:$0xff]  }
 0x817   :  { %10160 = vmatmul.mubr.bf16.gmra.mrb[44].mxu0 %v22450_v37  ;;  %10319 = vmatmul.mubr.bf16.gmra.mrb[108].mxu1 %v22450_v37 }
 0x818   :  { %10361 = vmatprep.mubr.bf16.mxu0 %v22401_v19  ;;  %v20016_v19 = vld [vmem:[#allocation11 + $0x194] ss:$24 sps:$4 sm:$0xff]  }
 0x819   :  { %10334 = vmatpush1.bf16.msra.mxu0 %v19996_v23  ;;  %v20071_v23 = vld [vmem:[#allocation11 + $0x520] ss:$24 sps:$4 sm:$0xff]  }
 0x81a   :  { %10335 = vmatprep.subr.bf16.mxu0 %v20001_v2  ;;  %v20076_v2 = vld [vmem:[#allocation11 + $0x554] ss:$24 sps:$4 sm:$0xff]  }
 0x81d   :  { %10336 = vmatpush1.bf16.msra.mxu0 %v19999_v60  ;;  %v20074_v60 = vld [vmem:[#allocation11 + $0x550] ss:$24 sps:$4 sm:$0xff]  }
 0x81e   :  { %10337 = vmatprep.subr.bf16.mxu0 %v20004_v26  ;;  %v20079_v26 = vld [vmem:[#allocation11 + $0x584] ss:$24 sps:$4 sm:$0xff]  }
 0x821   :  { %10338 = vmatpush1.bf16.msra.mxu0 %v20002_v8  ;;  %v20077_v8 = vld [vmem:[#allocation11 + $0x580] ss:$24 sps:$4 sm:$0xff]  }
 0x822   :  { %10339 = vmatprep.subr.bf16.mxu0 %v20007_v56  ;;  %v20082_v56 = vld [vmem:[#allocation11 + $0x5b4] ss:$24 sps:$4 sm:$0xff]  }
 0x825   :  { %10340 = vmatpush1.bf16.msra.mxu0 %v20005_v61  ;;  %v20080_v61 = vld [vmem:[#allocation11 + $0x5b0] ss:$24 sps:$4 sm:$0xff]  }
 0x826   :  { %10341 = vmatprep.subr.bf16.mxu0 %v20010_v52  ;;  %v20085_v52 = vld [vmem:[#allocation11 + $0x5e4] ss:$24 sps:$4 sm:$0xff]  }
 0x829   :  { %10342 = vmatpush1.bf16.msra.mxu0 %v20008_v34  ;;  %v20083_v34 = vld [vmem:[#allocation11 + $0x5e0] ss:$24 sps:$4 sm:$0xff]  }
 0x82a   :  { %10343 = vmatprep.subr.bf16.mxu0 %v20013_v11  ;;  %v20088_v11 = vld [vmem:[#allocation11 + $0x614] ss:$24 sps:$4 sm:$0xff]  }
 0x82d   :  { %10344 = vmatpush1.bf16.msra.mxu0 %v20011_v45  ;;  %v20086_v45 = vld [vmem:[#allocation11 + $0x610] ss:$24 sps:$4 sm:$0xff]  }
 0x82e   :  { %10345 = vmatprep.subr.bf16.mxu0 %v20016_v19  ;;  %v20091_v19 = vld [vmem:[#allocation11 + $0x644] ss:$24 sps:$4 sm:$0xff]  }
 0x831   :  { %10346 = vmatpush1.bf16.msra.mxu0 %v20014_v28  ;;  %v20089_v28 = vld [vmem:[#allocation11 + $0x640] ss:$24 sps:$4 sm:$0xff]  }
 0x832   :  { %10347 = vmatprep.subr.bf16.mxu0 %v20019_v9  ;;  %v20094_v9 = vld [vmem:[#allocation11 + $0x674] ss:$24 sps:$4 sm:$0xff]  }
 0x835   :  { %10348 = vmatpush1.bf16.msra.mxu0 %v20017_v12  ;;  %v20092_v12 = vld [vmem:[#allocation11 + $0x670] ss:$24 sps:$4 sm:$0xff]  }
 0x836   :  { %10349 = vmatprep.subr.bf16.mxu0 %v20022_v39  ;;  %v20097_v39 = vld [vmem:[#allocation11 + $0x6a4] ss:$24 sps:$4 sm:$0xff]  }
 0x839   :  { %10350 = vmatpush1.bf16.msra.mxu0 %v20020_v31  ;;  %v20095_v31 = vld [vmem:[#allocation11 + $0x6a0] ss:$24 sps:$4 sm:$0xff]  }
 0x83a   :  { %10351 = vmatprep.subr.bf16.mxu0 %v20025_v53  ;;  %v20100_v53 = vld [vmem:[#allocation11 + $0x6d4] ss:$24 sps:$4 sm:$0xff]  }
 0x83d   :  { %10352 = vmatpush1.bf16.msra.mxu0 %v20023_v0  ;;  %v20101_v0 = vld [vmem:[#allocation11 + $0x700] ss:$24 sps:$4 sm:$0xff]  }
 0x83e   :  { %10353 = vmatprep.subr.bf16.mxu0 %v20028_v40  ;;  %v20106_v40 = vld [vmem:[#allocation11 + $0x734] ss:$24 sps:$4 sm:$0xff]  }
 0x841   :  { %10354 = vmatpush1.bf16.msra.mxu0 %v20026_v59  ;;  %v20104_v59 = vld [vmem:[#allocation11 + $0x730] ss:$24 sps:$4 sm:$0xff]  }
 0x842   :  { %10355 = vmatprep.subr.bf16.mxu0 %v20031_v24  ;;  %v20109_v24 = vld [vmem:[#allocation11 + $0x764] ss:$24 sps:$4 sm:$0xff]  }
 0x845   :  { %10356 = vmatpush1.bf16.msra.mxu0 %v20029_v4  ;;  %v20112_v4 = vld [vmem:[#allocation11 + $0x794] ss:$24 sps:$4 sm:$0xff]  }
 0x846   :  { %10357 = vmatprep.subr.bf16.mxu0 %v20034_v47  ;;  %v20115_v47 = vld [vmem:[#allocation11 + $0x7c4] ss:$24 sps:$4 sm:$0xff]  }
 0x849   :  { %10358 = vmatpush1.bf16.msra.mxu0 %v20032_v62  ;;  %v20113_v62 = vld [vmem:[#allocation11 + $0x7c0] ss:$24 sps:$4 sm:$0xff]  }
 0x84a   :  { %10359 = vmatprep.subr.bf16.mxu0 %v20037_v51  ;;  %v20118_v51 = vld [vmem:[#allocation11 + $0x7f4] ss:$24 sps:$4 sm:$0xff]  }
 0x84d   :  { %10360 = vmatpush1.bf16.msra.mxu0 %v20035_v49  ;;  %v20116_v49 = vld [vmem:[#allocation11 + $0x7f0] ss:$24 sps:$4 sm:$0xff]  }
 0x84e   :  { %10382 = vmatprep.subr.bf16.mxu0 %v20040_v25  ;;  %v20121_v25 = vld [vmem:[#allocation11 + $0x824] ss:$24 sps:$4 sm:$0xff]  }
 0x850   :  { %10362 = vmatmul.mubr.bf16.vlgmr.msra.gmra.mrb[48].mxu0 %v22399_v13  ;;  %v20050_v13 = vld [vmem:[#allocation11 + $0x3d0] ss:$24 sps:$4 sm:$0xff]  }
 0x851   :  { %10371 = vmatprep.mubr.bf16.mxu0 %v22431_v10  ;;  %10383 = vmatpush1.bf16.msra.mxu0 %v20038_v44  ;;  %v20055_v10 = vld [vmem:[#allocation11 + $0x404] ss:$24 sps:$4 sm:$0xff]   ;;  %v20119_v44 = vld [vmem:[#allocation11 + $0x820] ss:$24 sps:$4 sm:$0xff]  }
 0x852   :  { %10384 = vmatprep.subr.bf16.mxu0 %v20043_v20  ;;  %v20124_v20 = vld [vmem:[#allocation11 + $0x854] ss:$24 sps:$4 sm:$0xff]  }
 0x855   :  { %10385 = vmatpush1.bf16.msra.mxu0 %v20041_v15  ;;  %v20122_v15 = vld [vmem:[#allocation11 + $0x850] ss:$24 sps:$4 sm:$0xff]  }
 0x856   :  { %10386 = vmatprep.subr.bf16.mxu0 %v20046_v17  ;;  %v20127_v17 = vld [vmem:[#allocation11 + $0x884] ss:$24 sps:$4 sm:$0xff]  }
 0x858   :  { %10372 = vmatmul.mubr.bf16.gmra.mrb[52].mxu0 %v22428_v22  ;;  %v20059_v22 = vld [vmem:[#allocation11 + $0x460] ss:$24 sps:$4 sm:$0xff]  }
 0x859   :  { %10387 = vmatpush1.bf16.msra.mxu0 %v20044_v43  ;;  %10414 = vmatprep.mubr.bf16.mxu0 %v22409_v32  ;;  %v20062_v32 = vld [vmem:[#allocation11 + $0x490] ss:$24 sps:$4 sm:$0xff]   ;;  %v20125_v43 = vld [vmem:[#allocation11 + $0x880] ss:$24 sps:$4 sm:$0xff]  }
 0x85a   :  { %10388 = vmatprep.subr.bf16.mxu0 %v20049_v36  ;;  %v20130_v36 = vld [vmem:[#allocation11 + $0x8b4] ss:$24 sps:$4 sm:$0xff]  }
 0x85d   :  { %10389 = vmatpush1.bf16.msra.mxu0 %v20047_v57  ;;  %v20128_v57 = vld [vmem:[#allocation11 + $0x8b0] ss:$24 sps:$4 sm:$0xff]  }
 0x85e   :  { %10390 = vmatprep.subr.bf16.mxu0 %v20052_v46  ;;  %v20133_v46 = vld [vmem:[#allocation11 + $0x8e4] ss:$24 sps:$4 sm:$0xff]  }
 0x861   :  { %10391 = vmatpush1.bf16.msra.mxu0 %v20050_v13  ;;  %v20131_v13 = vld [vmem:[#allocation11 + $0x8e0] ss:$24 sps:$4 sm:$0xff]  }
 0x862   :  { %10392 = vmatprep.subr.bf16.mxu0 %v20055_v10 }
 0x865   :  { %10393 = vmatpush1.bf16.msra.mxu0 %v20053_v54 }
 0x866   :  { %10394 = vmatprep.subr.bf16.mxu0 %v20058_v38 }
 0x869   :  { %10395 = vmatpush1.bf16.msra.mxu0 %v20056_v21 }
 0x86a   :  { %10396 = vmatprep.subr.bf16.mxu0 %v20061_v58 }
 0x86d   :  { %10397 = vmatpush1.bf16.msra.mxu0 %v20059_v22 }
 0x86e   :  { %10398 = vmatprep.subr.bf16.mxu0 %v20064_v41 }
 0x871   :  { %10399 = vmatpush1.bf16.msra.mxu0 %v20062_v32 }
 0x872   :  { %10400 = vmatprep.subr.bf16.mxu0 %v20067_v5 }
 0x875   :  { %10401 = vmatpush1.bf16.msra.mxu0 %v20065_v55 }
 0x876   :  { %10402 = vmatprep.subr.bf16.mxu0 %v20070_v7 }
 0x879   :  { %10403 = vmatpush1.bf16.msra.mxu0 %v20068_v48 }
 0x87a   :  { %10404 = vmatprep.subr.bf16.mxu0 %v20073_v27 }
 0x87d   :  { %10405 = vmatpush1.bf16.msra.mxu0 %v20071_v23 }
 0x87e   :  { %10406 = vmatprep.subr.bf16.mxu0 %v20076_v2 }
 0x881   :  { %10407 = vmatpush1.bf16.msra.mxu0 %v20074_v60 }
 0x882   :  { %10408 = vmatprep.subr.bf16.mxu0 %v20079_v26 }
 0x885   :  { %10409 = vmatpush1.bf16.msra.mxu0 %v20077_v8  ;;  %v21081_v8 = vld [vmem:[#allocation3] sm:$0xff] }
 0x886   :  { %10410 = vmatprep.subr.bf16.mxu0 %v20082_v56  ;;  %v10488_v56 = vunpack.c.l.bf16 %v21081_v8 }
 0x889   :  { %10411 = vmatpush1.bf16.msra.mxu0 %v20080_v61 }
 0x88a   :  { %10412 = vmatprep.subr.bf16.mxu0 %v20085_v52  ;;  %v10489_v52 = vunpack.c.h.bf16 %v21081_v8 }
 0x88d   :  { %10413 = vmatpush1.bf16.msra.mxu0 %v20083_v34 }
 0x88e   :  { %10435 = vmatprep.subr.bf16.mxu0 %v20088_v11  ;;  %v21082_v11 = vld [vmem:[#allocation3 + $0x18] sm:$0xff] }
 0x890   :  { %10415 = vmatmul.mubr.bf16.vlgmr.msra.gmra.mrb[48].mxu0 %v22407_v30  ;;  %v20098_v30 = vld [vmem:[#allocation11 + $0x6d0] ss:$24 sps:$4 sm:$0xff]  }
 0x891   :  { %10424 = vmatprep.mubr.bf16.mxu0 %v22443_v14  ;;  %10436 = vmatpush1.bf16.msra.mxu0 %v20086_v45  ;;  %v20103_v14 = vld [vmem:[#allocation11 + $0x704] ss:$24 sps:$4 sm:$0xff]   ;;  %v10494_v45 = vunpack.c.l.bf16 %v21082_v11 }
 0x892   :  { %10437 = vmatprep.subr.bf16.mxu0 %v20091_v19 }
 0x895   :  { %10438 = vmatpush1.bf16.msra.mxu0 %v20089_v28  ;;  %v10495_v28 = vunpack.c.h.bf16 %v21082_v11 }
 0x896   :  { %10439 = vmatprep.subr.bf16.mxu0 %v20094_v9 }
 0x898   :  { %10425 = vmatmul.mubr.bf16.gmra.mrb[52].mxu0 %v22440_v29  ;;  %v20107_v29 = vld [vmem:[#allocation11 + $0x760] ss:$24 sps:$4 sm:$0xff]  }
 0x899   :  { %10440 = vmatpush1.bf16.msra.mxu0 %v20092_v12  ;;  %10467 = vmatprep.mubr.bf16.mxu0 %v22413_v33  ;;  %v20110_v33 = vld [vmem:[#allocation11 + $0x790] ss:$24 sps:$4 sm:$0xff]  }
 0x89a   :  { %10441 = vmatprep.subr.bf16.mxu0 %v20097_v39 }
 0x89d   :  { %10442 = vmatpush1.bf16.msra.mxu0 %v20095_v31  ;;  %v21083_v31 = vld [vmem:[#allocation3 + $0x8] sm:$0xff] }
 0x89e   :  { %10443 = vmatprep.subr.bf16.mxu0 %v20100_v53  ;;  %v10490_v53 = vunpack.c.l.bf16 %v21083_v31 }
 0x8a1   :  { %10444 = vmatpush1.bf16.msra.mxu0 %v20098_v30 }
 0x8a2   :  { %10445 = vmatprep.subr.bf16.mxu0 %v20103_v14 }
 0x8a5   :  { %10446 = vmatpush1.bf16.msra.mxu0 %v20101_v0 }
 0x8a6   :  { %10447 = vmatprep.subr.bf16.mxu0 %v20106_v40 }
 0x8a9   :  { %10448 = vmatpush1.bf16.msra.mxu0 %v20104_v59  ;;  %v10491_v59 = vunpack.c.h.bf16 %v21083_v31 }
 0x8aa   :  { %10449 = vmatprep.subr.bf16.mxu0 %v20109_v24  ;;  %v21084_v24 = vld [vmem:[#allocation3 + $0x20] sm:$0xff] }
 0x8ad   :  { %10450 = vmatpush1.bf16.msra.mxu0 %v20107_v29  ;;  %v10496_v29 = vunpack.c.l.bf16 %v21084_v24 }
 0x8ae   :  { %10451 = vmatprep.subr.bf16.mxu0 %v20112_v4  ;;  %v10497_v4 = vunpack.c.h.bf16 %v21084_v24 }
 0x8b1   :  { %10452 = vmatpush1.bf16.msra.mxu0 %v20110_v33 }
 0x8b2   :  { %10453 = vmatprep.subr.bf16.mxu0 %v20115_v47  ;;  %v21085_v47 = vld [vmem:[#allocation3 + $0x30] sm:$0xff] }
 0x8b5   :  { %10454 = vmatpush1.bf16.msra.mxu0 %v20113_v62  ;;  %v10500_v62 = vunpack.c.l.bf16 %v21085_v47 }
 0x8b6   :  { %10455 = vmatprep.subr.bf16.mxu0 %v20118_v51  ;;  %v22499_v51 = vld [vmem:[#allocation3 + $0x38] sm:$0xff] }
 0x8b9   :  { %10456 = vmatpush1.bf16.msra.mxu0 %v20116_v49  ;;  %v10502_v49 = vunpack.c.l.bf16 %v22499_v51 }
 0x8ba   :  { %10457 = vmatprep.subr.bf16.mxu0 %v20121_v25  ;;  %v10501_v25 = vunpack.c.h.bf16 %v21085_v47 }
 0x8bd   :  { %10458 = vmatpush1.bf16.msra.mxu0 %v20119_v44 }
 0x8be   :  { %10459 = vmatprep.subr.bf16.mxu0 %v20124_v20 }
 0x8c1   :  { %10460 = vmatpush1.bf16.msra.mxu0 %v20122_v15 }
 0x8c2   :  { %10461 = vmatprep.subr.bf16.mxu0 %v20127_v17  ;;  %v10503_v17 = vunpack.c.h.bf16 %v22499_v51 }
 0x8c5   :  { %10462 = vmatpush1.bf16.msra.mxu0 %v20125_v43 }
 0x8c6   :  { %10463 = vmatprep.subr.bf16.mxu0 %v20130_v36 }
 0x8c9   :  { %10464 = vmatpush1.bf16.msra.mxu0 %v20128_v57  ;;  %v21087_v57 = vld [vmem:[#allocation3 + $0x48] sm:$0xff] }
 0x8ca   :  { %10465 = vmatprep.subr.bf16.mxu0 %v20133_v46  ;;  %v10506_v46 = vunpack.c.l.bf16 %v21087_v57 }
 0x8cd   :  { %10466 = vmatpush1.bf16.msra.mxu0 %v20131_v13  ;;  %v10507_v13 = vunpack.c.h.bf16 %v21087_v57 }
 0x8d0   :  { %10468 = vmatmul.mubr.bf16.vlgmr.msra.gmra.mrb[48].mxu0 %v22411_v18 }
 0x8d1   :  { %10477 = vmatprep.mubr.bf16.mxu0 %v22453_v42 }
 0x8d8   :  { %10478 = vmatmul.mubr.bf16.gmra.mrb[52].mxu0 %v22450_v37  ;;  %v8539_v37 = vld [vmem:[#allocation12] sm:$0x3f] }
 0x8d9   :  { %v8544_v2 = vrot.slane %v8539_v37, %v23798_v35  ;;  %v8548_v60 = vrot.slane %v8539_v37, %v23799_v3  ;;  %v8552_v9 = vrot.slane %v8539_v37, %v21927_v63  ;;  %v22493_v30 = vrot.slane %v8539_v37, %v21932_v1 }
 0x8e2   :  { %v10151_v10 = vpop.f32.mrb[40].mxu0  ;;  %v10310_v54 = vpop.f32.mrb[104].mxu1 }
 0x8e3   :  { %v10153_v38 = vpop.f32.mrb[41].mxu0  ;;  %v10312_v21 = vpop.f32.mrb[105].mxu1  ;;  %v17985_v26 = vadd.f32 %v10151_v10, %v8544_v2  ;;  %v17993_v40 = vadd.f32 %v10310_v54, %v8552_v9 }
 0x8e4   :  { %v10155_v58 = vpop.f32.mrb[42].mxu0  ;;  %v10314_v22 = vpop.f32.mrb[106].mxu1  ;;  %v17986_v61 = vadd.f32 %v10153_v38, %v8548_v60  ;;  %v17994_v43 = vadd.f32 %v10312_v21, %v22493_v30  ;;  %v22517_v21 = vrot.slane %v8539_v37, %v23790_v6 }
 0x8e5   :  { %v10157_v41 = vpop.f32.mrb[43].mxu0  ;;  %v10316_v32 = vpop.f32.mrb[107].mxu1  ;;  %v17987_v34 = vadd.f32 %v10155_v58, %v8544_v2  ;;  %v22488_v12 = vadd.f32 %v17985_v26, %v10488_v56  ;;  %v17995_v33 = vadd.f32 %v10314_v22, %v8552_v9  ;;  %v22508_v10 = vadd.f32 %v17993_v40, %v10490_v53 }
 0x8e6   :  { %v17988_v19 = vadd.f32 %v10157_v41, %v8548_v60  ;;  %v22490_v39 = vadd.f32 %v17986_v61, %v10489_v52  ;;  %v22511_v58 = vrot.slane %v8539_v37, %v23792_v50  ;;  %v17996_v41 = vadd.f32 %v10316_v32, %v22493_v30 }
 0x8e7   :  { %v22495_v14 = vadd.f32 %v17987_v34, %v10494_v45  ;;  %v22513_v22 = vadd.f32 %v17995_v33, %v10496_v29 }
 0x8e8   :  { %v22497_v0 = vadd.f32 %v17988_v19, %v10495_v28  ;;  %v10538_v44 = vadd.f32 %v22490_v39, %v22488_v12  ;;  %v21090_v19 = vld [vmem:[#allocation3 + $0x28] sm:$0xff]  ;;  %v22533_v31 = vadd.f32 %v17996_v41, %v10497_v4 }
 0x8e9   :  { %v10498_v28 = vunpack.c.l.bf16 %v21090_v19  ;;  %v10499_v24 = vunpack.c.h.bf16 %v21090_v19 }
 0x8ea   :  { %v10161_v5 = vpop.f32.mrb[44].mxu0  ;;  %v22477_v55 = vpop.f32.mrb[108].mxu1  ;;  %v10545_v36 = vadd.f32 %v22497_v0, %v22495_v14  ;;  %v10539_v26 = vadd.f32 %v10538_v44, %v22508_v10 }
 0x8eb   :  { %v10163_v7 = vpop.f32.mrb[45].mxu0  ;;  %v22479_v48 = vpop.f32.mrb[109].mxu1  ;;  %v17989_v20 = vadd.f32 %v10161_v5, %v8544_v2  ;;  %v21088_v5 = vld [vmem:[#allocation3 + $0x50] sm:$0xff]  ;;  %v17997_v61 = vadd.f32 %v22477_v55, %v8552_v9 }
 0x8ec   :  { %v10165_v27 = vpop.f32.mrb[46].mxu0  ;;  %v22481_v18 = vpop.f32.mrb[110].mxu1  ;;  %v17990_v15 = vadd.f32 %v10163_v7, %v8548_v60  ;;  %v10508_v7 = vunpack.c.l.bf16 %v21088_v5  ;;  %v17998_v4 = vadd.f32 %v22479_v48, %v22493_v30 }
 0x8ed   :  { %v10167_v42 = vpop.f32.mrb[47].mxu0  ;;  %v22483_v23 = vpop.f32.mrb[111].mxu1  ;;  %v17991_v54 = vadd.f32 %v10165_v27, %v8544_v2  ;;  %v22520_v8 = vadd.f32 %v17989_v20, %v10500_v62  ;;  %v21089_v27 = vld [vmem:[#allocation3 + $0x10] sm:$0xff]  ;;  %v22524_v2 = vadd.f32 %v17994_v43, %v10491_v59  ;;  %v17999_v53 = vadd.f32 %v22481_v18, %v8552_v9 }
 0x8ee   :  { %v17992_v38 = vadd.f32 %v10167_v42, %v8548_v60  ;;  %v22522_v56 = vadd.f32 %v17990_v15, %v10501_v25  ;;  %v10492_v42 = vunpack.c.l.bf16 %v21089_v27  ;;  %v10546_v60 = vadd.f32 %v10545_v36, %v22513_v22 }
 0x8ef   :  { %v10493_v52 = vunpack.c.h.bf16 %v21089_v27  ;;  %v22528_v34 = vadd.f32 %v17991_v54, %v10506_v46  ;;  %v10540_v55 = vadd.f32 %v10539_v26, %v22524_v2  ;;  %v22543_v51 = vadd.f32 %v17997_v61, %v10502_v49  ;;  %v21091_v46 = vld [vmem:[#allocation3 + $0x40] sm:$0xff] }
 0x8f0   :  { %v22530_v37 = vadd.f32 %v17992_v38, %v10507_v13  ;;  %v10552_v29 = vadd.f32 %v22522_v56, %v22520_v8  ;;  %v10547_v25 = vadd.f32 %v10546_v60, %v22533_v31  ;;  %v22556_v43 = vadd.f32 %v17999_v53, %v10508_v7 }
 0x8f1   :  { %v18000_v49 = vadd.f32 %v22483_v23, %v22493_v30  ;;  %v10509_v36 = vunpack.c.h.bf16 %v21088_v5  ;;  %v10504_v13 = vunpack.c.l.bf16 %v21091_v46  ;;  %v22565_v41 = vadd.f32 %v17998_v4, %v10503_v17  ;;  %v21092_v30 = vld [vmem:[#allocation3 + $0x58] sm:$0xff]  ;;  %v20134_v4 = vld [vmem:[#allocation17] ss:$24 sps:$4 sm:$0xff]  }
 0x8f2   :  { %v10559_v44 = vadd.f32 %v22530_v37, %v22528_v34  ;;  %v10553_v57 = vadd.f32 %v10552_v29, %v22543_v51  ;;  %v10505_v27 = vunpack.c.h.bf16 %v21091_v46  ;;  %v10510_v5 = vunpack.c.l.bf16 %v21092_v30  ;;  %v20151_v46 = vld [vmem:[#allocation17 + $0x6c] ss:$24 sps:$4 sm:$0xff]  }
 0x8f3   :  { %v22572_v17 = vadd.f32 %v18000_v49, %v10509_v36  ;;  %v20140_v49 = vld [vmem:[#allocation17 + $0x30] ss:$24 sps:$4 sm:$0xff]  }
 0x8f4   :  { %v10560_v7 = vadd.f32 %v10559_v44, %v22556_v43  ;;  %v20142_v44 = vld [vmem:[#allocation17 + $0x34] ss:$24 sps:$4 sm:$0xff]   ;;  %v20143_v36 = vld [vmem:[#allocation17 + $0x38] ss:$24 sps:$4 sm:$0xff]  }
 0x9a3   :  { %v10469_v32 = vpop.f32.mrb[48].mxu0 }
 0x9a4   :  { %v18001_v11 = vadd.f32 %v10469_v32, %v22511_v58  ;;  %v10471_v45 = vpop.f32.mrb[49].mxu0 }
 0x9a5   :  { %v18002_v40 = vadd.f32 %v10471_v45, %v22517_v21  ;;  %v10473_v59 = vpop.f32.mrb[50].mxu0 }
 0x9a6   :  { %v22540_v33 = vadd.f32 %v18001_v11, %v10492_v42  ;;  %v18003_v47 = vadd.f32 %v10473_v59, %v22511_v58  ;;  %v10475_v62 = vpop.f32.mrb[51].mxu0  ;;  %v10554_v11 = vadd.f32 %v10553_v57, %v22565_v41  ;;  %v10561_v59 = vadd.f32 %v10560_v7, %v22572_v17  ;;  %v20148_v57 = vld [vmem:[#allocation17 + $0x64] ss:$24 sps:$4 sm:$0xff]   ;;  %v20155_v7 = vld [vmem:[#allocation17 + $0x98] ss:$24 sps:$4 sm:$0xff]  }
 0x9a7   :  { %v22547_v18 = vadd.f32 %v18002_v40, %v10493_v52  ;;  %v18004_v9 = vadd.f32 %v10475_v62, %v22517_v21  ;;  %v10511_v52 = vunpack.c.h.bf16 %v21092_v30  ;;  %v20158_v30 = vld [vmem:[#allocation17 + $0xc0] ss:$24 sps:$4 sm:$0xff]  }
 0x9a8   :  { %v22553_v20 = vadd.f32 %v18003_v47, %v10498_v28  ;;  %v10541_v15 = vadd.f32 %v10540_v55, %v22540_v33 }
 0x9a9   :  { %v22560_v48 = vadd.f32 %v18004_v9, %v10499_v24  ;;  %v20136_v9 = vld [vmem:[#allocation17 + $0x4] ss:$24 sps:$4 sm:$0xff]  }
 0x9aa   :  { %v10542_v54 = vadd.f32 %v10541_v15, %v22547_v18  ;;  %v10548_v38 = vadd.f32 %v10547_v25, %v22553_v20  ;;  %v20137_v25 = vld [vmem:[#allocation17 + $0x8] ss:$24 sps:$4 sm:$0xff]   ;;  %12565 = vmatprep.subr.bf16.mxu1 %v20136_v9  ;;  %v20145_v15 = vld [vmem:[#allocation17 + $0x3c] ss:$24 sps:$4 sm:$0xff]  }
 0x9ab   :  { %v10479_v26 = vpop.f32.mrb[52].mxu0  ;;  %12566 = vmatpush1.bf16.msra.mxu1 %v20134_v4  ;;  %v20187_v4 = vld [vmem:[#allocation17 + $0x18c] ss:$24 sps:$4 sm:$0xff]   ;;  %v20182_v9 = vld [vmem:[#allocation17 + $0x180] ss:$24 sps:$4 sm:$0xff]  }
 0x9ac   :  { %v18005_v42 = vadd.f32 %v10479_v26, %v22511_v58  ;;  %v10481_v23 = vpop.f32.mrb[53].mxu0  ;;  %10543 = vadd.xlane.f32.xlu0 %v10542_v54  ;;  %v10549_v60 = vadd.f32 %v10548_v38, %v22560_v48  ;;  %12567 = vmatprep.subr.bf16.mxu1 %v20142_v44  ;;  %v20149_v54 = vld [vmem:[#allocation17 + $0x68] ss:$24 sps:$4 sm:$0xff]   ;;  %v20154_v38 = vld [vmem:[#allocation17 + $0x94] ss:$24 sps:$4 sm:$0xff]  }
 0x9ad   :  { %v18006_v61 = vadd.f32 %v10481_v23, %v22517_v21  ;;  %v10483_v32 = vpop.f32.mrb[54].mxu0  ;;  %v20157_v26 = vld [vmem:[#allocation17 + $0x9c] ss:$24 sps:$4 sm:$0xff]   ;;  %v20163_v23 = vld [vmem:[#allocation17 + $0xcc] ss:$24 sps:$4 sm:$0xff]  }
 0x9ae   :  { %v22574_v45 = vadd.f32 %v18005_v42, %v10504_v13  ;;  %v18007_v19 = vadd.f32 %v10483_v32, %v22511_v58  ;;  %v10485_v28 = vpop.f32.mrb[55].mxu0  ;;  %10550 = vadd.xlane.f32.xlu1 %v10549_v60  ;;  %v20146_v13 = vld [vmem:[#allocation17 + $0x60] ss:$24 sps:$4 sm:$0xff]   ;;  %v20160_v42 = vld [vmem:[#allocation17 + $0xc4] ss:$24 sps:$4 sm:$0xff]  }
 0x9af   :  { %v22577_v53 = vadd.f32 %v18006_v61, %v10505_v27  ;;  %v18008_v40 = vadd.f32 %v10485_v28, %v22517_v21  ;;  %v20139_v21 = vld [vmem:[#allocation17 + $0xc] ss:$24 sps:$4 sm:$0xff]   ;;  %12568 = vmatpush1.bf16.msra.mxu1 %v20140_v49  ;;  %v20152_v27 = vld [vmem:[#allocation17 + $0x90] ss:$24 sps:$4 sm:$0xff]   ;;  %v20169_v61 = vld [vmem:[#allocation17 + $0xfc] ss:$24 sps:$4 sm:$0xff]  }
 0x9b0   :  { %v22581_v24 = vadd.f32 %v18007_v19, %v10510_v5  ;;  %v10555_v55 = vadd.f32 %v10554_v11, %v22574_v45  ;;  %12724 = vmatprep.subr.bf16.mxu0 %v20139_v21  ;;  %12569 = vmatprep.subr.bf16.mxu1 %v20148_v57  ;;  %v20161_v5 = vld [vmem:[#allocation17 + $0xc8] ss:$24 sps:$4 sm:$0xff]   ;;  %v20166_v60 = vld [vmem:[#allocation17 + $0xf4] ss:$24 sps:$4 sm:$0xff]   ;;  %v20172_v11 = vld [vmem:[#allocation17 + $0x124] ss:$24 sps:$4 sm:$0xff]  }
 0x9b1   :  { %v22584_v29 = vadd.f32 %v18008_v40, %v10511_v52  ;;  %12725 = vmatpush1.bf16.msra.mxu0 %v20137_v25  ;;  %v20164_v32 = vld [vmem:[#allocation17 + $0xf0] ss:$24 sps:$4 sm:$0xff]   ;;  %v20175_v19 = vld [vmem:[#allocation17 + $0x12c] ss:$24 sps:$4 sm:$0xff]   ;;  %v20170_v28 = vld [vmem:[#allocation17 + $0x120] ss:$24 sps:$4 sm:$0xff]  }
 0x9b2   :  { %v10556_v47 = vadd.f32 %v10555_v55, %v22577_v53  ;;  %v10562_v62 = vadd.f32 %v10561_v59, %v22581_v24  ;;  %12726 = vmatprep.subr.bf16.mxu0 %v20145_v15  ;;  %v20167_v52 = vld [vmem:[#allocation17 + $0xf8] ss:$24 sps:$4 sm:$0xff]   ;;  %v20173_v40 = vld [vmem:[#allocation17 + $0x128] ss:$24 sps:$4 sm:$0xff]   ;;  %v20178_v59 = vld [vmem:[#allocation17 + $0x154] ss:$24 sps:$4 sm:$0xff]  }
 0x9b3   :  { %12570 = vmatpush1.bf16.msra.mxu1 %v20146_v13  ;;  %v20181_v55 = vld [vmem:[#allocation17 + $0x15c] ss:$24 sps:$4 sm:$0xff]   ;;  %v20185_v25 = vld [vmem:[#allocation17 + $0x188] ss:$24 sps:$4 sm:$0xff]   ;;  %v20191_v49 = vld [vmem:[#allocation17 + $0x1b8] ss:$24 sps:$4 sm:$0xff]  }
 0x9b4   :  { %10557 = vadd.xlane.f32.xlu0 %v10556_v47  ;;  %v10563_v58 = vadd.f32 %v10562_v62, %v22584_v29  ;;  %12571 = vmatprep.subr.bf16.mxu1 %v20154_v38  ;;  %v20176_v47 = vld [vmem:[#allocation17 + $0x150] ss:$24 sps:$4 sm:$0xff]   ;;  %v20190_v21 = vld [vmem:[#allocation17 + $0x1b4] ss:$24 sps:$4 sm:$0xff]  }
 0x9b5   :  { %12727 = vmatpush1.bf16.msra.mxu0 %v20143_v36  ;;  %v20179_v62 = vld [vmem:[#allocation17 + $0x158] ss:$24 sps:$4 sm:$0xff]   ;;  %v20193_v44 = vld [vmem:[#allocation17 + $0x1bc] ss:$24 sps:$4 sm:$0xff]  }
 0x9b6   :  { %10564 = vadd.xlane.f32.xlu1 %v10563_v58  ;;  %12728 = vmatprep.subr.bf16.mxu0 %v20151_v46  ;;  %v20184_v58 = vld [vmem:[#allocation17 + $0x184] ss:$24 sps:$4 sm:$0xff]   ;;  %v20188_v15 = vld [vmem:[#allocation17 + $0x1b0] ss:$24 sps:$4 sm:$0xff]  }
 0x9b7   :  { %12572 = vmatpush1.bf16.msra.mxu1 %v20152_v27 }
 0x9b8   :  { %12573 = vmatprep.subr.bf16.mxu1 %v20160_v42 }
 0x9b9   :  { %12729 = vmatpush1.bf16.msra.mxu0 %v20149_v54 }
 0x9ba   :  { %12730 = vmatprep.subr.bf16.mxu0 %v20157_v26 }
 0x9bb   :  { %12574 = vmatpush1.bf16.msra.mxu1 %v20158_v30 }
 0x9bc   :  { %12575 = vmatprep.subr.bf16.mxu1 %v20166_v60 }
 0x9bd   :  { %12731 = vmatpush1.bf16.msra.mxu0 %v20155_v7 }
 0x9be   :  { %12732 = vmatprep.subr.bf16.mxu0 %v20163_v23 }
 0x9bf   :  { %12576 = vmatpush1.bf16.msra.mxu1 %v20164_v32 }
 0x9c0   :  { %12577 = vmatprep.subr.bf16.mxu1 %v20172_v11 }
 0x9c1   :  { %12733 = vmatpush1.bf16.msra.mxu0 %v20161_v5 }
 0x9c2   :  { %12734 = vmatprep.subr.bf16.mxu0 %v20169_v61 }
 0x9c3   :  { %12578 = vmatpush1.bf16.msra.mxu1 %v20170_v28 }
 0x9c4   :  { %12579 = vmatprep.subr.bf16.mxu1 %v20178_v59 }
 0x9c5   :  { %12735 = vmatpush1.bf16.msra.mxu0 %v20167_v52 }
 0x9c6   :  { %12736 = vmatprep.subr.bf16.mxu0 %v20175_v19 }
 0x9c7   :  { %12580 = vmatpush1.bf16.msra.mxu1 %v20176_v47 }
 0x9c8   :  { %12581 = vmatprep.subr.bf16.mxu1 %v20184_v58 }
 0x9c9   :  { %12737 = vmatpush1.bf16.msra.mxu0 %v20173_v40 }
 0x9ca   :  { %12738 = vmatprep.subr.bf16.mxu0 %v20181_v55 }
 0x9cb   :  { %12582 = vmatpush1.bf16.msra.mxu1 %v20182_v9 }
 0x9cc   :  { %12583 = vmatprep.subr.bf16.mxu1 %v20190_v21 }
 0x9cd   :  { %12739 = vmatpush1.bf16.msra.mxu0 %v20179_v62 }
 0x9ce   :  { %12740 = vmatprep.subr.bf16.mxu0 %v20187_v4 }
 0x9cf   :  { %12584 = vmatpush1.bf16.msra.mxu1 %v20188_v15 }
 0x9d1   :  { %12741 = vmatpush1.bf16.msra.mxu0 %v20185_v25 }
 0x9d2   :  { %12742 = vmatprep.subr.bf16.mxu0 %v20193_v44 }
 0x9d5   :  { %12743 = vmatpush1.bf16.msra.mxu0 %v20191_v49 }
 0xa39   :  { %v10544_v36 = vpop.xlane.xlu0 %10543 }
 0xa3a   :  { %v10567_v57 = vmul.f32 0.0013020834, %v10544_v36 }
 0xa3b   :  { %v10551_v46 = vpop.xlane.xlu1 %10550 }
 0xa3c   :  { %v10568_v13 = vmul.f32 0.0013020834, %v10551_v46  ;;  %v22590_v54 = vsub.f32 %v22488_v12, %v10567_v57  ;;  %v22593_v38 = vsub.f32 %v22490_v39, %v10567_v57  ;;  %v22596_v26 = vsub.f32 %v22508_v10, %v10567_v57 }
 0xa3d   :  { %v22599_v27 = vsub.f32 %v22524_v2, %v10567_v57  ;;  %v22602_v7 = vsub.f32 %v22540_v33, %v10567_v57  ;;  %v22612_v39 = vsub.f32 %v22547_v18, %v10567_v57 }
 0xa3e   :  { %v10595_v42 = vmul.f32 %v22590_v54, %v22590_v54  ;;  %v10596_v23 = vmul.f32 %v22593_v38, %v22593_v38  ;;  %v22609_v12 = vsub.f32 %v22495_v14, %v10568_v13  ;;  %v22615_v10 = vsub.f32 %v22497_v0, %v10568_v13 }
 0xa3f   :  { %v10597_v2 = vmul.f32 %v22596_v26, %v22596_v26  ;;  %v22620_v30 = vsub.f32 %v22513_v22, %v10568_v13  ;;  %v22623_v60 = vsub.f32 %v22533_v31, %v10568_v13  ;;  %v10598_v0 = vmul.f32 %v22599_v27, %v22599_v27 }
 0xa40   :  { %v10619_v33 = vadd.f32 %v10596_v23, %v10595_v42  ;;  %v10601_v14 = vmul.f32 %v22609_v12, %v22609_v12  ;;  %v10602_v18 = vmul.f32 %v22615_v10, %v22615_v10  ;;  %v10599_v32 = vmul.f32 %v22602_v7, %v22602_v7 }
 0xa41   :  { %v10558_v5 = vpop.xlane.xlu0 %10557  ;;  %v10600_v11 = vmul.f32 %v22612_v39, %v22612_v39  ;;  %v22636_v31 = vsub.f32 %v22553_v20, %v10568_v13  ;;  %v10603_v19 = vmul.f32 %v22620_v30, %v22620_v30  ;;  %v22647_v62 = vsub.f32 %v22560_v48, %v10568_v13 }
 0xa42   :  { %v10569_v61 = vmul.f32 0.0013020834, %v10558_v5  ;;  %v10620_v52 = vadd.f32 %v10619_v33, %v10597_v2  ;;  %v10626_v28 = vadd.f32 %v10602_v18, %v10601_v14  ;;  %v10604_v58 = vmul.f32 %v22623_v60, %v22623_v60 }
 0xa43   :  { %v10565_v22 = vpop.xlane.xlu1 %10564  ;;  %v10605_v48 = vmul.f32 %v22636_v31, %v22636_v31  ;;  %v10606_v36 = vmul.f32 %v22647_v62, %v22647_v62 }
 0xa44   :  { %v10570_v40 = vmul.f32 0.0013020834, %v10565_v22  ;;  %v10621_v59 = vadd.f32 %v10620_v52, %v10598_v0  ;;  %v22641_v55 = vsub.f32 %v22520_v8, %v10569_v61  ;;  %v22644_v47 = vsub.f32 %v22522_v56, %v10569_v61 }
 0xa45   :  { %v10627_v20 = vadd.f32 %v10626_v28, %v10603_v19  ;;  %v22652_v4 = vsub.f32 %v22543_v51, %v10569_v61  ;;  %v22655_v25 = vsub.f32 %v22565_v41, %v10569_v61  ;;  %v22664_v44 = vsub.f32 %v22574_v45, %v10569_v61 }
 0xa46   :  { %v10622_v9 = vadd.f32 %v10621_v59, %v10599_v32  ;;  %v10607_v8 = vmul.f32 %v22641_v55, %v22641_v55  ;;  %v10608_v56 = vmul.f32 %v22644_v47, %v22644_v47  ;;  %v22669_v41 = vsub.f32 %v22528_v34, %v10570_v40 }
 0xa47   :  { %v10628_v21 = vadd.f32 %v10627_v20, %v10604_v58  ;;  %v10609_v51 = vmul.f32 %v22652_v4, %v22652_v4  ;;  %v22674_v46 = vsub.f32 %v22530_v37, %v10570_v40  ;;  %v22677_v13 = vsub.f32 %v22556_v43, %v10570_v40  ;;  %v20196_v58 = vld [vmem:[#allocation17 + $0x1e4] ss:$24 sps:$4 sm:$0xff]  }
 0xa48   :  { %v10623_v15 = vadd.f32 %v10622_v9, %v10600_v11  ;;  %v10633_v49 = vadd.f32 %v10608_v56, %v10607_v8  ;;  %v22680_v45 = vsub.f32 %v22577_v53, %v10569_v61  ;;  %v10610_v42 = vmul.f32 %v22655_v25, %v22655_v25  ;;  %v20199_v20 = vld [vmem:[#allocation17 + $0x1ec] ss:$24 sps:$4 sm:$0xff]   ;;  %12585 = vmatprep.subr.bf16.mxu1 %v20196_v58  ;;  %v20200_v9 = vld [vmem:[#allocation17 + $0x210] ss:$24 sps:$4 sm:$0xff]  }
 0xa49   :  { %v10629_v57 = vadd.f32 %v10628_v21, %v10605_v48  ;;  %v10613_v34 = vmul.f32 %v22669_v41, %v22669_v41  ;;  %v22687_v33 = vsub.f32 %v22572_v17, %v10570_v40  ;;  %v10614_v37 = vmul.f32 %v22674_v46, %v22674_v46  ;;  %12744 = vmatprep.subr.bf16.mxu0 %v20199_v20  ;;  %v20202_v8 = vld [vmem:[#allocation17 + $0x214] ss:$24 sps:$4 sm:$0xff]   ;;  %v20203_v56 = vld [vmem:[#allocation17 + $0x218] ss:$24 sps:$4 sm:$0xff]   ;;  %v20208_v21 = vld [vmem:[#allocation17 + $0x244] ss:$24 sps:$4 sm:$0xff]  }
 0xa4a   :  { %10624 = vadd.xlane.f32.xlu0 %v10623_v15  ;;  %v10634_v23 = vadd.f32 %v10633_v49, %v10609_v51  ;;  %v10611_v43 = vmul.f32 %v22664_v44, %v22664_v44  ;;  %v22694_v53 = vsub.f32 %v22581_v24, %v10570_v40  ;;  %v10615_v14 = vmul.f32 %v22677_v13, %v22677_v13  ;;  %v20205_v48 = vld [vmem:[#allocation17 + $0x21c] ss:$24 sps:$4 sm:$0xff]   ;;  %v20211_v15 = vld [vmem:[#allocation17 + $0x24c] ss:$24 sps:$4 sm:$0xff]   ;;  %v20206_v51 = vld [vmem:[#allocation17 + $0x240] ss:$24 sps:$4 sm:$0xff]  }
 0xa4b   :  { %v10630_v2 = vadd.f32 %v10629_v57, %v10606_v36  ;;  %v10640_v18 = vadd.f32 %v10614_v37, %v10613_v34  ;;  %v10612_v61 = vmul.f32 %v22680_v45, %v22680_v45  ;;  %v22701_v0 = vsub.f32 %v22584_v29, %v10570_v40  ;;  %v20194_v29 = vld [vmem:[#allocation17 + $0x1e0] ss:$24 sps:$4 sm:$0xff]   ;;  %v20214_v36 = vld [vmem:[#allocation17 + $0x274] ss:$24 sps:$4 sm:$0xff]   ;;  %v20220_v34 = vld [vmem:[#allocation17 + $0x2a4] ss:$24 sps:$4 sm:$0xff]  }
 0xa4c   :  { %v10635_v5 = vadd.f32 %v10634_v23, %v10610_v42  ;;  %v10616_v32 = vmul.f32 %v22687_v33, %v22687_v33  ;;  %v10617_v24 = vmul.f32 %v22694_v53, %v22694_v53  ;;  %v20197_v40 = vld [vmem:[#allocation17 + $0x1e8] ss:$24 sps:$4 sm:$0xff]   ;;  %12586 = vmatpush1.bf16.msra.mxu1 %v20194_v29  ;;  %v20217_v57 = vld [vmem:[#allocation17 + $0x27c] ss:$24 sps:$4 sm:$0xff]   ;;  %v20215_v23 = vld [vmem:[#allocation17 + $0x278] ss:$24 sps:$4 sm:$0xff]  }
 0xa4d   :  { %10631 = vadd.xlane.f32.xlu1 %v10630_v2  ;;  %v10641_v52 = vadd.f32 %v10640_v18, %v10615_v14  ;;  %v10618_v19 = vmul.f32 %v22701_v0, %v22701_v0  ;;  %12745 = vmatpush1.bf16.msra.mxu0 %v20197_v40  ;;  %v20209_v49 = vld [vmem:[#allocation17 + $0x248] ss:$24 sps:$4 sm:$0xff]   ;;  %v20223_v37 = vld [vmem:[#allocation17 + $0x2ac] ss:$24 sps:$4 sm:$0xff]   ;;  %v20229_v14 = vld [vmem:[#allocation17 + $0x2dc] ss:$24 sps:$4 sm:$0xff]  }
 0xa4e   :  { %v10636_v17 = vadd.f32 %v10635_v5, %v10611_v43  ;;  %12587 = vmatprep.subr.bf16.mxu1 %v20202_v8  ;;  %12746 = vmatprep.subr.bf16.mxu0 %v20205_v48  ;;  %v20212_v42 = vld [vmem:[#allocation17 + $0x270] ss:$24 sps:$4 sm:$0xff]   ;;  %v20218_v2 = vld [vmem:[#allocation17 + $0x2a0] ss:$24 sps:$4 sm:$0xff]   ;;  %v20226_v5 = vld [vmem:[#allocation17 + $0x2d4] ss:$24 sps:$4 sm:$0xff]  }
 0xa4f   :  { %v10642_v11 = vadd.f32 %v10641_v52, %v10616_v32  ;;  %v20221_v43 = vld [vmem:[#allocation17 + $0x2a8] ss:$24 sps:$4 sm:$0xff]   ;;  %v20235_v32 = vld [vmem:[#allocation17 + $0x30c] ss:$24 sps:$4 sm:$0xff]   ;;  %v10536_v29 = vld [vmem:[#allocation14] sm:$0x3f] }
 0xa50   :  { %v10637_v22 = vadd.f32 %v10636_v17, %v10612_v61  ;;  %12588 = vmatpush1.bf16.msra.mxu1 %v20200_v9  ;;  %v20224_v18 = vld [vmem:[#allocation17 + $0x2d0] ss:$24 sps:$4 sm:$0xff]   ;;  %v20232_v17 = vld [vmem:[#allocation17 + $0x304] ss:$24 sps:$4 sm:$0xff]   ;;  %v22715_v48 = vrot.slane %v10536_v29, %v23798_v35 }
 0xa51   :  { %v10643_v28 = vadd.f32 %v10642_v11, %v10617_v24  ;;  %12747 = vmatpush1.bf16.msra.mxu0 %v20203_v56  ;;  %12589 = vmatprep.subr.bf16.mxu1 %v20208_v21  ;;  %v20227_v61 = vld [vmem:[#allocation17 + $0x2d8] ss:$24 sps:$4 sm:$0xff]   ;;  %v22712_v56 = vrot.slane %v10536_v29, %v23799_v3 }
 0xa52   :  { %10638 = vadd.xlane.f32.xlu0 %v10637_v22  ;;  %12748 = vmatprep.subr.bf16.mxu0 %v20211_v15  ;;  %v22709_v9 = vld [vmem:[#allocation15] sm:$0x3f]  ;;  %v22718_v15 = vrot.slane %v10536_v29, %v21927_v63 }
 0xa53   :  { %v10644_v59 = vadd.f32 %v10643_v28, %v10618_v19 }
 0xa54   :  { %12590 = vmatpush1.bf16.msra.mxu1 %v20206_v51 }
 0xa55   :  { %10645 = vadd.xlane.f32.xlu1 %v10644_v59  ;;  %12749 = vmatpush1.bf16.msra.mxu0 %v20209_v49 }
 0xa56   :  { %12591 = vmatprep.subr.bf16.mxu1 %v20214_v36  ;;  %12750 = vmatprep.subr.bf16.mxu0 %v20217_v57  ;;  %v22723_v36 = vrot.slane %v22709_v9, %v23799_v3 }
 0xa58   :  { %12592 = vmatpush1.bf16.msra.mxu1 %v20212_v42  ;;  %v22728_v42 = vrot.slane %v22709_v9, %v23798_v35 }
 0xa59   :  { %12751 = vmatpush1.bf16.msra.mxu0 %v20215_v23  ;;  %12593 = vmatprep.subr.bf16.mxu1 %v20220_v34  ;;  %v22733_v34 = vrot.slane %v22709_v9, %v21927_v63 }
 0xa5a   :  { %12752 = vmatprep.subr.bf16.mxu0 %v20223_v37 }
 0xa5c   :  { %12594 = vmatpush1.bf16.msra.mxu1 %v20218_v2  ;;  %v22736_v2 = vrot.slane %v10536_v29, %v23790_v6 }
 0xa5d   :  { %12753 = vmatpush1.bf16.msra.mxu0 %v20221_v43  ;;  %12595 = vmatprep.subr.bf16.mxu1 %v20226_v5 }
 0xa5e   :  { %12754 = vmatprep.subr.bf16.mxu0 %v20229_v14 }
 0xa60   :  { %12596 = vmatpush1.bf16.msra.mxu1 %v20224_v18 }
 0xa61   :  { %12755 = vmatpush1.bf16.msra.mxu0 %v20227_v61  ;;  %12618 = vmatprep.subr.bf16.mxu1 %v20232_v17  ;;  %v22747_v61 = vrot.slane %v22709_v9, %v23790_v6 }
 0xa62   :  { %12777 = vmatprep.subr.bf16.mxu0 %v20235_v32  ;;  %v22751_v32 = vrot.slane %v10536_v29, %v23792_v50 }
 0xad7   :  { %v10625_v52 = vpop.xlane.xlu0 %10624 }
 0xad8   :  { %v10647_v22 = vmul.f32 0.0013020834, %v10625_v52 }
 0xada   :  { %v10651_v24 = vadd.f32 1e-12, %v10647_v22  ;;  %v10632_v11 = vpop.xlane.xlu1 %10631 }
 0xadb   :  { %v10648_v19 = vmul.f32 0.0013020834, %v10632_v11 }
 0xadc   :  { %21014 = vrsqrt.f32 %v10651_v24 }
 0xadd   :  { %v10652_v28 = vadd.f32 1e-12, %v10648_v19 }
 0xadf   :  { %21016 = vrsqrt.f32 %v10652_v28  ;;  %v10639_v59 = vpop.xlane.xlu0 %10638 }
 0xae0   :  { %v10649_v58 = vmul.f32 0.0013020834, %v10639_v59 }
 0xae2   :  { %v10653_v20 = vadd.f32 1e-12, %v10649_v58  ;;  %v10646_v40 = vpop.xlane.xlu1 %10645 }
 0xae3   :  { %v10650_v8 = vmul.f32 0.0013020834, %v10646_v40  ;;  %v22783_v40 = vrot.slane %v10536_v29, %v21932_v1 }
 0xae4   :  { %21018 = vrsqrt.f32 %v10653_v20 }
 0xae5   :  { %v10654_v51 = vadd.f32 1e-12, %v10650_v8 }
 0xae6   :  { %v21015_v21 = vpop.eup %21014 }
 0xae7   :  { %v10660_v49 = vmul.f32 %v21015_v21, %v22593_v38  ;;  %v10659_v57 = vmul.f32 %v21015_v21, %v22590_v54  ;;  %v10661_v23 = vmul.f32 %v21015_v21, %v22596_v26  ;;  %21020 = vrsqrt.f32 %v10654_v51 }
 0xae8   :  { %v10664_v54 = vmul.f32 %v21015_v21, %v22612_v39  ;;  %v10663_v17 = vmul.f32 %v21015_v21, %v22602_v7  ;;  %v10662_v20 = vmul.f32 %v21015_v21, %v22599_v27  ;;  %v20238_v27 = vld [vmem:[#allocation17 + $0x334] ss:$24 sps:$4 sm:$0xff]  }
 0xae9   :  { %v21017_v38 = vpop.eup %21016  ;;  %v10715_v37 = vmul.f32 %v22712_v56, %v10660_v49  ;;  %v10714_v43 = vmul.f32 %v22715_v48, %v10659_v57  ;;  %v10716_v18 = vmul.f32 %v22718_v15, %v10661_v23  ;;  %v20230_v49 = vld [vmem:[#allocation17 + $0x300] ss:$24 sps:$4 sm:$0xff]   ;;  %v20241_v21 = vld [vmem:[#allocation17 + $0x33c] ss:$24 sps:$4 sm:$0xff]  }
 0xaea   :  { %v10666_v5 = vmul.f32 %v21017_v38, %v22615_v10  ;;  %v10665_v14 = vmul.f32 %v21017_v38, %v22609_v12  ;;  %v10667_v26 = vmul.f32 %v21017_v38, %v22620_v30  ;;  %v10668_v10 = vmul.f32 %v21017_v38, %v22623_v60  ;;  %v20233_v57 = vld [vmem:[#allocation17 + $0x308] ss:$24 sps:$4 sm:$0xff]  }
 0xaeb   :  { %v22758_v30 = vadd.f32 %v22723_v36, %v10715_v37  ;;  %v22761_v22 = vadd.f32 %v22728_v42, %v10714_v43  ;;  %v22764_v24 = vadd.f32 %v22733_v34, %v10716_v18  ;;  %v10719_v7 = vmul.f32 %v22736_v2, %v10664_v54  ;;  %v20239_v18 = vld [vmem:[#allocation17 + $0x338] ss:$24 sps:$4 sm:$0xff]  }
 0xaec   :  { %v10721_v52 = vmul.f32 %v22712_v56, %v10666_v5  ;;  %v10720_v39 = vmul.f32 %v22715_v48, %v10665_v14  ;;  %v10722_v12 = vmul.f32 %v22718_v15, %v10667_v26  ;;  %v10670_v59 = vmul.f32 %v21017_v38, %v22647_v62  ;;  %v20236_v26 = vld [vmem:[#allocation17 + $0x330] ss:$24 sps:$4 sm:$0xff]  }
 0xaed   :  { %v10723_v29 = vmul.f32 %v22783_v40, %v10668_v10  ;;  %v10669_v37 = vmul.f32 %v21017_v38, %v22636_v31  ;;  %v10718_v54 = vmul.f32 %v22751_v32, %v10663_v17  ;;  %v10717_v31 = vmul.f32 %v22783_v40, %v10662_v20  ;;  %v20244_v10 = vld [vmem:[#allocation17 + $0x364] ss:$24 sps:$4 sm:$0xff]  }
 0xaee   :  { %v22767_v11 = vpop.eup %21018  ;;  %v22770_v19 = vadd.f32 %v22723_v36, %v10721_v52  ;;  %v22773_v60 = vadd.f32 %v22728_v42, %v10720_v39  ;;  %v22776_v28 = vadd.f32 %v22733_v34, %v10722_v12  ;;  %v10725_v43 = vmul.f32 %v22736_v2, %v10670_v59  ;;  %v20247_v12 = vld [vmem:[#allocation17 + $0x36c] ss:$24 sps:$4 sm:$0xff]  }
 0xaef   :  { %v10672_v58 = vmul.f32 %v22767_v11, %v22644_v47  ;;  %v10673_v8 = vmul.f32 %v22767_v11, %v22652_v4  ;;  %v10671_v47 = vmul.f32 %v22767_v11, %v22641_v55  ;;  %v22800_v4 = vrot.slane %v22709_v9, %v21932_v1 }
 0xaf0   :  { %v22789_v51 = vpack.c.bf16 %v22770_v19, %v22758_v30  ;;  %v22793_v62 = vpack.c.bf16 %v22773_v60, %v22761_v22  ;;  %v22808_v55 = vadd.f32 %v22747_v61, %v10719_v7  ;;  %v22819_v38 = vrot.slane %v22709_v9, %v23792_v50 }
 0xaf1   :  { %v10728_v23 = vmul.f32 %v22718_v15, %v10673_v8  ;;  %v22811_v5 = vpop.eup %21020  ;;  %v10727_v14 = vmul.f32 %v22712_v56, %v10672_v58  ;;  %v10726_v39 = vmul.f32 %v22715_v48, %v10671_v47  ;;  %v22832_v59 = vadd.f32 %v22747_v61, %v10725_v43  ;;  %v20250_v43 = vld [vmem:[#allocation17 + $0x394] ss:$24 sps:$4 sm:$0xff]  }
 0xaf2   :  { %12597 = vmatprep.mubr.bf16.mxu1 %v22789_v51  ;;  %12756 = vmatprep.mubr.bf16.mxu0 %v22789_v51  ;;  %23800 = vst [vmem:[#allocation42_spill] sm:$0xff] %v22808_v55  ;;  %v10678_v17 = vmul.f32 %v22811_v5, %v22674_v46  ;;  %v10677_v52 = vmul.f32 %v22811_v5, %v22669_v41 }
 0xaf3   :  { %12598 = vmatmul.mubr.bf16.vlgmr.msra.gmra.mrb[112].mxu1 %v22793_v62  ;;  %12757 = vmatmul.mubr.bf16.vlgmr.msra.gmra.mrb[56].mxu0 %v22793_v62  ;;  %v10679_v9 = vmul.f32 %v22811_v5, %v22677_v13  ;;  %v22829_v7 = vadd.f32 %v22733_v34, %v10728_v23  ;;  %23801 = vst [vmem:[#allocation48_spill] sm:$0xff] %v22832_v59 }
 0xaf4   :  { %12619 = vmatpush1.bf16.msra.mxu1 %v20230_v49  ;;  %12778 = vmatpush1.bf16.msra.mxu0 %v20233_v57  ;;  %v10733_v46 = vmul.f32 %v22712_v56, %v10678_v17  ;;  %v10732_v58 = vmul.f32 %v22715_v48, %v10677_v52  ;;  %v22837_v41 = vadd.f32 %v22800_v4, %v10723_v29  ;;  %v20245_v29 = vld [vmem:[#allocation17 + $0x368] ss:$24 sps:$4 sm:$0xff]   ;;  %v20251_v17 = vld [vmem:[#allocation17 + $0x398] ss:$24 sps:$4 sm:$0xff]  }
 0xaf5   :  { %12620 = vmatprep.subr.bf16.mxu1 %v20238_v27  ;;  %12779 = vmatprep.subr.bf16.mxu0 %v20241_v21  ;;  %v10724_v20 = vmul.f32 %v22751_v32, %v10669_v37  ;;  %v22841_v8 = vadd.f32 %v22723_v36, %v10727_v14  ;;  %v10734_v13 = vmul.f32 %v22718_v15, %v10679_v9  ;;  %v20242_v21 = vld [vmem:[#allocation17 + $0x360] ss:$24 sps:$4 sm:$0xff]  }
 0xaf6   :  { %v22845_v49 = vadd.f32 %v22819_v38, %v10718_v54  ;;  %v10676_v57 = vmul.f32 %v22767_v11, %v22680_v45  ;;  %v22850_v56 = vadd.f32 %v22723_v36, %v10733_v46  ;;  %v22853_v48 = vadd.f32 %v22728_v42, %v10726_v39  ;;  %v20253_v54 = vld [vmem:[#allocation17 + $0x39c] ss:$24 sps:$4 sm:$0xff]   ;;  %v20259_v39 = vld [vmem:[#allocation17 + $0x3cc] ss:$24 sps:$4 sm:$0xff]   ;;  %v20257_v9 = vld [vmem:[#allocation17 + $0x3c8] ss:$24 sps:$4 sm:$0xff]  }
 0xaf7   :  { %v22856_v47 = vadd.f32 %v22728_v42, %v10732_v58  ;;  %v22859_v15 = vadd.f32 %v22733_v34, %v10734_v13  ;;  %v22862_v27 = vadd.f32 %v22819_v38, %v10724_v20  ;;  %v10682_v45 = vmul.f32 %v22811_v5, %v22701_v0  ;;  %v20265_v46 = vld [vmem:[#allocation17 + $0x3fc] ss:$24 sps:$4 sm:$0xff]   ;;  %v20260_v58 = vld [vmem:[#allocation17 + $0x3f0] ss:$24 sps:$4 sm:$0xff]  }
 0xaf8   :  { %12621 = vmatpush1.bf16.msra.mxu1 %v20236_v26  ;;  %12780 = vmatpush1.bf16.msra.mxu0 %v20239_v18  ;;  %v22868_v36 = vpack.c.bf16 %v22850_v56, %v22841_v8  ;;  %v10731_v23 = vmul.f32 %v22736_v2, %v10676_v57  ;;  %v22876_v34 = vadd.f32 %v22800_v4, %v10717_v31  ;;  %v20248_v18 = vld [vmem:[#allocation17 + $0x390] ss:$24 sps:$4 sm:$0xff]   ;;  %v20268_v13 = vld [vmem:[#allocation17 + $0x424] ss:$24 sps:$4 sm:$0xff]  }
 0xaf9   :  { %12622 = vmatprep.subr.bf16.mxu1 %v20244_v10  ;;  %12781 = vmatprep.subr.bf16.mxu0 %v20247_v12  ;;  %v22872_v42 = vpack.c.bf16 %v22856_v47, %v22853_v48  ;;  %v10737_v37 = vmul.f32 %v22736_v2, %v10682_v45  ;;  %v10675_v0 = vmul.f32 %v22767_v11, %v22664_v44  ;;  %v20254_v12 = vld [vmem:[#allocation17 + $0x3c0] ss:$24 sps:$4 sm:$0xff]   ;;  %v20271_v57 = vld [vmem:[#allocation17 + $0x42c] ss:$24 sps:$4 sm:$0xff]  }
 0xafa   :  { %12607 = vmatprep.mubr.bf16.mxu1 %v22868_v36  ;;  %12766 = vmatprep.mubr.bf16.mxu0 %v22868_v36  ;;  %v22884_v14 = vadd.f32 %v22747_v61, %v10731_v23  ;;  %v10681_v26 = vmul.f32 %v22811_v5, %v22694_v53  ;;  %v22892_v2 = vpack.c.bf16 %v22837_v41, %v22876_v34  ;;  %v20256_v53 = vld [vmem:[#allocation17 + $0x3c4] ss:$24 sps:$4 sm:$0xff]   ;;  %v20263_v20 = vld [vmem:[#allocation17 + $0x3f8] ss:$24 sps:$4 sm:$0xff]   ;;  %v20269_v45 = vld [vmem:[#allocation17 + $0x428] ss:$24 sps:$4 sm:$0xff]  }
 0xafb   :  { %12608 = vmatmul.mubr.bf16.gmra.mrb[116].mxu1 %v22872_v42  ;;  %12767 = vmatmul.mubr.bf16.gmra.mrb[60].mxu0 %v22872_v42  ;;  %v22895_v44 = vadd.f32 %v22747_v61, %v10737_v37  ;;  %v10730_v31 = vmul.f32 %v22751_v32, %v10675_v0  ;;  %v20272_v23 = vld [vmem:[#allocation17 + $0x450] ss:$24 sps:$4 sm:$0xff]   ;;  %v20280_v0 = vld [vmem:[#allocation17 + $0x484] ss:$24 sps:$4 sm:$0xff]  }
 0xafc   :  { %23802 = vst [vmem:[#allocation52_spill] sm:$0xff] %v22884_v14  ;;  %12623 = vmatpush1.bf16.msra.mxu1 %v20242_v21  ;;  %12782 = vmatpush1.bf16.msra.mxu0 %v20245_v29  ;;  %v10736_v52 = vmul.f32 %v22751_v32, %v10681_v26  ;;  %v20262_v32 = vld [vmem:[#allocation17 + $0x3f4] ss:$24 sps:$4 sm:$0xff]   ;;  %v20275_v37 = vld [vmem:[#allocation17 + $0x458] ss:$24 sps:$4 sm:$0xff]  }
 0xafd   :  { %23803 = vst [vmem:[#allocation47_spill] sm:$0xff] %v22895_v44  ;;  %12650 = vmatprep.mubr.bf16.mxu1 %v22892_v2  ;;  %12809 = vmatprep.mubr.bf16.mxu0 %v22892_v2  ;;  %v22902_v10 = vadd.f32 %v22819_v38, %v10730_v31  ;;  %v20274_v21 = vld [vmem:[#allocation17 + $0x454] ss:$24 sps:$4 sm:$0xff]   ;;  %v20281_v26 = vld [vmem:[#allocation17 + $0x488] ss:$24 sps:$4 sm:$0xff]  }
 0xafe   :  { %12624 = vmatprep.subr.bf16.mxu1 %v20250_v43  ;;  %12783 = vmatprep.subr.bf16.mxu0 %v20253_v54  ;;  %v22905_v61 = vadd.f32 %v22819_v38, %v10736_v52  ;;  %v20266_v38 = vld [vmem:[#allocation17 + $0x420] ss:$24 sps:$4 sm:$0xff]   ;;  %v20277_v29 = vld [vmem:[#allocation17 + $0x45c] ss:$24 sps:$4 sm:$0xff]   ;;  %v20283_v43 = vld [vmem:[#allocation17 + $0x48c] ss:$24 sps:$4 sm:$0xff]  }
 0xaff   :  { %23804 = vst [vmem:[#allocation41_spill] sm:$0xff] %v22902_v10  ;;  %v20278_v54 = vld [vmem:[#allocation17 + $0x480] ss:$24 sps:$4 sm:$0xff]   ;;  %v20286_v31 = vld [vmem:[#allocation17 + $0x4b4] ss:$24 sps:$4 sm:$0xff]  }
 0xb00   :  { %23805 = vst [vmem:[#allocation51_spill] sm:$0xff] %v22905_v61  ;;  %12625 = vmatpush1.bf16.msra.mxu1 %v20248_v18  ;;  %12784 = vmatpush1.bf16.msra.mxu0 %v20251_v17  ;;  %v20289_v18 = vld [vmem:[#allocation17 + $0x4bc] ss:$24 sps:$4 sm:$0xff]   ;;  %v20284_v17 = vld [vmem:[#allocation17 + $0x4b0] ss:$24 sps:$4 sm:$0xff]  }
 0xb01   :  { %12626 = vmatprep.subr.bf16.mxu1 %v20256_v53  ;;  %12785 = vmatprep.subr.bf16.mxu0 %v20259_v39  ;;  %v20287_v52 = vld [vmem:[#allocation17 + $0x4b8] ss:$24 sps:$4 sm:$0xff]   ;;  %v20292_v53 = vld [vmem:[#allocation17 + $0x4e4] ss:$24 sps:$4 sm:$0xff]  }
 0xb02   :  { %v20295_v39 = vld [vmem:[#allocation17 + $0x4ec] ss:$24 sps:$4 sm:$0xff]  }
 0xb04   :  { %12627 = vmatpush1.bf16.msra.mxu1 %v20254_v12  ;;  %12786 = vmatpush1.bf16.msra.mxu0 %v20257_v9  ;;  %v20290_v12 = vld [vmem:[#allocation17 + $0x4e0] ss:$24 sps:$4 sm:$0xff]  }
 0xb05   :  { %12628 = vmatprep.subr.bf16.mxu1 %v20262_v32  ;;  %12787 = vmatprep.subr.bf16.mxu0 %v20265_v46  ;;  %v20293_v9 = vld [vmem:[#allocation17 + $0x4e8] ss:$24 sps:$4 sm:$0xff]   ;;  %v20298_v32 = vld [vmem:[#allocation17 + $0x514] ss:$24 sps:$4 sm:$0xff]  }
 0xb06   :  { %v20301_v46 = vld [vmem:[#allocation17 + $0x51c] ss:$24 sps:$4 sm:$0xff]  }
 0xb08   :  { %12629 = vmatpush1.bf16.msra.mxu1 %v20260_v58  ;;  %12788 = vmatpush1.bf16.msra.mxu0 %v20263_v20  ;;  %v20296_v58 = vld [vmem:[#allocation17 + $0x510] ss:$24 sps:$4 sm:$0xff]  }
 0xb09   :  { %12630 = vmatprep.subr.bf16.mxu1 %v20268_v13  ;;  %12789 = vmatprep.subr.bf16.mxu0 %v20271_v57  ;;  %v20299_v20 = vld [vmem:[#allocation17 + $0x518] ss:$24 sps:$4 sm:$0xff]   ;;  %v20304_v13 = vld [vmem:[#allocation17 + $0x544] ss:$24 sps:$4 sm:$0xff]  }
 0xb0a   :  { %v20307_v57 = vld [vmem:[#allocation17 + $0x54c] ss:$24 sps:$4 sm:$0xff]  }
 0xb0c   :  { %12631 = vmatpush1.bf16.msra.mxu1 %v20266_v38  ;;  %12790 = vmatpush1.bf16.msra.mxu0 %v20269_v45  ;;  %v20302_v38 = vld [vmem:[#allocation17 + $0x540] ss:$24 sps:$4 sm:$0xff]  }
 0xb0d   :  { %12632 = vmatprep.subr.bf16.mxu1 %v20274_v21  ;;  %12791 = vmatprep.subr.bf16.mxu0 %v20277_v29  ;;  %v20305_v45 = vld [vmem:[#allocation17 + $0x548] ss:$24 sps:$4 sm:$0xff]   ;;  %v20310_v21 = vld [vmem:[#allocation17 + $0x574] ss:$24 sps:$4 sm:$0xff]  }
 0xb0e   :  { %v20313_v29 = vld [vmem:[#allocation17 + $0x57c] ss:$24 sps:$4 sm:$0xff]  }
 0xb10   :  { %12633 = vmatpush1.bf16.msra.mxu1 %v20272_v23  ;;  %12792 = vmatpush1.bf16.msra.mxu0 %v20275_v37  ;;  %v20308_v23 = vld [vmem:[#allocation17 + $0x570] ss:$24 sps:$4 sm:$0xff]  }
 0xb11   :  { %12634 = vmatprep.subr.bf16.mxu1 %v20280_v0  ;;  %12793 = vmatprep.subr.bf16.mxu0 %v20283_v43  ;;  %v20311_v37 = vld [vmem:[#allocation17 + $0x578] ss:$24 sps:$4 sm:$0xff]   ;;  %v20316_v0 = vld [vmem:[#allocation17 + $0x5a4] ss:$24 sps:$4 sm:$0xff]  }
 0xb12   :  { %v20319_v43 = vld [vmem:[#allocation17 + $0x5ac] ss:$24 sps:$4 sm:$0xff]  }
 0xb14   :  { %12635 = vmatpush1.bf16.msra.mxu1 %v20278_v54  ;;  %12794 = vmatpush1.bf16.msra.mxu0 %v20281_v26  ;;  %v10680_v54 = vmul.f32 %v22811_v5, %v22687_v33  ;;  %v20314_v26 = vld [vmem:[#allocation17 + $0x5a0] ss:$24 sps:$4 sm:$0xff]   ;;  %v20328_v33 = vld [vmem:[#allocation17 + $0x604] ss:$24 sps:$4 sm:$0xff]  }
 0xb15   :  { %12636 = vmatprep.subr.bf16.mxu1 %v20286_v31  ;;  %12795 = vmatprep.subr.bf16.mxu0 %v20289_v18  ;;  %v20317_v31 = vld [vmem:[#allocation17 + $0x5a8] ss:$24 sps:$4 sm:$0xff]   ;;  %v10674_v18 = vmul.f32 %v22767_v11, %v22655_v25  ;;  %v20331_v5 = vld [vmem:[#allocation17 + $0x60c] ss:$24 sps:$4 sm:$0xff]  }
 0xb16   :  { %v20326_v25 = vld [vmem:[#allocation17 + $0x600] ss:$24 sps:$4 sm:$0xff]  }
 0xb18   :  { %12637 = vmatpush1.bf16.msra.mxu1 %v20284_v17  ;;  %12796 = vmatpush1.bf16.msra.mxu0 %v20287_v52  ;;  %v20322_v17 = vld [vmem:[#allocation17 + $0x5d4] ss:$24 sps:$4 sm:$0xff]  }
 0xb19   :  { %12638 = vmatprep.subr.bf16.mxu1 %v20292_v53  ;;  %12797 = vmatprep.subr.bf16.mxu0 %v20295_v39  ;;  %v20325_v52 = vld [vmem:[#allocation17 + $0x5dc] ss:$24 sps:$4 sm:$0xff]   ;;  %v10735_v53 = vmul.f32 %v22783_v40, %v10680_v54  ;;  %v20320_v39 = vld [vmem:[#allocation17 + $0x5d0] ss:$24 sps:$4 sm:$0xff]  }
 0xb1a   :  { %v20344_v54 = vld [vmem:[#allocation17 + $0x690] ss:$24 sps:$4 sm:$0xff]  }
 0xb1c   :  { %12639 = vmatpush1.bf16.msra.mxu1 %v20290_v12  ;;  %12798 = vmatpush1.bf16.msra.mxu0 %v20293_v9  ;;  %v20323_v12 = vld [vmem:[#allocation17 + $0x5d8] ss:$24 sps:$4 sm:$0xff]   ;;  %v10729_v9 = vmul.f32 %v22783_v40, %v10674_v18  ;;  %v20355_v18 = vld [vmem:[#allocation17 + $0x6cc] ss:$24 sps:$4 sm:$0xff]  }
 0xb1d   :  { %12640 = vmatprep.subr.bf16.mxu1 %v20298_v32  ;;  %12799 = vmatprep.subr.bf16.mxu0 %v20301_v46  ;;  %v22914_v32 = vadd.f32 %v22800_v4, %v10735_v53  ;;  %v22921_v46 = vpack.c.bf16 %v22776_v28, %v22764_v24  ;;  %v20358_v53 = vld [vmem:[#allocation17 + $0x6f4] ss:$24 sps:$4 sm:$0xff]  }
 0xb1e   :  { %v22917_v11 = vadd.f32 %v22800_v4, %v10729_v9  ;;  %v20332_v4 = vld [vmem:[#allocation17 + $0x630] ss:$24 sps:$4 sm:$0xff]  }
 0xb1f   :  { %23806 = vst [vmem:[#allocation54_spill] sm:$0xff] %v22914_v32  ;;  %v20359_v9 = vld [vmem:[#allocation17 + $0x6f8] ss:$24 sps:$4 sm:$0xff]  }
 0xb20   :  { %12641 = vmatpush1.bf16.msra.mxu1 %v20296_v58  ;;  %12800 = vmatpush1.bf16.msra.mxu0 %v20299_v20  ;;  %23807 = vst [vmem:[#allocation40_spill] sm:$0xff] %v22917_v11  ;;  %v20329_v58 = vld [vmem:[#allocation17 + $0x608] ss:$24 sps:$4 sm:$0xff]   ;;  %v22925_v40 = vpack.c.bf16 %v22914_v32, %v22917_v11  ;;  %v20334_v20 = vld [vmem:[#allocation17 + $0x634] ss:$24 sps:$4 sm:$0xff]  }
 0xb21   :  { %12642 = vmatprep.subr.bf16.mxu1 %v20304_v13  ;;  %12801 = vmatprep.subr.bf16.mxu0 %v20307_v57  ;;  %v20337_v13 = vld [vmem:[#allocation17 + $0x63c] ss:$24 sps:$4 sm:$0xff]   ;;  %v20335_v57 = vld [vmem:[#allocation17 + $0x638] ss:$24 sps:$4 sm:$0xff]  }
 0xb24   :  { %12643 = vmatpush1.bf16.msra.mxu1 %v20302_v38  ;;  %12802 = vmatpush1.bf16.msra.mxu0 %v20305_v45  ;;  %v20340_v38 = vld [vmem:[#allocation17 + $0x664] ss:$24 sps:$4 sm:$0xff]  }
 0xb25   :  { %12644 = vmatprep.subr.bf16.mxu1 %v20310_v21  ;;  %12803 = vmatprep.subr.bf16.mxu0 %v20313_v29  ;;  %v20343_v45 = vld [vmem:[#allocation17 + $0x66c] ss:$24 sps:$4 sm:$0xff]   ;;  %v20338_v21 = vld [vmem:[#allocation17 + $0x660] ss:$24 sps:$4 sm:$0xff]   ;;  %v22933_v29 = vpack.c.bf16 %v22859_v15, %v22829_v7 }
 0xb28   :  { %12645 = vmatpush1.bf16.msra.mxu1 %v20308_v23  ;;  %12804 = vmatpush1.bf16.msra.mxu0 %v20311_v37  ;;  %v20341_v23 = vld [vmem:[#allocation17 + $0x668] ss:$24 sps:$4 sm:$0xff]   ;;  %v22937_v37 = vpack.c.bf16 %v22832_v59, %v22808_v55 }
 0xb29   :  { %12646 = vmatprep.subr.bf16.mxu1 %v20316_v0  ;;  %12805 = vmatprep.subr.bf16.mxu0 %v20319_v43  ;;  %v20346_v0 = vld [vmem:[#allocation17 + $0x694] ss:$24 sps:$4 sm:$0xff]  }
 0xb2a   :  { %v20349_v43 = vld [vmem:[#allocation17 + $0x69c] ss:$24 sps:$4 sm:$0xff]  }
 0xb2c   :  { %12647 = vmatpush1.bf16.msra.mxu1 %v20314_v26  ;;  %12806 = vmatpush1.bf16.msra.mxu0 %v20317_v31  ;;  %v20347_v26 = vld [vmem:[#allocation17 + $0x698] ss:$24 sps:$4 sm:$0xff]   ;;  %v20352_v31 = vld [vmem:[#allocation17 + $0x6c4] ss:$24 sps:$4 sm:$0xff]  }
 0xb2d   :  { %12648 = vmatprep.subr.bf16.mxu1 %v20322_v17  ;;  %12807 = vmatprep.subr.bf16.mxu0 %v20325_v52  ;;  %v20350_v17 = vld [vmem:[#allocation17 + $0x6c0] ss:$24 sps:$4 sm:$0xff]  }
 0xb2e   :  { %v20353_v52 = vld [vmem:[#allocation17 + $0x6c8] ss:$24 sps:$4 sm:$0xff]  }
 0xb30   :  { %12649 = vmatpush1.bf16.msra.mxu1 %v20320_v39  ;;  %12808 = vmatpush1.bf16.msra.mxu0 %v20323_v12  ;;  %v20361_v39 = vld [vmem:[#allocation17 + $0x6fc] ss:$24 sps:$4 sm:$0xff]   ;;  %v20356_v12 = vld [vmem:[#allocation17 + $0x6f0] ss:$24 sps:$4 sm:$0xff]  }
 0xb31   :  { %12671 = vmatprep.subr.bf16.mxu1 %v20328_v33  ;;  %12830 = vmatprep.subr.bf16.mxu0 %v20331_v5  ;;  %v20364_v33 = vld [vmem:[#allocation17 + $0x724] ss:$24 sps:$4 sm:$0xff]  }
 0xb32   :  { %v20367_v5 = vld [vmem:[#allocation17 + $0x72c] ss:$24 sps:$4 sm:$0xff]  }
 0xb33   :  { %12651 = vmatmul.mubr.bf16.vlgmr.msra.gmra.mrb[112].mxu1 %v22921_v46  ;;  %12810 = vmatmul.mubr.bf16.vlgmr.msra.gmra.mrb[56].mxu0 %v22921_v46 }
 0xb34   :  { %12660 = vmatprep.mubr.bf16.mxu1 %v22925_v40  ;;  %12672 = vmatpush1.bf16.msra.mxu1 %v20326_v25  ;;  %v20362_v25 = vld [vmem:[#allocation17 + $0x720] ss:$24 sps:$4 sm:$0xff]  }
 0xb35   :  { %12819 = vmatprep.mubr.bf16.mxu0 %v22925_v40  ;;  %12831 = vmatpush1.bf16.msra.mxu0 %v20329_v58  ;;  %v20365_v58 = vld [vmem:[#allocation17 + $0x728] ss:$24 sps:$4 sm:$0xff]  }
 0xb36   :  { %12673 = vmatprep.subr.bf16.mxu1 %v20334_v20  ;;  %12832 = vmatprep.subr.bf16.mxu0 %v20337_v13  ;;  %v20370_v20 = vld [vmem:[#allocation17 + $0x754] ss:$24 sps:$4 sm:$0xff]  }
 0xb37   :  { %v20373_v13 = vld [vmem:[#allocation17 + $0x75c] ss:$24 sps:$4 sm:$0xff]  }
 0xb38   :  { %12674 = vmatpush1.bf16.msra.mxu1 %v20332_v4  ;;  %v20368_v4 = vld [vmem:[#allocation17 + $0x750] ss:$24 sps:$4 sm:$0xff]  }
 0xb39   :  { %12833 = vmatpush1.bf16.msra.mxu0 %v20335_v57  ;;  %12675 = vmatprep.subr.bf16.mxu1 %v20340_v38  ;;  %v20371_v57 = vld [vmem:[#allocation17 + $0x758] ss:$24 sps:$4 sm:$0xff]   ;;  %v20376_v38 = vld [vmem:[#allocation17 + $0x784] ss:$24 sps:$4 sm:$0xff]  }
 0xb3a   :  { %12834 = vmatprep.subr.bf16.mxu0 %v20343_v45  ;;  %v20379_v45 = vld [vmem:[#allocation17 + $0x78c] ss:$24 sps:$4 sm:$0xff]  }
 0xb3b   :  { %12661 = vmatmul.mubr.bf16.gmra.mrb[116].mxu1 %v22933_v29  ;;  %12820 = vmatmul.mubr.bf16.gmra.mrb[60].mxu0 %v22933_v29 }
 0xb3c   :  { %12676 = vmatpush1.bf16.msra.mxu1 %v20338_v21  ;;  %12703 = vmatprep.mubr.bf16.mxu1 %v22937_v37  ;;  %v20374_v21 = vld [vmem:[#allocation17 + $0x780] ss:$24 sps:$4 sm:$0xff]  }
 0xb3d   :  { %12835 = vmatpush1.bf16.msra.mxu0 %v20341_v23  ;;  %12862 = vmatprep.mubr.bf16.mxu0 %v22937_v37  ;;  %v20377_v23 = vld [vmem:[#allocation17 + $0x788] ss:$24 sps:$4 sm:$0xff]  }
 0xb3e   :  { %12677 = vmatprep.subr.bf16.mxu1 %v20346_v0  ;;  %12836 = vmatprep.subr.bf16.mxu0 %v20349_v43  ;;  %v20382_v0 = vld [vmem:[#allocation17 + $0x7b4] ss:$24 sps:$4 sm:$0xff]  }
 0xb3f   :  { %v20385_v43 = vld [vmem:[#allocation17 + $0x7bc] ss:$24 sps:$4 sm:$0xff]  }
 0xb40   :  { %12678 = vmatpush1.bf16.msra.mxu1 %v20344_v54  ;;  %v20380_v54 = vld [vmem:[#allocation17 + $0x7b0] ss:$24 sps:$4 sm:$0xff]  }
 0xb41   :  { %12837 = vmatpush1.bf16.msra.mxu0 %v20347_v26  ;;  %12679 = vmatprep.subr.bf16.mxu1 %v20352_v31  ;;  %v20383_v26 = vld [vmem:[#allocation17 + $0x7b8] ss:$24 sps:$4 sm:$0xff]   ;;  %v20388_v31 = vld [vmem:[#allocation17 + $0x7e4] ss:$24 sps:$4 sm:$0xff]  }
 0xb42   :  { %12838 = vmatprep.subr.bf16.mxu0 %v20355_v18  ;;  %v20391_v18 = vld [vmem:[#allocation17 + $0x7ec] ss:$24 sps:$4 sm:$0xff]  }
 0xb44   :  { %12680 = vmatpush1.bf16.msra.mxu1 %v20350_v17  ;;  %v20386_v17 = vld [vmem:[#allocation17 + $0x7e0] ss:$24 sps:$4 sm:$0xff]  }
 0xb45   :  { %12839 = vmatpush1.bf16.msra.mxu0 %v20353_v52  ;;  %12681 = vmatprep.subr.bf16.mxu1 %v20358_v53  ;;  %v20389_v52 = vld [vmem:[#allocation17 + $0x7e8] ss:$24 sps:$4 sm:$0xff]   ;;  %v20394_v53 = vld [vmem:[#allocation17 + $0x814] ss:$24 sps:$4 sm:$0xff]  }
 0xb46   :  { %12840 = vmatprep.subr.bf16.mxu0 %v20361_v39  ;;  %v20397_v39 = vld [vmem:[#allocation17 + $0x81c] ss:$24 sps:$4 sm:$0xff]  }
 0xb48   :  { %12682 = vmatpush1.bf16.msra.mxu1 %v20356_v12  ;;  %v20392_v12 = vld [vmem:[#allocation17 + $0x810] ss:$24 sps:$4 sm:$0xff]  }
 0xb49   :  { %12841 = vmatpush1.bf16.msra.mxu0 %v20359_v9  ;;  %12683 = vmatprep.subr.bf16.mxu1 %v20364_v33  ;;  %v20395_v9 = vld [vmem:[#allocation17 + $0x818] ss:$24 sps:$4 sm:$0xff]   ;;  %v20400_v33 = vld [vmem:[#allocation17 + $0x844] ss:$24 sps:$4 sm:$0xff]  }
 0xb4a   :  { %12842 = vmatprep.subr.bf16.mxu0 %v20367_v5  ;;  %v20403_v5 = vld [vmem:[#allocation17 + $0x84c] ss:$24 sps:$4 sm:$0xff]  }
 0xb4c   :  { %12684 = vmatpush1.bf16.msra.mxu1 %v20362_v25  ;;  %v20398_v25 = vld [vmem:[#allocation17 + $0x840] ss:$24 sps:$4 sm:$0xff]  }
 0xb4d   :  { %12843 = vmatpush1.bf16.msra.mxu0 %v20365_v58  ;;  %12685 = vmatprep.subr.bf16.mxu1 %v20370_v20  ;;  %v20401_v58 = vld [vmem:[#allocation17 + $0x848] ss:$24 sps:$4 sm:$0xff]   ;;  %v20406_v20 = vld [vmem:[#allocation17 + $0x874] ss:$24 sps:$4 sm:$0xff]  }
 0xb4e   :  { %12844 = vmatprep.subr.bf16.mxu0 %v20373_v13  ;;  %v20409_v13 = vld [vmem:[#allocation17 + $0x87c] ss:$24 sps:$4 sm:$0xff]  }
 0xb50   :  { %12686 = vmatpush1.bf16.msra.mxu1 %v20368_v4  ;;  %v20404_v4 = vld [vmem:[#allocation17 + $0x870] ss:$24 sps:$4 sm:$0xff]  }
 0xb51   :  { %12845 = vmatpush1.bf16.msra.mxu0 %v20371_v57  ;;  %12687 = vmatprep.subr.bf16.mxu1 %v20376_v38  ;;  %v20407_v57 = vld [vmem:[#allocation17 + $0x878] ss:$24 sps:$4 sm:$0xff]   ;;  %v20412_v38 = vld [vmem:[#allocation17 + $0x8a4] ss:$24 sps:$4 sm:$0xff]  }
 0xb52   :  { %12846 = vmatprep.subr.bf16.mxu0 %v20379_v45  ;;  %v20415_v45 = vld [vmem:[#allocation17 + $0x8ac] ss:$24 sps:$4 sm:$0xff]  }
 0xb54   :  { %12688 = vmatpush1.bf16.msra.mxu1 %v20374_v21  ;;  %v20410_v21 = vld [vmem:[#allocation17 + $0x8a0] ss:$24 sps:$4 sm:$0xff]  }
 0xb55   :  { %12847 = vmatpush1.bf16.msra.mxu0 %v20377_v23  ;;  %12689 = vmatprep.subr.bf16.mxu1 %v20382_v0  ;;  %v20413_v23 = vld [vmem:[#allocation17 + $0x8a8] ss:$24 sps:$4 sm:$0xff]   ;;  %v20418_v0 = vld [vmem:[#allocation17 + $0x8d4] ss:$24 sps:$4 sm:$0xff]  }
 0xb56   :  { %12848 = vmatprep.subr.bf16.mxu0 %v20385_v43  ;;  %v20421_v43 = vld [vmem:[#allocation17 + $0x8dc] ss:$24 sps:$4 sm:$0xff]  }
 0xb58   :  { %12690 = vmatpush1.bf16.msra.mxu1 %v20380_v54  ;;  %v20416_v54 = vld [vmem:[#allocation17 + $0x8d0] ss:$24 sps:$4 sm:$0xff]  }
 0xb59   :  { %12849 = vmatpush1.bf16.msra.mxu0 %v20383_v26  ;;  %12691 = vmatprep.subr.bf16.mxu1 %v20388_v31  ;;  %v20419_v26 = vld [vmem:[#allocation17 + $0x8d8] ss:$24 sps:$4 sm:$0xff]   ;;  %v20424_v31 = vld [vmem:[#allocation17 + $0x14] ss:$24 sps:$4 sm:$0xff]  }
 0xb5a   :  { %12850 = vmatprep.subr.bf16.mxu0 %v20391_v18  ;;  %v22945_v18 = vpack.c.bf16 %v22862_v27, %v22845_v49 }
 0xb5c   :  { %12692 = vmatpush1.bf16.msra.mxu1 %v20386_v17  ;;  %v20422_v17 = vld [vmem:[#allocation17 + $0x10] ss:$24 sps:$4 sm:$0xff]  }
 0xb5d   :  { %12851 = vmatpush1.bf16.msra.mxu0 %v20389_v52  ;;  %12693 = vmatprep.subr.bf16.mxu1 %v20394_v53  ;;  %v22949_v52 = vpack.c.bf16 %v22895_v44, %v22884_v14  ;;  %v20427_v53 = vld [vmem:[#allocation17 + $0x44] ss:$24 sps:$4 sm:$0xff]  }
 0xb5e   :  { %12852 = vmatprep.subr.bf16.mxu0 %v20397_v39  ;;  %v20425_v39 = vld [vmem:[#allocation17 + $0x40] ss:$24 sps:$4 sm:$0xff]  }
 0xb60   :  { %12694 = vmatpush1.bf16.msra.mxu1 %v20392_v12  ;;  %v20430_v12 = vld [vmem:[#allocation17 + $0x74] ss:$24 sps:$4 sm:$0xff]  }
 0xb61   :  { %12853 = vmatpush1.bf16.msra.mxu0 %v20395_v9  ;;  %12695 = vmatprep.subr.bf16.mxu1 %v20400_v33  ;;  %v22957_v9 = vpack.c.bf16 %v22905_v61, %v22902_v10  ;;  %v20428_v33 = vld [vmem:[#allocation17 + $0x70] ss:$24 sps:$4 sm:$0xff]  }
 0xb62   :  { %12854 = vmatprep.subr.bf16.mxu0 %v20403_v5  ;;  %v20433_v5 = vld [vmem:[#allocation17 + $0xa4] ss:$24 sps:$4 sm:$0xff]  }
 0xb63   :  { %v20623_v61 = vld [vmem:[#allocation20 + $0x188] ss:$24 sps:$4 sm:$0xff]  }
 0xb64   :  { %12696 = vmatpush1.bf16.msra.mxu1 %v20398_v25  ;;  %v20431_v25 = vld [vmem:[#allocation17 + $0xa0] ss:$24 sps:$4 sm:$0xff]  }
 0xb65   :  { %12855 = vmatpush1.bf16.msra.mxu0 %v20401_v58  ;;  %12697 = vmatprep.subr.bf16.mxu1 %v20406_v20  ;;  %v20436_v58 = vld [vmem:[#allocation17 + $0xd4] ss:$24 sps:$4 sm:$0xff]   ;;  %v20434_v20 = vld [vmem:[#allocation17 + $0xd0] ss:$24 sps:$4 sm:$0xff]  }
 0xb66   :  { %12856 = vmatprep.subr.bf16.mxu0 %v20409_v13  ;;  %v20439_v13 = vld [vmem:[#allocation17 + $0x104] ss:$24 sps:$4 sm:$0xff]  }
 0xb68   :  { %12698 = vmatpush1.bf16.msra.mxu1 %v20404_v4  ;;  %v20437_v4 = vld [vmem:[#allocation17 + $0x100] ss:$24 sps:$4 sm:$0xff]  }
 0xb69   :  { %12857 = vmatpush1.bf16.msra.mxu0 %v20407_v57  ;;  %12699 = vmatprep.subr.bf16.mxu1 %v20412_v38  ;;  %v20442_v57 = vld [vmem:[#allocation17 + $0x134] ss:$24 sps:$4 sm:$0xff]   ;;  %v20440_v38 = vld [vmem:[#allocation17 + $0x130] ss:$24 sps:$4 sm:$0xff]  }
 0xb6a   :  { %12858 = vmatprep.subr.bf16.mxu0 %v20415_v45  ;;  %v20445_v45 = vld [vmem:[#allocation17 + $0x164] ss:$24 sps:$4 sm:$0xff]  }
 0xb6c   :  { %12700 = vmatpush1.bf16.msra.mxu1 %v20410_v21  ;;  %v20443_v21 = vld [vmem:[#allocation17 + $0x160] ss:$24 sps:$4 sm:$0xff]  }
 0xb6d   :  { %12859 = vmatpush1.bf16.msra.mxu0 %v20413_v23  ;;  %12701 = vmatprep.subr.bf16.mxu1 %v20418_v0  ;;  %v20446_v23 = vld [vmem:[#allocation17 + $0x190] ss:$24 sps:$4 sm:$0xff]   ;;  %v20451_v0 = vld [vmem:[#allocation17 + $0x1c4] ss:$24 sps:$4 sm:$0xff]  }
 0xb6e   :  { %12860 = vmatprep.subr.bf16.mxu0 %v20421_v43  ;;  %v20449_v43 = vld [vmem:[#allocation17 + $0x1c0] ss:$24 sps:$4 sm:$0xff]  }
 0xb70   :  { %12702 = vmatpush1.bf16.msra.mxu1 %v20416_v54  ;;  %v20454_v54 = vld [vmem:[#allocation17 + $0x1f4] ss:$24 sps:$4 sm:$0xff]  }
 0xb71   :  { %12861 = vmatpush1.bf16.msra.mxu0 %v20419_v26  ;;  %12883 = vmatprep.subr.bf16.mxu1 %v20424_v31  ;;  %v20452_v26 = vld [vmem:[#allocation17 + $0x1f0] ss:$24 sps:$4 sm:$0xff]   ;;  %v20457_v31 = vld [vmem:[#allocation17 + $0x224] ss:$24 sps:$4 sm:$0xff]  }
 0xb73   :  { %12704 = vmatmul.mubr.bf16.vlgmr.msra.gmra.mrb[112].mxu1 %v22945_v18 }
 0xb74   :  { %12863 = vmatmul.mubr.bf16.vlgmr.msra.gmra.mrb[56].mxu0 %v22945_v18  ;;  %12713 = vmatprep.mubr.bf16.mxu1 %v22949_v52 }
 0xb75   :  { %12872 = vmatprep.mubr.bf16.mxu0 %v22949_v52  ;;  %12884 = vmatpush1.bf16.msra.mxu1 %v20422_v17  ;;  %v20455_v17 = vld [vmem:[#allocation17 + $0x220] ss:$24 sps:$4 sm:$0xff]  }
 0xb76   :  { %12885 = vmatprep.subr.bf16.mxu1 %v20427_v53  ;;  %v20460_v53 = vld [vmem:[#allocation17 + $0x254] ss:$24 sps:$4 sm:$0xff]  }
 0xb79   :  { %12886 = vmatpush1.bf16.msra.mxu1 %v20425_v39  ;;  %v20458_v39 = vld [vmem:[#allocation17 + $0x250] ss:$24 sps:$4 sm:$0xff]  }
 0xb7a   :  { %12887 = vmatprep.subr.bf16.mxu1 %v20430_v12  ;;  %v20463_v12 = vld [vmem:[#allocation17 + $0x284] ss:$24 sps:$4 sm:$0xff]  }
 0xb7b   :  { %12714 = vmatmul.mubr.bf16.gmra.mrb[116].mxu1 %v22957_v9 }
 0xb7c   :  { %12873 = vmatmul.mubr.bf16.gmra.mrb[60].mxu0 %v22957_v9  ;;  %12915 = vmatprep.mubr.bf16.mxu1 %v22789_v51  ;;  %v20448_v51 = vld [vmem:[#allocation17 + $0x194] ss:$24 sps:$4 sm:$0xff]  }
 0xb7d   :  { %12888 = vmatpush1.bf16.msra.mxu1 %v20428_v33  ;;  %v20461_v33 = vld [vmem:[#allocation17 + $0x280] ss:$24 sps:$4 sm:$0xff]  }
 0xb7e   :  { %12889 = vmatprep.subr.bf16.mxu1 %v20433_v5  ;;  %v20466_v5 = vld [vmem:[#allocation17 + $0x2b4] ss:$24 sps:$4 sm:$0xff]  }
 0xb81   :  { %12890 = vmatpush1.bf16.msra.mxu1 %v20431_v25  ;;  %v20464_v25 = vld [vmem:[#allocation17 + $0x2b0] ss:$24 sps:$4 sm:$0xff]  }
 0xb82   :  { %12891 = vmatprep.subr.bf16.mxu1 %v20436_v58  ;;  %v20560_v58 = vld [vmem:[#allocation20] ss:$24 sps:$4 sm:$0xff]  }
 0xb85   :  { %12892 = vmatpush1.bf16.msra.mxu1 %v20434_v20  ;;  %v20562_v20 = vld [vmem:[#allocation20 + $0x4] ss:$24 sps:$4 sm:$0xff]  }
 0xb86   :  { %12893 = vmatprep.subr.bf16.mxu1 %v20439_v13  ;;  %v20469_v13 = vld [vmem:[#allocation17 + $0x2e4] ss:$24 sps:$4 sm:$0xff]   ;;  %15030 = vmatprep.subr.bf16.mxu0 %v20562_v20 }
 0xb87   :  { %15031 = vmatpush1.bf16.msra.mxu0 %v20560_v58  ;;  %v20596_v58 = vld [vmem:[#allocation20 + $0x120] ss:$24 sps:$4 sm:$0xff]   ;;  %v20598_v20 = vld [vmem:[#allocation20 + $0x124] ss:$24 sps:$4 sm:$0xff]  }
 0xb89   :  { %12894 = vmatpush1.bf16.msra.mxu1 %v20437_v4  ;;  %v20467_v4 = vld [vmem:[#allocation17 + $0x2e0] ss:$24 sps:$4 sm:$0xff]  }
 0xb8a   :  { %12895 = vmatprep.subr.bf16.mxu1 %v20442_v57  ;;  %v20566_v57 = vld [vmem:[#allocation20 + $0x30] ss:$24 sps:$4 sm:$0xff]  }
 0xb8d   :  { %12896 = vmatpush1.bf16.msra.mxu1 %v20440_v38  ;;  %v20568_v38 = vld [vmem:[#allocation20 + $0x34] ss:$24 sps:$4 sm:$0xff]  }
 0xb8e   :  { %12897 = vmatprep.subr.bf16.mxu1 %v20445_v45  ;;  %v20472_v45 = vld [vmem:[#allocation17 + $0x314] ss:$24 sps:$4 sm:$0xff]   ;;  %15032 = vmatprep.subr.bf16.mxu0 %v20568_v38  ;;  %v20488_v38 = vld [vmem:[#allocation17 + $0x430] ss:$24 sps:$4 sm:$0xff]  }
 0xb8f   :  { %15033 = vmatpush1.bf16.msra.mxu0 %v20566_v57  ;;  %v20604_v57 = vld [vmem:[#allocation20 + $0x154] ss:$24 sps:$4 sm:$0xff]  }
 0xb91   :  { %12898 = vmatpush1.bf16.msra.mxu1 %v20443_v21  ;;  %v20470_v21 = vld [vmem:[#allocation17 + $0x310] ss:$24 sps:$4 sm:$0xff]  }
 0xb92   :  { %12899 = vmatprep.subr.bf16.mxu1 %v20448_v51  ;;  %v20572_v51 = vld [vmem:[#allocation20 + $0x60] ss:$24 sps:$4 sm:$0xff]  }
 0xb95   :  { %12900 = vmatpush1.bf16.msra.mxu1 %v20446_v23  ;;  %v20574_v23 = vld [vmem:[#allocation20 + $0x64] ss:$24 sps:$4 sm:$0xff]  }
 0xb96   :  { %12901 = vmatprep.subr.bf16.mxu1 %v20451_v0  ;;  %v20475_v0 = vld [vmem:[#allocation17 + $0x344] ss:$24 sps:$4 sm:$0xff]   ;;  %15034 = vmatprep.subr.bf16.mxu0 %v20574_v23 }
 0xb97   :  { %15035 = vmatpush1.bf16.msra.mxu0 %v20572_v51  ;;  %v20496_v51 = vld [vmem:[#allocation17 + $0x494] ss:$24 sps:$4 sm:$0xff]  }
 0xb98   :  { %v20610_v23 = vld [vmem:[#allocation20 + $0x184] ss:$24 sps:$4 sm:$0xff]  }
 0xb99   :  { %12902 = vmatpush1.bf16.msra.mxu1 %v20449_v43  ;;  %v20473_v43 = vld [vmem:[#allocation17 + $0x340] ss:$24 sps:$4 sm:$0xff]  }
 0xb9a   :  { %12903 = vmatprep.subr.bf16.mxu1 %v20454_v54  ;;  %v20578_v54 = vld [vmem:[#allocation20 + $0x90] ss:$24 sps:$4 sm:$0xff]  }
 0xb9d   :  { %12904 = vmatpush1.bf16.msra.mxu1 %v20452_v26  ;;  %v20580_v26 = vld [vmem:[#allocation20 + $0x94] ss:$24 sps:$4 sm:$0xff]  }
 0xb9e   :  { %12905 = vmatprep.subr.bf16.mxu1 %v20457_v31  ;;  %v20478_v31 = vld [vmem:[#allocation17 + $0x374] ss:$24 sps:$4 sm:$0xff]   ;;  %15036 = vmatprep.subr.bf16.mxu0 %v20580_v26 }
 0xb9f   :  { %15037 = vmatpush1.bf16.msra.mxu0 %v20578_v54  ;;  %v20499_v54 = vld [vmem:[#allocation17 + $0x4c4] ss:$24 sps:$4 sm:$0xff]  }
 0xba0   :  { %v20616_v26 = vld [vmem:[#allocation20 + $0x1b4] ss:$24 sps:$4 sm:$0xff]  }
 0xba1   :  { %12906 = vmatpush1.bf16.msra.mxu1 %v20455_v17  ;;  %v20476_v17 = vld [vmem:[#allocation17 + $0x370] ss:$24 sps:$4 sm:$0xff]  }
 0xba2   :  { %12907 = vmatprep.subr.bf16.mxu1 %v20460_v53  ;;  %v20584_v53 = vld [vmem:[#allocation20 + $0xc0] ss:$24 sps:$4 sm:$0xff]  }
 0xba5   :  { %12908 = vmatpush1.bf16.msra.mxu1 %v20458_v39  ;;  %v20586_v39 = vld [vmem:[#allocation20 + $0xc4] ss:$24 sps:$4 sm:$0xff]  }
 0xba6   :  { %12909 = vmatprep.subr.bf16.mxu1 %v20463_v12  ;;  %v20481_v12 = vld [vmem:[#allocation17 + $0x3a4] ss:$24 sps:$4 sm:$0xff]   ;;  %15038 = vmatprep.subr.bf16.mxu0 %v20586_v39  ;;  %v20500_v39 = vld [vmem:[#allocation17 + $0x4f0] ss:$24 sps:$4 sm:$0xff]  }
 0xba7   :  { %15039 = vmatpush1.bf16.msra.mxu0 %v20584_v53  ;;  %v20502_v53 = vld [vmem:[#allocation17 + $0x4f4] ss:$24 sps:$4 sm:$0xff]  }
 0xba9   :  { %12910 = vmatpush1.bf16.msra.mxu1 %v20461_v33  ;;  %v20592_v33 = vld [vmem:[#allocation20 + $0xf4] ss:$24 sps:$4 sm:$0xff]  }
 0xbaa   :  { %12911 = vmatprep.subr.bf16.mxu1 %v20466_v5  ;;  %v20484_v5 = vld [vmem:[#allocation17 + $0x3d4] ss:$24 sps:$4 sm:$0xff]   ;;  %15040 = vmatprep.subr.bf16.mxu0 %v20592_v33 }
 0xbab   :  { %v20508_v33 = vld [vmem:[#allocation17 + $0x554] ss:$24 sps:$4 sm:$0xff]  }
 0xbad   :  { %12912 = vmatpush1.bf16.msra.mxu1 %v20464_v25  ;;  %v20482_v25 = vld [vmem:[#allocation17 + $0x3d0] ss:$24 sps:$4 sm:$0xff]  }
 0xbae   :  { %12913 = vmatprep.subr.bf16.mxu1 %v20469_v13  ;;  %v20487_v13 = vld [vmem:[#allocation17 + $0x404] ss:$24 sps:$4 sm:$0xff]  }
 0xbb1   :  { %12914 = vmatpush1.bf16.msra.mxu1 %v20467_v4  ;;  %v20602_v4 = vld [vmem:[#allocation20 + $0x150] ss:$24 sps:$4 sm:$0xff]  }
 0xbb2   :  { %12936 = vmatprep.subr.bf16.mxu1 %v20472_v45  ;;  %v20493_v45 = vld [vmem:[#allocation17 + $0x464] ss:$24 sps:$4 sm:$0xff]  }
 0xbb4   :  { %12916 = vmatmul.mubr.bf16.vlgmr.msra.gmra.mrb[120].mxu1 %v22793_v62  ;;  %v20479_v62 = vld [vmem:[#allocation17 + $0x3a0] ss:$24 sps:$4 sm:$0xff]  }
 0xbb5   :  { %12925 = vmatprep.mubr.bf16.mxu1 %v22868_v36  ;;  %12937 = vmatpush1.bf16.msra.mxu1 %v20470_v21  ;;  %v20590_v36 = vld [vmem:[#allocation20 + $0xf0] ss:$24 sps:$4 sm:$0xff]  }
 0xbb6   :  { %12938 = vmatprep.subr.bf16.mxu1 %v20475_v0  ;;  %15041 = vmatpush1.bf16.msra.mxu0 %v20590_v36  ;;  %v20491_v21 = vld [vmem:[#allocation17 + $0x460] ss:$24 sps:$4 sm:$0xff]  }
 0xbb7   :  { %15042 = vmatprep.subr.bf16.mxu0 %v20598_v20  ;;  %v20608_v0 = vld [vmem:[#allocation20 + $0x180] ss:$24 sps:$4 sm:$0xff]   ;;  %v20622_v36 = vld [vmem:[#allocation20 + $0x1e4] ss:$24 sps:$4 sm:$0xff]  }
 0xbb8   :  { %v20511_v20 = vld [vmem:[#allocation17 + $0x584] ss:$24 sps:$4 sm:$0xff]  }
 0xbb9   :  { %12939 = vmatpush1.bf16.msra.mxu1 %v20473_v43  ;;  %v20494_v43 = vld [vmem:[#allocation17 + $0x490] ss:$24 sps:$4 sm:$0xff]  }
 0xbba   :  { %12940 = vmatprep.subr.bf16.mxu1 %v20478_v31  ;;  %15043 = vmatpush1.bf16.msra.mxu0 %v20596_v58  ;;  %v20614_v31 = vld [vmem:[#allocation20 + $0x1b0] ss:$24 sps:$4 sm:$0xff]   ;;  %v20628_v58 = vld [vmem:[#allocation20 + $0x214] ss:$24 sps:$4 sm:$0xff]  }
 0xbbb   :  { %15044 = vmatprep.subr.bf16.mxu0 %v20604_v57  ;;  %v20514_v57 = vld [vmem:[#allocation17 + $0x5b4] ss:$24 sps:$4 sm:$0xff]  }
 0xbbc   :  { %12926 = vmatmul.mubr.bf16.gmra.mrb[124].mxu1 %v22872_v42  ;;  %v20485_v42 = vld [vmem:[#allocation17 + $0x400] ss:$24 sps:$4 sm:$0xff]  }
 0xbbd   :  { %12941 = vmatpush1.bf16.msra.mxu1 %v20476_v17  ;;  %12968 = vmatprep.mubr.bf16.mxu1 %v22892_v2  ;;  %v20490_v2 = vld [vmem:[#allocation17 + $0x434] ss:$24 sps:$4 sm:$0xff]   ;;  %v20497_v17 = vld [vmem:[#allocation17 + $0x4c0] ss:$24 sps:$4 sm:$0xff]  }
 0xbbe   :  { %12942 = vmatprep.subr.bf16.mxu1 %v20481_v12  ;;  %15045 = vmatpush1.bf16.msra.mxu0 %v20602_v4  ;;  %v20505_v12 = vld [vmem:[#allocation17 + $0x524] ss:$24 sps:$4 sm:$0xff]  }
 0xbbf   :  { %15046 = vmatprep.subr.bf16.mxu0 %v20610_v23  ;;  %v20634_v4 = vld [vmem:[#allocation20 + $0x244] ss:$24 sps:$4 sm:$0xff]   ;;  %v20644_v23 = vld [vmem:[#allocation20 + $0x2a0] ss:$24 sps:$4 sm:$0xff]  }
 0xbc1   :  { %12943 = vmatpush1.bf16.msra.mxu1 %v20479_v62  ;;  %v20503_v62 = vld [vmem:[#allocation17 + $0x520] ss:$24 sps:$4 sm:$0xff]  }
 0xbc2   :  { %12944 = vmatprep.subr.bf16.mxu1 %v20484_v5  ;;  %15047 = vmatpush1.bf16.msra.mxu0 %v20608_v0  ;;  %v20620_v5 = vld [vmem:[#allocation20 + $0x1e0] ss:$24 sps:$4 sm:$0xff]   ;;  %v20646_v0 = vld [vmem:[#allocation20 + $0x2a4] ss:$24 sps:$4 sm:$0xff]  }
 0xbc3   :  { %15048 = vmatprep.subr.bf16.mxu0 %v20616_v26  ;;  %v20652_v26 = vld [vmem:[#allocation20 + $0x2d4] ss:$24 sps:$4 sm:$0xff]  }
 0xbc5   :  { %12945 = vmatpush1.bf16.msra.mxu1 %v20482_v25  ;;  %v20506_v25 = vld [vmem:[#allocation17 + $0x550] ss:$24 sps:$4 sm:$0xff]  }
 0xbc6   :  { %12946 = vmatprep.subr.bf16.mxu1 %v20487_v13  ;;  %15049 = vmatpush1.bf16.msra.mxu0 %v20614_v31  ;;  %v20626_v13 = vld [vmem:[#allocation20 + $0x210] ss:$24 sps:$4 sm:$0xff]  }
 0xbc7   :  { %15050 = vmatprep.subr.bf16.mxu0 %v20622_v36  ;;  %v20650_v31 = vld [vmem:[#allocation20 + $0x2d0] ss:$24 sps:$4 sm:$0xff]  }
 0xbc8   :  { %v20524_v36 = vld [vmem:[#allocation17 + $0x670] ss:$24 sps:$4 sm:$0xff]  }
 0xbc9   :  { %12947 = vmatpush1.bf16.msra.mxu1 %v20485_v42  ;;  %v20509_v42 = vld [vmem:[#allocation17 + $0x580] ss:$24 sps:$4 sm:$0xff]  }
 0xbca   :  { %12948 = vmatprep.subr.bf16.mxu1 %v20490_v2  ;;  %15051 = vmatpush1.bf16.msra.mxu0 %v20620_v5  ;;  %v20632_v2 = vld [vmem:[#allocation20 + $0x240] ss:$24 sps:$4 sm:$0xff]  }
 0xbcb   :  { %15052 = vmatprep.subr.bf16.mxu0 %v20628_v58  ;;  %v20527_v5 = vld [vmem:[#allocation17 + $0x6a0] ss:$24 sps:$4 sm:$0xff]  }
 0xbcc   :  { %v20533_v58 = vld [vmem:[#allocation17 + $0x700] ss:$24 sps:$4 sm:$0xff]  }
 0xbcd   :  { %12949 = vmatpush1.bf16.msra.mxu1 %v20488_v38  ;;  %v20512_v38 = vld [vmem:[#allocation17 + $0x5b0] ss:$24 sps:$4 sm:$0xff]  }
 0xbce   :  { %12950 = vmatprep.subr.bf16.mxu1 %v20493_v45  ;;  %15053 = vmatpush1.bf16.msra.mxu0 %v20626_v13  ;;  %v20640_v45 = vld [vmem:[#allocation20 + $0x274] ss:$24 sps:$4 sm:$0xff]  }
 0xbcf   :  { %15054 = vmatprep.subr.bf16.mxu0 %v20634_v4  ;;  %v20536_v13 = vld [vmem:[#allocation17 + $0x730] ss:$24 sps:$4 sm:$0xff]   ;;  %v20544_v4 = vld [vmem:[#allocation17 + $0x794] ss:$24 sps:$4 sm:$0xff]  }
 0xbd1   :  { %12951 = vmatpush1.bf16.msra.mxu1 %v20491_v21  ;;  %v20517_v21 = vld [vmem:[#allocation17 + $0x5e4] ss:$24 sps:$4 sm:$0xff]  }
 0xbd2   :  { %12952 = vmatprep.subr.bf16.mxu1 %v20496_v51  ;;  %15055 = vmatpush1.bf16.msra.mxu0 %v20632_v2  ;;  %v20638_v51 = vld [vmem:[#allocation20 + $0x270] ss:$24 sps:$4 sm:$0xff]  }
 0xbd3   :  { %15056 = vmatprep.subr.bf16.mxu0 %v20640_v45  ;;  %v20545_v2 = vld [vmem:[#allocation17 + $0x7c0] ss:$24 sps:$4 sm:$0xff]   ;;  %v20548_v45 = vld [vmem:[#allocation17 + $0x7f0] ss:$24 sps:$4 sm:$0xff]  }
 0xbd5   :  { %12953 = vmatpush1.bf16.msra.mxu1 %v20494_v43  ;;  %v20515_v43 = vld [vmem:[#allocation17 + $0x5e0] ss:$24 sps:$4 sm:$0xff]  }
 0xbd6   :  { %12954 = vmatprep.subr.bf16.mxu1 %v20499_v54  ;;  %15057 = vmatpush1.bf16.msra.mxu0 %v20638_v51  ;;  %v20520_v54 = vld [vmem:[#allocation17 + $0x614] ss:$24 sps:$4 sm:$0xff]   ;;  %v20551_v51 = vld [vmem:[#allocation17 + $0x820] ss:$24 sps:$4 sm:$0xff]  }
 0xbd7   :  { %15058 = vmatprep.subr.bf16.mxu0 %v20646_v0  ;;  %v20554_v0 = vld [vmem:[#allocation17 + $0x850] ss:$24 sps:$4 sm:$0xff]  }
 0xbd9   :  { %12955 = vmatpush1.bf16.msra.mxu1 %v20497_v17  ;;  %v20518_v17 = vld [vmem:[#allocation17 + $0x610] ss:$24 sps:$4 sm:$0xff]  }
 0xbda   :  { %12956 = vmatprep.subr.bf16.mxu1 %v20502_v53  ;;  %15059 = vmatpush1.bf16.msra.mxu0 %v20644_v23  ;;  %v20523_v53 = vld [vmem:[#allocation17 + $0x644] ss:$24 sps:$4 sm:$0xff]   ;;  %v20556_v23 = vld [vmem:[#allocation17 + $0x854] ss:$24 sps:$4 sm:$0xff]  }
 0xbdb   :  { %15060 = vmatprep.subr.bf16.mxu0 %v20652_v26  ;;  %v20565_v26 = vld [vmem:[#allocation17 + $0x8b4] ss:$24 sps:$4 sm:$0xff]  }
 0xbdd   :  { %12957 = vmatpush1.bf16.msra.mxu1 %v20500_v39  ;;  %v20658_v39 = vld [vmem:[#allocation20 + $0x304] ss:$24 sps:$4 sm:$0xff]  }
 0xbde   :  { %12958 = vmatprep.subr.bf16.mxu1 %v20505_v12  ;;  %15061 = vmatpush1.bf16.msra.mxu0 %v20650_v31  ;;  %v20521_v12 = vld [vmem:[#allocation17 + $0x640] ss:$24 sps:$4 sm:$0xff]   ;;  %v20563_v31 = vld [vmem:[#allocation17 + $0x8b0] ss:$24 sps:$4 sm:$0xff]  }
 0xbdf   :  { %15083 = vmatprep.subr.bf16.mxu0 %v20658_v39  ;;  %v20577_v39 = vld [vmem:[#allocation20 + $0xc] ss:$24 sps:$4 sm:$0xff]  }
 0xbe1   :  { %12959 = vmatpush1.bf16.msra.mxu1 %v20503_v62  ;;  %v20526_v62 = vld [vmem:[#allocation17 + $0x674] ss:$24 sps:$4 sm:$0xff]  }
 0xbe2   :  { %12960 = vmatprep.subr.bf16.mxu1 %v20508_v33  ;;  %v20529_v33 = vld [vmem:[#allocation17 + $0x6a4] ss:$24 sps:$4 sm:$0xff]  }
 0xbe5   :  { %12961 = vmatpush1.bf16.msra.mxu1 %v20506_v25  ;;  %v20530_v25 = vld [vmem:[#allocation17 + $0x6d0] ss:$24 sps:$4 sm:$0xff]  }
 0xbe6   :  { %12962 = vmatprep.subr.bf16.mxu1 %v20511_v20  ;;  %v20538_v20 = vld [vmem:[#allocation17 + $0x734] ss:$24 sps:$4 sm:$0xff]  }
 0xbe9   :  { %12963 = vmatpush1.bf16.msra.mxu1 %v20509_v42  ;;  %v20541_v42 = vld [vmem:[#allocation17 + $0x764] ss:$24 sps:$4 sm:$0xff]  }
 0xbea   :  { %12964 = vmatprep.subr.bf16.mxu1 %v20514_v57  ;;  %v20547_v57 = vld [vmem:[#allocation17 + $0x7c4] ss:$24 sps:$4 sm:$0xff]  }
 0xbed   :  { %12965 = vmatpush1.bf16.msra.mxu1 %v20512_v38  ;;  %v20550_v38 = vld [vmem:[#allocation17 + $0x7f4] ss:$24 sps:$4 sm:$0xff]  }
 0xbee   :  { %12966 = vmatprep.subr.bf16.mxu1 %v20517_v21  ;;  %v20553_v21 = vld [vmem:[#allocation17 + $0x824] ss:$24 sps:$4 sm:$0xff]  }
 0xbf1   :  { %12967 = vmatpush1.bf16.msra.mxu1 %v20515_v43  ;;  %v20559_v43 = vld [vmem:[#allocation17 + $0x884] ss:$24 sps:$4 sm:$0xff]  }
 0xbf2   :  { %12989 = vmatprep.subr.bf16.mxu1 %v20520_v54  ;;  %v20557_v54 = vld [vmem:[#allocation17 + $0x880] ss:$24 sps:$4 sm:$0xff]  }
 0xbf4   :  { %12969 = vmatmul.mubr.bf16.vlgmr.msra.gmra.mrb[120].mxu1 %v22921_v46  ;;  %v20532_v46 = vld [vmem:[#allocation17 + $0x6d4] ss:$24 sps:$4 sm:$0xff]  }
 0xbf5   :  { %12978 = vmatprep.mubr.bf16.mxu1 %v22925_v40  ;;  %12990 = vmatpush1.bf16.msra.mxu1 %v20518_v17  ;;  %v20535_v40 = vld [vmem:[#allocation17 + $0x704] ss:$24 sps:$4 sm:$0xff]  }
 0xbf6   :  { %12991 = vmatprep.subr.bf16.mxu1 %v20523_v53  ;;  %v20571_v17 = vld [vmem:[#allocation17 + $0x8e4] ss:$24 sps:$4 sm:$0xff]   ;;  %v20569_v53 = vld [vmem:[#allocation17 + $0x8e0] ss:$24 sps:$4 sm:$0xff]  }
 0xbf9   :  { %12992 = vmatpush1.bf16.msra.mxu1 %v20521_v12  ;;  %v20575_v12 = vld [vmem:[#allocation20 + $0x8] ss:$24 sps:$4 sm:$0xff]  }
 0xbfa   :  { %12993 = vmatprep.subr.bf16.mxu1 %v20526_v62  ;;  %v20583_v62 = vld [vmem:[#allocation20 + $0x3c] ss:$24 sps:$4 sm:$0xff]  }
 0xbfc   :  { %12979 = vmatmul.mubr.bf16.gmra.mrb[124].mxu1 %v22933_v29  ;;  %v20539_v29 = vld [vmem:[#allocation17 + $0x760] ss:$24 sps:$4 sm:$0xff]  }
 0xbfd   :  { %12994 = vmatpush1.bf16.msra.mxu1 %v20524_v36  ;;  %13021 = vmatprep.mubr.bf16.mxu1 %v22937_v37  ;;  %v20542_v37 = vld [vmem:[#allocation17 + $0x790] ss:$24 sps:$4 sm:$0xff]   ;;  %v20581_v36 = vld [vmem:[#allocation20 + $0x38] ss:$24 sps:$4 sm:$0xff]  }
 0xbfe   :  { %12995 = vmatprep.subr.bf16.mxu1 %v20529_v33  ;;  %v20589_v33 = vld [vmem:[#allocation20 + $0x6c] ss:$24 sps:$4 sm:$0xff]  }
 0xc01   :  { %12996 = vmatpush1.bf16.msra.mxu1 %v20527_v5  ;;  %v20587_v5 = vld [vmem:[#allocation20 + $0x68] ss:$24 sps:$4 sm:$0xff]  }
 0xc02   :  { %12997 = vmatprep.subr.bf16.mxu1 %v20532_v46  ;;  %v20595_v46 = vld [vmem:[#allocation20 + $0x9c] ss:$24 sps:$4 sm:$0xff]  }
 0xc05   :  { %12998 = vmatpush1.bf16.msra.mxu1 %v20530_v25  ;;  %v20593_v25 = vld [vmem:[#allocation20 + $0x98] ss:$24 sps:$4 sm:$0xff]  }
 0xc06   :  { %12999 = vmatprep.subr.bf16.mxu1 %v20535_v40  ;;  %v20601_v40 = vld [vmem:[#allocation20 + $0xcc] ss:$24 sps:$4 sm:$0xff]  }
 0xc09   :  { %13000 = vmatpush1.bf16.msra.mxu1 %v20533_v58  ;;  %v11093_v58 = vld [vmem:[#allocation18] sm:$0x3f] }
 0xc0a   :  { %13001 = vmatprep.subr.bf16.mxu1 %v20538_v20  ;;  %v20599_v20 = vld [vmem:[#allocation20 + $0xc8] ss:$24 sps:$4 sm:$0xff]  }
 0xc0d   :  { %13002 = vmatpush1.bf16.msra.mxu1 %v20536_v13  ;;  %v22977_v13 = vrot.slane %v11093_v58, %v21927_v63 }
 0xc0e   :  { %13003 = vmatprep.subr.bf16.mxu1 %v20541_v42  ;;  %v22980_v42 = vrot.slane %v11093_v58, %v23799_v3 }
 0xc11   :  { %13004 = vmatpush1.bf16.msra.mxu1 %v20539_v29  ;;  %v20605_v29 = vld [vmem:[#allocation20 + $0xf8] ss:$24 sps:$4 sm:$0xff]  }
 0xc12   :  { %13005 = vmatprep.subr.bf16.mxu1 %v20544_v4 }
 0xc15   :  { %13006 = vmatpush1.bf16.msra.mxu1 %v20542_v37  ;;  %v20613_v37 = vld [vmem:[#allocation20 + $0x12c] ss:$24 sps:$4 sm:$0xff]  }
 0xc16   :  { %13007 = vmatprep.subr.bf16.mxu1 %v20547_v57 }
 0xc19   :  { %13008 = vmatpush1.bf16.msra.mxu1 %v20545_v2 }
 0xc1a   :  { %13009 = vmatprep.subr.bf16.mxu1 %v20550_v38 }
 0xc1d   :  { %13010 = vmatpush1.bf16.msra.mxu1 %v20548_v45 }
 0xc1e   :  { %13011 = vmatprep.subr.bf16.mxu1 %v20553_v21 }
 0xc21   :  { %13012 = vmatpush1.bf16.msra.mxu1 %v20551_v51 }
 0xc22   :  { %13013 = vmatprep.subr.bf16.mxu1 %v20556_v23 }
 0xc25   :  { %13014 = vmatpush1.bf16.msra.mxu1 %v20554_v0 }
 0xc26   :  { %13015 = vmatprep.subr.bf16.mxu1 %v20559_v43 }
 0xc29   :  { %13016 = vmatpush1.bf16.msra.mxu1 %v20557_v54 }
 0xc2a   :  { %13017 = vmatprep.subr.bf16.mxu1 %v20565_v26 }
 0xc2d   :  { %13018 = vmatpush1.bf16.msra.mxu1 %v20563_v31 }
 0xc2e   :  { %13019 = vmatprep.subr.bf16.mxu1 %v20571_v17  ;;  %v20611_v17 = vld [vmem:[#allocation20 + $0x128] ss:$24 sps:$4 sm:$0xff]  }
 0xc31   :  { %13020 = vmatpush1.bf16.msra.mxu1 %v20569_v53 }
 0xc32   :  { %15189 = vmatprep.subr.bf16.mxu1 %v20577_v39 }
 0xc34   :  { %13022 = vmatmul.mubr.bf16.vlgmr.msra.gmra.mrb[120].mxu1 %v22945_v18  ;;  %v20607_v18 = vld [vmem:[#allocation20 + $0xfc] ss:$24 sps:$4 sm:$0xff]  }
 0xc35   :  { %13031 = vmatprep.mubr.bf16.mxu1 %v22949_v52  ;;  %15190 = vmatpush1.bf16.msra.mxu1 %v20575_v12  ;;  %v22974_v52 = vrot.slane %v11093_v58, %v23798_v35 }
 0xc36   :  { %15191 = vmatprep.subr.bf16.mxu1 %v20583_v62 }
 0xc39   :  { %15192 = vmatpush1.bf16.msra.mxu1 %v20581_v36 }
 0xc3a   :  { %15193 = vmatprep.subr.bf16.mxu1 %v20589_v33  ;;  %v20619_v33 = vld [vmem:[#allocation20 + $0x15c] ss:$24 sps:$4 sm:$0xff]  }
 0xc3c   :  { %13032 = vmatmul.mubr.bf16.gmra.mrb[124].mxu1 %v22957_v9  ;;  %v22983_v9 = vrot.slane %v11093_v58, %v21932_v1 }
 0xc3d   :  { %15194 = vmatpush1.bf16.msra.mxu1 %v20587_v5 }
 0xc3e   :  { %15195 = vmatprep.subr.bf16.mxu1 %v20595_v46 }
 0xc41   :  { %15196 = vmatpush1.bf16.msra.mxu1 %v20593_v25 }
 0xc42   :  { %15197 = vmatprep.subr.bf16.mxu1 %v20601_v40 }
 0xc45   :  { %15198 = vmatpush1.bf16.msra.mxu1 %v20599_v20 }
 0xc46   :  { %v12705_v4 = vpop.f32.mrb[112].mxu1  ;;  %15199 = vmatprep.subr.bf16.mxu1 %v20607_v18 }
 0xc47   :  { %v22986_v57 = vadd.f32 %v12705_v4, %v22974_v52  ;;  %v12864_v2 = vpop.f32.mrb[56].mxu0  ;;  %v12707_v38 = vpop.f32.mrb[113].mxu1 }
 0xc48   :  { %v22989_v45 = vadd.f32 %v12864_v2, %v22977_v13  ;;  %v22992_v21 = vadd.f32 %v12707_v38, %v22980_v42  ;;  %v12866_v51 = vpop.f32.mrb[57].mxu0  ;;  %v12709_v23 = vpop.f32.mrb[114].mxu1 }
 0xc49   :  { %v13042_v0 = vmul.f32 %v22986_v57, %v22986_v57  ;;  %v22997_v43 = vadd.f32 %v12866_v51, %v22983_v9  ;;  %v23000_v54 = vadd.f32 %v12709_v23, %v22974_v52  ;;  %v12868_v26 = vpop.f32.mrb[58].mxu0  ;;  %15200 = vmatpush1.bf16.msra.mxu1 %v20605_v29  ;;  %v12711_v31 = vpop.f32.mrb[115].mxu1  ;;  %v20617_v51 = vld [vmem:[#allocation20 + $0x158] ss:$24 sps:$4 sm:$0xff]   ;;  %v20625_v23 = vld [vmem:[#allocation20 + $0x18c] ss:$24 sps:$4 sm:$0xff]  }
 0xc4a   :  { %v13044_v53 = vmul.f32 %v22989_v45, %v22989_v45  ;;  %v13043_v39 = vmul.f32 %v22992_v21, %v22992_v21  ;;  %v23007_v12 = vadd.f32 %v12868_v26, %v22977_v13  ;;  %v23010_v62 = vadd.f32 %v12711_v31, %v22980_v42  ;;  %v12870_v36 = vpop.f32.mrb[59].mxu0  ;;  %15201 = vmatprep.subr.bf16.mxu1 %v20613_v37 }
 0xc4b   :  { %v13066_v5 = vmul.f32 %v22986_v57, %v13042_v0  ;;  %v13045_v46 = vmul.f32 %v22997_v43, %v22997_v43  ;;  %v13048_v25 = vmul.f32 %v23000_v54, %v23000_v54  ;;  %v23018_v40 = vadd.f32 %v12870_v36, %v22983_v9 }
 0xc4c   :  { %v13068_v58 = vmul.f32 %v22989_v45, %v13044_v53  ;;  %v13067_v20 = vmul.f32 %v22992_v21, %v13043_v39  ;;  %v13050_v18 = vmul.f32 %v23007_v12, %v23007_v12  ;;  %v13049_v29 = vmul.f32 %v23010_v62, %v23010_v62 }
 0xc4d   :  { %v13090_v4 = vmul.f32 0.044715, %v13066_v5  ;;  %v13069_v37 = vmul.f32 %v22997_v43, %v13045_v46  ;;  %v13072_v2 = vmul.f32 %v23000_v54, %v13048_v25  ;;  %v13051_v38 = vmul.f32 %v23018_v40, %v23018_v40  ;;  %15202 = vmatpush1.bf16.msra.mxu1 %v20611_v17 }
 0xc4e   :  { %v13092_v0 = vmul.f32 0.044715, %v13068_v58  ;;  %v13091_v26 = vmul.f32 0.044715, %v13067_v20  ;;  %v13074_v31 = vmul.f32 %v23007_v12, %v13050_v18  ;;  %v13073_v53 = vmul.f32 %v23010_v62, %v13049_v29  ;;  %v12715_v39 = vpop.f32.mrb[116].mxu1  ;;  %15203 = vmatprep.subr.bf16.mxu1 %v20619_v33 }
 0xc4f   :  { %v13114_v36 = vadd.f32 %v22986_v57, %v13090_v4  ;;  %v13093_v5 = vmul.f32 0.044715, %v13069_v37  ;;  %v13096_v46 = vmul.f32 0.044715, %v13072_v2  ;;  %v13075_v25 = vmul.f32 %v23018_v40, %v13051_v38  ;;  %v12874_v16 = vpop.f32.mrb[60].mxu0  ;;  %v12717_v44 = vpop.f32.mrb[117].mxu1 }
 0xc50   :  { %v13116_v17 = vadd.f32 %v22989_v45, %v13092_v0  ;;  %v13115_v58 = vadd.f32 %v22992_v21, %v13091_v26  ;;  %v13098_v20 = vmul.f32 0.044715, %v13074_v31  ;;  %v13097_v14 = vmul.f32 0.044715, %v13073_v53  ;;  %v12876_v18 = vpop.f32.mrb[61].mxu0  ;;  %v12719_v10 = vpop.f32.mrb[118].mxu1 }
 0xc51   :  { %v20631_v29 = vld [vmem:[#allocation20 + $0x1bc] ss:$24 sps:$4 sm:$0xff]   ;;  %v13138_v32 = vmul.f32 0.7978846, %v13114_v36  ;;  %v13117_v33 = vadd.f32 %v22997_v43, %v13093_v5  ;;  %v13120_v4 = vadd.f32 %v23000_v54, %v13096_v46  ;;  %v13099_v37 = vmul.f32 0.044715, %v13075_v25  ;;  %15204 = vmatpush1.bf16.msra.mxu1 %v20617_v51 }
 0xc52   :  { %v12878_v2 = vpop.f32.mrb[62].mxu0  ;;  %v12721_v38 = vpop.f32.mrb[119].mxu1  ;;  %v13140_v55 = vmul.f32 0.7978846, %v13116_v17  ;;  %v13139_v11 = vmul.f32 0.7978846, %v13115_v58  ;;  %v13122_v0 = vadd.f32 %v23007_v12, %v13098_v20  ;;  %v13121_v26 = vadd.f32 %v23010_v62, %v13097_v14  ;;  %15205 = vmatprep.subr.bf16.mxu1 %v20625_v23 }
 0xc53   :  { %v12880_v31 = vpop.f32.mrb[63].mxu0  ;;  %21022 = vtanh.f32 %v13138_v32  ;;  %v13141_v53 = vmul.f32 0.7978846, %v13117_v33  ;;  %v13144_v59 = vmul.f32 0.7978846, %v13120_v4  ;;  %v13123_v36 = vadd.f32 %v23018_v40, %v13099_v37 }
 0xc54   :  { %21024 = vtanh.f32 %v13140_v55  ;;  %v13146_v5 = vmul.f32 0.7978846, %v13122_v0  ;;  %v13145_v46 = vmul.f32 0.7978846, %v13121_v26  ;;  %v23042_v25 = vadd.f32 %v12715_v39, %v22974_v52  ;;  %v20629_v32 = vld [vmem:[#allocation20 + $0x1b8] ss:$24 sps:$4 sm:$0xff]  }
 0xc55   :  { %21026 = vtanh.f32 %v13139_v11  ;;  %v13147_v51 = vmul.f32 0.7978846, %v13123_v36  ;;  %v23045_v17 = vadd.f32 %v12874_v16, %v22977_v13  ;;  %v23048_v14 = vadd.f32 %v12717_v44, %v22980_v42  ;;  %15206 = vmatpush1.bf16.msra.mxu1 %v20623_v61  ;;  %v20637_v11 = vld [vmem:[#allocation20 + $0x1ec] ss:$24 sps:$4 sm:$0xff]   ;;  %v20643_v37 = vld [vmem:[#allocation20 + $0x21c] ss:$24 sps:$4 sm:$0xff]  }
 0xc56   :  { %21028 = vtanh.f32 %v13141_v53  ;;  %v13054_v23 = vmul.f32 %v23042_v25, %v23042_v25  ;;  %v23053_v55 = vadd.f32 %v12876_v18, %v22983_v9  ;;  %v23056_v39 = vadd.f32 %v12719_v10, %v22974_v52  ;;  %15207 = vmatprep.subr.bf16.mxu1 %v20631_v29 }
 0xc57   :  { %21030 = vtanh.f32 %v13144_v59  ;;  %v13056_v16 = vmul.f32 %v23045_v17, %v23045_v17  ;;  %v13055_v44 = vmul.f32 %v23048_v14, %v23048_v14  ;;  %v23063_v61 = vadd.f32 %v12878_v2, %v22977_v13  ;;  %v20635_v13 = vld [vmem:[#allocation20 + $0x1e8] ss:$24 sps:$4 sm:$0xff]  }
 0xc58   :  { %21032 = vtanh.f32 %v13146_v5  ;;  %v13078_v58 = vmul.f32 %v23042_v25, %v13054_v23  ;;  %v13057_v20 = vmul.f32 %v23053_v55, %v23053_v55  ;;  %v13060_v10 = vmul.f32 %v23056_v39, %v23056_v39 }
 0xc59   :  { %21034 = vtanh.f32 %v13145_v46  ;;  %v13080_v59 = vmul.f32 %v23045_v17, %v13056_v16  ;;  %v13079_v52 = vmul.f32 %v23048_v14, %v13055_v44  ;;  %v13062_v18 = vmul.f32 %v23063_v61, %v23063_v61  ;;  %15208 = vmatpush1.bf16.msra.mxu1 %v20629_v32 }
 0xc5a   :  { %21036 = vtanh.f32 %v13147_v51  ;;  %v13102_v29 = vmul.f32 0.044715, %v13078_v58  ;;  %v13081_v33 = vmul.f32 %v23053_v55, %v13057_v20  ;;  %v13084_v4 = vmul.f32 %v23056_v39, %v13060_v10  ;;  %15209 = vmatprep.subr.bf16.mxu1 %v20637_v11  ;;  %v20641_v58 = vld [vmem:[#allocation20 + $0x218] ss:$24 sps:$4 sm:$0xff]  }
 0xc5b   :  { %v13104_v2 = vmul.f32 0.044715, %v13080_v59  ;;  %v13103_v0 = vmul.f32 0.044715, %v13079_v52  ;;  %v13086_v26 = vmul.f32 %v23063_v61, %v13062_v18  ;;  %v23078_v53 = vadd.f32 %v12721_v38, %v22980_v42 }
 0xc5c   :  { %v13126_v36 = vadd.f32 %v23042_v25, %v13102_v29  ;;  %v13105_v5 = vmul.f32 0.044715, %v13081_v33  ;;  %v13108_v46 = vmul.f32 0.044715, %v13084_v4  ;;  %v23082_v51 = vadd.f32 %v12880_v31, %v22983_v9  ;;  %v20649_v9 = vld [vmem:[#allocation20 + $0x24c] ss:$24 sps:$4 sm:$0xff]  }
 0xc5d   :  { %v21023_v32 = vpop.eup %21022  ;;  %v13128_v23 = vadd.f32 %v23045_v17, %v13104_v2  ;;  %v13127_v11 = vadd.f32 %v23048_v14, %v13103_v0  ;;  %v13110_v16 = vmul.f32 0.044715, %v13086_v26  ;;  %v13061_v44 = vmul.f32 %v23078_v53, %v23078_v53  ;;  %15210 = vmatpush1.bf16.msra.mxu1 %v20635_v13 }
 0xc5e   :  { %v21025_v42 = vpop.eup %21024  ;;  %v13186_v38 = vadd.f32 1.0, %v21023_v32  ;;  %v13150_v20 = vmul.f32 0.7978846, %v13126_v36  ;;  %v13129_v10 = vadd.f32 %v23053_v55, %v13105_v5  ;;  %v13132_v59 = vadd.f32 %v23056_v39, %v13108_v46  ;;  %15211 = vmatprep.subr.bf16.mxu1 %v20643_v37  ;;  %v20647_v37 = vld [vmem:[#allocation20 + $0x248] ss:$24 sps:$4 sm:$0xff]  }
 0xc5f   :  { %v21027_v31 = vpop.eup %21026  ;;  %v13188_v52 = vadd.f32 1.0, %v21025_v42  ;;  %v13152_v18 = vmul.f32 0.7978846, %v13128_v23  ;;  %v13151_v29 = vmul.f32 0.7978846, %v13127_v11  ;;  %v13134_v33 = vadd.f32 %v23063_v61, %v13110_v16 }
 0xc60   :  { %v21029_v4 = vpop.eup %21028  ;;  %v13210_v2 = vmul.f32 0.5, %v13186_v38  ;;  %21038 = vtanh.f32 %v13150_v20  ;;  %v13153_v13 = vmul.f32 0.7978846, %v13129_v10  ;;  %v13156_v0 = vmul.f32 0.7978846, %v13132_v59 }
 0xc61   :  { %v21031_v26 = vpop.eup %21030  ;;  %v13212_v32 = vmul.f32 0.5, %v13188_v52  ;;  %21040 = vtanh.f32 %v13152_v18  ;;  %v13158_v36 = vmul.f32 0.7978846, %v13134_v33  ;;  %v13085_v5 = vmul.f32 %v23078_v53, %v13061_v44  ;;  %15212 = vmatpush1.bf16.msra.mxu1 %v20641_v58  ;;  %v20655_v16 = vld [vmem:[#allocation20 + $0x27c] ss:$24 sps:$4 sm:$0xff]  }
 0xc62   :  { %v21033_v46 = vpop.eup %21032  ;;  %v13234_v42 = vmul.f32 %v22986_v57, %v13210_v2  ;;  %v13192_v23 = vadd.f32 1.0, %v21031_v26  ;;  %21042 = vtanh.f32 %v13151_v29  ;;  %v13063_v11 = vmul.f32 %v23082_v51, %v23082_v51  ;;  %15213 = vmatprep.subr.bf16.mxu1 %v20649_v9  ;;  %v20653_v33 = vld [vmem:[#allocation20 + $0x278] ss:$24 sps:$4 sm:$0xff]  }
 0xc63   :  { %v21035_v38 = vpop.eup %21034  ;;  %v13236_v20 = vmul.f32 %v22989_v45, %v13212_v32  ;;  %v13194_v10 = vadd.f32 1.0, %v21033_v46  ;;  %21044 = vtanh.f32 %v13153_v13  ;;  %v13109_v59 = vmul.f32 0.044715, %v13085_v5  ;;  %v20661_v13 = vld [vmem:[#allocation20 + $0x2ac] ss:$24 sps:$4 sm:$0xff]  }
 0xc64   :  { %v21037_v52 = vpop.eup %21036  ;;  %v13216_v44 = vmul.f32 0.5, %v13192_v23  ;;  %21046 = vtanh.f32 %v13156_v0  ;;  %v13087_v58 = vmul.f32 %v23082_v51, %v13063_v11  ;;  %v13187_v18 = vadd.f32 1.0, %v21027_v31 }
 0xc65   :  { %v13218_v57 = vmul.f32 0.5, %v13194_v10  ;;  %21048 = vtanh.f32 %v13158_v36  ;;  %v13133_v29 = vadd.f32 %v23078_v53, %v13109_v59  ;;  %15214 = vmatpush1.bf16.msra.mxu1 %v20647_v37  ;;  %v13193_v9 = vadd.f32 1.0, %v21035_v38 }
 0xc66   :  { %v13240_v2 = vmul.f32 %v23000_v54, %v13216_v44  ;;  %v13111_v26 = vmul.f32 0.044715, %v13087_v58  ;;  %15215 = vmatprep.subr.bf16.mxu1 %v20655_v16  ;;  %v13211_v45 = vmul.f32 0.5, %v13187_v18  ;;  %v13189_v32 = vadd.f32 1.0, %v21029_v4  ;;  %v20667_v44 = vld [vmem:[#allocation20 + $0x2dc] ss:$24 sps:$4 sm:$0xff]  }
 0xc67   :  { %v13242_v5 = vmul.f32 %v23007_v12, %v13218_v57  ;;  %v13157_v0 = vmul.f32 0.7978846, %v13133_v29  ;;  %v13217_v46 = vmul.f32 0.5, %v13193_v9  ;;  %v13195_v23 = vadd.f32 1.0, %v21037_v52  ;;  %v20659_v12 = vld [vmem:[#allocation20 + $0x2a8] ss:$24 sps:$4 sm:$0xff]  }
 0xc68   :  { %v23100_v31 = vpack.c.bf16 %v13240_v2, %v13234_v42  ;;  %v13135_v36 = vadd.f32 %v23082_v51, %v13111_v26  ;;  %v13235_v37 = vmul.f32 %v22992_v21, %v13211_v45  ;;  %v13213_v11 = vmul.f32 0.5, %v13189_v32  ;;  %v20656_v42 = vld [vmem:[#allocation20 + $0x300] ss:$24 sps:$4 sm:$0xff]   ;;  %v20664_v57 = vld [vmem:[#allocation20 + $0x334] ss:$24 sps:$4 sm:$0xff]  }
 0xc69   :  { %v23104_v38 = vpack.c.bf16 %v13242_v5, %v13236_v20  ;;  %21050 = vtanh.f32 %v13157_v0  ;;  %15216 = vmatpush1.bf16.msra.mxu1 %v20653_v33  ;;  %v13241_v54 = vmul.f32 %v23010_v62, %v13217_v46  ;;  %v13219_v16 = vmul.f32 0.5, %v13195_v23  ;;  %v20665_v2 = vld [vmem:[#allocation20 + $0x2d8] ss:$24 sps:$4 sm:$0xff]   ;;  %v20670_v5 = vld [vmem:[#allocation20 + $0x364] ss:$24 sps:$4 sm:$0xff]  }
 0xc6a   :  { %v21039_v4 = vpop.eup %21038  ;;  %v13159_v10 = vmul.f32 0.7978846, %v13135_v36  ;;  %15217 = vmatprep.subr.bf16.mxu1 %v20661_v13  ;;  %v13237_v21 = vmul.f32 %v22997_v43, %v13213_v11  ;;  %v20662_v43 = vld [vmem:[#allocation20 + $0x330] ss:$24 sps:$4 sm:$0xff]   ;;  %v20673_v13 = vld [vmem:[#allocation20 + $0x30c] ss:$24 sps:$4 sm:$0xff]  }
 0xc6b   :  { %v21041_v59 = vpop.eup %21040  ;;  %v23107_v52 = vpack.c.bf16 %v13241_v54, %v13235_v37  ;;  %v13198_v58 = vadd.f32 1.0, %v21039_v4  ;;  %v13243_v20 = vmul.f32 %v23018_v40, %v13219_v16  ;;  %v20671_v36 = vld [vmem:[#allocation20 + $0x308] ss:$24 sps:$4 sm:$0xff]  }
 0xc6c   :  { %v21043_v18 = vpop.eup %21042  ;;  %21052 = vtanh.f32 %v13159_v10  ;;  %v13200_v29 = vadd.f32 1.0, %v21041_v59  ;;  %v20668_v54 = vld [vmem:[#allocation20 + $0x360] ss:$24 sps:$4 sm:$0xff]   ;;  %v20679_v10 = vld [vmem:[#allocation20 + $0x33c] ss:$24 sps:$4 sm:$0xff]  }
 0xc6d   :  { %v21045_v62 = vpop.eup %21044  ;;  %15062 = vmatprep.mubr.bf16.mxu0 %v23107_v52  ;;  %15221 = vmatprep.mubr.bf16.mxu1 %v23107_v52  ;;  %v23113_v33 = vpack.c.bf16 %v13243_v20, %v13237_v21  ;;  %v13222_v45 = vmul.f32 0.5, %v13198_v58  ;;  %v13199_v32 = vadd.f32 1.0, %v21043_v18 }
 0xc6e   :  { %v21047_v9 = vpop.eup %21046  ;;  %15063 = vmatmul.mubr.bf16.vlgmr.msra.gmra.mrb[64].mxu0 %v23100_v31  ;;  %15218 = vmatpush1.bf16.msra.mxu1 %v20659_v12  ;;  %v13224_v46 = vmul.f32 0.5, %v13200_v29  ;;  %v13201_v12 = vadd.f32 1.0, %v21045_v62  ;;  %v20674_v29 = vld [vmem:[#allocation20 + $0x390] ss:$24 sps:$4 sm:$0xff]   ;;  %v20685_v62 = vld [vmem:[#allocation20 + $0x36c] ss:$24 sps:$4 sm:$0xff]  }
 0xc6f   :  { %v21049_v26 = vpop.eup %21048  ;;  %15084 = vmatpush1.bf16.msra.mxu0 %v20656_v42  ;;  %15219 = vmatprep.subr.bf16.mxu1 %v20667_v44  ;;  %v13204_v40 = vadd.f32 1.0, %v21047_v9  ;;  %v13246_v16 = vmul.f32 %v23042_v25, %v13222_v45  ;;  %v13223_v42 = vmul.f32 0.5, %v13199_v32  ;;  %v20676_v44 = vld [vmem:[#allocation20 + $0x394] ss:$24 sps:$4 sm:$0xff]   ;;  %v20677_v25 = vld [vmem:[#allocation20 + $0x338] ss:$24 sps:$4 sm:$0xff]  }
 0xc70   :  { %15085 = vmatprep.subr.bf16.mxu0 %v20664_v57  ;;  %v13206_v0 = vadd.f32 1.0, %v21049_v26  ;;  %v13248_v58 = vmul.f32 %v23045_v17, %v13224_v46  ;;  %v20682_v26 = vld [vmem:[#allocation20 + $0x3c4] ss:$24 sps:$4 sm:$0xff]   ;;  %v20680_v45 = vld [vmem:[#allocation20 + $0x3c0] ss:$24 sps:$4 sm:$0xff]  }
 0xc71   :  { %v13228_v23 = vmul.f32 0.5, %v13204_v40  ;;  %v13247_v17 = vmul.f32 %v23048_v14, %v13223_v42  ;;  %v20688_v14 = vld [vmem:[#allocation20 + $0x3f4] ss:$24 sps:$4 sm:$0xff]   ;;  %v20689_v46 = vld [vmem:[#allocation20 + $0x398] ss:$24 sps:$4 sm:$0xff]  }
 0xc72   :  { %15220 = vmatpush1.bf16.msra.mxu1 %v20665_v2  ;;  %v13230_v37 = vmul.f32 0.5, %v13206_v0  ;;  %v13225_v2 = vmul.f32 0.5, %v13201_v12  ;;  %v20709_v12 = vld [vmem:[#allocation20 + $0x42c] ss:$24 sps:$4 sm:$0xff]   ;;  %v20707_v42 = vld [vmem:[#allocation20 + $0x428] ss:$24 sps:$4 sm:$0xff]  }
 0xc73   :  { %v21051_v11 = vpop.eup %21050  ;;  %15086 = vmatpush1.bf16.msra.mxu0 %v20662_v43  ;;  %v13252_v4 = vmul.f32 %v23056_v39, %v13228_v23  ;;  %15242 = vmatprep.subr.bf16.mxu1 %v20673_v13  ;;  %v20683_v13 = vld [vmem:[#allocation20 + $0x368] ss:$24 sps:$4 sm:$0xff]   ;;  %v20697_v23 = vld [vmem:[#allocation20 + $0x3cc] ss:$24 sps:$4 sm:$0xff]  }
 0xc74   :  { %v13205_v59 = vadd.f32 1.0, %v21051_v11  ;;  %15087 = vmatprep.subr.bf16.mxu0 %v20670_v5  ;;  %v13254_v21 = vmul.f32 %v23063_v61, %v13230_v37  ;;  %v13249_v32 = vmul.f32 %v23053_v55, %v13225_v2  ;;  %v20686_v55 = vld [vmem:[#allocation20 + $0x3f0] ss:$24 sps:$4 sm:$0xff]   ;;  %v20700_v11 = vld [vmem:[#allocation20 + $0x454] ss:$24 sps:$4 sm:$0xff]  }
 0xc75   :  { %v23120_v20 = vpack.c.bf16 %v13252_v4, %v13246_v16  ;;  %15222 = vmatmul.mubr.bf16.vlgmr.msra.gmra.mrb[128].mxu1 %v23100_v31  ;;  %v20695_v37 = vld [vmem:[#allocation20 + $0x3c8] ss:$24 sps:$4 sm:$0xff]   ;;  %v20701_v4 = vld [vmem:[#allocation20 + $0x3f8] ss:$24 sps:$4 sm:$0xff]   ;;  %v20727_v2 = vld [vmem:[#allocation20 + $0x4bc] ss:$24 sps:$4 sm:$0xff]  }
 0xc76   :  { %v21053_v18 = vpop.eup %21052  ;;  %v13229_v57 = vmul.f32 0.5, %v13205_v59  ;;  %15243 = vmatpush1.bf16.msra.mxu1 %v20671_v36  ;;  %v23123_v39 = vpack.c.bf16 %v13254_v21, %v13248_v58  ;;  %v20692_v36 = vld [vmem:[#allocation20 + $0x420] ss:$24 sps:$4 sm:$0xff]   ;;  %v20698_v16 = vld [vmem:[#allocation20 + $0x450] ss:$24 sps:$4 sm:$0xff]  }
 0xc77   :  { %15088 = vmatpush1.bf16.msra.mxu0 %v20668_v54  ;;  %15244 = vmatprep.subr.bf16.mxu1 %v20679_v10  ;;  %v13207_v9 = vadd.f32 1.0, %v21053_v18  ;;  %v20703_v54 = vld [vmem:[#allocation20 + $0x3fc] ss:$24 sps:$4 sm:$0xff]   ;;  %v20704_v59 = vld [vmem:[#allocation20 + $0x480] ss:$24 sps:$4 sm:$0xff]  }
 0xc78   :  { %v13253_v61 = vmul.f32 %v23078_v53, %v13229_v57  ;;  %15089 = vmatprep.subr.bf16.mxu0 %v20676_v44  ;;  %v20691_v53 = vld [vmem:[#allocation20 + $0x39c] ss:$24 sps:$4 sm:$0xff]   ;;  %v20710_v21 = vld [vmem:[#allocation20 + $0x4b0] ss:$24 sps:$4 sm:$0xff]  }
 0xc79   :  { %v13231_v43 = vmul.f32 0.5, %v13207_v9  ;;  %v20706_v10 = vld [vmem:[#allocation20 + $0x484] ss:$24 sps:$4 sm:$0xff]   ;;  %v20712_v44 = vld [vmem:[#allocation20 + $0x4b4] ss:$24 sps:$4 sm:$0xff]  }
 0xc7a   :  { %v23127_v40 = vpack.c.bf16 %v13253_v61, %v13247_v17  ;;  %15245 = vmatpush1.bf16.msra.mxu1 %v20677_v25  ;;  %v20715_v58 = vld [vmem:[#allocation20 + $0x45c] ss:$24 sps:$4 sm:$0xff]   ;;  %v20713_v18 = vld [vmem:[#allocation20 + $0x458] ss:$24 sps:$4 sm:$0xff]   ;;  %v20721_v25 = vld [vmem:[#allocation20 + $0x48c] ss:$24 sps:$4 sm:$0xff]  }
 0xc7b   :  { %15090 = vmatpush1.bf16.msra.mxu0 %v20674_v29  ;;  %15246 = vmatprep.subr.bf16.mxu1 %v20685_v62  ;;  %v13255_v5 = vmul.f32 %v23082_v51, %v13231_v43  ;;  %v20694_v51 = vld [vmem:[#allocation20 + $0x424] ss:$24 sps:$4 sm:$0xff]   ;;  %v20716_v29 = vld [vmem:[#allocation20 + $0x4e0] ss:$24 sps:$4 sm:$0xff]   ;;  %v20724_v9 = vld [vmem:[#allocation20 + $0x514] ss:$24 sps:$4 sm:$0xff]  }
 0xc7c   :  { %15072 = vmatprep.mubr.bf16.mxu0 %v23127_v40  ;;  %15231 = vmatprep.mubr.bf16.mxu1 %v23127_v40  ;;  %v20718_v57 = vld [vmem:[#allocation20 + $0x4e4] ss:$24 sps:$4 sm:$0xff]   ;;  %v20719_v62 = vld [vmem:[#allocation20 + $0x488] ss:$24 sps:$4 sm:$0xff]   ;;  %v20725_v61 = vld [vmem:[#allocation20 + $0x4b8] ss:$24 sps:$4 sm:$0xff]  }
 0xc7d   :  { %15073 = vmatmul.mubr.bf16.gmra.mrb[68].mxu0 %v23120_v20  ;;  %15091 = vmatprep.subr.bf16.mxu0 %v20682_v26  ;;  %v23134_v0 = vpack.c.bf16 %v13255_v5, %v13249_v32  ;;  %v20722_v17 = vld [vmem:[#allocation20 + $0x510] ss:$24 sps:$4 sm:$0xff]   ;;  %v20730_v26 = vld [vmem:[#allocation20 + $0x544] ss:$24 sps:$4 sm:$0xff]   ;;  %v20736_v32 = vld [vmem:[#allocation20 + $0x574] ss:$24 sps:$4 sm:$0xff]  }
 0xc7e   :  { %15115 = vmatprep.mubr.bf16.mxu0 %v23113_v33  ;;  %15232 = vmatmul.mubr.bf16.gmra.mrb[132].mxu1 %v23120_v20  ;;  %v20733_v43 = vld [vmem:[#allocation20 + $0x4ec] ss:$24 sps:$4 sm:$0xff]   ;;  %v20739_v5 = vld [vmem:[#allocation20 + $0x51c] ss:$24 sps:$4 sm:$0xff]  }
 0xc7f   :  { %15092 = vmatpush1.bf16.msra.mxu0 %v20680_v45  ;;  %15247 = vmatpush1.bf16.msra.mxu1 %v20683_v13  ;;  %v20728_v45 = vld [vmem:[#allocation20 + $0x540] ss:$24 sps:$4 sm:$0xff]  }
 0xc80   :  { %15274 = vmatprep.mubr.bf16.mxu1 %v23113_v33  ;;  %15093 = vmatprep.subr.bf16.mxu0 %v20688_v14  ;;  %v20731_v13 = vld [vmem:[#allocation20 + $0x4e8] ss:$24 sps:$4 sm:$0xff]  }
 0xc81   :  { %15248 = vmatprep.subr.bf16.mxu1 %v20691_v53  ;;  %v20734_v14 = vld [vmem:[#allocation20 + $0x570] ss:$24 sps:$4 sm:$0xff]  }
 0xc82   :  { %v20737_v53 = vld [vmem:[#allocation20 + $0x518] ss:$24 sps:$4 sm:$0xff]  }
 0xc83   :  { %15094 = vmatpush1.bf16.msra.mxu0 %v20686_v55  ;;  %15249 = vmatpush1.bf16.msra.mxu1 %v20689_v46  ;;  %v20742_v55 = vld [vmem:[#allocation20 + $0x5a4] ss:$24 sps:$4 sm:$0xff]  }
 0xc84   :  { %15095 = vmatprep.subr.bf16.mxu0 %v20694_v51  ;;  %15250 = vmatprep.subr.bf16.mxu1 %v20697_v23  ;;  %v20745_v46 = vld [vmem:[#allocation20 + $0x54c] ss:$24 sps:$4 sm:$0xff]   ;;  %v20740_v51 = vld [vmem:[#allocation20 + $0x5a0] ss:$24 sps:$4 sm:$0xff]  }
 0xc85   :  { %v20743_v23 = vld [vmem:[#allocation20 + $0x548] ss:$24 sps:$4 sm:$0xff]  }
 0xc87   :  { %15096 = vmatpush1.bf16.msra.mxu0 %v20692_v36  ;;  %15251 = vmatpush1.bf16.msra.mxu1 %v20695_v37  ;;  %v20748_v36 = vld [vmem:[#allocation20 + $0x5d4] ss:$24 sps:$4 sm:$0xff]  }
 0xc88   :  { %15097 = vmatprep.subr.bf16.mxu0 %v20700_v11  ;;  %15252 = vmatprep.subr.bf16.mxu1 %v20703_v54  ;;  %v20751_v37 = vld [vmem:[#allocation20 + $0x57c] ss:$24 sps:$4 sm:$0xff]   ;;  %v20746_v11 = vld [vmem:[#allocation20 + $0x5d0] ss:$24 sps:$4 sm:$0xff]  }
 0xc89   :  { %v20749_v54 = vld [vmem:[#allocation20 + $0x578] ss:$24 sps:$4 sm:$0xff]  }
 0xc8b   :  { %15098 = vmatpush1.bf16.msra.mxu0 %v20698_v16  ;;  %15253 = vmatpush1.bf16.msra.mxu1 %v20701_v4  ;;  %v20754_v16 = vld [vmem:[#allocation20 + $0x5ac] ss:$24 sps:$4 sm:$0xff]  }
 0xc8c   :  { %15099 = vmatprep.subr.bf16.mxu0 %v20706_v10  ;;  %15254 = vmatprep.subr.bf16.mxu1 %v20709_v12  ;;  %v20760_v4 = vld [vmem:[#allocation20 + $0x604] ss:$24 sps:$4 sm:$0xff]   ;;  %v20752_v10 = vld [vmem:[#allocation20 + $0x5a8] ss:$24 sps:$4 sm:$0xff]  }
 0xc8d   :  { %v20757_v12 = vld [vmem:[#allocation20 + $0x5dc] ss:$24 sps:$4 sm:$0xff]  }
 0xc8f   :  { %15100 = vmatpush1.bf16.msra.mxu0 %v20704_v59  ;;  %15255 = vmatpush1.bf16.msra.mxu1 %v20707_v42  ;;  %v20758_v59 = vld [vmem:[#allocation20 + $0x600] ss:$24 sps:$4 sm:$0xff]   ;;  %v20766_v42 = vld [vmem:[#allocation20 + $0x634] ss:$24 sps:$4 sm:$0xff]  }
 0xc90   :  { %15101 = vmatprep.subr.bf16.mxu0 %v20712_v44  ;;  %15256 = vmatprep.subr.bf16.mxu1 %v20715_v58  ;;  %v20755_v44 = vld [vmem:[#allocation20 + $0x5d8] ss:$24 sps:$4 sm:$0xff]   ;;  %v20763_v58 = vld [vmem:[#allocation20 + $0x60c] ss:$24 sps:$4 sm:$0xff]  }
 0xc93   :  { %15102 = vmatpush1.bf16.msra.mxu0 %v20710_v21  ;;  %15257 = vmatpush1.bf16.msra.mxu1 %v20713_v18  ;;  %v20764_v21 = vld [vmem:[#allocation20 + $0x630] ss:$24 sps:$4 sm:$0xff]   ;;  %v20772_v18 = vld [vmem:[#allocation20 + $0x664] ss:$24 sps:$4 sm:$0xff]  }
 0xc94   :  { %15103 = vmatprep.subr.bf16.mxu0 %v20718_v57  ;;  %15258 = vmatprep.subr.bf16.mxu1 %v20721_v25  ;;  %v20761_v57 = vld [vmem:[#allocation20 + $0x608] ss:$24 sps:$4 sm:$0xff]   ;;  %v20769_v25 = vld [vmem:[#allocation20 + $0x63c] ss:$24 sps:$4 sm:$0xff]  }
 0xc97   :  { %15104 = vmatpush1.bf16.msra.mxu0 %v20716_v29  ;;  %15259 = vmatpush1.bf16.msra.mxu1 %v20719_v62  ;;  %v20770_v29 = vld [vmem:[#allocation20 + $0x660] ss:$24 sps:$4 sm:$0xff]   ;;  %v20778_v62 = vld [vmem:[#allocation20 + $0x694] ss:$24 sps:$4 sm:$0xff]  }
 0xc98   :  { %15105 = vmatprep.subr.bf16.mxu0 %v20724_v9  ;;  %15260 = vmatprep.subr.bf16.mxu1 %v20727_v2  ;;  %v20767_v9 = vld [vmem:[#allocation20 + $0x638] ss:$24 sps:$4 sm:$0xff]   ;;  %v20775_v2 = vld [vmem:[#allocation20 + $0x66c] ss:$24 sps:$4 sm:$0xff]  }
 0xc9b   :  { %15106 = vmatpush1.bf16.msra.mxu0 %v20722_v17  ;;  %15261 = vmatpush1.bf16.msra.mxu1 %v20725_v61  ;;  %v20776_v17 = vld [vmem:[#allocation20 + $0x690] ss:$24 sps:$4 sm:$0xff]   ;;  %v20784_v61 = vld [vmem:[#allocation20 + $0x6c4] ss:$24 sps:$4 sm:$0xff]  }
 0xc9c   :  { %15107 = vmatprep.subr.bf16.mxu0 %v20730_v26  ;;  %15262 = vmatprep.subr.bf16.mxu1 %v20733_v43  ;;  %v20773_v26 = vld [vmem:[#allocation20 + $0x668] ss:$24 sps:$4 sm:$0xff]   ;;  %v20781_v43 = vld [vmem:[#allocation20 + $0x69c] ss:$24 sps:$4 sm:$0xff]  }
 0xc9f   :  { %15108 = vmatpush1.bf16.msra.mxu0 %v20728_v45  ;;  %15263 = vmatpush1.bf16.msra.mxu1 %v20731_v13  ;;  %v20782_v45 = vld [vmem:[#allocation20 + $0x6c0] ss:$24 sps:$4 sm:$0xff]   ;;  %v20790_v13 = vld [vmem:[#allocation20 + $0x6f4] ss:$24 sps:$4 sm:$0xff]  }
 0xca0   :  { %15109 = vmatprep.subr.bf16.mxu0 %v20736_v32  ;;  %15264 = vmatprep.subr.bf16.mxu1 %v20739_v5  ;;  %v20779_v32 = vld [vmem:[#allocation20 + $0x698] ss:$24 sps:$4 sm:$0xff]   ;;  %v20787_v5 = vld [vmem:[#allocation20 + $0x6cc] ss:$24 sps:$4 sm:$0xff]  }
 0xca3   :  { %15110 = vmatpush1.bf16.msra.mxu0 %v20734_v14  ;;  %15265 = vmatpush1.bf16.msra.mxu1 %v20737_v53  ;;  %v20788_v14 = vld [vmem:[#allocation20 + $0x6f0] ss:$24 sps:$4 sm:$0xff]   ;;  %v20796_v53 = vld [vmem:[#allocation20 + $0x724] ss:$24 sps:$4 sm:$0xff]  }
 0xca4   :  { %15111 = vmatprep.subr.bf16.mxu0 %v20742_v55  ;;  %15266 = vmatprep.subr.bf16.mxu1 %v20745_v46  ;;  %v20785_v55 = vld [vmem:[#allocation20 + $0x6c8] ss:$24 sps:$4 sm:$0xff]   ;;  %v20793_v46 = vld [vmem:[#allocation20 + $0x6fc] ss:$24 sps:$4 sm:$0xff]  }
 0xca7   :  { %15112 = vmatpush1.bf16.msra.mxu0 %v20740_v51  ;;  %15267 = vmatpush1.bf16.msra.mxu1 %v20743_v23  ;;  %v20794_v51 = vld [vmem:[#allocation20 + $0x720] ss:$24 sps:$4 sm:$0xff]   ;;  %v20802_v23 = vld [vmem:[#allocation20 + $0x754] ss:$24 sps:$4 sm:$0xff]  }
 0xca8   :  { %15113 = vmatprep.subr.bf16.mxu0 %v20748_v36  ;;  %15268 = vmatprep.subr.bf16.mxu1 %v20751_v37  ;;  %v20791_v36 = vld [vmem:[#allocation20 + $0x6f8] ss:$24 sps:$4 sm:$0xff]   ;;  %v20799_v37 = vld [vmem:[#allocation20 + $0x72c] ss:$24 sps:$4 sm:$0xff]  }
 0xcab   :  { %15114 = vmatpush1.bf16.msra.mxu0 %v20746_v11  ;;  %15269 = vmatpush1.bf16.msra.mxu1 %v20749_v54  ;;  %v20800_v11 = vld [vmem:[#allocation20 + $0x750] ss:$24 sps:$4 sm:$0xff]   ;;  %v20808_v54 = vld [vmem:[#allocation20 + $0x784] ss:$24 sps:$4 sm:$0xff]  }
 0xcac   :  { %15270 = vmatprep.subr.bf16.mxu1 %v20754_v16  ;;  %15136 = vmatprep.subr.bf16.mxu0 %v20760_v4  ;;  %v20797_v16 = vld [vmem:[#allocation20 + $0x728] ss:$24 sps:$4 sm:$0xff]   ;;  %v20805_v4 = vld [vmem:[#allocation20 + $0x75c] ss:$24 sps:$4 sm:$0xff]  }
 0xcae   :  { %15116 = vmatmul.mubr.bf16.vlgmr.msra.gmra.mrb[64].mxu0 %v23104_v38 }
 0xcaf   :  { %15125 = vmatprep.mubr.bf16.mxu0 %v23134_v0  ;;  %15271 = vmatpush1.bf16.msra.mxu1 %v20752_v10  ;;  %v20806_v10 = vld [vmem:[#allocation20 + $0x780] ss:$24 sps:$4 sm:$0xff]  }
 0xcb0   :  { %15272 = vmatprep.subr.bf16.mxu1 %v20757_v12  ;;  %15137 = vmatpush1.bf16.msra.mxu0 %v20758_v59  ;;  %v20814_v12 = vld [vmem:[#allocation20 + $0x7b4] ss:$24 sps:$4 sm:$0xff]   ;;  %v20803_v59 = vld [vmem:[#allocation20 + $0x758] ss:$24 sps:$4 sm:$0xff]  }
 0xcb1   :  { %15138 = vmatprep.subr.bf16.mxu0 %v20766_v42  ;;  %v20811_v42 = vld [vmem:[#allocation20 + $0x78c] ss:$24 sps:$4 sm:$0xff]  }
 0xcb3   :  { %15273 = vmatpush1.bf16.msra.mxu1 %v20755_v44  ;;  %v20812_v44 = vld [vmem:[#allocation20 + $0x7b0] ss:$24 sps:$4 sm:$0xff]  }
 0xcb4   :  { %15295 = vmatprep.subr.bf16.mxu1 %v20763_v58  ;;  %15139 = vmatpush1.bf16.msra.mxu0 %v20764_v21  ;;  %v20820_v58 = vld [vmem:[#allocation20 + $0x7e4] ss:$24 sps:$4 sm:$0xff]   ;;  %v20809_v21 = vld [vmem:[#allocation20 + $0x788] ss:$24 sps:$4 sm:$0xff]  }
 0xcb5   :  { %15140 = vmatprep.subr.bf16.mxu0 %v20772_v18  ;;  %v20817_v18 = vld [vmem:[#allocation20 + $0x7bc] ss:$24 sps:$4 sm:$0xff]  }
 0xcb6   :  { %15126 = vmatmul.mubr.bf16.gmra.mrb[68].mxu0 %v23123_v39  ;;  %15275 = vmatmul.mubr.bf16.vlgmr.msra.gmra.mrb[128].mxu1 %v23104_v38 }
 0xcb7   :  { %15284 = vmatprep.mubr.bf16.mxu1 %v23134_v0  ;;  %15296 = vmatpush1.bf16.msra.mxu1 %v20761_v57  ;;  %v20818_v57 = vld [vmem:[#allocation20 + $0x7e0] ss:$24 sps:$4 sm:$0xff]  }
 0xcb8   :  { %15297 = vmatprep.subr.bf16.mxu1 %v20769_v25  ;;  %15141 = vmatpush1.bf16.msra.mxu0 %v20770_v29  ;;  %v20826_v25 = vld [vmem:[#allocation20 + $0x814] ss:$24 sps:$4 sm:$0xff]   ;;  %v20815_v29 = vld [vmem:[#allocation20 + $0x7b8] ss:$24 sps:$4 sm:$0xff]  }
 0xcb9   :  { %15142 = vmatprep.subr.bf16.mxu0 %v20778_v62  ;;  %v20823_v62 = vld [vmem:[#allocation20 + $0x7ec] ss:$24 sps:$4 sm:$0xff]  }
 0xcbb   :  { %15298 = vmatpush1.bf16.msra.mxu1 %v20767_v9  ;;  %v20824_v9 = vld [vmem:[#allocation20 + $0x810] ss:$24 sps:$4 sm:$0xff]  }
 0xcbc   :  { %15299 = vmatprep.subr.bf16.mxu1 %v20775_v2  ;;  %15143 = vmatpush1.bf16.msra.mxu0 %v20776_v17  ;;  %v20832_v2 = vld [vmem:[#allocation20 + $0x844] ss:$24 sps:$4 sm:$0xff]   ;;  %v20821_v17 = vld [vmem:[#allocation20 + $0x7e8] ss:$24 sps:$4 sm:$0xff]  }
 0xcbd   :  { %15144 = vmatprep.subr.bf16.mxu0 %v20784_v61  ;;  %v20829_v61 = vld [vmem:[#allocation20 + $0x81c] ss:$24 sps:$4 sm:$0xff]  }
 0xcbe   :  { %15285 = vmatmul.mubr.bf16.gmra.mrb[132].mxu1 %v23123_v39 }
 0xcbf   :  { %15300 = vmatpush1.bf16.msra.mxu1 %v20773_v26  ;;  %v20830_v26 = vld [vmem:[#allocation20 + $0x840] ss:$24 sps:$4 sm:$0xff]  }
 0xcc0   :  { %15301 = vmatprep.subr.bf16.mxu1 %v20781_v43  ;;  %15145 = vmatpush1.bf16.msra.mxu0 %v20782_v45  ;;  %v20838_v43 = vld [vmem:[#allocation20 + $0x874] ss:$24 sps:$4 sm:$0xff]   ;;  %v20827_v45 = vld [vmem:[#allocation20 + $0x818] ss:$24 sps:$4 sm:$0xff]  }
 0xcc1   :  { %15146 = vmatprep.subr.bf16.mxu0 %v20790_v13  ;;  %v20835_v13 = vld [vmem:[#allocation20 + $0x84c] ss:$24 sps:$4 sm:$0xff]  }
 0xcc3   :  { %15302 = vmatpush1.bf16.msra.mxu1 %v20779_v32  ;;  %v20836_v32 = vld [vmem:[#allocation20 + $0x870] ss:$24 sps:$4 sm:$0xff]  }
 0xcc4   :  { %15303 = vmatprep.subr.bf16.mxu1 %v20787_v5  ;;  %15147 = vmatpush1.bf16.msra.mxu0 %v20788_v14  ;;  %v20844_v5 = vld [vmem:[#allocation20 + $0x8a4] ss:$24 sps:$4 sm:$0xff]   ;;  %v20833_v14 = vld [vmem:[#allocation20 + $0x848] ss:$24 sps:$4 sm:$0xff]  }
 0xcc5   :  { %15148 = vmatprep.subr.bf16.mxu0 %v20796_v53  ;;  %v20841_v53 = vld [vmem:[#allocation20 + $0x87c] ss:$24 sps:$4 sm:$0xff]  }
 0xcc7   :  { %15304 = vmatpush1.bf16.msra.mxu1 %v20785_v55  ;;  %v20842_v55 = vld [vmem:[#allocation20 + $0x8a0] ss:$24 sps:$4 sm:$0xff]  }
 0xcc8   :  { %15305 = vmatprep.subr.bf16.mxu1 %v20793_v46  ;;  %15149 = vmatpush1.bf16.msra.mxu0 %v20794_v51  ;;  %v20850_v46 = vld [vmem:[#allocation20 + $0x8d4] ss:$24 sps:$4 sm:$0xff]   ;;  %v20839_v51 = vld [vmem:[#allocation20 + $0x878] ss:$24 sps:$4 sm:$0xff]  }
 0xcc9   :  { %15150 = vmatprep.subr.bf16.mxu0 %v20802_v23  ;;  %v20847_v23 = vld [vmem:[#allocation20 + $0x8ac] ss:$24 sps:$4 sm:$0xff]  }
 0xccb   :  { %15306 = vmatpush1.bf16.msra.mxu1 %v20791_v36  ;;  %v20848_v36 = vld [vmem:[#allocation20 + $0x8d0] ss:$24 sps:$4 sm:$0xff]  }
 0xccc   :  { %15307 = vmatprep.subr.bf16.mxu1 %v20799_v37  ;;  %15151 = vmatpush1.bf16.msra.mxu0 %v20800_v11  ;;  %v20856_v37 = vld [vmem:[#allocation20 + $0x14] ss:$24 sps:$4 sm:$0xff]   ;;  %v20845_v11 = vld [vmem:[#allocation20 + $0x8a8] ss:$24 sps:$4 sm:$0xff]  }
 0xccd   :  { %15152 = vmatprep.subr.bf16.mxu0 %v20808_v54  ;;  %v20853_v54 = vld [vmem:[#allocation20 + $0x8dc] ss:$24 sps:$4 sm:$0xff]  }
 0xccf   :  { %15308 = vmatpush1.bf16.msra.mxu1 %v20797_v16  ;;  %v20851_v16 = vld [vmem:[#allocation20 + $0x8d8] ss:$24 sps:$4 sm:$0xff]  }
 0xcd0   :  { %15309 = vmatprep.subr.bf16.mxu1 %v20805_v4  ;;  %15153 = vmatpush1.bf16.msra.mxu0 %v20806_v10  ;;  %v21093_v4 = vld [vmem:[#allocation18] sm:$0x3f] }
 0xcd1   :  { %15154 = vmatprep.subr.bf16.mxu0 %v20814_v12  ;;  %v11114_v10 = vrot.slane %v21093_v4, %v23792_v50  ;;  %v11118_v12 = vrot.slane %v21093_v4, %v23790_v6 }
 0xcd3   :  { %15310 = vmatpush1.bf16.msra.mxu1 %v20803_v59 }
 0xcd4   :  { %15311 = vmatprep.subr.bf16.mxu1 %v20811_v42  ;;  %15155 = vmatpush1.bf16.msra.mxu0 %v20812_v44 }
 0xcd5   :  { %15156 = vmatprep.subr.bf16.mxu0 %v20820_v58 }
 0xcd7   :  { %15312 = vmatpush1.bf16.msra.mxu1 %v20809_v21 }
 0xcd8   :  { %15313 = vmatprep.subr.bf16.mxu1 %v20817_v18  ;;  %15157 = vmatpush1.bf16.msra.mxu0 %v20818_v57 }
 0xcd9   :  { %15158 = vmatprep.subr.bf16.mxu0 %v20826_v25 }
 0xcdb   :  { %15314 = vmatpush1.bf16.msra.mxu1 %v20815_v29 }
 0xcdc   :  { %15315 = vmatprep.subr.bf16.mxu1 %v20823_v62  ;;  %15159 = vmatpush1.bf16.msra.mxu0 %v20824_v9 }
 0xcdd   :  { %15160 = vmatprep.subr.bf16.mxu0 %v20832_v2 }
 0xcdf   :  { %15316 = vmatpush1.bf16.msra.mxu1 %v20821_v17 }
 0xce0   :  { %15317 = vmatprep.subr.bf16.mxu1 %v20829_v61  ;;  %15161 = vmatpush1.bf16.msra.mxu0 %v20830_v26 }
 0xce1   :  { %15162 = vmatprep.subr.bf16.mxu0 %v20838_v43 }
 0xce3   :  { %15318 = vmatpush1.bf16.msra.mxu1 %v20827_v45 }
 0xce4   :  { %15319 = vmatprep.subr.bf16.mxu1 %v20835_v13  ;;  %15163 = vmatpush1.bf16.msra.mxu0 %v20836_v32 }
 0xce5   :  { %15164 = vmatprep.subr.bf16.mxu0 %v20844_v5 }
 0xce7   :  { %15320 = vmatpush1.bf16.msra.mxu1 %v20833_v14 }
 0xce8   :  { %15321 = vmatprep.subr.bf16.mxu1 %v20841_v53  ;;  %15165 = vmatpush1.bf16.msra.mxu0 %v20842_v55 }
 0xce9   :  { %15166 = vmatprep.subr.bf16.mxu0 %v20850_v46 }
 0xceb   :  { %15322 = vmatpush1.bf16.msra.mxu1 %v20839_v51 }
 0xcec   :  { %15323 = vmatprep.subr.bf16.mxu1 %v20847_v23  ;;  %15167 = vmatpush1.bf16.msra.mxu0 %v20848_v36 }
 0xced   :  { %15348 = vmatprep.subr.bf16.mxu0 %v20856_v37 }
 0xcef   :  { %15324 = vmatpush1.bf16.msra.mxu1 %v20845_v11 }
 0xcf0   :  { %15325 = vmatprep.subr.bf16.mxu1 %v20853_v54 }
 0xcf3   :  { %15326 = vmatpush1.bf16.msra.mxu1 %v20851_v16 }
 0xd07   :  { %v13023_v59 = vpop.f32.mrb[120].mxu1 }
 0xd08   :  { %v23147_v42 = vadd.f32 %v13023_v59, %v11114_v10  ;;  %v13025_v44 = vpop.f32.mrb[121].mxu1 }
 0xd09   :  { %v23149_v58 = vadd.f32 %v13025_v44, %v11118_v12  ;;  %v13027_v21 = vpop.f32.mrb[122].mxu1 }
 0xd0a   :  { %v13046_v18 = vmul.f32 %v23147_v42, %v23147_v42  ;;  %v23153_v57 = vadd.f32 %v13027_v21, %v11114_v10  ;;  %v13029_v25 = vpop.f32.mrb[123].mxu1 }
 0xd0b   :  { %v13047_v29 = vmul.f32 %v23149_v58, %v23149_v58  ;;  %v23157_v62 = vadd.f32 %v13029_v25, %v11118_v12 }
 0xd0c   :  { %v13070_v9 = vmul.f32 %v23147_v42, %v13046_v18  ;;  %v13052_v2 = vmul.f32 %v23153_v57, %v23153_v57 }
 0xd0d   :  { %v13071_v17 = vmul.f32 %v23149_v58, %v13047_v29  ;;  %v13053_v61 = vmul.f32 %v23157_v62, %v23157_v62 }
 0xd0e   :  { %v13094_v26 = vmul.f32 0.044715, %v13070_v9  ;;  %v13076_v43 = vmul.f32 %v23153_v57, %v13052_v2 }
 0xd0f   :  { %v13095_v45 = vmul.f32 0.044715, %v13071_v17  ;;  %v13077_v13 = vmul.f32 %v23157_v62, %v13053_v61  ;;  %v13033_v32 = vpop.f32.mrb[124].mxu1 }
 0xd10   :  { %v13118_v5 = vadd.f32 %v23147_v42, %v13094_v26  ;;  %v13100_v14 = vmul.f32 0.044715, %v13076_v43  ;;  %v23168_v53 = vadd.f32 %v13033_v32, %v11114_v10  ;;  %v13035_v55 = vpop.f32.mrb[125].mxu1 }
 0xd11   :  { %v13119_v46 = vadd.f32 %v23149_v58, %v13095_v45  ;;  %v13101_v51 = vmul.f32 0.044715, %v13077_v13  ;;  %v23171_v23 = vadd.f32 %v13035_v55, %v11118_v12  ;;  %v13037_v36 = vpop.f32.mrb[126].mxu1 }
 0xd12   :  { %v13142_v37 = vmul.f32 0.7978846, %v13118_v5  ;;  %v13124_v11 = vadd.f32 %v23153_v57, %v13100_v14  ;;  %v13058_v54 = vmul.f32 %v23168_v53, %v23168_v53  ;;  %v23176_v16 = vadd.f32 %v13037_v36, %v11114_v10  ;;  %v13039_v4 = vpop.f32.mrb[127].mxu1 }
 0xd13   :  { %v13143_v59 = vmul.f32 0.7978846, %v13119_v46  ;;  %v13125_v44 = vadd.f32 %v23157_v62, %v13101_v51  ;;  %v13059_v21 = vmul.f32 %v23171_v23, %v23171_v23  ;;  %v23181_v18 = vadd.f32 %v13039_v4, %v11118_v12 }
 0xd14   :  { %21054 = vtanh.f32 %v13142_v37  ;;  %v13148_v25 = vmul.f32 0.7978846, %v13124_v11  ;;  %v13082_v29 = vmul.f32 %v23168_v53, %v13058_v54  ;;  %v13064_v9 = vmul.f32 %v23176_v16, %v23176_v16 }
 0xd15   :  { %21056 = vtanh.f32 %v13143_v59  ;;  %v13149_v2 = vmul.f32 0.7978846, %v13125_v44  ;;  %v13083_v10 = vmul.f32 %v23171_v23, %v13059_v21  ;;  %v13065_v17 = vmul.f32 %v23181_v18, %v23181_v18 }
 0xd16   :  { %21058 = vtanh.f32 %v13148_v25  ;;  %v13106_v61 = vmul.f32 0.044715, %v13082_v29  ;;  %v13088_v26 = vmul.f32 %v23176_v16, %v13064_v9 }
 0xd17   :  { %21060 = vtanh.f32 %v13149_v2  ;;  %v13107_v12 = vmul.f32 0.044715, %v13083_v10  ;;  %v13089_v43 = vmul.f32 %v23181_v18, %v13065_v17 }
 0xd18   :  { %v13130_v45 = vadd.f32 %v23168_v53, %v13106_v61  ;;  %v13112_v13 = vmul.f32 0.044715, %v13088_v26 }
 0xd19   :  { %v13131_v32 = vadd.f32 %v23171_v23, %v13107_v12  ;;  %v13113_v5 = vmul.f32 0.044715, %v13089_v43 }
 0xd1a   :  { %v13154_v14 = vmul.f32 0.7978846, %v13130_v45  ;;  %v13136_v55 = vadd.f32 %v23176_v16, %v13112_v13 }
 0xd1b   :  { %v13155_v46 = vmul.f32 0.7978846, %v13131_v32  ;;  %v13137_v51 = vadd.f32 %v23181_v18, %v13113_v5 }
 0xd1c   :  { %21062 = vtanh.f32 %v13154_v14  ;;  %v13160_v36 = vmul.f32 0.7978846, %v13136_v55 }
 0xd1d   :  { %21064 = vtanh.f32 %v13155_v46  ;;  %v13161_v37 = vmul.f32 0.7978846, %v13137_v51  ;;  %v20854_v46 = vld [vmem:[#allocation20 + $0x10] ss:$24 sps:$4 sm:$0xff]  }
 0xd1e   :  { %v21055_v11 = vpop.eup %21054  ;;  %21066 = vtanh.f32 %v13160_v36 }
 0xd1f   :  { %v21057_v54 = vpop.eup %21056  ;;  %v13190_v4 = vadd.f32 1.0, %v21055_v11  ;;  %21068 = vtanh.f32 %v13161_v37  ;;  %v20859_v37 = vld [vmem:[#allocation20 + $0x44] ss:$24 sps:$4 sm:$0xff]  }
 0xd20   :  { %v21059_v59 = vpop.eup %21058  ;;  %v13191_v44 = vadd.f32 1.0, %v21057_v54  ;;  %v20857_v54 = vld [vmem:[#allocation20 + $0x40] ss:$24 sps:$4 sm:$0xff]  }
 0xd21   :  { %v21061_v21 = vpop.eup %21060  ;;  %v13214_v25 = vmul.f32 0.5, %v13190_v4  ;;  %v13196_v29 = vadd.f32 1.0, %v21059_v59  ;;  %v20862_v59 = vld [vmem:[#allocation20 + $0x74] ss:$24 sps:$4 sm:$0xff]  }
 0xd22   :  { %v13197_v9 = vadd.f32 1.0, %v21061_v21  ;;  %v13215_v2 = vmul.f32 0.5, %v13191_v44 }
 0xd23   :  { %v13220_v10 = vmul.f32 0.5, %v13196_v29  ;;  %v13238_v61 = vmul.f32 %v23147_v42, %v13214_v25 }
 0xd24   :  { %v13221_v17 = vmul.f32 0.5, %v13197_v9  ;;  %v13239_v43 = vmul.f32 %v23149_v58, %v13215_v2 }
 0xd25   :  { %v13244_v26 = vmul.f32 %v23153_v57, %v13220_v10  ;;  %v20860_v10 = vld [vmem:[#allocation20 + $0x70] ss:$24 sps:$4 sm:$0xff]  }
 0xd26   :  { %v21063_v12 = vpop.eup %21062  ;;  %v13245_v45 = vmul.f32 %v23157_v62, %v13221_v17  ;;  %v20865_v17 = vld [vmem:[#allocation20 + $0xa4] ss:$24 sps:$4 sm:$0xff]  }
 0xd27   :  { %v21065_v13 = vpop.eup %21064  ;;  %v23199_v32 = vpack.c.bf16 %v13244_v26, %v13238_v61  ;;  %v13202_v5 = vadd.f32 1.0, %v21063_v12  ;;  %v20869_v61 = vld [vmem:[#allocation20 + $0x100] ss:$24 sps:$4 sm:$0xff]   ;;  %v20874_v26 = vld [vmem:[#allocation20 + $0x134] ss:$24 sps:$4 sm:$0xff]  }
 0xd28   :  { %v21067_v14 = vpop.eup %21066  ;;  %v23201_v55 = vpack.c.bf16 %v13245_v45, %v13239_v43  ;;  %v13203_v51 = vadd.f32 1.0, %v21065_v13  ;;  %v20872_v12 = vld [vmem:[#allocation20 + $0x130] ss:$24 sps:$4 sm:$0xff]   ;;  %v20877_v43 = vld [vmem:[#allocation20 + $0x164] ss:$24 sps:$4 sm:$0xff]  }
 0xd29   :  { %v21069_v36 = vpop.eup %21068  ;;  %v13208_v11 = vadd.f32 1.0, %v21067_v14  ;;  %v13226_v42 = vmul.f32 0.5, %v13202_v5  ;;  %v20875_v45 = vld [vmem:[#allocation20 + $0x160] ss:$24 sps:$4 sm:$0xff]   ;;  %v20880_v13 = vld [vmem:[#allocation20 + $0x194] ss:$24 sps:$4 sm:$0xff]  }
 0xd2a   :  { %15168 = vmatprep.mubr.bf16.mxu0 %v23201_v55  ;;  %15327 = vmatprep.mubr.bf16.mxu1 %v23201_v55  ;;  %v13209_v58 = vadd.f32 1.0, %v21069_v36  ;;  %v13227_v57 = vmul.f32 0.5, %v13203_v51  ;;  %v20883_v5 = vld [vmem:[#allocation20 + $0x1c4] ss:$24 sps:$4 sm:$0xff]   ;;  %v20881_v14 = vld [vmem:[#allocation20 + $0x1c0] ss:$24 sps:$4 sm:$0xff]  }
 0xd2b   :  { %15169 = vmatmul.mubr.bf16.vlgmr.msra.gmra.mrb[64].mxu0 %v23199_v32  ;;  %15328 = vmatmul.mubr.bf16.vlgmr.msra.gmra.mrb[128].mxu1 %v23199_v32  ;;  %v13232_v62 = vmul.f32 0.5, %v13208_v11  ;;  %v13250_v44 = vmul.f32 %v23168_v53, %v13226_v42  ;;  %v20863_v53 = vld [vmem:[#allocation20 + $0xa0] ss:$24 sps:$4 sm:$0xff]   ;;  %v20884_v51 = vld [vmem:[#allocation20 + $0x1f0] ss:$24 sps:$4 sm:$0xff]  }
 0xd2c   :  { %15349 = vmatpush1.bf16.msra.mxu0 %v20854_v46  ;;  %v13233_v4 = vmul.f32 0.5, %v13209_v58  ;;  %v13251_v25 = vmul.f32 %v23171_v23, %v13227_v57  ;;  %v20868_v23 = vld [vmem:[#allocation20 + $0xd4] ss:$24 sps:$4 sm:$0xff]   ;;  %v20889_v36 = vld [vmem:[#allocation20 + $0x224] ss:$24 sps:$4 sm:$0xff]  }
 0xd2d   :  { %15350 = vmatprep.subr.bf16.mxu0 %v20859_v37  ;;  %v13256_v21 = vmul.f32 %v23176_v16, %v13232_v62  ;;  %v20866_v16 = vld [vmem:[#allocation20 + $0xd0] ss:$24 sps:$4 sm:$0xff]   ;;  %v20886_v46 = vld [vmem:[#allocation20 + $0x1f4] ss:$24 sps:$4 sm:$0xff]   ;;  %v20887_v37 = vld [vmem:[#allocation20 + $0x220] ss:$24 sps:$4 sm:$0xff]  }
 0xd2e   :  { %v13257_v29 = vmul.f32 %v23181_v18, %v13233_v4  ;;  %v20871_v18 = vld [vmem:[#allocation20 + $0x104] ss:$24 sps:$4 sm:$0xff]   ;;  %v20892_v11 = vld [vmem:[#allocation20 + $0x254] ss:$24 sps:$4 sm:$0xff]   ;;  %v20890_v42 = vld [vmem:[#allocation20 + $0x250] ss:$24 sps:$4 sm:$0xff]  }
 0xd2f   :  { %v23211_v9 = vpack.c.bf16 %v13256_v21, %v13250_v44  ;;  %v20895_v58 = vld [vmem:[#allocation20 + $0x284] ss:$24 sps:$4 sm:$0xff]   ;;  %v20893_v57 = vld [vmem:[#allocation20 + $0x280] ss:$24 sps:$4 sm:$0xff]   ;;  %v20898_v62 = vld [vmem:[#allocation20 + $0x2b4] ss:$24 sps:$4 sm:$0xff]  }
 0xd30   :  { %15351 = vmatpush1.bf16.msra.mxu0 %v20857_v54  ;;  %v23213_v2 = vpack.c.bf16 %v13257_v29, %v13251_v25  ;;  %v20896_v54 = vld [vmem:[#allocation20 + $0x2b0] ss:$24 sps:$4 sm:$0xff]   ;;  %v20901_v4 = vld [vmem:[#allocation20 + $0x2e4] ss:$24 sps:$4 sm:$0xff]   ;;  %v20904_v44 = vld [vmem:[#allocation20 + $0x314] ss:$24 sps:$4 sm:$0xff]  }
 0xd31   :  { %15352 = vmatprep.subr.bf16.mxu0 %v20862_v59  ;;  %v20899_v59 = vld [vmem:[#allocation20 + $0x2e0] ss:$24 sps:$4 sm:$0xff]   ;;  %v20902_v21 = vld [vmem:[#allocation20 + $0x310] ss:$24 sps:$4 sm:$0xff]   ;;  %v20907_v25 = vld [vmem:[#allocation20 + $0x344] ss:$24 sps:$4 sm:$0xff]  }
 0xd32   :  { %15178 = vmatprep.mubr.bf16.mxu0 %v23213_v2  ;;  %15337 = vmatprep.mubr.bf16.mxu1 %v23213_v2  ;;  %v20905_v29 = vld [vmem:[#allocation20 + $0x340] ss:$24 sps:$4 sm:$0xff]  }
 0xd33   :  { %15179 = vmatmul.mubr.bf16.gmra.mrb[68].mxu0 %v23211_v9  ;;  %15338 = vmatmul.mubr.bf16.gmra.mrb[132].mxu1 %v23211_v9 }
 0xd34   :  { %15353 = vmatpush1.bf16.msra.mxu0 %v20860_v10  ;;  %15380 = vmatprep.mubr.bf16.mxu0 %v23107_v52  ;;  %v20878_v52 = vld [vmem:[#allocation20 + $0x190] ss:$24 sps:$4 sm:$0xff]   ;;  %v20910_v10 = vld [vmem:[#allocation20 + $0x374] ss:$24 sps:$4 sm:$0xff]  }
 0xd35   :  { %15354 = vmatprep.subr.bf16.mxu0 %v20865_v17  ;;  %v20908_v17 = vld [vmem:[#allocation20 + $0x370] ss:$24 sps:$4 sm:$0xff]  }
 0xd38   :  { %15355 = vmatpush1.bf16.msra.mxu0 %v20863_v53  ;;  %v20913_v53 = vld [vmem:[#allocation20 + $0x3a4] ss:$24 sps:$4 sm:$0xff]  }
 0xd39   :  { %15356 = vmatprep.subr.bf16.mxu0 %v20868_v23  ;;  %v20911_v23 = vld [vmem:[#allocation20 + $0x3a0] ss:$24 sps:$4 sm:$0xff]  }
 0xd3c   :  { %15357 = vmatpush1.bf16.msra.mxu0 %v20866_v16  ;;  %v20916_v16 = vld [vmem:[#allocation20 + $0x3d4] ss:$24 sps:$4 sm:$0xff]  }
 0xd3d   :  { %15358 = vmatprep.subr.bf16.mxu0 %v20871_v18  ;;  %v20917_v18 = vld [vmem:[#allocation20 + $0x400] ss:$24 sps:$4 sm:$0xff]  }
 0xd40   :  { %15359 = vmatpush1.bf16.msra.mxu0 %v20869_v61  ;;  %v20922_v61 = vld [vmem:[#allocation20 + $0x434] ss:$24 sps:$4 sm:$0xff]  }
 0xd41   :  { %15360 = vmatprep.subr.bf16.mxu0 %v20874_v26  ;;  %v20920_v26 = vld [vmem:[#allocation20 + $0x430] ss:$24 sps:$4 sm:$0xff]  }
 0xd44   :  { %15361 = vmatpush1.bf16.msra.mxu0 %v20872_v12  ;;  %v20925_v12 = vld [vmem:[#allocation20 + $0x464] ss:$24 sps:$4 sm:$0xff]  }
 0xd45   :  { %15362 = vmatprep.subr.bf16.mxu0 %v20877_v43  ;;  %v20928_v43 = vld [vmem:[#allocation20 + $0x494] ss:$24 sps:$4 sm:$0xff]  }
 0xd48   :  { %15363 = vmatpush1.bf16.msra.mxu0 %v20875_v45  ;;  %v20931_v45 = vld [vmem:[#allocation20 + $0x4c4] ss:$24 sps:$4 sm:$0xff]  }
 0xd49   :  { %15364 = vmatprep.subr.bf16.mxu0 %v20880_v13  ;;  %v20929_v13 = vld [vmem:[#allocation20 + $0x4c0] ss:$24 sps:$4 sm:$0xff]  }
 0xd4c   :  { %15365 = vmatpush1.bf16.msra.mxu0 %v20878_v52  ;;  %v20934_v52 = vld [vmem:[#allocation20 + $0x4f4] ss:$24 sps:$4 sm:$0xff]  }
 0xd4d   :  { %15366 = vmatprep.subr.bf16.mxu0 %v20883_v5  ;;  %v20932_v5 = vld [vmem:[#allocation20 + $0x4f0] ss:$24 sps:$4 sm:$0xff]  }
 0xd50   :  { %15367 = vmatpush1.bf16.msra.mxu0 %v20881_v14  ;;  %v20937_v14 = vld [vmem:[#allocation20 + $0x524] ss:$24 sps:$4 sm:$0xff]  }
 0xd51   :  { %15368 = vmatprep.subr.bf16.mxu0 %v20886_v46  ;;  %v20935_v46 = vld [vmem:[#allocation20 + $0x520] ss:$24 sps:$4 sm:$0xff]  }
 0xd54   :  { %15369 = vmatpush1.bf16.msra.mxu0 %v20884_v51  ;;  %v20940_v51 = vld [vmem:[#allocation20 + $0x554] ss:$24 sps:$4 sm:$0xff]  }
 0xd55   :  { %15370 = vmatprep.subr.bf16.mxu0 %v20889_v36  ;;  %v20938_v36 = vld [vmem:[#allocation20 + $0x550] ss:$24 sps:$4 sm:$0xff]  }
 0xd58   :  { %15371 = vmatpush1.bf16.msra.mxu0 %v20887_v37  ;;  %v20943_v37 = vld [vmem:[#allocation20 + $0x584] ss:$24 sps:$4 sm:$0xff]  }
 0xd59   :  { %15372 = vmatprep.subr.bf16.mxu0 %v20892_v11  ;;  %v20941_v11 = vld [vmem:[#allocation20 + $0x580] ss:$24 sps:$4 sm:$0xff]  }
 0xd5c   :  { %15373 = vmatpush1.bf16.msra.mxu0 %v20890_v42  ;;  %v20946_v42 = vld [vmem:[#allocation20 + $0x5b4] ss:$24 sps:$4 sm:$0xff]  }
 0xd5d   :  { %15374 = vmatprep.subr.bf16.mxu0 %v20895_v58  ;;  %v20944_v58 = vld [vmem:[#allocation20 + $0x5b0] ss:$24 sps:$4 sm:$0xff]  }
 0xd60   :  { %15375 = vmatpush1.bf16.msra.mxu0 %v20893_v57  ;;  %v20949_v57 = vld [vmem:[#allocation20 + $0x5e4] ss:$24 sps:$4 sm:$0xff]  }
 0xd61   :  { %15376 = vmatprep.subr.bf16.mxu0 %v20898_v62  ;;  %v20947_v62 = vld [vmem:[#allocation20 + $0x5e0] ss:$24 sps:$4 sm:$0xff]  }
 0xd64   :  { %15377 = vmatpush1.bf16.msra.mxu0 %v20896_v54  ;;  %v20952_v54 = vld [vmem:[#allocation20 + $0x614] ss:$24 sps:$4 sm:$0xff]  }
 0xd65   :  { %15378 = vmatprep.subr.bf16.mxu0 %v20901_v4  ;;  %v20950_v4 = vld [vmem:[#allocation20 + $0x610] ss:$24 sps:$4 sm:$0xff]  }
 0xd68   :  { %15379 = vmatpush1.bf16.msra.mxu0 %v20899_v59  ;;  %v20955_v59 = vld [vmem:[#allocation20 + $0x644] ss:$24 sps:$4 sm:$0xff]  }
 0xd69   :  { %15401 = vmatprep.subr.bf16.mxu0 %v20904_v44  ;;  %v20953_v44 = vld [vmem:[#allocation20 + $0x640] ss:$24 sps:$4 sm:$0xff]  }
 0xd6b   :  { %15381 = vmatmul.mubr.bf16.vlgmr.msra.gmra.mrb[72].mxu0 %v23100_v31  ;;  %v20914_v31 = vld [vmem:[#allocation20 + $0x3d0] ss:$24 sps:$4 sm:$0xff]  }
 0xd6c   :  { %15390 = vmatprep.mubr.bf16.mxu0 %v23127_v40  ;;  %15402 = vmatpush1.bf16.msra.mxu0 %v20902_v21  ;;  %v20919_v40 = vld [vmem:[#allocation20 + $0x404] ss:$24 sps:$4 sm:$0xff]   ;;  %v20958_v21 = vld [vmem:[#allocation20 + $0x674] ss:$24 sps:$4 sm:$0xff]  }
 0xd6d   :  { %15403 = vmatprep.subr.bf16.mxu0 %v20907_v25  ;;  %v20956_v25 = vld [vmem:[#allocation20 + $0x670] ss:$24 sps:$4 sm:$0xff]  }
 0xd70   :  { %15404 = vmatpush1.bf16.msra.mxu0 %v20905_v29  ;;  %v20961_v29 = vld [vmem:[#allocation20 + $0x6a4] ss:$24 sps:$4 sm:$0xff]  }
 0xd71   :  { %15405 = vmatprep.subr.bf16.mxu0 %v20910_v10  ;;  %v20959_v10 = vld [vmem:[#allocation20 + $0x6a0] ss:$24 sps:$4 sm:$0xff]  }
 0xd73   :  { %15391 = vmatmul.mubr.bf16.gmra.mrb[76].mxu0 %v23120_v20  ;;  %v20923_v20 = vld [vmem:[#allocation20 + $0x460] ss:$24 sps:$4 sm:$0xff]  }
 0xd74   :  { %15406 = vmatpush1.bf16.msra.mxu0 %v20908_v17  ;;  %15433 = vmatprep.mubr.bf16.mxu0 %v23113_v33  ;;  %v20926_v33 = vld [vmem:[#allocation20 + $0x490] ss:$24 sps:$4 sm:$0xff]   ;;  %v20964_v17 = vld [vmem:[#allocation20 + $0x6d4] ss:$24 sps:$4 sm:$0xff]  }
 0xd75   :  { %15407 = vmatprep.subr.bf16.mxu0 %v20913_v53  ;;  %v20965_v53 = vld [vmem:[#allocation20 + $0x700] ss:$24 sps:$4 sm:$0xff]  }
 0xd78   :  { %15408 = vmatpush1.bf16.msra.mxu0 %v20911_v23  ;;  %v20970_v23 = vld [vmem:[#allocation20 + $0x734] ss:$24 sps:$4 sm:$0xff]  }
 0xd79   :  { %15409 = vmatprep.subr.bf16.mxu0 %v20916_v16  ;;  %v20968_v16 = vld [vmem:[#allocation20 + $0x730] ss:$24 sps:$4 sm:$0xff]  }
 0xd7c   :  { %15410 = vmatpush1.bf16.msra.mxu0 %v20914_v31  ;;  %v20973_v31 = vld [vmem:[#allocation20 + $0x764] ss:$24 sps:$4 sm:$0xff]  }
 0xd7d   :  { %15411 = vmatprep.subr.bf16.mxu0 %v20919_v40  ;;  %v20976_v40 = vld [vmem:[#allocation20 + $0x794] ss:$24 sps:$4 sm:$0xff]  }
 0xd80   :  { %15412 = vmatpush1.bf16.msra.mxu0 %v20917_v18  ;;  %v20979_v18 = vld [vmem:[#allocation20 + $0x7c4] ss:$24 sps:$4 sm:$0xff]  }
 0xd81   :  { %15413 = vmatprep.subr.bf16.mxu0 %v20922_v61  ;;  %v20977_v61 = vld [vmem:[#allocation20 + $0x7c0] ss:$24 sps:$4 sm:$0xff]  }
 0xd84   :  { %15414 = vmatpush1.bf16.msra.mxu0 %v20920_v26  ;;  %v20982_v26 = vld [vmem:[#allocation20 + $0x7f4] ss:$24 sps:$4 sm:$0xff]  }
 0xd85   :  { %15415 = vmatprep.subr.bf16.mxu0 %v20925_v12  ;;  %v20980_v12 = vld [vmem:[#allocation20 + $0x7f0] ss:$24 sps:$4 sm:$0xff]  }
 0xd88   :  { %15416 = vmatpush1.bf16.msra.mxu0 %v20923_v20  ;;  %v20985_v20 = vld [vmem:[#allocation20 + $0x824] ss:$24 sps:$4 sm:$0xff]  }
 0xd89   :  { %15417 = vmatprep.subr.bf16.mxu0 %v20928_v43  ;;  %v20983_v43 = vld [vmem:[#allocation20 + $0x820] ss:$24 sps:$4 sm:$0xff]  }
 0xd8c   :  { %15418 = vmatpush1.bf16.msra.mxu0 %v20926_v33  ;;  %v20988_v33 = vld [vmem:[#allocation20 + $0x854] ss:$24 sps:$4 sm:$0xff]  }
 0xd8d   :  { %15419 = vmatprep.subr.bf16.mxu0 %v20931_v45  ;;  %v20986_v45 = vld [vmem:[#allocation20 + $0x850] ss:$24 sps:$4 sm:$0xff]  }
 0xd90   :  { %15420 = vmatpush1.bf16.msra.mxu0 %v20929_v13  ;;  %v20991_v13 = vld [vmem:[#allocation20 + $0x884] ss:$24 sps:$4 sm:$0xff]  }
 0xd91   :  { %15421 = vmatprep.subr.bf16.mxu0 %v20934_v52  ;;  %v20989_v52 = vld [vmem:[#allocation20 + $0x880] ss:$24 sps:$4 sm:$0xff]  }
 0xd94   :  { %15422 = vmatpush1.bf16.msra.mxu0 %v20932_v5  ;;  %v20994_v5 = vld [vmem:[#allocation20 + $0x8b4] ss:$24 sps:$4 sm:$0xff]  }
 0xd95   :  { %15423 = vmatprep.subr.bf16.mxu0 %v20937_v14  ;;  %v20992_v14 = vld [vmem:[#allocation20 + $0x8b0] ss:$24 sps:$4 sm:$0xff]  }
 0xd98   :  { %15424 = vmatpush1.bf16.msra.mxu0 %v20935_v46  ;;  %v20997_v46 = vld [vmem:[#allocation20 + $0x8e4] ss:$24 sps:$4 sm:$0xff]  }
 0xd99   :  { %15425 = vmatprep.subr.bf16.mxu0 %v20940_v51  ;;  %v20995_v51 = vld [vmem:[#allocation20 + $0x8e0] ss:$24 sps:$4 sm:$0xff]  }
 0xd9c   :  { %15426 = vmatpush1.bf16.msra.mxu0 %v20938_v36 }
 0xd9d   :  { %15427 = vmatprep.subr.bf16.mxu0 %v20943_v37 }
 0xda0   :  { %15428 = vmatpush1.bf16.msra.mxu0 %v20941_v11 }
 0xda1   :  { %15429 = vmatprep.subr.bf16.mxu0 %v20946_v42 }
 0xda4   :  { %15430 = vmatpush1.bf16.msra.mxu0 %v20944_v58 }
 0xda5   :  { %15431 = vmatprep.subr.bf16.mxu0 %v20949_v57 }
 0xda8   :  { %15432 = vmatpush1.bf16.msra.mxu0 %v20947_v62 }
 0xda9   :  { %15454 = vmatprep.subr.bf16.mxu0 %v20952_v54 }
 0xdab   :  { %15434 = vmatmul.mubr.bf16.vlgmr.msra.gmra.mrb[72].mxu0 %v23104_v38  ;;  %v20962_v38 = vld [vmem:[#allocation20 + $0x6d0] ss:$24 sps:$4 sm:$0xff]  }
 0xdac   :  { %15443 = vmatprep.mubr.bf16.mxu0 %v23134_v0  ;;  %15455 = vmatpush1.bf16.msra.mxu0 %v20950_v4  ;;  %v20967_v0 = vld [vmem:[#allocation20 + $0x704] ss:$24 sps:$4 sm:$0xff]  }
 0xdad   :  { %15456 = vmatprep.subr.bf16.mxu0 %v20955_v59 }
 0xdb0   :  { %15457 = vmatpush1.bf16.msra.mxu0 %v20953_v44 }
 0xdb1   :  { %15458 = vmatprep.subr.bf16.mxu0 %v20958_v21 }
 0xdb3   :  { %15444 = vmatmul.mubr.bf16.gmra.mrb[76].mxu0 %v23123_v39  ;;  %v20971_v39 = vld [vmem:[#allocation20 + $0x760] ss:$24 sps:$4 sm:$0xff]  }
 0xdb4   :  { %15459 = vmatpush1.bf16.msra.mxu0 %v20956_v25  ;;  %15486 = vmatprep.mubr.bf16.mxu0 %v23201_v55  ;;  %v20974_v55 = vld [vmem:[#allocation20 + $0x790] ss:$24 sps:$4 sm:$0xff]  }
 0xdb5   :  { %15460 = vmatprep.subr.bf16.mxu0 %v20961_v29 }
 0xdb8   :  { %15461 = vmatpush1.bf16.msra.mxu0 %v20959_v10 }
 0xdb9   :  { %15462 = vmatprep.subr.bf16.mxu0 %v20964_v17  ;;  %v13558_v17 = vld [vmem:[#allocation21] sm:$0x3f] }
 0xdbc   :  { %15463 = vmatpush1.bf16.msra.mxu0 %v20962_v38 }
 0xdbd   :  { %15464 = vmatprep.subr.bf16.mxu0 %v20967_v0 }
 0xdc0   :  { %15465 = vmatpush1.bf16.msra.mxu0 %v20965_v53 }
 0xdc1   :  { %15466 = vmatprep.subr.bf16.mxu0 %v20970_v23 }
 0xdc4   :  { %15467 = vmatpush1.bf16.msra.mxu0 %v20968_v16  ;;  %v13571_v16 = vrot.slane %v13558_v17, %v21927_v63 }
 0xdc5   :  { %15468 = vmatprep.subr.bf16.mxu0 %v20973_v31 }
 0xdc8   :  { %15469 = vmatpush1.bf16.msra.mxu0 %v20971_v39 }
 0xdc9   :  { %15470 = vmatprep.subr.bf16.mxu0 %v20976_v40 }
 0xdcc   :  { %15471 = vmatpush1.bf16.msra.mxu0 %v20974_v55  ;;  %v13575_v55 = vrot.slane %v13558_v17, %v21932_v1 }
 0xdcd   :  { %15472 = vmatprep.subr.bf16.mxu0 %v20979_v18 }
 0xdd0   :  { %15473 = vmatpush1.bf16.msra.mxu0 %v20977_v61 }
 0xdd1   :  { %15474 = vmatprep.subr.bf16.mxu0 %v20982_v26 }
 0xdd4   :  { %15475 = vmatpush1.bf16.msra.mxu0 %v20980_v12 }
 0xdd5   :  { %15476 = vmatprep.subr.bf16.mxu0 %v20985_v20 }
 0xdd8   :  { %15477 = vmatpush1.bf16.msra.mxu0 %v20983_v43 }
 0xdd9   :  { %15478 = vmatprep.subr.bf16.mxu0 %v20988_v33 }
 0xddc   :  { %15479 = vmatpush1.bf16.msra.mxu0 %v20986_v45 }
 0xddd   :  { %15480 = vmatprep.subr.bf16.mxu0 %v20991_v13 }
 0xde0   :  { %15481 = vmatpush1.bf16.msra.mxu0 %v20989_v52 }
 0xde1   :  { %15482 = vmatprep.subr.bf16.mxu0 %v20994_v5 }
 0xde4   :  { %15483 = vmatpush1.bf16.msra.mxu0 %v20992_v14 }
 0xde5   :  { %15484 = vmatprep.subr.bf16.mxu0 %v20997_v46 }
 0xde8   :  { %15485 = vmatpush1.bf16.msra.mxu0 %v20995_v51 }
 0xdeb   :  { %15487 = vmatmul.mubr.bf16.vlgmr.msra.gmra.mrb[72].mxu0 %v23199_v32 }
 0xdec   :  { %15496 = vmatprep.mubr.bf16.mxu0 %v23213_v2  ;;  %v13563_v2 = vrot.slane %v13558_v17, %v23798_v35 }
 0xdf3   :  { %15497 = vmatmul.mubr.bf16.gmra.mrb[76].mxu0 %v23211_v9  ;;  %v13567_v9 = vrot.slane %v13558_v17, %v23799_v3 }
 0xdfe   :  { %v15170_v36 = vpop.f32.mrb[64].mxu0  ;;  %v15329_v37 = vpop.f32.mrb[128].mxu1 }
 0xdff   :  { %v15172_v11 = vpop.f32.mrb[65].mxu0  ;;  %v15331_v42 = vpop.f32.mrb[129].mxu1  ;;  %v18033_v53 = vadd.f32 %v15170_v36, %v13563_v2  ;;  %v18041_v33 = vadd.f32 %v15329_v37, %v13571_v16 }
 0xe00   :  { %v15174_v58 = vpop.f32.mrb[66].mxu0  ;;  %v15333_v57 = vpop.f32.mrb[130].mxu1  ;;  %v18034_v23 = vadd.f32 %v15172_v11, %v13567_v9  ;;  %v18042_v45 = vadd.f32 %v15331_v42, %v13575_v55 }
 0xe01   :  { %v15176_v62 = vpop.f32.mrb[67].mxu0  ;;  %v15335_v54 = vpop.f32.mrb[131].mxu1  ;;  %v18035_v38 = vadd.f32 %v15174_v58, %v13563_v2  ;;  %v23241_v40 = vadd.f32 %v18033_v53, %v22761_v22  ;;  %v18043_v61 = vadd.f32 %v15333_v57, %v13571_v16  ;;  %v23268_v37 = vadd.f32 %v18041_v33, %v22764_v24  ;;  %v23809_v53 = vld [vmem:[#allocation40_spill] sm:$0xff] }
 0xe02   :  { %v18036_v0 = vadd.f32 %v15176_v62, %v13567_v9  ;;  %v23245_v18 = vadd.f32 %v18034_v23, %v22758_v30  ;;  %v18044_v13 = vadd.f32 %v15335_v54, %v13575_v55 }
 0xe03   :  { %v23235_v31 = vadd.f32 %v18035_v38, %v22773_v60  ;;  %v23253_v52 = vadd.f32 %v18043_v61, %v22776_v28  ;;  %v23810_v61 = vld [vmem:[#allocation42_spill] sm:$0xff] }
 0xe04   :  { %v23238_v39 = vadd.f32 %v18036_v0, %v22770_v19  ;;  %v13579_v19 = vrot.slane %v13558_v17, %v23792_v50  ;;  %v15533_v22 = vadd.f32 %v23245_v18, %v23241_v40 }
 0xe06   :  { %v15180_v4 = vpop.f32.mrb[68].mxu0  ;;  %v15339_v59 = vpop.f32.mrb[132].mxu1  ;;  %v15540_v60 = vadd.f32 %v23238_v39, %v23235_v31 }
 0xe07   :  { %v15182_v44 = vpop.f32.mrb[69].mxu0  ;;  %v15341_v21 = vpop.f32.mrb[133].mxu1  ;;  %v18037_v26 = vadd.f32 %v15180_v4, %v13563_v2  ;;  %v18045_v14 = vadd.f32 %v15339_v59, %v13571_v16 }
 0xe08   :  { %v15184_v25 = vpop.f32.mrb[70].mxu0  ;;  %v15343_v29 = vpop.f32.mrb[134].mxu1  ;;  %v18038_v12 = vadd.f32 %v15182_v44, %v13567_v9  ;;  %v15541_v28 = vadd.f32 %v15540_v60, %v23253_v52  ;;  %v18046_v59 = vadd.f32 %v15341_v21, %v13575_v55 }
 0xe09   :  { %v15186_v10 = vpop.f32.mrb[71].mxu0  ;;  %v15345_v32 = vpop.f32.mrb[135].mxu1  ;;  %v18039_v20 = vadd.f32 %v15184_v25, %v13563_v2  ;;  %v23256_v30 = vadd.f32 %v18037_v26, %v22853_v48  ;;  %v13583_v48 = vrot.slane %v13558_v17, %v23790_v6  ;;  %v18047_v58 = vadd.f32 %v15343_v29, %v13571_v16  ;;  %v23808_v2 = vld [vmem:[#allocation48_spill] sm:$0xff] }
 0xe0a   :  { %v18040_v43 = vadd.f32 %v15186_v10, %v13567_v9  ;;  %v23259_v5 = vadd.f32 %v18038_v12, %v22841_v8  ;;  %v23273_v8 = vadd.f32 %v18042_v45, %v22876_v34  ;;  %v23280_v4 = vadd.f32 %v18045_v14, %v22829_v7  ;;  %v23811_v45 = vld [vmem:[#allocation54_spill] sm:$0xff] }
 0xe0b   :  { %v23262_v46 = vadd.f32 %v18039_v20, %v22856_v47  ;;  %v15534_v47 = vadd.f32 %v15533_v22, %v23268_v37  ;;  %v23289_v17 = vadd.f32 %v18047_v58, %v22859_v15  ;;  %v18048_v38 = vadd.f32 %v15345_v32, %v13575_v55  ;;  %v23812_v55 = vld [vmem:[#allocation41_spill] sm:$0xff]  ;;  %v23814_v58 = vld [vmem:[#allocation51_spill] sm:$0xff] }
 0xe0c   :  { %v23265_v51 = vadd.f32 %v18040_v43, %v22850_v56  ;;  %v15516_v56 = vadd.f32 %v18044_v13, %v22837_v41  ;;  %v15547_v62 = vadd.f32 %v23259_v5, %v23256_v30  ;;  %v23295_v23 = vadd.f32 %v18046_v59, %v23809_v53 }
 0xe0d   :  { %v15535_v7 = vadd.f32 %v15534_v47, %v23273_v8  ;;  %v23302_v32 = vadd.f32 %v18048_v38, %v23811_v45 }
 0xe0e   :  { %v15554_v44 = vadd.f32 %v23265_v51, %v23262_v46  ;;  %v15542_v25 = vadd.f32 %v15541_v28, %v15516_v56  ;;  %v15548_v21 = vadd.f32 %v15547_v62, %v23280_v4 }
 0xe10   :  { %v15549_v60 = vadd.f32 %v15548_v21, %v23295_v23 }
 0xebe   :  { %v15488_v36 = vpop.f32.mrb[72].mxu0 }
 0xebf   :  { %v18049_v11 = vadd.f32 %v15488_v36, %v13579_v19  ;;  %v15490_v42 = vpop.f32.mrb[73].mxu0  ;;  %v23813_v36 = vld [vmem:[#allocation52_spill] sm:$0xff] }
 0xec0   :  { %v15492_v57 = vpop.f32.mrb[74].mxu0  ;;  %v18050_v10 = vadd.f32 %v15490_v42, %v13583_v48 }
 0xec1   :  { %v18051_v24 = vadd.f32 %v15492_v57, %v13579_v19  ;;  %v15494_v54 = vpop.f32.mrb[75].mxu0  ;;  %v23285_v29 = vadd.f32 %v18049_v11, %v22845_v49  ;;  %v15555_v49 = vadd.f32 %v15554_v44, %v23289_v17 }
 0xec2   :  { %v18052_v34 = vadd.f32 %v15494_v54, %v13583_v48  ;;  %v15512_v26 = vadd.f32 %v18050_v10, %v23810_v61 }
 0xec3   :  { %v15517_v41 = vadd.f32 %v18051_v24, %v22862_v27  ;;  %v15536_v20 = vadd.f32 %v15535_v7, %v23285_v29  ;;  %v15556_v42 = vadd.f32 %v15555_v49, %v23302_v32  ;;  %v23815_v24 = vld [vmem:[#allocation47_spill] sm:$0xff] }
 0xec4   :  { %v15518_v9 = vadd.f32 %v18052_v34, %v23808_v2 }
 0xec5   :  { %v15543_v0 = vadd.f32 %v15542_v25, %v15517_v41  ;;  %v15537_v47 = vadd.f32 %v15536_v20, %v15512_v26 }
 0xec6   :  { %v15498_v16 = vpop.f32.mrb[76].mxu0 }
 0xec7   :  { %v18053_v27 = vadd.f32 %v15498_v16, %v13579_v19  ;;  %v15500_v12 = vpop.f32.mrb[77].mxu0  ;;  %v15544_v15 = vadd.f32 %v15543_v0, %v15518_v9 }
 0xec8   :  { %v18054_v43 = vadd.f32 %v15500_v12, %v13583_v48  ;;  %v15502_v33 = vpop.f32.mrb[78].mxu0 }
 0xec9   :  { %v15523_v13 = vadd.f32 %v18053_v27, %v23812_v55  ;;  %v18055_v22 = vadd.f32 %v15502_v33, %v13579_v19  ;;  %v15504_v14 = vpop.f32.mrb[79].mxu0  ;;  %15545 = vadd.xlane.f32.xlu0 %v15544_v15 }
 0xeca   :  { %v23306_v28 = vadd.f32 %v18054_v43, %v23813_v36  ;;  %v18056_v11 = vadd.f32 %v15504_v14, %v13583_v48 }
 0xecb   :  { %v23310_v57 = vadd.f32 %v18055_v22, %v23814_v58  ;;  %v15550_v62 = vadd.f32 %v15549_v60, %v15523_v13 }
 0xecc   :  { %v23313_v54 = vadd.f32 %v18056_v11, %v23815_v24 }
 0xecd   :  { %15538 = vadd.xlane.f32.xlu0 %v15537_v47  ;;  %v15551_v59 = vadd.f32 %v15550_v62, %v23306_v28  ;;  %v15557_v19 = vadd.f32 %v15556_v42, %v23310_v57 }
 0xecf   :  { %15552 = vadd.xlane.f32.xlu1 %v15551_v59  ;;  %v15558_v44 = vadd.f32 %v15557_v19, %v23313_v54 }
 0xed3   :  { %15559 = vadd.xlane.f32.xlu1 %v15558_v44 }
 0xf56   :  { %v15546_v48 = vpop.xlane.xlu0 %15545 }
 0xf57   :  { %v15562_v34 = vmul.f32 0.0013020834, %v15546_v48 }
 0xf59   :  { %v23319_v25 = vsub.f32 %v23235_v31, %v15562_v34  ;;  %v23322_v10 = vsub.f32 %v23238_v39, %v15562_v34  ;;  %v23325_v2 = vsub.f32 %v23253_v52, %v15562_v34  ;;  %v23327_v21 = vsub.f32 %v15516_v56, %v15562_v34 }
 0xf5a   :  { %v15539_v7 = vpop.xlane.xlu0 %15538  ;;  %v23333_v16 = vsub.f32 %v15517_v41, %v15562_v34  ;;  %v23335_v31 = vsub.f32 %v15518_v9, %v15562_v34 }
 0xf5b   :  { %v15561_v38 = vmul.f32 0.0013020834, %v15539_v7  ;;  %v15595_v0 = vmul.f32 %v23319_v25, %v23319_v25  ;;  %v15596_v53 = vmul.f32 %v23322_v10, %v23322_v10  ;;  %v15597_v39 = vmul.f32 %v23325_v2, %v23325_v2 }
 0xf5c   :  { %v15553_v49 = vpop.xlane.xlu1 %15552  ;;  %v15598_v12 = vmul.f32 %v23327_v21, %v23327_v21  ;;  %v15599_v33 = vmul.f32 %v23333_v16, %v23333_v16 }
 0xf5d   :  { %v15563_v52 = vmul.f32 0.0013020834, %v15553_v49  ;;  %v15620_v61 = vadd.f32 %v15596_v53, %v15595_v0  ;;  %v23340_v56 = vsub.f32 %v23241_v40, %v15561_v38  ;;  %v23343_v27 = vsub.f32 %v23245_v18, %v15561_v38 }
 0xf5e   :  { %v23348_v15 = vsub.f32 %v23268_v37, %v15561_v38  ;;  %v23351_v41 = vsub.f32 %v23273_v8, %v15561_v38  ;;  %v15600_v37 = vmul.f32 %v23335_v31, %v23335_v31  ;;  %v23365_v8 = vsub.f32 %v23285_v29, %v15561_v38 }
 0xf5f   :  { %v15621_v9 = vadd.f32 %v15620_v61, %v15597_v39  ;;  %v15589_v20 = vmul.f32 %v23340_v56, %v23340_v56  ;;  %v15590_v40 = vmul.f32 %v23343_v27, %v23343_v27  ;;  %v23358_v43 = vsub.f32 %v23256_v30, %v15563_v52 }
 0xf60   :  { %v15560_v18 = vpop.xlane.xlu1 %15559  ;;  %v15591_v60 = vmul.f32 %v23348_v15, %v23348_v15  ;;  %v23370_v14 = vsub.f32 %v23259_v5, %v15563_v52  ;;  %v23372_v30 = vsub.f32 %v15512_v26, %v15561_v38  ;;  %v15592_v36 = vmul.f32 %v23351_v41, %v23351_v41 }
 0xf61   :  { %v15564_v45 = vmul.f32 0.0013020834, %v15560_v18  ;;  %v15622_v55 = vadd.f32 %v15621_v9, %v15598_v12  ;;  %v15613_v22 = vadd.f32 %v15590_v40, %v15589_v20  ;;  %v23377_v11 = vsub.f32 %v23280_v4, %v15563_v52 }
 0xf62   :  { %v23380_v29 = vsub.f32 %v23295_v23, %v15563_v52  ;;  %v15601_v47 = vmul.f32 %v23358_v43, %v23358_v43  ;;  %v15602_v5 = vmul.f32 %v23370_v14, %v23370_v14  ;;  %v15593_v26 = vmul.f32 %v23365_v8, %v23365_v8 }
 0xf63   :  { %v15623_v42 = vadd.f32 %v15622_v55, %v15599_v33  ;;  %v15614_v58 = vadd.f32 %v15613_v22, %v15591_v60  ;;  %v23388_v62 = vsub.f32 %v15523_v13, %v15563_v52  ;;  %v15603_v4 = vmul.f32 %v23377_v11, %v23377_v11  ;;  %v16094_v22 = vld [vmem:[#allocation2] sm:$0x1] }
 0xf64   :  { %v15627_v23 = vadd.f32 %v15602_v5, %v15601_v47  ;;  %v23393_v19 = vsub.f32 %v23262_v46, %v15564_v45  ;;  %v15594_v44 = vmul.f32 %v23372_v30, %v23372_v30  ;;  %v23398_v48 = vsub.f32 %v23306_v28, %v15563_v52 }
 0xf65   :  { %v15624_v24 = vadd.f32 %v15623_v42, %v15600_v37  ;;  %v15615_v59 = vadd.f32 %v15614_v58, %v15592_v36  ;;  %v23401_v34 = vsub.f32 %v23265_v51, %v15564_v45  ;;  %v23404_v13 = vsub.f32 %v23289_v17, %v15564_v45 }
 0xf66   :  { %v15604_v38 = vmul.f32 %v23380_v29, %v23380_v29  ;;  %v15628_v0 = vadd.f32 %v15627_v23, %v15603_v4  ;;  %v15607_v46 = vmul.f32 %v23393_v19, %v23393_v19  ;;  %v23411_v53 = vsub.f32 %v23302_v32, %v15564_v45  ;;  %v15531_v4 = vld [vmem:[#allocation23] sm:$0x3f] }
 0xf67   :  { %15625 = vadd.xlane.f32.xlu0 %v15624_v24  ;;  %v15616_v7 = vadd.f32 %v15615_v59, %v15593_v26  ;;  %v15608_v28 = vmul.f32 %v23401_v34, %v23401_v34  ;;  %v15605_v17 = vmul.f32 %v23388_v62, %v23388_v62  ;;  %v23418_v39 = vsub.f32 %v23310_v57, %v15564_v45  ;;  %v15532_v59 = vld [vmem:[#allocation24] sm:$0x3f] }
 0xf68   :  { %v15629_v49 = vadd.f32 %v15628_v0, %v15604_v38  ;;  %v15609_v52 = vmul.f32 %v23404_v13, %v23404_v13  ;;  %v15606_v32 = vmul.f32 %v23398_v48, %v23398_v48  ;;  %v23425_v9 = vsub.f32 %v23313_v54, %v15564_v45 }
 0xf69   :  { %v15617_v51 = vadd.f32 %v15616_v7, %v15594_v44  ;;  %v15634_v61 = vadd.f32 %v15608_v28, %v15607_v46  ;;  %v15610_v20 = vmul.f32 %v23411_v53, %v23411_v53  ;;  %v15611_v57 = vmul.f32 %v23418_v39, %v23418_v39 }
 0xf6a   :  { %v15630_v12 = vadd.f32 %v15629_v49, %v15605_v17  ;;  %v15612_v37 = vmul.f32 %v23425_v9, %v23425_v9  ;;  %v23434_v44 = vrot.slane %v15531_v4, %v23798_v35  ;;  %v23437_v7 = vrot.slane %v15531_v4, %v23799_v3  ;;  %v15956_v17 = vld [vmem:[#allocation26] sm:$0x3f] }
 0xf6b   :  { %15618 = vadd.xlane.f32.xlu0 %v15617_v51  ;;  %v15635_v40 = vadd.f32 %v15634_v61, %v15609_v52  ;;  %v23440_v38 = vrot.slane %v15531_v4, %v21927_v63  ;;  %v23443_v46 = vrot.slane %v15531_v4, %v21932_v1  ;;  %v23446_v28 = vrot.slane %v15531_v4, %v23792_v50 }
 0xf6c   :  { %v15631_v18 = vadd.f32 %v15630_v12, %v15606_v32  ;;  %v23449_v51 = vrot.slane %v15531_v4, %v23790_v6  ;;  %v23452_v52 = vrot.slane %v15532_v59, %v23798_v35  ;;  %v23455_v61 = vrot.slane %v15532_v59, %v23799_v3 }
 0xf6d   :  { %v15636_v33 = vadd.f32 %v15635_v40, %v15610_v20  ;;  %v23458_v32 = vrot.slane %v15532_v59, %v21927_v63  ;;  %v23461_v12 = vrot.slane %v15532_v59, %v21932_v1 }
 0xf6e   :  { %15632 = vadd.xlane.f32.xlu1 %v15631_v18 }
 0xf6f   :  { %v15637_v60 = vadd.f32 %v15636_v33, %v15611_v57  ;;  %v23466_v57 = vrot.slane %v15532_v59, %v23792_v50 }
 0xf71   :  { %v15638_v55 = vadd.f32 %v15637_v60, %v15612_v37  ;;  %v23471_v60 = vrot.slane %v15532_v59, %v23790_v6 }
 0xf73   :  { %15639 = vadd.xlane.f32.xlu1 %v15638_v55  ;;  %v23474_v55 = vrot.slane %v15956_v17, %v23798_v35 }
 0xf84   :  { %16097 = vperm.xlu1 %18392, %v16094_v22  }
 0xff4   :  { %v15626_v54 = vpop.xlane.xlu0 %15625 }
 0xff5   :  { %v15642_v45 = vmul.f32 0.0013020834, %v15626_v54 }
 0xff7   :  { %v15646_v36 = vadd.f32 1e-12, %v15642_v45 }
 0xff8   :  { %v15619_v42 = vpop.xlane.xlu0 %15618 }
 0xff9   :  { %21070 = vrsqrt.f32 %v15646_v36  ;;  %v15641_v58 = vmul.f32 0.0013020834, %v15619_v42  ;;  %v23487_v36 = vrot.slane %v15956_v17, %v21932_v1 }
 0xffb   :  { %v15645_v47 = vadd.f32 1e-12, %v15641_v58  ;;  %v15633_v5 = vpop.xlane.xlu1 %15632 }
 0xffc   :  { %v15643_v26 = vmul.f32 0.0013020834, %v15633_v5 }
 0xffd   :  { %21072 = vrsqrt.f32 %v15645_v47 }
 0xffe   :  { %v15647_v24 = vadd.f32 1e-12, %v15643_v26 }
0x1000   :  { %21074 = vrsqrt.f32 %v15647_v24  ;;  %v15640_v23 = vpop.xlane.xlu1 %15639 }
0x1001   :  { %v15644_v0 = vmul.f32 0.0013020834, %v15640_v23 }
0x1003   :  { %v21071_v49 = vpop.eup %21070  ;;  %v15648_v20 = vadd.f32 1e-12, %v15644_v0 }
0x1004   :  { %v15659_v40 = vmul.f32 %v21071_v49, %v23319_v25  ;;  %v15660_v18 = vmul.f32 %v21071_v49, %v23322_v10  ;;  %v15661_v33 = vmul.f32 %v21071_v49, %v23325_v2  ;;  %v15662_v37 = vmul.f32 %v21071_v49, %v23327_v21 }
0x1005   :  { %21076 = vrsqrt.f32 %v15648_v20  ;;  %v15663_v22 = vmul.f32 %v21071_v49, %v23333_v16  ;;  %v15664_v25 = vmul.f32 %v21071_v49, %v23335_v31  ;;  %v23479_v10 = vrot.slane %v15956_v17, %v23799_v3 }
0x1006   :  { %v15714_v45 = vmul.f32 %v23434_v44, %v15659_v40  ;;  %v15715_v2 = vmul.f32 %v23437_v7, %v15660_v18  ;;  %v23484_v21 = vrot.slane %v15956_v17, %v21927_v63  ;;  %v23492_v31 = vrot.slane %v15956_v17, %v23792_v50 }
0x1007   :  { %v21073_v54 = vpop.eup %21072  ;;  %v23495_v3 = vrot.slane %v15956_v17, %v23790_v6  ;;  %v15716_v63 = vmul.f32 %v23440_v38, %v15661_v33  ;;  %v15717_v5 = vmul.f32 %v23443_v46, %v15662_v37  ;;  %v15719_v50 = vmul.f32 %v23449_v51, %v15664_v25 }
0x1008   :  { %v15653_v42 = vmul.f32 %v21073_v54, %v23340_v56  ;;  %v15654_v16 = vmul.f32 %v21073_v54, %v23343_v27  ;;  %v15655_v58 = vmul.f32 %v21073_v54, %v23348_v15  ;;  %v15656_v47 = vmul.f32 %v21073_v54, %v23351_v41 }
0x1009   :  { %v15657_v1 = vmul.f32 %v21073_v54, %v23365_v8  ;;  %v15658_v56 = vmul.f32 %v21073_v54, %v23372_v30  ;;  %v15718_v27 = vmul.f32 %v23446_v28, %v15663_v22  ;;  %v15769_v15 = vadd.f32 %v23452_v52, %v15714_v45 }
0x100a   :  { %v21075_v26 = vpop.eup %21074  ;;  %v15708_v6 = vmul.f32 %v23434_v44, %v15653_v42  ;;  %v15709_v4 = vmul.f32 %v23437_v7, %v15654_v16  ;;  %v15770_v41 = vadd.f32 %v23455_v61, %v15715_v2  ;;  %v15710_v17 = vmul.f32 %v23440_v38, %v15655_v58 }
0x100b   :  { %v15665_v24 = vmul.f32 %v21075_v26, %v23358_v43  ;;  %v15666_v59 = vmul.f32 %v21075_v26, %v23370_v14  ;;  %v15667_v8 = vmul.f32 %v21075_v26, %v23377_v11  ;;  %v15668_v30 = vmul.f32 %v21075_v26, %v23380_v29 }
0x100c   :  { %v15669_v23 = vmul.f32 %v21075_v26, %v23388_v62  ;;  %v15670_v0 = vmul.f32 %v21075_v26, %v23398_v48  ;;  %v15711_v49 = vmul.f32 %v23443_v46, %v15656_v47  ;;  %v15712_v20 = vmul.f32 %v23446_v28, %v15657_v1 }
0x100d   :  { %v15713_v40 = vmul.f32 %v23449_v51, %v15658_v56  ;;  %v23520_v43 = vadd.f32 %v23458_v32, %v15716_v63  ;;  %v23523_v14 = vadd.f32 %v23461_v12, %v15717_v5  ;;  %v15720_v11 = vmul.f32 %v23434_v44, %v15665_v24 }
0x100e   :  { %v15721_v29 = vmul.f32 %v23437_v7, %v15666_v59  ;;  %v15763_v62 = vadd.f32 %v23452_v52, %v15708_v6  ;;  %v15764_v48 = vadd.f32 %v23455_v61, %v15709_v4  ;;  %v15722_v33 = vmul.f32 %v23440_v38, %v15667_v8 }
0x100f   :  { %v21077_v18 = vpop.eup %21076  ;;  %v15723_v37 = vmul.f32 %v23443_v46, %v15668_v30  ;;  %v15724_v22 = vmul.f32 %v23446_v28, %v15669_v23  ;;  %v15725_v25 = vmul.f32 %v23449_v51, %v15670_v0  ;;  %v15765_v47 = vadd.f32 %v23458_v32, %v15710_v17 }
0x1010   :  { %v15671_v54 = vmul.f32 %v21077_v18, %v23393_v19  ;;  %v15672_v45 = vmul.f32 %v21077_v18, %v23401_v34  ;;  %v15673_v2 = vmul.f32 %v21077_v18, %v23404_v13  ;;  %v15674_v42 = vmul.f32 %v21077_v18, %v23411_v53 }
0x1011   :  { %v15675_v16 = vmul.f32 %v21077_v18, %v23418_v39  ;;  %v15676_v58 = vmul.f32 %v21077_v18, %v23425_v9  ;;  %v15766_v63 = vadd.f32 %v23461_v12, %v15711_v49  ;;  %v15767_v5 = vadd.f32 %v23466_v57, %v15712_v20 }
0x1012   :  { %v15768_v1 = vadd.f32 %v23471_v60, %v15713_v40  ;;  %v23544_v19 = vadd.f32 %v23466_v57, %v15718_v27  ;;  %v23547_v34 = vadd.f32 %v23471_v60, %v15719_v50  ;;  %v15726_v13 = vmul.f32 %v23434_v44, %v15671_v54 }
0x1013   :  { %v15727_v53 = vmul.f32 %v23437_v7, %v15672_v45  ;;  %v23552_v39 = vadd.f32 %v23452_v52, %v15720_v11  ;;  %v23555_v9 = vadd.f32 %v23455_v61, %v15721_v29  ;;  %v15728_v56 = vmul.f32 %v23440_v38, %v15673_v2 }
0x1014   :  { %v15729_v26 = vmul.f32 %v23443_v46, %v15674_v42  ;;  %v15730_v27 = vmul.f32 %v23446_v28, %v15675_v16  ;;  %v15731_v6 = vmul.f32 %v23449_v51, %v15676_v58  ;;  %v23562_v50 = vadd.f32 %v23458_v32, %v15722_v33 }
0x1015   :  { %v23565_v44 = vadd.f32 %v23461_v12, %v15723_v37  ;;  %v23568_v7 = vadd.f32 %v23466_v57, %v15724_v22  ;;  %v23571_v4 = vadd.f32 %v23471_v60, %v15725_v25  ;;  %v15787_v24 = vrot.slane %v15763_v62, 4 }
0x1016   :  { %v15793_v38 = vrot.slane %v15764_v48, 4  ;;  %v15799_v59 = vrot.slane %v15765_v47, 4  ;;  %v15805_v46 = vrot.slane %v15766_v63, 4  ;;  %v15811_v8 = vrot.slane %v15767_v5, 4 }
0x1017   :  { %v15817_v28 = vrot.slane %v15768_v1, 4  ;;  %v15823_v30 = vrot.slane %v15769_v15, 4  ;;  %v15829_v51 = vrot.slane %v15770_v41, 4  ;;  %v15788_v23 = vadd.f32 %v15787_v24, %v15763_v62 }
0x1018   :  { %v15794_v0 = vadd.f32 %v15793_v38, %v15764_v48  ;;  %v15800_v17 = vadd.f32 %v15799_v59, %v15765_v47  ;;  %v15806_v49 = vadd.f32 %v15805_v46, %v15766_v63  ;;  %v15812_v20 = vadd.f32 %v15811_v8, %v15767_v5 }
0x1019   :  { %v15818_v40 = vadd.f32 %v15817_v28, %v15768_v1  ;;  %v15824_v11 = vadd.f32 %v15823_v30, %v15769_v15  ;;  %v15830_v29 = vadd.f32 %v15829_v51, %v15770_v41  ;;  %v15789_v18 = vrot.slane %v15788_v23, 2 }
0x101a   :  { %v15795_v33 = vrot.slane %v15794_v0, 2  ;;  %v15801_v37 = vrot.slane %v15800_v17, 2  ;;  %v15807_v22 = vrot.slane %v15806_v49, 2  ;;  %v15813_v25 = vrot.slane %v15812_v20, 2 }
0x101b   :  { %v15819_v54 = vrot.slane %v15818_v40, 2  ;;  %v15825_v45 = vrot.slane %v15824_v11, 2  ;;  %v15831_v2 = vrot.slane %v15830_v29, 2  ;;  %v15790_v42 = vadd.f32 %v15789_v18, %v15788_v23 }
0x101c   :  { %v15796_v16 = vadd.f32 %v15795_v33, %v15794_v0  ;;  %v15802_v58 = vadd.f32 %v15801_v37, %v15800_v17  ;;  %v15808_v35 = vadd.f32 %v15807_v22, %v15806_v49  ;;  %v15814_v62 = vadd.f32 %v15813_v25, %v15812_v20 }
0x101d   :  { %v15820_v48 = vadd.f32 %v15819_v54, %v15818_v40  ;;  %v15826_v47 = vadd.f32 %v15825_v45, %v15824_v11  ;;  %v15832_v63 = vadd.f32 %v15831_v2, %v15830_v29  ;;  %v23574_v5 = vadd.f32 %v23452_v52, %v15726_v13 }
0x101e   :  { %v23577_v15 = vadd.f32 %v23455_v61, %v15727_v53  ;;  %v15791_v41 = vrot.slane %v15790_v42, 1  ;;  %v15797_v1 = vrot.slane %v15796_v16, 1  ;;  %v23580_v24 = vadd.f32 %v23458_v32, %v15728_v56 }
0x101f   :  { %v23583_v38 = vadd.f32 %v23461_v12, %v15729_v26  ;;  %v23586_v59 = vadd.f32 %v23466_v57, %v15730_v27  ;;  %v23589_v46 = vadd.f32 %v23471_v60, %v15731_v6  ;;  %v15803_v8 = vrot.slane %v15802_v58, 1 }
0x1020   :  { %v15809_v52 = vrot.slane %v15808_v35, 1  ;;  %v15815_v13 = vrot.slane %v15814_v62, 1  ;;  %v15821_v28 = vrot.slane %v15820_v48, 1  ;;  %v23591_v61 = vadd.f32 %v15791_v41, %v15790_v42 }
0x1021   :  { %v23593_v53 = vadd.f32 %v15797_v1, %v15796_v16  ;;  %v15827_v30 = vrot.slane %v15826_v47, 1  ;;  %v15833_v32 = vrot.slane %v15832_v63, 1  ;;  %v15835_v56 = vrot.slane %v23520_v43, 4 }
0x1022   :  { %v15841_v12 = vrot.slane %v23523_v14, 4  ;;  %v15847_v57 = vrot.slane %v23544_v19, 4  ;;  %v15853_v26 = vrot.slane %v23547_v34, 4  ;;  %v15859_v60 = vrot.slane %v23552_v39, 4 }
0x1023   :  { %v15865_v27 = vrot.slane %v23555_v9, 4  ;;  %v15871_v6 = vrot.slane %v23562_v50, 4  ;;  %v15877_v51 = vrot.slane %v23565_v44, 4  ;;  %v15836_v23 = vadd.f32 %v15835_v56, %v23520_v43 }
0x1024   :  { %v15842_v0 = vadd.f32 %v15841_v12, %v23523_v14  ;;  %v15848_v17 = vadd.f32 %v15847_v57, %v23544_v19  ;;  %v15854_v49 = vadd.f32 %v15853_v26, %v23547_v34  ;;  %v15860_v20 = vadd.f32 %v15859_v60, %v23552_v39 }
0x1025   :  { %v15866_v40 = vadd.f32 %v15865_v27, %v23555_v9  ;;  %v15872_v11 = vadd.f32 %v15871_v6, %v23562_v50  ;;  %v15878_v29 = vadd.f32 %v15877_v51, %v23565_v44  ;;  %v15837_v18 = vrot.slane %v15836_v23, 2 }
0x1026   :  { %v15843_v33 = vrot.slane %v15842_v0, 2  ;;  %v15849_v37 = vrot.slane %v15848_v17, 2  ;;  %v15855_v22 = vrot.slane %v15854_v49, 2  ;;  %v15861_v25 = vrot.slane %v15860_v20, 2 }
0x1027   :  { %v15867_v43 = vrot.slane %v15866_v40, 2  ;;  %v15873_v54 = vrot.slane %v15872_v11, 2  ;;  %v15879_v14 = vrot.slane %v15878_v29, 2  ;;  %v15838_v45 = vadd.f32 %v15837_v18, %v15836_v23 }
0x1028   :  { %v15844_v19 = vadd.f32 %v15843_v33, %v15842_v0  ;;  %v15850_v2 = vadd.f32 %v15849_v37, %v15848_v17  ;;  %v15856_v34 = vadd.f32 %v15855_v22, %v15854_v49  ;;  %v15862_v42 = vadd.f32 %v15861_v25, %v15860_v20 }
0x1029   :  { %v15868_v39 = vadd.f32 %v15867_v43, %v15866_v40  ;;  %v15874_v16 = vadd.f32 %v15873_v54, %v15872_v11  ;;  %v15880_v9 = vadd.f32 %v15879_v14, %v15878_v29  ;;  %v23611_v41 = vadd.f32 %v15803_v8, %v15802_v58 }
0x102a   :  { %v23613_v50 = vadd.f32 %v15809_v52, %v15808_v35  ;;  %v15839_v44 = vrot.slane %v15838_v45, 1  ;;  %v15845_v1 = vrot.slane %v15844_v19, 1  ;;  %v23615_v56 = vadd.f32 %v15815_v13, %v15814_v62 }
0x102b   :  { %v23617_v12 = vadd.f32 %v15821_v28, %v15820_v48  ;;  %v23619_v57 = vadd.f32 %v15827_v30, %v15826_v47  ;;  %v23621_v26 = vadd.f32 %v15833_v32, %v15832_v63  ;;  %v15851_v60 = vrot.slane %v15850_v2, 1 }
0x102c   :  { %v15857_v27 = vrot.slane %v15856_v34, 1  ;;  %v15863_v6 = vrot.slane %v15862_v42, 1  ;;  %v15869_v51 = vrot.slane %v15868_v39, 1  ;;  %v23623_v23 = vadd.f32 %v15839_v44, %v15838_v45 }
0x102d   :  { %v23625_v58 = vadd.f32 %v15845_v1, %v15844_v19  ;;  %v15875_v35 = vrot.slane %v15874_v16, 1  ;;  %v15881_v8 = vrot.slane %v15880_v9, 1  ;;  %v15883_v52 = vrot.slane %v23568_v7, 4 }
0x102e   :  { %v15889_v62 = vrot.slane %v23571_v4, 4  ;;  %v15895_v48 = vrot.slane %v23574_v5, 4  ;;  %v15901_v47 = vrot.slane %v23577_v15, 4  ;;  %v15907_v63 = vrot.slane %v23580_v24, 4 }
0x102f   :  { %v15913_v13 = vrot.slane %v23583_v38, 4  ;;  %v15919_v28 = vrot.slane %v23586_v59, 4  ;;  %v15925_v30 = vrot.slane %v23589_v46, 4  ;;  %v15884_v32 = vadd.f32 %v15883_v52, %v23568_v7 }
0x1030   :  { %v15890_v0 = vadd.f32 %v15889_v62, %v23571_v4  ;;  %v15896_v17 = vadd.f32 %v15895_v48, %v23574_v5  ;;  %v15902_v49 = vadd.f32 %v15901_v47, %v23577_v15  ;;  %v15908_v20 = vadd.f32 %v15907_v63, %v23580_v24 }
0x1031   :  { %v15914_v40 = vadd.f32 %v15913_v13, %v23583_v38  ;;  %v15920_v11 = vadd.f32 %v15919_v28, %v23586_v59  ;;  %v15926_v29 = vadd.f32 %v15925_v30, %v23589_v46  ;;  %v15885_v18 = vrot.slane %v15884_v32, 2 }
0x1032   :  { %v15891_v33 = vrot.slane %v15890_v0, 2  ;;  %v15897_v37 = vrot.slane %v15896_v17, 2  ;;  %v15903_v22 = vrot.slane %v15902_v49, 2  ;;  %v15909_v25 = vrot.slane %v15908_v20, 2 }
0x1033   :  { %v15915_v7 = vrot.slane %v15914_v40, 2  ;;  %v15921_v43 = vrot.slane %v15920_v11, 2  ;;  %v15927_v4 = vrot.slane %v15926_v29, 2  ;;  %v15886_v54 = vadd.f32 %v15885_v18, %v15884_v32 }
0x1034   :  { %v15892_v5 = vadd.f32 %v15891_v33, %v15890_v0  ;;  %v15898_v14 = vadd.f32 %v15897_v37, %v15896_v17  ;;  %v15904_v15 = vadd.f32 %v15903_v22, %v15902_v49  ;;  %v15910_v45 = vadd.f32 %v15909_v25, %v15908_v20 }
0x1035   :  { %v15916_v24 = vadd.f32 %v15915_v7, %v15914_v40  ;;  %v15922_v19 = vadd.f32 %v15921_v43, %v15920_v11  ;;  %v15928_v38 = vadd.f32 %v15927_v4, %v15926_v29  ;;  %v15887_v44 = vrot.slane %v15886_v54, 1 }
0x1036   :  { %v15893_v59 = vrot.slane %v15892_v5, 1  ;;  %v15899_v1 = vrot.slane %v15898_v14, 1  ;;  %v15905_v46 = vrot.slane %v15904_v15, 1  ;;  %v15911_v52 = vrot.slane %v15910_v45, 1 }
0x1037   :  { %v15917_v62 = vrot.slane %v15916_v24, 1  ;;  %v15923_v48 = vrot.slane %v15922_v19, 1  ;;  %v15929_v47 = vrot.slane %v15928_v38, 1  ;;  %v15852_v63 = vadd.f32 %v15851_v60, %v15850_v2 }
0x1038   :  { %v15858_v13 = vadd.f32 %v15857_v27, %v15856_v34  ;;  %v15864_v28 = vadd.f32 %v15863_v6, %v15862_v42  ;;  %v15870_v30 = vadd.f32 %v15869_v51, %v15868_v39  ;;  %v15876_v32 = vadd.f32 %v15875_v35, %v15874_v16 }
0x1039   :  { %v15882_v0 = vadd.f32 %v15881_v8, %v15880_v9  ;;  %v15888_v17 = vadd.f32 %v15887_v44, %v15886_v54  ;;  %v15894_v49 = vadd.f32 %v15893_v59, %v15892_v5  ;;  %v15900_v20 = vadd.f32 %v15899_v1, %v15898_v14 }
0x103a   :  { %v15906_v40 = vadd.f32 %v15905_v46, %v15904_v15  ;;  %v15912_v11 = vadd.f32 %v15911_v52, %v15910_v45  ;;  %v15918_v29 = vadd.f32 %v15917_v62, %v15916_v24  ;;  %v15924_v18 = vadd.f32 %v15923_v48, %v15922_v19 }
0x103b   :  { %v15930_v33 = vadd.f32 %v15929_v47, %v15928_v38  ;;  %v15932_v37 = vmul.f32 0.125, %v23591_v61  ;;  %v15933_v22 = vmul.f32 0.125, %v23593_v53  ;;  %v15934_v25 = vmul.f32 0.125, %v23611_v41 }
0x103c   :  { %v15935_v2 = vmul.f32 0.125, %v23613_v50  ;;  %v15936_v34 = vmul.f32 0.125, %v23615_v56  ;;  %v23649_v42 = vmul.f32 0.125, %v23617_v12  ;;  %v15938_v39 = vmul.f32 0.125, %v23619_v57 }
0x103d   :  { %v15939_v16 = vmul.f32 0.125, %v23621_v26  ;;  %v15940_v9 = vmul.f32 0.125, %v23623_v23  ;;  %v15941_v60 = vmul.f32 0.125, %v23625_v58  ;;  %v15942_v61 = vmul.f32 0.125, %v15852_v63 }
0x103e   :  { %v15943_v53 = vmul.f32 0.125, %v15858_v13  ;;  %v15944_v27 = vmul.f32 0.125, %v15864_v28  ;;  %v15945_v41 = vmul.f32 0.125, %v15870_v30  ;;  %v15946_v50 = vmul.f32 0.125, %v15876_v32 }
0x103f   :  { %v15947_v6 = vmul.f32 0.125, %v15882_v0  ;;  %v15948_v56 = vmul.f32 0.125, %v15888_v17  ;;  %v15949_v51 = vmul.f32 0.125, %v15894_v49  ;;  %v15950_v12 = vmul.f32 0.125, %v15900_v20 }
0x1040   :  { %v15951_v35 = vmul.f32 0.125, %v15906_v40  ;;  %v15952_v57 = vmul.f32 0.125, %v15912_v11  ;;  %v15953_v8 = vmul.f32 0.125, %v15918_v29  ;;  %v15954_v26 = vmul.f32 0.125, %v15924_v18 }
0x1041   :  { %v15955_v7 = vmul.f32 0.125, %v15930_v33  ;;  %v15988_v23 = vmul.f32 %v23474_v55, %v15932_v37  ;;  %v15989_v58 = vmul.f32 %v23479_v10, %v15933_v22  ;;  %v15990_v43 = vmul.f32 %v23484_v21, %v15934_v25 }
0x1042   :  { %v15991_v4 = vmul.f32 %v23487_v36, %v15935_v2  ;;  %v15992_v54 = vmul.f32 %v23492_v31, %v15936_v34  ;;  %v15994_v5 = vmul.f32 %v23474_v55, %v15938_v39  ;;  %v15995_v14 = vmul.f32 %v23479_v10, %v15939_v16 }
0x1043   :  { %v15996_v15 = vmul.f32 %v23484_v21, %v15940_v9  ;;  %v16000_v45 = vmul.f32 %v23474_v55, %v15944_v27  ;;  %v16001_v24 = vmul.f32 %v23479_v10, %v15945_v41  ;;  %v15997_v19 = vmul.f32 %v23487_v36, %v15941_v60 }
0x1044   :  { %v16002_v38 = vmul.f32 %v23484_v21, %v15946_v50  ;;  %v16006_v44 = vmul.f32 %v23474_v55, %v15950_v12  ;;  %v16007_v59 = vmul.f32 %v23479_v10, %v15951_v35  ;;  %v15998_v1 = vmul.f32 %v23492_v31, %v15942_v61 }
0x1045   :  { %v15999_v46 = vmul.f32 %v23495_v3, %v15943_v53  ;;  %v16003_v52 = vmul.f32 %v23487_v36, %v15947_v6  ;;  %v16008_v62 = vmul.f32 %v23484_v21, %v15952_v57  ;;  %v16004_v48 = vmul.f32 %v23492_v31, %v15948_v56 }
0x1046   :  { %v16036_v47 = vrot.slane %v15994_v5, 7  ;;  %v16039_v63 = vrot.slane %v16000_v45, 6  ;;  %v16042_v13 = vrot.slane %v16006_v44, 5  ;;  %v16009_v28 = vmul.f32 %v23487_v36, %v15953_v8  ;;  %v23818_v44 = vld [vmem:[#allocation37_spill] sm:$0xff] }
0x1047   :  { %v16045_v30 = vrot.slane %v15995_v14, 7  ;;  %v16047_v32 = vrot.slane %v16001_v24, 6  ;;  %v16049_v55 = vrot.slane %v16007_v59, 5  ;;  %v16005_v10 = vmul.f32 %v23495_v3, %v15949_v51 }
0x1048   :  { %v16010_v0 = vmul.f32 %v23492_v31, %v15954_v26  ;;  %v16038_v17 = vsel %vm16037_vm2, %v16036_v47, %v15988_v23  ;;  %v16053_v49 = vrot.slane %v16002_v38, 6  ;;  %v16051_v40 = vrot.slane %v15996_v15, 7  ;;  %v16098_v15 = vpop.permute.xlu1 %16097 }
0x1049   :  { %v16041_v20 = vsel %vm16040_vm3, %v16039_v63, %v16038_v17  ;;  %v16046_v21 = vsel %vm16037_vm2, %v16045_v30, %v15989_v58  ;;  %v16055_v11 = vrot.slane %v16008_v62, 5  ;;  %v16057_v18 = vrot.slane %v15997_v19, 7  ;;  %v23817_v19 = vld [vmem:[#allocation38_spill] sm:$0xff] }
0x104a   :  { %v16044_v29 = vsel %vm16043_vm4, %v16042_v13, %v16041_v20  ;;  %v16048_v36 = vsel %vm16040_vm3, %v16047_v32, %v16046_v21  ;;  %v16059_v33 = vrot.slane %v16003_v52, 6  ;;  %v16011_v37 = vmul.f32 %v23495_v3, %v15955_v7 }
0x104b   :  { %v16050_v22 = vsel %vm16043_vm4, %v16049_v55, %v16048_v36  ;;  %v16052_v31 = vsel %vm16037_vm2, %v16051_v40, %v15990_v43  ;;  %v16061_v25 = vrot.slane %v16009_v28, 5  ;;  %v15993_v2 = vmul.f32 %v23495_v3, %v23649_v42 }
0x104c   :  { %v16054_v34 = vsel %vm16040_vm3, %v16053_v49, %v16052_v31  ;;  %v16058_v39 = vsel %vm16037_vm2, %v16057_v18, %v15991_v4  ;;  %v16065_v16 = vrot.slane %v16004_v48, 6  ;;  %v16063_v60 = vrot.slane %v15998_v1, 7 }
0x104d   :  { %v16056_v9 = vsel %vm16043_vm4, %v16055_v11, %v16054_v34  ;;  %v16067_v61 = vrot.slane %v16010_v0, 5  ;;  %v16081_v53 = vsel %vm7665_vm0, %v16044_v29, 0.0  ;;  %v16060_v27 = vsel %vm16040_vm3, %v16059_v33, %v16058_v39 }
0x104e   :  { %v16069_v41 = vrot.slane %v15999_v46, 7  ;;  %v16071_v50 = vrot.slane %v16005_v10, 6  ;;  %v16082_v6 = vsel %vm7665_vm0, %v16050_v22, 0.0  ;;  %v16062_v56 = vsel %vm16043_vm4, %v16061_v25, %v16060_v27 }
0x104f   :  { %v16064_v3 = vsel %vm16037_vm2, %v16063_v60, %v15992_v54  ;;  %v16073_v42 = vrot.slane %v16011_v37, 5  ;;  %v16083_v51 = vadd.f32 %v16082_v6, %v16081_v53  ;;  %v16084_v35 = vsel %vm7665_vm0, %v16056_v9, 0.0 }
0x1050   :  { %v16066_v12 = vsel %vm16040_vm3, %v16065_v16, %v16064_v3  ;;  %v16070_v8 = vsel %vm16037_vm2, %v16069_v41, %v15993_v2  ;;  %v16086_v23 = vsel %vm7665_vm0, %v16062_v56, 0.0  ;;  %v23816_v45 = vlaneseq }
0x1051   :  { %v16068_v57 = vsel %vm16043_vm4, %v16067_v61, %v16066_v12  ;;  %v16085_v26 = vadd.f32 %v16084_v35, %v16083_v51  ;;  %v16072_v7 = vsel %vm16040_vm3, %v16071_v50, %v16070_v8  ;;  %v16103_v38 = vrot.slane %v16098_v15, %v23817_v19 }
0x1052   :  { %v16074_v58 = vsel %vm16043_vm4, %v16073_v42, %v16072_v7  ;;  %v16088_v4 = vsel %vm7665_vm0, %v16068_v57, 0.0  ;;  %v16107_v24 = vand.u32 127, %v23816_v45 }
0x1053   :  { %v16087_v43 = vadd.f32 %v16086_v23, %v16085_v26  ;;  %v16090_v5 = vsel %vm7665_vm0, %v16074_v58, 0.0 }
0x1054   :  { %v16110_v59 = vsub.s32 %v16107_v24, %v23818_v44 }
0x1055   :  { %v16089_v54 = vadd.f32 %v16088_v4, %v16087_v43 }
0x1057   :  { %v16091_v14 = vadd.f32 %v16090_v5, %v16089_v54 }
0x1059   :  { %16092 = vadd.xlane.f32.xlu0 %v16091_v14 }
0x10e6   :  { %v16093_v1 = vpop.xlane.xlu0 %16092 }
0x10e7   :  { %v16104_v46 = vadd.f32 %v16103_v38, %v16093_v1 }
0x10e9   :  { %v16111_v52 = vrot.slane %v16104_v46, %v16110_v59 }
0x10eb   :  { %16114 = vst.msk [vmem:[#allocation27] sm:$0x1] %vm16113_vm5, %v16111_v52 }
0x10ec   :  { %21435 = shalt.err (!%p21432_p12)
}
0x10ed   :  { %s21436_s26 = scalar_lea.hbm %s23735_s16, 16 }
0x10ee   :  { %p21437_p13 = scmp.ne.s32.totalorder %s23735_s16, %s21436_s26  ;;  %p21440_p0 = scmp.lt.u32.totalorder %s21436_s26, %s23735_s16 }
0x10f0   :  { %p21442_p1 = pnand %p21440_p0, %p21437_p13 }
0x10f2   :  { %21445 = shalt.err (!%p21442_p1)
}
0x10f3   :  { %16124 = dma.vmem_to_hbm [thread:$0]  %s16122_s5, 16, %s23735_s16, [#allocation5]  }
0x10f4   :  { %21462 = dma.done.wait [#allocation5], 16  }
0x10f5   :  { %21463 = vsyncadd [#allocation5], 4294967280 }
0x10f6   :  { %16128 = vsyncpa [#allocation4], 1 }
0x10f7   :  { %16129 = vsyncpa [#allocation7], 1 }
0x10f8   :  { %16130 = vsyncpa [#allocation10], 1 }
0x10f9   :  { %16131 = vsyncpa [#allocation13], 1 }
0x10fa   :  { %16132 = vsyncpa [#allocation16], 1 }
0x10fb   :  { %16133 = vsyncpa [#allocation19], 1 }
0x10fc   :  { %16134 = vsyncpa [#allocation22], 1 }
0x10fd   :  { %16135 = vsyncpa [#allocation25], 1 }
0x10fe   :  { %16136 = vsyncpa [#allocation5], 1 }

</bundles_post_ra>
